<compile_context>
chip_gen: v6e
topology: v6e:2x2x1
jax: 0.10.0
libtpu: 0.0.40
codegen_flags: <defaults>
</compile_context>

<pallas_src>
import jax
import jax.numpy as jnp
from jax.experimental import pallas as pl
from jax.experimental.pallas import tpu as pltpu


# ---------------- fused encoder kernel (single invocation, in-kernel time loop) ----

def _encoder_kernel(src_ref, w_ih_ref, w_hh_ref, b_ref, h_out, c_out, xg_sc):
    T, B, E = src_ref.shape
    H = h_out.shape[-1]

    # Bulk input projection for all time steps: one well-shaped MXU matmul
    # (M = T*B) hoisted off the serial critical path.  B is a multiple of 8,
    # so the (T, B, E) -> (T*B, E) reshape is layout-free.
    x_all = src_ref[...].reshape(T * B, E).astype(jnp.bfloat16)
    xg_sc[...] = jnp.dot(x_all, w_ih_ref[...],
                         preferred_element_type=jnp.float32) + b_ref[...]

    h_out[...] = jnp.zeros_like(h_out)
    c_out[...] = jnp.zeros_like(c_out)

    def step(t, carry):
        off = pl.multiple_of(t * B, B)
        gates = xg_sc[pl.ds(off, B), :] + jnp.dot(
            h_out[...].astype(jnp.bfloat16), w_hh_ref[...],
            preferred_element_type=jnp.float32)
        # Gate order [i, f, o, g]: one sigmoid over the contiguous 3H slice.
        act = jax.nn.sigmoid(gates[:, :3 * H])
        i = act[:, 0 * H:1 * H]
        f = act[:, 1 * H:2 * H]
        o = act[:, 2 * H:3 * H]
        g = jnp.tanh(gates[:, 3 * H:4 * H])
        c_new = f * c_out[...] + i * g
        c_out[...] = c_new
        h_out[...] = o * jnp.tanh(c_new)
        return carry

    jax.lax.fori_loop(0, T, step, 0, unroll=True)


def run_encoder(src_emb, w_ih_bf16, w_hh_bf16, b):
    """src_emb: (T, B, E) f32; w_ih: (E, 4H) bf16; w_hh: (H, 4H) bf16; b: (1, 4H) f32
    -> final (h, c), each (B, H) f32."""
    T, B, E = src_emb.shape
    H = w_hh_bf16.shape[0]
    vmem = pl.BlockSpec(memory_space=pltpu.MemorySpace.VMEM)
    return pl.pallas_call(
        _encoder_kernel,
        out_shape=(jax.ShapeDtypeStruct((B, H), jnp.float32),
                   jax.ShapeDtypeStruct((B, H), jnp.float32)),
        in_specs=[vmem, vmem, vmem, vmem],
        out_specs=(vmem, vmem),
        scratch_shapes=[pltpu.VMEM((T * B, 4 * H), jnp.float32)],  # precomputed x-gates
    )(src_emb, w_ih_bf16, w_hh_bf16, b)


# ---------------- fused decoder kernel (single invocation, in-kernel time loop) ----

def _decoder_kernel(coins_ref,                                   # SMEM: (T+1,) int32
                    tf_emb_ref, w_ih_ref, w_hh_ref, b_ref,
                    emb_ref, fc_w_ref, fc_b_ref, h0_ref, c0_ref,
                    out_ref,
                    h_sc, c_sc, pred_sc, xg_cur, xg_sc):
    T, B, E = tf_emb_ref.shape
    H = h_sc.shape[-1]
    V = out_ref.shape[-1]

    # Bulk teacher-forced input projection for all steps (off the critical path).
    tf_all = tf_emb_ref[...].reshape(T * B, E).astype(jnp.bfloat16)
    xg_sc[...] = jnp.dot(tf_all, w_ih_ref[...],
                         preferred_element_type=jnp.float32) + b_ref[...]

    h_sc[...] = h0_ref[...]
    c_sc[...] = c0_ref[...]
    pred_sc[...] = jnp.zeros_like(pred_sc)

    def step(s, carry):
        # Step 0 always teacher-forces (x = target[0]); later steps flip the coin.
        use_teacher = jnp.logical_or(s == 0, coins_ref[s] != 0)

        @pl.when(use_teacher)
        def _():
            off = pl.multiple_of(s * B, B)
            xg_cur[...] = xg_sc[pl.ds(off, B), :]

        @pl.when(jnp.logical_not(use_teacher))
        def _():
            # Only pay for the pred @ W_ih matmul when the prediction is fed back.
            xg_cur[...] = jnp.dot(pred_sc[...].astype(jnp.bfloat16), w_ih_ref[...],
                                  preferred_element_type=jnp.float32) + b_ref[...]

        gates = xg_cur[...] + jnp.dot(h_sc[...].astype(jnp.bfloat16), w_hh_ref[...],
                                      preferred_element_type=jnp.float32)
        act = jax.nn.sigmoid(gates[:, :3 * H])
        i = act[:, 0 * H:1 * H]
        f = act[:, 1 * H:2 * H]
        o = act[:, 2 * H:3 * H]
        g = jnp.tanh(gates[:, 3 * H:4 * H])
        c_new = f * c_sc[...] + i * g
        h_new = o * jnp.tanh(c_new)
        c_sc[...] = c_new
        h_sc[...] = h_new

        # Vocab projection (lane-dense (B, V) tile).
        logits = jnp.dot(h_new.astype(jnp.bfloat16), fc_w_ref[...],
                         preferred_element_type=jnp.float32) + fc_b_ref[...]
        out_ref[s] = logits

        # Greedy best-guess embedding, only when the NEXT step consumes it
        # (coins is padded with 1 at index T, so the last step always skips this).
        @pl.when(coins_ref[s + 1] == 0)
        def _():
            lane = jax.lax.broadcasted_iota(jnp.int32, logits.shape, 1)   # (B, V)
            m = jnp.max(logits, axis=1, keepdims=True)
            cand = jnp.where(logits == m, lane, V)
            best = jnp.min(cand, axis=1, keepdims=True)                   # first-index tie break
            onehot = (lane == best).astype(jnp.bfloat16)
            pred_sc[...] = jnp.dot(onehot, emb_ref[...],
                                   preferred_element_type=jnp.float32)    # (B, E)
        return carry

    jax.lax.fori_loop(0, T, step, 0, unroll=True)


def run_decoder(coins_i32, tf_emb, w_ih_bf16, w_hh_bf16, b,
                emb_bf16, fc_w_bf16, fc_b, h0, c0):
    """coins_i32: (T+1,) int32 (coin per step, padded); tf_emb: (T, B, E) f32.
    Returns logits for reference time steps 1..T: (T, B, V) f32."""
    T, B, E = tf_emb.shape
    H = w_hh_bf16.shape[0]
    V = fc_w_bf16.shape[1]
    vmem = pl.BlockSpec(memory_space=pltpu.MemorySpace.VMEM)
    smem = pl.BlockSpec(memory_space=pltpu.MemorySpace.SMEM)
    # TODO(synk): at realistic vocab sizes, tile fc_w / emb over V and raise
    # vmem_limit_bytes instead of keeping them fully resident (v7x has 64 MiB VMEM).
    return pl.pallas_call(
        _decoder_kernel,
        out_shape=jax.ShapeDtypeStruct((T, B, V), jnp.float32),
        in_specs=[smem, vmem, vmem, vmem, vmem, vmem, vmem, vmem, vmem, vmem],
        out_specs=vmem,
        scratch_shapes=[
            pltpu.VMEM((B, H), jnp.float32),          # h state
            pltpu.VMEM((B, H), jnp.float32),          # c state
            pltpu.VMEM((B, E), jnp.float32),          # fed-back prediction embedding
            pltpu.VMEM((B, 4 * H), jnp.float32),      # current step x-gate contribution
            pltpu.VMEM((T * B, 4 * H), jnp.float32),  # precomputed teacher-forced x-gates
        ],
    )(coins_i32, tf_emb, w_ih_bf16, w_hh_bf16, b, emb_bf16, fc_w_bf16, fc_b, h0, c0)


# ---------------- Parameters (deterministic synthetic init) ----------------

def init_params(key, src_vocab, tgt_vocab, emb_dim, hidden):
    ks = jax.random.split(key, 9)
    s = 1.0 / float(hidden) ** 0.5
    u = lambda k, shape: jax.random.uniform(k, shape, jnp.float32, -s, s)
    # Gate columns are ordered [i, f, o, g]; b holds (b_ih + b_hh) folded together.
    return dict(
        enc_emb=u(ks[0], (src_vocab, emb_dim)),
        enc_w_ih=u(ks[1], (emb_dim, 4 * hidden)),
        enc_w_hh=u(ks[2], (hidden, 4 * hidden)),
        enc_b=u(ks[3], (1, 4 * hidden)),
        dec_emb=u(ks[4], (tgt_vocab, emb_dim)),
        dec_w_ih=u(ks[5], (emb_dim, 4 * hidden)),
        dec_w_hh=u(ks[6], (hidden, 4 * hidden)),
        dec_b=u(ks[7], (1, 4 * hidden)),
        fc_w=u(ks[8], (hidden, tgt_vocab)),
        fc_b=jnp.zeros((1, tgt_vocab), jnp.float32),
    )


# ---------------- Seq2Seq forward ----------------

def seq2seq_forward(params, source, target, teacher_force_ratio=0.5, tf_key=None):
    """source: (src_len, batch) int32, target: (tgt_len, batch) int32.
    Returns outputs: (tgt_len, batch, tgt_vocab) f32; outputs[0] stays zero,
    exactly like the PyTorch reference."""
    if tf_key is None:
        tf_key = jax.random.PRNGKey(0)

    src_len, batch = source.shape
    tgt_len = target.shape[0]
    tgt_vocab = params['fc_w'].shape[1]

    # bf16 copies for the MXU (f32 masters kept for numerics-sensitive adds).
    enc_w_ih = params['enc_w_ih'].astype(jnp.bfloat16)
    enc_w_hh = params['enc_w_hh'].astype(jnp.bfloat16)
    dec_w_ih = params['dec_w_ih'].astype(jnp.bfloat16)
    dec_w_hh = params['dec_w_hh'].astype(jnp.bfloat16)
    fc_w = params['fc_w'].astype(jnp.bfloat16)
    dec_emb_bf16 = params['dec_emb'].astype(jnp.bfloat16)

    # TODO(synk): embedding gathers stay in XLA glue; at realistic vocab/seq sizes
    # move them in-kernel via scalar-prefetched token ids + pl.Element row gather.
    src_emb = params['enc_emb'][source]                    # (src_len, B, E)
    h, c = run_encoder(src_emb, enc_w_ih, enc_w_hh, params['enc_b'])

    n_steps = tgt_len - 1
    # TODO(synk): python-side per-step random.random() replaced by a deterministic
    # jax.random coin per decoder step (same scalar-per-step semantics).
    coins = (jax.random.uniform(tf_key, (n_steps,)) < teacher_force_ratio).astype(jnp.int32)
    coins = jnp.concatenate([coins, jnp.ones((1,), jnp.int32)])  # pad: last step never feeds back

    tf_emb = params['dec_emb'][target[:n_steps]]           # (n_steps, B, E) teacher inputs
    logits_seq = run_decoder(coins, tf_emb, dec_w_ih, dec_w_hh, params['dec_b'],
                             dec_emb_bf16, fc_w, params['fc_b'], h, c)

    zeros0 = jnp.zeros((1, batch, tgt_vocab), jnp.float32)
    return jnp.concatenate([zeros0, logits_seq], axis=0)


# ---------------- main ----------------

if __name__ == "__main__":
    SRC_LEN, TGT_LEN = 10, 8
    BATCH = 16                      # >= 16 for bf16 sublane packing (perf review)
    EMB, HIDDEN = 128, 128          # lane-aligned: gates and state are whole vregs
    SRC_VOCAB, TGT_VOCAB = 64, 128  # lane-dense logits tile

    root = jax.random.PRNGKey(0)
    k_par, k_src, k_tgt, k_tf = jax.random.split(root, 4)

    params = init_params(k_par, SRC_VOCAB, TGT_VOCAB, EMB, HIDDEN)
    source = jax.random.randint(k_src, (SRC_LEN, BATCH), 0, SRC_VOCAB, dtype=jnp.int32)
    target = jax.random.randint(k_tgt, (TGT_LEN, BATCH), 0, TGT_VOCAB, dtype=jnp.int32)

    fwd = jax.jit(seq2seq_forward, static_argnames=("teacher_force_ratio",))
    outputs = fwd(params, source, target, teacher_force_ratio=0.5, tf_key=k_tf)
    outputs = jax.block_until_ready(outputs)

    assert outputs.shape == (TGT_LEN, BATCH, TGT_VOCAB)
    assert outputs.dtype == jnp.float32
    assert bool(jnp.all(outputs[0] == 0.0))
    assert bool(jnp.all(jnp.isfinite(outputs)))
    print("KERNEL_OK")
</pallas_src>

<mosaic_0001>
module attributes {stable_mosaic.version = 11 : i64} {
  func.func @_encoder_kernel(%arg0: memref<10x16x128xf32, #tpu.memory_space<vmem>>, %arg1: memref<128x512xbf16, #tpu.memory_space<vmem>>, %arg2: memref<128x512xbf16, #tpu.memory_space<vmem>>, %arg3: memref<1x512xf32, #tpu.memory_space<vmem>>, %arg4: memref<16x128xf32, #tpu.memory_space<vmem>>, %arg5: memref<16x128xf32, #tpu.memory_space<vmem>>, %arg6: memref<160x512xf32, #tpu.memory_space<vmem>>) attributes {dimension_semantics = [], scalar_prefetch = 0 : i64, scratch_operands = 1 : i64, tpu.core_type = #tpu.core_type<tc>} {
    %c0 = arith.constant 0 : index
    %c0_0 = arith.constant 0 : index
    %c0_1 = arith.constant 0 : index
    %0 = vector.load %arg0[%c0, %c0_0, %c0_1] : memref<10x16x128xf32, #tpu.memory_space<vmem>>, vector<10x16x128xf32>
    %1 = vector.shape_cast %0 : vector<10x16x128xf32> to vector<160x128xf32>
    %2 = arith.truncf %1 : vector<160x128xf32> to vector<160x128xbf16>
    %c0_2 = arith.constant 0 : index
    %c0_3 = arith.constant 0 : index
    %3 = vector.load %arg1[%c0_2, %c0_3] : memref<128x512xbf16, #tpu.memory_space<vmem>>, vector<128x512xbf16>
    %cst = arith.constant dense<0.000000e+00> : vector<160x512xf32>
    %4 = tpu.matmul %2, %3, %cst {dimension_numbers = #tpu.dot_dimension_numbers<[1], [0], [0], [1], [0, 0, 1, 1], [], []>} : vector<160x128xbf16>, vector<128x512xbf16>, vector<160x512xf32> -> vector<160x512xf32>
    %c0_4 = arith.constant 0 : index
    %c0_5 = arith.constant 0 : index
    %5 = vector.load %arg3[%c0_4, %c0_5] : memref<1x512xf32, #tpu.memory_space<vmem>>, vector<1x512xf32>
    %6 = vector.broadcast %5 : vector<1x512xf32> to vector<160x512xf32>
    %7 = arith.addf %4, %6 : vector<160x512xf32>
    %c0_6 = arith.constant 0 : index
    %c0_7 = arith.constant 0 : index
    %8 = vector.load %arg6[%c0_6, %c0_7] : memref<160x512xf32, #tpu.memory_space<vmem>>, vector<160x512xf32>
    tpu.vector_store %arg6[%c0_6, %c0_7], %7 {strides = array<i32>} : memref<160x512xf32, #tpu.memory_space<vmem>>, vector<160x512xf32>,
    %cst_8 = arith.constant 0.000000e+00 : f32
    %9 = vector.broadcast %cst_8 : f32 to vector<16x128xf32>
    %c0_9 = arith.constant 0 : index
    %c0_10 = arith.constant 0 : index
    %10 = vector.load %arg4[%c0_9, %c0_10] : memref<16x128xf32, #tpu.memory_space<vmem>>, vector<16x128xf32>
    tpu.vector_store %arg4[%c0_9, %c0_10], %9 {strides = array<i32>} : memref<16x128xf32, #tpu.memory_space<vmem>>, vector<16x128xf32>,
    %cst_11 = arith.constant 0.000000e+00 : f32
    %11 = vector.broadcast %cst_11 : f32 to vector<16x128xf32>
    %c0_12 = arith.constant 0 : index
    %c0_13 = arith.constant 0 : index
    %12 = vector.load %arg5[%c0_12, %c0_13] : memref<16x128xf32, #tpu.memory_space<vmem>>, vector<16x128xf32>
    tpu.vector_store %arg5[%c0_12, %c0_13], %11 {strides = array<i32>} : memref<16x128xf32, #tpu.memory_space<vmem>>, vector<16x128xf32>,
    %c0_i32 = arith.constant 0 : i32
    %c16_i32 = arith.constant 16 : i32
    %13 = arith.muli %c0_i32, %c16_i32 : i32
    %14 = tpu.assume_multiple %13, 16 : i32
    %15 = arith.index_cast %14 : i32 to index
    %c0_14 = arith.constant 0 : index
    %16 = vector.load %arg6[%15, %c0_14] : memref<160x512xf32, #tpu.memory_space<vmem>>, vector<16x512xf32>
    %c0_15 = arith.constant 0 : index
    %c0_16 = arith.constant 0 : index
    %17 = vector.load %arg4[%c0_15, %c0_16] : memref<16x128xf32, #tpu.memory_space<vmem>>, vector<16x128xf32>
    %18 = arith.truncf %17 : vector<16x128xf32> to vector<16x128xbf16>
    %c0_17 = arith.constant 0 : index
    %c0_18 = arith.constant 0 : index
    %19 = vector.load %arg2[%c0_17, %c0_18] : memref<128x512xbf16, #tpu.memory_space<vmem>>, vector<128x512xbf16>
    %cst_19 = arith.constant dense<0.000000e+00> : vector<16x512xf32>
    %20 = tpu.matmul %18, %19, %cst_19 {dimension_numbers = #tpu.dot_dimension_numbers<[1], [0], [0], [1], [0, 0, 1, 1], [], []>} : vector<16x128xbf16>, vector<128x512xbf16>, vector<16x512xf32> -> vector<16x512xf32>
    %21 = arith.addf %16, %20 : vector<16x512xf32>
    %22 = vector.extract_strided_slice %21 {offsets = [0, 0], sizes = [16, 384], strides = [1, 1]} : vector<16x512xf32> to vector<16x384xf32>
    %23 = arith.negf %22 : vector<16x384xf32>
    %24 = math.exp %23 : vector<16x384xf32>
    %cst_20 = arith.constant 1.000000e+00 : f32
    %25 = vector.broadcast %cst_20 : f32 to vector<16x384xf32>
    %26 = arith.addf %25, %24 : vector<16x384xf32>
    %27 = arith.divf %25, %26 : vector<16x384xf32>
    %28 = vector.extract_strided_slice %27 {offsets = [0, 0], sizes = [16, 128], strides = [1, 1]} : vector<16x384xf32> to vector<16x128xf32>
    %29 = vector.extract_strided_slice %27 {offsets = [0, 128], sizes = [16, 128], strides = [1, 1]} : vector<16x384xf32> to vector<16x128xf32>
    %30 = vector.extract_strided_slice %27 {offsets = [0, 256], sizes = [16, 128], strides = [1, 1]} : vector<16x384xf32> to vector<16x128xf32>
    %31 = vector.extract_strided_slice %21 {offsets = [0, 384], sizes = [16, 128], strides = [1, 1]} : vector<16x512xf32> to vector<16x128xf32>
    %32 = math.tanh %31 : vector<16x128xf32>
    %c0_21 = arith.constant 0 : index
    %c0_22 = arith.constant 0 : index
    %33 = vector.load %arg5[%c0_21, %c0_22] : memref<16x128xf32, #tpu.memory_space<vmem>>, vector<16x128xf32>
    %34 = arith.mulf %29, %33 : vector<16x128xf32>
    %35 = arith.mulf %28, %32 : vector<16x128xf32>
    %36 = arith.addf %34, %35 : vector<16x128xf32>
    %c0_23 = arith.constant 0 : index
    %c0_24 = arith.constant 0 : index
    %37 = vector.load %arg5[%c0_23, %c0_24] : memref<16x128xf32, #tpu.memory_space<vmem>>, vector<16x128xf32>
    tpu.vector_store %arg5[%c0_23, %c0_24], %36 {strides = array<i32>} : memref<16x128xf32, #tpu.memory_space<vmem>>, vector<16x128xf32>,
    %38 = math.tanh %36 : vector<16x128xf32>
    %39 = arith.mulf %30, %38 : vector<16x128xf32>
    %c0_25 = arith.constant 0 : index
    %c0_26 = arith.constant 0 : index
    %40 = vector.load %arg4[%c0_25, %c0_26] : memref<16x128xf32, #tpu.memory_space<vmem>>, vector<16x128xf32>
    tpu.vector_store %arg4[%c0_25, %c0_26], %39 {strides = array<i32>} : memref<16x128xf32, #tpu.memory_space<vmem>>, vector<16x128xf32>,
    %c1_i32 = arith.constant 1 : i32
    %c16_i32_27 = arith.constant 16 : i32
    %41 = arith.muli %c1_i32, %c16_i32_27 : i32
    %42 = tpu.assume_multiple %41, 16 : i32
    %43 = arith.index_cast %42 : i32 to index
    %c0_28 = arith.constant 0 : index
    %44 = vector.load %arg6[%43, %c0_28] : memref<160x512xf32, #tpu.memory_space<vmem>>, vector<16x512xf32>
    %c0_29 = arith.constant 0 : index
    %c0_30 = arith.constant 0 : index
    %45 = vector.load %arg4[%c0_29, %c0_30] : memref<16x128xf32, #tpu.memory_space<vmem>>, vector<16x128xf32>
    %46 = arith.truncf %45 : vector<16x128xf32> to vector<16x128xbf16>
    %c0_31 = arith.constant 0 : index
    %c0_32 = arith.constant 0 : index
    %47 = vector.load %arg2[%c0_31, %c0_32] : memref<128x512xbf16, #tpu.memory_space<vmem>>, vector<128x512xbf16>
    %cst_33 = arith.constant dense<0.000000e+00> : vector<16x512xf32>
    %48 = tpu.matmul %46, %47, %cst_33 {dimension_numbers = #tpu.dot_dimension_numbers<[1], [0], [0], [1], [0, 0, 1, 1], [], []>} : vector<16x128xbf16>, vector<128x512xbf16>, vector<16x512xf32> -> vector<16x512xf32>
    %49 = arith.addf %44, %48 : vector<16x512xf32>
    %50 = vector.extract_strided_slice %49 {offsets = [0, 0], sizes = [16, 384], strides = [1, 1]} : vector<16x512xf32> to vector<16x384xf32>
    %51 = arith.negf %50 : vector<16x384xf32>
    %52 = math.exp %51 : vector<16x384xf32>
    %cst_34 = arith.constant 1.000000e+00 : f32
    %53 = vector.broadcast %cst_34 : f32 to vector<16x384xf32>
    %54 = arith.addf %53, %52 : vector<16x384xf32>
    %55 = arith.divf %53, %54 : vector<16x384xf32>
    %56 = vector.extract_strided_slice %55 {offsets = [0, 0], sizes = [16, 128], strides = [1, 1]} : vector<16x384xf32> to vector<16x128xf32>
    %57 = vector.extract_strided_slice %55 {offsets = [0, 128], sizes = [16, 128], strides = [1, 1]} : vector<16x384xf32> to vector<16x128xf32>
    %58 = vector.extract_strided_slice %55 {offsets = [0, 256], sizes = [16, 128], strides = [1, 1]} : vector<16x384xf32> to vector<16x128xf32>
    %59 = vector.extract_strided_slice %49 {offsets = [0, 384], sizes = [16, 128], strides = [1, 1]} : vector<16x512xf32> to vector<16x128xf32>
    %60 = math.tanh %59 : vector<16x128xf32>
    %c0_35 = arith.constant 0 : index
    %c0_36 = arith.constant 0 : index
    %61 = vector.load %arg5[%c0_35, %c0_36] : memref<16x128xf32, #tpu.memory_space<vmem>>, vector<16x128xf32>
    %62 = arith.mulf %57, %61 : vector<16x128xf32>
    %63 = arith.mulf %56, %60 : vector<16x128xf32>
    %64 = arith.addf %62, %63 : vector<16x128xf32>
    %c0_37 = arith.constant 0 : index
    %c0_38 = arith.constant 0 : index
    %65 = vector.load %arg5[%c0_37, %c0_38] : memref<16x128xf32, #tpu.memory_space<vmem>>, vector<16x128xf32>
    tpu.vector_store %arg5[%c0_37, %c0_38], %64 {strides = array<i32>} : memref<16x128xf32, #tpu.memory_space<vmem>>, vector<16x128xf32>,
    %66 = math.tanh %64 : vector<16x128xf32>
    %67 = arith.mulf %58, %66 : vector<16x128xf32>
    %c0_39 = arith.constant 0 : index
    %c0_40 = arith.constant 0 : index
    %68 = vector.load %arg4[%c0_39, %c0_40] : memref<16x128xf32, #tpu.memory_space<vmem>>, vector<16x128xf32>
    tpu.vector_store %arg4[%c0_39, %c0_40], %67 {strides = array<i32>} : memref<16x128xf32, #tpu.memory_space<vmem>>, vector<16x128xf32>,
    %c2_i32 = arith.constant 2 : i32
    %c16_i32_41 = arith.constant 16 : i32
    %69 = arith.muli %c2_i32, %c16_i32_41 : i32
    %70 = tpu.assume_multiple %69, 16 : i32
    %71 = arith.index_cast %70 : i32 to index
    %c0_42 = arith.constant 0 : index
    %72 = vector.load %arg6[%71, %c0_42] : memref<160x512xf32, #tpu.memory_space<vmem>>, vector<16x512xf32>
    %c0_43 = arith.constant 0 : index
    %c0_44 = arith.constant 0 : index
    %73 = vector.load %arg4[%c0_43, %c0_44] : memref<16x128xf32, #tpu.memory_space<vmem>>, vector<16x128xf32>
    %74 = arith.truncf %73 : vector<16x128xf32> to vector<16x128xbf16>
    %c0_45 = arith.constant 0 : index
    %c0_46 = arith.constant 0 : index
    %75 = vector.load %arg2[%c0_45, %c0_46] : memref<128x512xbf16, #tpu.memory_space<vmem>>, vector<128x512xbf16>
    %cst_47 = arith.constant dense<0.000000e+00> : vector<16x512xf32>
    %76 = tpu.matmul %74, %75, %cst_47 {dimension_numbers = #tpu.dot_dimension_numbers<[1], [0], [0], [1], [0, 0, 1, 1], [], []>} : vector<16x128xbf16>, vector<128x512xbf16>, vector<16x512xf32> -> vector<16x512xf32>
    %77 = arith.addf %72, %76 : vector<16x512xf32>
    %78 = vector.extract_strided_slice %77 {offsets = [0, 0], sizes = [16, 384], strides = [1, 1]} : vector<16x512xf32> to vector<16x384xf32>
    %79 = arith.negf %78 : vector<16x384xf32>
    %80 = math.exp %79 : vector<16x384xf32>
    %cst_48 = arith.constant 1.000000e+00 : f32
    %81 = vector.broadcast %cst_48 : f32 to vector<16x384xf32>
    %82 = arith.addf %81, %80 : vector<16x384xf32>
    %83 = arith.divf %81, %82 : vector<16x384xf32>
    %84 = vector.extract_strided_slice %83 {offsets = [0, 0], sizes = [16, 128], strides = [1, 1]} : vector<16x384xf32> to vector<16x128xf32>
    %85 = vector.extract_strided_slice %83 {offsets = [0, 128], sizes = [16, 128], strides = [1, 1]} : vector<16x384xf32> to vector<16x128xf32>
    %86 = vector.extract_strided_slice %83 {offsets = [0, 256], sizes = [16, 128], strides = [1, 1]} : vector<16x384xf32> to vector<16x128xf32>
    %87 = vector.extract_strided_slice %77 {offsets = [0, 384], sizes = [16, 128], strides = [1, 1]} : vector<16x512xf32> to vector<16x128xf32>
    %88 = math.tanh %87 : vector<16x128xf32>
    %c0_49 = arith.constant 0 : index
    %c0_50 = arith.constant 0 : index
    %89 = vector.load %arg5[%c0_49, %c0_50] : memref<16x128xf32, #tpu.memory_space<vmem>>, vector<16x128xf32>
    %90 = arith.mulf %85, %89 : vector<16x128xf32>
    %91 = arith.mulf %84, %88 : vector<16x128xf32>
    %92 = arith.addf %90, %91 : vector<16x128xf32>
    %c0_51 = arith.constant 0 : index
    %c0_52 = arith.constant 0 : index
    %93 = vector.load %arg5[%c0_51, %c0_52] : memref<16x128xf32, #tpu.memory_space<vmem>>, vector<16x128xf32>
    tpu.vector_store %arg5[%c0_51, %c0_52], %92 {strides = array<i32>} : memref<16x128xf32, #tpu.memory_space<vmem>>, vector<16x128xf32>,
    %94 = math.tanh %92 : vector<16x128xf32>
    %95 = arith.mulf %86, %94 : vector<16x128xf32>
    %c0_53 = arith.constant 0 : index
    %c0_54 = arith.constant 0 : index
    %96 = vector.load %arg4[%c0_53, %c0_54] : memref<16x128xf32, #tpu.memory_space<vmem>>, vector<16x128xf32>
    tpu.vector_store %arg4[%c0_53, %c0_54], %95 {strides = array<i32>} : memref<16x128xf32, #tpu.memory_space<vmem>>, vector<16x128xf32>,
    %c3_i32 = arith.constant 3 : i32
    %c16_i32_55 = arith.constant 16 : i32
    %97 = arith.muli %c3_i32, %c16_i32_55 : i32
    %98 = tpu.assume_multiple %97, 16 : i32
    %99 = arith.index_cast %98 : i32 to index
    %c0_56 = arith.constant 0 : index
    %100 = vector.load %arg6[%99, %c0_56] : memref<160x512xf32, #tpu.memory_space<vmem>>, vector<16x512xf32>
    %c0_57 = arith.constant 0 : index
    %c0_58 = arith.constant 0 : index
    %101 = vector.load %arg4[%c0_57, %c0_58] : memref<16x128xf32, #tpu.memory_space<vmem>>, vector<16x128xf32>
    %102 = arith.truncf %101 : vector<16x128xf32> to vector<16x128xbf16>
    %c0_59 = arith.constant 0 : index
    %c0_60 = arith.constant 0 : index
    %103 = vector.load %arg2[%c0_59, %c0_60] : memref<128x512xbf16, #tpu.memory_space<vmem>>, vector<128x512xbf16>
    %cst_61 = arith.constant dense<0.000000e+00> : vector<16x512xf32>
    %104 = tpu.matmul %102, %103, %cst_61 {dimension_numbers = #tpu.dot_dimension_numbers<[1], [0], [0], [1], [0, 0, 1, 1], [], []>} : vector<16x128xbf16>, vector<128x512xbf16>, vector<16x512xf32> -> vector<16x512xf32>
    %105 = arith.addf %100, %104 : vector<16x512xf32>
    %106 = vector.extract_strided_slice %105 {offsets = [0, 0], sizes = [16, 384], strides = [1, 1]} : vector<16x512xf32> to vector<16x384xf32>
    %107 = arith.negf %106 : vector<16x384xf32>
    %108 = math.exp %107 : vector<16x384xf32>
    %cst_62 = arith.constant 1.000000e+00 : f32
    %109 = vector.broadcast %cst_62 : f32 to vector<16x384xf32>
    %110 = arith.addf %109, %108 : vector<16x384xf32>
    %111 = arith.divf %109, %110 : vector<16x384xf32>
    %112 = vector.extract_strided_slice %111 {offsets = [0, 0], sizes = [16, 128], strides = [1, 1]} : vector<16x384xf32> to vector<16x128xf32>
    %113 = vector.extract_strided_slice %111 {offsets = [0, 128], sizes = [16, 128], strides = [1, 1]} : vector<16x384xf32> to vector<16x128xf32>
    %114 = vector.extract_strided_slice %111 {offsets = [0, 256], sizes = [16, 128], strides = [1, 1]} : vector<16x384xf32> to vector<16x128xf32>
    %115 = vector.extract_strided_slice %105 {offsets = [0, 384], sizes = [16, 128], strides = [1, 1]} : vector<16x512xf32> to vector<16x128xf32>
    %116 = math.tanh %115 : vector<16x128xf32>
    %c0_63 = arith.constant 0 : index
    %c0_64 = arith.constant 0 : index
    %117 = vector.load %arg5[%c0_63, %c0_64] : memref<16x128xf32, #tpu.memory_space<vmem>>, vector<16x128xf32>
    %118 = arith.mulf %113, %117 : vector<16x128xf32>
    %119 = arith.mulf %112, %116 : vector<16x128xf32>
    %120 = arith.addf %118, %119 : vector<16x128xf32>
    %c0_65 = arith.constant 0 : index
    %c0_66 = arith.constant 0 : index
    %121 = vector.load %arg5[%c0_65, %c0_66] : memref<16x128xf32, #tpu.memory_space<vmem>>, vector<16x128xf32>
    tpu.vector_store %arg5[%c0_65, %c0_66], %120 {strides = array<i32>} : memref<16x128xf32, #tpu.memory_space<vmem>>, vector<16x128xf32>,
    %122 = math.tanh %120 : vector<16x128xf32>
    %123 = arith.mulf %114, %122 : vector<16x128xf32>
    %c0_67 = arith.constant 0 : index
    %c0_68 = arith.constant 0 : index
    %124 = vector.load %arg4[%c0_67, %c0_68] : memref<16x128xf32, #tpu.memory_space<vmem>>, vector<16x128xf32>
    tpu.vector_store %arg4[%c0_67, %c0_68], %123 {strides = array<i32>} : memref<16x128xf32, #tpu.memory_space<vmem>>, vector<16x128xf32>,
    %c4_i32 = arith.constant 4 : i32
    %c16_i32_69 = arith.constant 16 : i32
    %125 = arith.muli %c4_i32, %c16_i32_69 : i32
    %126 = tpu.assume_multiple %125, 16 : i32
    %127 = arith.index_cast %126 : i32 to index
    %c0_70 = arith.constant 0 : index
    %128 = vector.load %arg6[%127, %c0_70] : memref<160x512xf32, #tpu.memory_space<vmem>>, vector<16x512xf32>
    %c0_71 = arith.constant 0 : index
    %c0_72 = arith.constant 0 : index
    %129 = vector.load %arg4[%c0_71, %c0_72] : memref<16x128xf32, #tpu.memory_space<vmem>>, vector<16x128xf32>
    %130 = arith.truncf %129 : vector<16x128xf32> to vector<16x128xbf16>
    %c0_73 = arith.constant 0 : index
    %c0_74 = arith.constant 0 : index
    %131 = vector.load %arg2[%c0_73, %c0_74] : memref<128x512xbf16, #tpu.memory_space<vmem>>, vector<128x512xbf16>
    %cst_75 = arith.constant dense<0.000000e+00> : vector<16x512xf32>
    %132 = tpu.matmul %130, %131, %cst_75 {dimension_numbers = #tpu.dot_dimension_numbers<[1], [0], [0], [1], [0, 0, 1, 1], [], []>} : vector<16x128xbf16>, vector<128x512xbf16>, vector<16x512xf32> -> vector<16x512xf32>
    %133 = arith.addf %128, %132 : vector<16x512xf32>
    %134 = vector.extract_strided_slice %133 {offsets = [0, 0], sizes = [16, 384], strides = [1, 1]} : vector<16x512xf32> to vector<16x384xf32>
    %135 = arith.negf %134 : vector<16x384xf32>
    %136 = math.exp %135 : vector<16x384xf32>
    %cst_76 = arith.constant 1.000000e+00 : f32
    %137 = vector.broadcast %cst_76 : f32 to vector<16x384xf32>
    %138 = arith.addf %137, %136 : vector<16x384xf32>
    %139 = arith.divf %137, %138 : vector<16x384xf32>
    %140 = vector.extract_strided_slice %139 {offsets = [0, 0], sizes = [16, 128], strides = [1, 1]} : vector<16x384xf32> to vector<16x128xf32>
    %141 = vector.extract_strided_slice %139 {offsets = [0, 128], sizes = [16, 128], strides = [1, 1]} : vector<16x384xf32> to vector<16x128xf32>
    %142 = vector.extract_strided_slice %139 {offsets = [0, 256], sizes = [16, 128], strides = [1, 1]} : vector<16x384xf32> to vector<16x128xf32>
    %143 = vector.extract_strided_slice %133 {offsets = [0, 384], sizes = [16, 128], strides = [1, 1]} : vector<16x512xf32> to vector<16x128xf32>
    %144 = math.tanh %143 : vector<16x128xf32>
    %c0_77 = arith.constant 0 : index
    %c0_78 = arith.constant 0 : index
    %145 = vector.load %arg5[%c0_77, %c0_78] : memref<16x128xf32, #tpu.memory_space<vmem>>, vector<16x128xf32>
    %146 = arith.mulf %141, %145 : vector<16x128xf32>
    %147 = arith.mulf %140, %144 : vector<16x128xf32>
    %148 = arith.addf %146, %147 : vector<16x128xf32>
    %c0_79 = arith.constant 0 : index
    %c0_80 = arith.constant 0 : index
    %149 = vector.load %arg5[%c0_79, %c0_80] : memref<16x128xf32, #tpu.memory_space<vmem>>, vector<16x128xf32>
    tpu.vector_store %arg5[%c0_79, %c0_80], %148 {strides = array<i32>} : memref<16x128xf32, #tpu.memory_space<vmem>>, vector<16x128xf32>,
    %150 = math.tanh %148 : vector<16x128xf32>
    %151 = arith.mulf %142, %150 : vector<16x128xf32>
    %c0_81 = arith.constant 0 : index
    %c0_82 = arith.constant 0 : index
    %152 = vector.load %arg4[%c0_81, %c0_82] : memref<16x128xf32, #tpu.memory_space<vmem>>, vector<16x128xf32>
    tpu.vector_store %arg4[%c0_81, %c0_82], %151 {strides = array<i32>} : memref<16x128xf32, #tpu.memory_space<vmem>>, vector<16x128xf32>,
    %c5_i32 = arith.constant 5 : i32
    %c16_i32_83 = arith.constant 16 : i32
    %153 = arith.muli %c5_i32, %c16_i32_83 : i32
    %154 = tpu.assume_multiple %153, 16 : i32
    %155 = arith.index_cast %154 : i32 to index
    %c0_84 = arith.constant 0 : index
    %156 = vector.load %arg6[%155, %c0_84] : memref<160x512xf32, #tpu.memory_space<vmem>>, vector<16x512xf32>
    %c0_85 = arith.constant 0 : index
    %c0_86 = arith.constant 0 : index
    %157 = vector.load %arg4[%c0_85, %c0_86] : memref<16x128xf32, #tpu.memory_space<vmem>>, vector<16x128xf32>
    %158 = arith.truncf %157 : vector<16x128xf32> to vector<16x128xbf16>
    %c0_87 = arith.constant 0 : index
    %c0_88 = arith.constant 0 : index
    %159 = vector.load %arg2[%c0_87, %c0_88] : memref<128x512xbf16, #tpu.memory_space<vmem>>, vector<128x512xbf16>
    %cst_89 = arith.constant dense<0.000000e+00> : vector<16x512xf32>
    %160 = tpu.matmul %158, %159, %cst_89 {dimension_numbers = #tpu.dot_dimension_numbers<[1], [0], [0], [1], [0, 0, 1, 1], [], []>} : vector<16x128xbf16>, vector<128x512xbf16>, vector<16x512xf32> -> vector<16x512xf32>
    %161 = arith.addf %156, %160 : vector<16x512xf32>
    %162 = vector.extract_strided_slice %161 {offsets = [0, 0], sizes = [16, 384], strides = [1, 1]} : vector<16x512xf32> to vector<16x384xf32>
    %163 = arith.negf %162 : vector<16x384xf32>
    %164 = math.exp %163 : vector<16x384xf32>
    %cst_90 = arith.constant 1.000000e+00 : f32
    %165 = vector.broadcast %cst_90 : f32 to vector<16x384xf32>
    %166 = arith.addf %165, %164 : vector<16x384xf32>
    %167 = arith.divf %165, %166 : vector<16x384xf32>
    %168 = vector.extract_strided_slice %167 {offsets = [0, 0], sizes = [16, 128], strides = [1, 1]} : vector<16x384xf32> to vector<16x128xf32>
    %169 = vector.extract_strided_slice %167 {offsets = [0, 128], sizes = [16, 128], strides = [1, 1]} : vector<16x384xf32> to vector<16x128xf32>
    %170 = vector.extract_strided_slice %167 {offsets = [0, 256], sizes = [16, 128], strides = [1, 1]} : vector<16x384xf32> to vector<16x128xf32>
    %171 = vector.extract_strided_slice %161 {offsets = [0, 384], sizes = [16, 128], strides = [1, 1]} : vector<16x512xf32> to vector<16x128xf32>
    %172 = math.tanh %171 : vector<16x128xf32>
    %c0_91 = arith.constant 0 : index
    %c0_92 = arith.constant 0 : index
    %173 = vector.load %arg5[%c0_91, %c0_92] : memref<16x128xf32, #tpu.memory_space<vmem>>, vector<16x128xf32>
    %174 = arith.mulf %169, %173 : vector<16x128xf32>
    %175 = arith.mulf %168, %172 : vector<16x128xf32>
    %176 = arith.addf %174, %175 : vector<16x128xf32>
    %c0_93 = arith.constant 0 : index
    %c0_94 = arith.constant 0 : index
    %177 = vector.load %arg5[%c0_93, %c0_94] : memref<16x128xf32, #tpu.memory_space<vmem>>, vector<16x128xf32>
    tpu.vector_store %arg5[%c0_93, %c0_94], %176 {strides = array<i32>} : memref<16x128xf32, #tpu.memory_space<vmem>>, vector<16x128xf32>,
    %178 = math.tanh %176 : vector<16x128xf32>
    %179 = arith.mulf %170, %178 : vector<16x128xf32>
    %c0_95 = arith.constant 0 : index
    %c0_96 = arith.constant 0 : index
    %180 = vector.load %arg4[%c0_95, %c0_96] : memref<16x128xf32, #tpu.memory_space<vmem>>, vector<16x128xf32>
    tpu.vector_store %arg4[%c0_95, %c0_96], %179 {strides = array<i32>} : memref<16x128xf32, #tpu.memory_space<vmem>>, vector<16x128xf32>,
    %c6_i32 = arith.constant 6 : i32
    %c16_i32_97 = arith.constant 16 : i32
    %181 = arith.muli %c6_i32, %c16_i32_97 : i32
    %182 = tpu.assume_multiple %181, 16 : i32
    %183 = arith.index_cast %182 : i32 to index
    %c0_98 = arith.constant 0 : index
    %184 = vector.load %arg6[%183, %c0_98] : memref<160x512xf32, #tpu.memory_space<vmem>>, vector<16x512xf32>
    %c0_99 = arith.constant 0 : index
    %c0_100 = arith.constant 0 : index
    %185 = vector.load %arg4[%c0_99, %c0_100] : memref<16x128xf32, #tpu.memory_space<vmem>>, vector<16x128xf32>
    %186 = arith.truncf %185 : vector<16x128xf32> to vector<16x128xbf16>
    %c0_101 = arith.constant 0 : index
    %c0_102 = arith.constant 0 : index
    %187 = vector.load %arg2[%c0_101, %c0_102] : memref<128x512xbf16, #tpu.memory_space<vmem>>, vector<128x512xbf16>
    %cst_103 = arith.constant dense<0.000000e+00> : vector<16x512xf32>
    %188 = tpu.matmul %186, %187, %cst_103 {dimension_numbers = #tpu.dot_dimension_numbers<[1], [0], [0], [1], [0, 0, 1, 1], [], []>} : vector<16x128xbf16>, vector<128x512xbf16>, vector<16x512xf32> -> vector<16x512xf32>
    %189 = arith.addf %184, %188 : vector<16x512xf32>
    %190 = vector.extract_strided_slice %189 {offsets = [0, 0], sizes = [16, 384], strides = [1, 1]} : vector<16x512xf32> to vector<16x384xf32>
    %191 = arith.negf %190 : vector<16x384xf32>
    %192 = math.exp %191 : vector<16x384xf32>
    %cst_104 = arith.constant 1.000000e+00 : f32
    %193 = vector.broadcast %cst_104 : f32 to vector<16x384xf32>
    %194 = arith.addf %193, %192 : vector<16x384xf32>
    %195 = arith.divf %193, %194 : vector<16x384xf32>
    %196 = vector.extract_strided_slice %195 {offsets = [0, 0], sizes = [16, 128], strides = [1, 1]} : vector<16x384xf32> to vector<16x128xf32>
    %197 = vector.extract_strided_slice %195 {offsets = [0, 128], sizes = [16, 128], strides = [1, 1]} : vector<16x384xf32> to vector<16x128xf32>
    %198 = vector.extract_strided_slice %195 {offsets = [0, 256], sizes = [16, 128], strides = [1, 1]} : vector<16x384xf32> to vector<16x128xf32>
    %199 = vector.extract_strided_slice %189 {offsets = [0, 384], sizes = [16, 128], strides = [1, 1]} : vector<16x512xf32> to vector<16x128xf32>
    %200 = math.tanh %199 : vector<16x128xf32>
    %c0_105 = arith.constant 0 : index
    %c0_106 = arith.constant 0 : index
    %201 = vector.load %arg5[%c0_105, %c0_106] : memref<16x128xf32, #tpu.memory_space<vmem>>, vector<16x128xf32>
    %202 = arith.mulf %197, %201 : vector<16x128xf32>
    %203 = arith.mulf %196, %200 : vector<16x128xf32>
    %204 = arith.addf %202, %203 : vector<16x128xf32>
    %c0_107 = arith.constant 0 : index
    %c0_108 = arith.constant 0 : index
    %205 = vector.load %arg5[%c0_107, %c0_108] : memref<16x128xf32, #tpu.memory_space<vmem>>, vector<16x128xf32>
    tpu.vector_store %arg5[%c0_107, %c0_108], %204 {strides = array<i32>} : memref<16x128xf32, #tpu.memory_space<vmem>>, vector<16x128xf32>,
    %206 = math.tanh %204 : vector<16x128xf32>
    %207 = arith.mulf %198, %206 : vector<16x128xf32>
    %c0_109 = arith.constant 0 : index
    %c0_110 = arith.constant 0 : index
    %208 = vector.load %arg4[%c0_109, %c0_110] : memref<16x128xf32, #tpu.memory_space<vmem>>, vector<16x128xf32>
    tpu.vector_store %arg4[%c0_109, %c0_110], %207 {strides = array<i32>} : memref<16x128xf32, #tpu.memory_space<vmem>>, vector<16x128xf32>,
    %c7_i32 = arith.constant 7 : i32
    %c16_i32_111 = arith.constant 16 : i32
    %209 = arith.muli %c7_i32, %c16_i32_111 : i32
    %210 = tpu.assume_multiple %209, 16 : i32
    %211 = arith.index_cast %210 : i32 to index
    %c0_112 = arith.constant 0 : index
    %212 = vector.load %arg6[%211, %c0_112] : memref<160x512xf32, #tpu.memory_space<vmem>>, vector<16x512xf32>
    %c0_113 = arith.constant 0 : index
    %c0_114 = arith.constant 0 : index
    %213 = vector.load %arg4[%c0_113, %c0_114] : memref<16x128xf32, #tpu.memory_space<vmem>>, vector<16x128xf32>
    %214 = arith.truncf %213 : vector<16x128xf32> to vector<16x128xbf16>
    %c0_115 = arith.constant 0 : index
    %c0_116 = arith.constant 0 : index
    %215 = vector.load %arg2[%c0_115, %c0_116] : memref<128x512xbf16, #tpu.memory_space<vmem>>, vector<128x512xbf16>
    %cst_117 = arith.constant dense<0.000000e+00> : vector<16x512xf32>
    %216 = tpu.matmul %214, %215, %cst_117 {dimension_numbers = #tpu.dot_dimension_numbers<[1], [0], [0], [1], [0, 0, 1, 1], [], []>} : vector<16x128xbf16>, vector<128x512xbf16>, vector<16x512xf32> -> vector<16x512xf32>
    %217 = arith.addf %212, %216 : vector<16x512xf32>
    %218 = vector.extract_strided_slice %217 {offsets = [0, 0], sizes = [16, 384], strides = [1, 1]} : vector<16x512xf32> to vector<16x384xf32>
    %219 = arith.negf %218 : vector<16x384xf32>
    %220 = math.exp %219 : vector<16x384xf32>
    %cst_118 = arith.constant 1.000000e+00 : f32
    %221 = vector.broadcast %cst_118 : f32 to vector<16x384xf32>
    %222 = arith.addf %221, %220 : vector<16x384xf32>
    %223 = arith.divf %221, %222 : vector<16x384xf32>
    %224 = vector.extract_strided_slice %223 {offsets = [0, 0], sizes = [16, 128], strides = [1, 1]} : vector<16x384xf32> to vector<16x128xf32>
    %225 = vector.extract_strided_slice %223 {offsets = [0, 128], sizes = [16, 128], strides = [1, 1]} : vector<16x384xf32> to vector<16x128xf32>
    %226 = vector.extract_strided_slice %223 {offsets = [0, 256], sizes = [16, 128], strides = [1, 1]} : vector<16x384xf32> to vector<16x128xf32>
    %227 = vector.extract_strided_slice %217 {offsets = [0, 384], sizes = [16, 128], strides = [1, 1]} : vector<16x512xf32> to vector<16x128xf32>
    %228 = math.tanh %227 : vector<16x128xf32>
    %c0_119 = arith.constant 0 : index
    %c0_120 = arith.constant 0 : index
    %229 = vector.load %arg5[%c0_119, %c0_120] : memref<16x128xf32, #tpu.memory_space<vmem>>, vector<16x128xf32>
    %230 = arith.mulf %225, %229 : vector<16x128xf32>
    %231 = arith.mulf %224, %228 : vector<16x128xf32>
    %232 = arith.addf %230, %231 : vector<16x128xf32>
    %c0_121 = arith.constant 0 : index
    %c0_122 = arith.constant 0 : index
    %233 = vector.load %arg5[%c0_121, %c0_122] : memref<16x128xf32, #tpu.memory_space<vmem>>, vector<16x128xf32>
    tpu.vector_store %arg5[%c0_121, %c0_122], %232 {strides = array<i32>} : memref<16x128xf32, #tpu.memory_space<vmem>>, vector<16x128xf32>,
    %234 = math.tanh %232 : vector<16x128xf32>
    %235 = arith.mulf %226, %234 : vector<16x128xf32>
    %c0_123 = arith.constant 0 : index
    %c0_124 = arith.constant 0 : index
    %236 = vector.load %arg4[%c0_123, %c0_124] : memref<16x128xf32, #tpu.memory_space<vmem>>, vector<16x128xf32>
    tpu.vector_store %arg4[%c0_123, %c0_124], %235 {strides = array<i32>} : memref<16x128xf32, #tpu.memory_space<vmem>>, vector<16x128xf32>,
    %c8_i32 = arith.constant 8 : i32
    %c16_i32_125 = arith.constant 16 : i32
    %237 = arith.muli %c8_i32, %c16_i32_125 : i32
    %238 = tpu.assume_multiple %237, 16 : i32
    %239 = arith.index_cast %238 : i32 to index
    %c0_126 = arith.constant 0 : index
    %240 = vector.load %arg6[%239, %c0_126] : memref<160x512xf32, #tpu.memory_space<vmem>>, vector<16x512xf32>
    %c0_127 = arith.constant 0 : index
    %c0_128 = arith.constant 0 : index
    %241 = vector.load %arg4[%c0_127, %c0_128] : memref<16x128xf32, #tpu.memory_space<vmem>>, vector<16x128xf32>
    %242 = arith.truncf %241 : vector<16x128xf32> to vector<16x128xbf16>
    %c0_129 = arith.constant 0 : index
    %c0_130 = arith.constant 0 : index
    %243 = vector.load %arg2[%c0_129, %c0_130] : memref<128x512xbf16, #tpu.memory_space<vmem>>, vector<128x512xbf16>
    %cst_131 = arith.constant dense<0.000000e+00> : vector<16x512xf32>
    %244 = tpu.matmul %242, %243, %cst_131 {dimension_numbers = #tpu.dot_dimension_numbers<[1], [0], [0], [1], [0, 0, 1, 1], [], []>} : vector<16x128xbf16>, vector<128x512xbf16>, vector<16x512xf32> -> vector<16x512xf32>
    %245 = arith.addf %240, %244 : vector<16x512xf32>
    %246 = vector.extract_strided_slice %245 {offsets = [0, 0], sizes = [16, 384], strides = [1, 1]} : vector<16x512xf32> to vector<16x384xf32>
    %247 = arith.negf %246 : vector<16x384xf32>
    %248 = math.exp %247 : vector<16x384xf32>
    %cst_132 = arith.constant 1.000000e+00 : f32
    %249 = vector.broadcast %cst_132 : f32 to vector<16x384xf32>
    %250 = arith.addf %249, %248 : vector<16x384xf32>
    %251 = arith.divf %249, %250 : vector<16x384xf32>
    %252 = vector.extract_strided_slice %251 {offsets = [0, 0], sizes = [16, 128], strides = [1, 1]} : vector<16x384xf32> to vector<16x128xf32>
    %253 = vector.extract_strided_slice %251 {offsets = [0, 128], sizes = [16, 128], strides = [1, 1]} : vector<16x384xf32> to vector<16x128xf32>
    %254 = vector.extract_strided_slice %251 {offsets = [0, 256], sizes = [16, 128], strides = [1, 1]} : vector<16x384xf32> to vector<16x128xf32>
    %255 = vector.extract_strided_slice %245 {offsets = [0, 384], sizes = [16, 128], strides = [1, 1]} : vector<16x512xf32> to vector<16x128xf32>
    %256 = math.tanh %255 : vector<16x128xf32>
    %c0_133 = arith.constant 0 : index
    %c0_134 = arith.constant 0 : index
    %257 = vector.load %arg5[%c0_133, %c0_134] : memref<16x128xf32, #tpu.memory_space<vmem>>, vector<16x128xf32>
    %258 = arith.mulf %253, %257 : vector<16x128xf32>
    %259 = arith.mulf %252, %256 : vector<16x128xf32>
    %260 = arith.addf %258, %259 : vector<16x128xf32>
    %c0_135 = arith.constant 0 : index
    %c0_136 = arith.constant 0 : index
    %261 = vector.load %arg5[%c0_135, %c0_136] : memref<16x128xf32, #tpu.memory_space<vmem>>, vector<16x128xf32>
    tpu.vector_store %arg5[%c0_135, %c0_136], %260 {strides = array<i32>} : memref<16x128xf32, #tpu.memory_space<vmem>>, vector<16x128xf32>,
    %262 = math.tanh %260 : vector<16x128xf32>
    %263 = arith.mulf %254, %262 : vector<16x128xf32>
    %c0_137 = arith.constant 0 : index
    %c0_138 = arith.constant 0 : index
    %264 = vector.load %arg4[%c0_137, %c0_138] : memref<16x128xf32, #tpu.memory_space<vmem>>, vector<16x128xf32>
    tpu.vector_store %arg4[%c0_137, %c0_138], %263 {strides = array<i32>} : memref<16x128xf32, #tpu.memory_space<vmem>>, vector<16x128xf32>,
    %c9_i32 = arith.constant 9 : i32
    %c16_i32_139 = arith.constant 16 : i32
    %265 = arith.muli %c9_i32, %c16_i32_139 : i32
    %266 = tpu.assume_multiple %265, 16 : i32
    %267 = arith.index_cast %266 : i32 to index
    %c0_140 = arith.constant 0 : index
    %268 = vector.load %arg6[%267, %c0_140] : memref<160x512xf32, #tpu.memory_space<vmem>>, vector<16x512xf32>
    %c0_141 = arith.constant 0 : index
    %c0_142 = arith.constant 0 : index
    %269 = vector.load %arg4[%c0_141, %c0_142] : memref<16x128xf32, #tpu.memory_space<vmem>>, vector<16x128xf32>
    %270 = arith.truncf %269 : vector<16x128xf32> to vector<16x128xbf16>
    %c0_143 = arith.constant 0 : index
    %c0_144 = arith.constant 0 : index
    %271 = vector.load %arg2[%c0_143, %c0_144] : memref<128x512xbf16, #tpu.memory_space<vmem>>, vector<128x512xbf16>
    %cst_145 = arith.constant dense<0.000000e+00> : vector<16x512xf32>
    %272 = tpu.matmul %270, %271, %cst_145 {dimension_numbers = #tpu.dot_dimension_numbers<[1], [0], [0], [1], [0, 0, 1, 1], [], []>} : vector<16x128xbf16>, vector<128x512xbf16>, vector<16x512xf32> -> vector<16x512xf32>
    %273 = arith.addf %268, %272 : vector<16x512xf32>
    %274 = vector.extract_strided_slice %273 {offsets = [0, 0], sizes = [16, 384], strides = [1, 1]} : vector<16x512xf32> to vector<16x384xf32>
    %275 = arith.negf %274 : vector<16x384xf32>
    %276 = math.exp %275 : vector<16x384xf32>
    %cst_146 = arith.constant 1.000000e+00 : f32
    %277 = vector.broadcast %cst_146 : f32 to vector<16x384xf32>
    %278 = arith.addf %277, %276 : vector<16x384xf32>
    %279 = arith.divf %277, %278 : vector<16x384xf32>
    %280 = vector.extract_strided_slice %279 {offsets = [0, 0], sizes = [16, 128], strides = [1, 1]} : vector<16x384xf32> to vector<16x128xf32>
    %281 = vector.extract_strided_slice %279 {offsets = [0, 128], sizes = [16, 128], strides = [1, 1]} : vector<16x384xf32> to vector<16x128xf32>
    %282 = vector.extract_strided_slice %279 {offsets = [0, 256], sizes = [16, 128], strides = [1, 1]} : vector<16x384xf32> to vector<16x128xf32>
    %283 = vector.extract_strided_slice %273 {offsets = [0, 384], sizes = [16, 128], strides = [1, 1]} : vector<16x512xf32> to vector<16x128xf32>
    %284 = math.tanh %283 : vector<16x128xf32>
    %c0_147 = arith.constant 0 : index
    %c0_148 = arith.constant 0 : index
    %285 = vector.load %arg5[%c0_147, %c0_148] : memref<16x128xf32, #tpu.memory_space<vmem>>, vector<16x128xf32>
    %286 = arith.mulf %281, %285 : vector<16x128xf32>
    %287 = arith.mulf %280, %284 : vector<16x128xf32>
    %288 = arith.addf %286, %287 : vector<16x128xf32>
    %c0_149 = arith.constant 0 : index
    %c0_150 = arith.constant 0 : index
    %289 = vector.load %arg5[%c0_149, %c0_150] : memref<16x128xf32, #tpu.memory_space<vmem>>, vector<16x128xf32>
    tpu.vector_store %arg5[%c0_149, %c0_150], %288 {strides = array<i32>} : memref<16x128xf32, #tpu.memory_space<vmem>>, vector<16x128xf32>,
    %290 = math.tanh %288 : vector<16x128xf32>
    %291 = arith.mulf %282, %290 : vector<16x128xf32>
    %c0_151 = arith.constant 0 : index
    %c0_152 = arith.constant 0 : index
    %292 = vector.load %arg4[%c0_151, %c0_152] : memref<16x128xf32, #tpu.memory_space<vmem>>, vector<16x128xf32>
    tpu.vector_store %arg4[%c0_151, %c0_152], %291 {strides = array<i32>} : memref<16x128xf32, #tpu.memory_space<vmem>>, vector<16x128xf32>,
    %c10_i32 = arith.constant 10 : i32
    return
  }
}

module attributes {stable_mosaic.version = 11 : i64} {
  func.func @_decoder_kernel(%arg0: memref<8xi32, #tpu.memory_space<smem>>, %arg1: memref<7x16x128xf32, #tpu.memory_space<vmem>>, %arg2: memref<128x512xbf16, #tpu.memory_space<vmem>>, %arg3: memref<128x512xbf16, #tpu.memory_space<vmem>>, %arg4: memref<1x512xf32, #tpu.memory_space<vmem>>, %arg5: memref<128x128xbf16, #tpu.memory_space<vmem>>, %arg6: memref<128x128xbf16, #tpu.memory_space<vmem>>, %arg7: memref<1x128xf32, #tpu.memory_space<vmem>>, %arg8: memref<16x128xf32, #tpu.memory_space<vmem>>, %arg9: memref<16x128xf32, #tpu.memory_space<vmem>>, %arg10: memref<7x16x128xf32, #tpu.memory_space<vmem>>, %arg11: memref<16x128xf32, #tpu.memory_space<vmem>>, %arg12: memref<16x128xf32, #tpu.memory_space<vmem>>, %arg13: memref<16x128xf32, #tpu.memory_space<vmem>>, %arg14: memref<16x512xf32, #tpu.memory_space<vmem>>, %arg15: memref<112x512xf32, #tpu.memory_space<vmem>>) attributes {dimension_semantics = [], scalar_prefetch = 0 : i64, scratch_operands = 5 : i64, tpu.core_type = #tpu.core_type<tc>} {
    %c0 = arith.constant 0 : index
    %c0_0 = arith.constant 0 : index
    %c0_1 = arith.constant 0 : index
    %0 = vector.load %arg1[%c0, %c0_0, %c0_1] : memref<7x16x128xf32, #tpu.memory_space<vmem>>, vector<7x16x128xf32>
    %1 = vector.shape_cast %0 : vector<7x16x128xf32> to vector<112x128xf32>
    %2 = arith.truncf %1 : vector<112x128xf32> to vector<112x128xbf16>
    %c0_2 = arith.constant 0 : index
    %c0_3 = arith.constant 0 : index
    %3 = vector.load %arg2[%c0_2, %c0_3] : memref<128x512xbf16, #tpu.memory_space<vmem>>, vector<128x512xbf16>
    %cst = arith.constant dense<0.000000e+00> : vector<112x512xf32>
    %4 = tpu.matmul %2, %3, %cst {dimension_numbers = #tpu.dot_dimension_numbers<[1], [0], [0], [1], [0, 0, 1, 1], [], []>} : vector<112x128xbf16>, vector<128x512xbf16>, vector<112x512xf32> -> vector<112x512xf32>
    %c0_4 = arith.constant 0 : index
    %c0_5 = arith.constant 0 : index
    %5 = vector.load %arg4[%c0_4, %c0_5] : memref<1x512xf32, #tpu.memory_space<vmem>>, vector<1x512xf32>
    %6 = vector.broadcast %5 : vector<1x512xf32> to vector<112x512xf32>
    %7 = arith.addf %4, %6 : vector<112x512xf32>
    %c0_6 = arith.constant 0 : index
    %c0_7 = arith.constant 0 : index
    %8 = vector.load %arg15[%c0_6, %c0_7] : memref<112x512xf32, #tpu.memory_space<vmem>>, vector<112x512xf32>
    tpu.vector_store %arg15[%c0_6, %c0_7], %7 {strides = array<i32>} : memref<112x512xf32, #tpu.memory_space<vmem>>, vector<112x512xf32>,
    %c0_8 = arith.constant 0 : index
    %c0_9 = arith.constant 0 : index
    %9 = vector.load %arg8[%c0_8, %c0_9] : memref<16x128xf32, #tpu.memory_space<vmem>>, vector<16x128xf32>
    %c0_10 = arith.constant 0 : index
    %c0_11 = arith.constant 0 : index
    %10 = vector.load %arg11[%c0_10, %c0_11] : memref<16x128xf32, #tpu.memory_space<vmem>>, vector<16x128xf32>
    tpu.vector_store %arg11[%c0_10, %c0_11], %9 {strides = array<i32>} : memref<16x128xf32, #tpu.memory_space<vmem>>, vector<16x128xf32>,
    %c0_12 = arith.constant 0 : index
    %c0_13 = arith.constant 0 : index
    %11 = vector.load %arg9[%c0_12, %c0_13] : memref<16x128xf32, #tpu.memory_space<vmem>>, vector<16x128xf32>
    %c0_14 = arith.constant 0 : index
    %c0_15 = arith.constant 0 : index
    %12 = vector.load %arg12[%c0_14, %c0_15] : memref<16x128xf32, #tpu.memory_space<vmem>>, vector<16x128xf32>
    tpu.vector_store %arg12[%c0_14, %c0_15], %11 {strides = array<i32>} : memref<16x128xf32, #tpu.memory_space<vmem>>, vector<16x128xf32>,
    %cst_16 = arith.constant 0.000000e+00 : f32
    %13 = vector.broadcast %cst_16 : f32 to vector<16x128xf32>
    %c0_17 = arith.constant 0 : index
    %c0_18 = arith.constant 0 : index
    %14 = vector.load %arg13[%c0_17, %c0_18] : memref<16x128xf32, #tpu.memory_space<vmem>>, vector<16x128xf32>
    tpu.vector_store %arg13[%c0_17, %c0_18], %13 {strides = array<i32>} : memref<16x128xf32, #tpu.memory_space<vmem>>, vector<16x128xf32>,
    %c0_i32 = arith.constant 0 : i32
    %c0_i32_19 = arith.constant 0 : i32
    %15 = arith.cmpi eq, %c0_i32, %c0_i32_19 : i32
    %16 = arith.index_cast %c0_i32 : i32 to index
    %17 = memref.load %arg0[%16] : memref<8xi32, #tpu.memory_space<smem>>
    %c0_i32_20 = arith.constant 0 : i32
    %18 = arith.cmpi ne, %17, %c0_i32_20 : i32
    %19 = arith.ori %15, %18 : i1
    %20 = arith.extui %19 : i1 to i32
    %c0_i32_21 = arith.constant 0 : i32
    %21 = arith.cmpi ne, %20, %c0_i32_21 : i32
    scf.if %21 {
      %c16_i32 = arith.constant 16 : i32
      %372 = arith.muli %c0_i32, %c16_i32 : i32
      %373 = tpu.assume_multiple %372, 16 : i32
      %374 = arith.index_cast %373 : i32 to index
      %c0_221 = arith.constant 0 : index
      %375 = vector.load %arg15[%374, %c0_221] : memref<112x512xf32, #tpu.memory_space<vmem>>, vector<16x512xf32>
      %c0_222 = arith.constant 0 : index
      %c0_223 = arith.constant 0 : index
      %376 = vector.load %arg14[%c0_222, %c0_223] : memref<16x512xf32, #tpu.memory_space<vmem>>, vector<16x512xf32>
      tpu.vector_store %arg14[%c0_222, %c0_223], %375 {strides = array<i32>} : memref<16x512xf32, #tpu.memory_space<vmem>>, vector<16x512xf32>,
    } else {
    }
    %true = arith.constant true
    %22 = arith.xori %19, %true : i1
    %23 = arith.extui %22 : i1 to i32
    %c0_i32_22 = arith.constant 0 : i32
    %24 = arith.cmpi ne, %23, %c0_i32_22 : i32
    scf.if %24 {
      %c0_221 = arith.constant 0 : index
      %c0_222 = arith.constant 0 : index
      %372 = vector.load %arg13[%c0_221, %c0_222] : memref<16x128xf32, #tpu.memory_space<vmem>>, vector<16x128xf32>
      %373 = arith.truncf %372 : vector<16x128xf32> to vector<16x128xbf16>
      %c0_223 = arith.constant 0 : index
      %c0_224 = arith.constant 0 : index
      %374 = vector.load %arg2[%c0_223, %c0_224] : memref<128x512xbf16, #tpu.memory_space<vmem>>, vector<128x512xbf16>
      %cst_225 = arith.constant dense<0.000000e+00> : vector<16x512xf32>
      %375 = tpu.matmul %373, %374, %cst_225 {dimension_numbers = #tpu.dot_dimension_numbers<[1], [0], [0], [1], [0, 0, 1, 1], [], []>} : vector<16x128xbf16>, vector<128x512xbf16>, vector<16x512xf32> -> vector<16x512xf32>
      %c0_226 = arith.constant 0 : index
      %c0_227 = arith.constant 0 : index
      %376 = vector.load %arg4[%c0_226, %c0_227] : memref<1x512xf32, #tpu.memory_space<vmem>>, vector<1x512xf32>
      %377 = vector.broadcast %376 : vector<1x512xf32> to vector<16x512xf32>
      %378 = arith.addf %375, %377 : vector<16x512xf32>
      %c0_228 = arith.constant 0 : index
      %c0_229 = arith.constant 0 : index
      %379 = vector.load %arg14[%c0_228, %c0_229] : memref<16x512xf32, #tpu.memory_space<vmem>>, vector<16x512xf32>
      tpu.vector_store %arg14[%c0_228, %c0_229], %378 {strides = array<i32>} : memref<16x512xf32, #tpu.memory_space<vmem>>, vector<16x512xf32>,
    } else {
    }
    %c0_23 = arith.constant 0 : index
    %c0_24 = arith.constant 0 : index
    %25 = vector.load %arg14[%c0_23, %c0_24] : memref<16x512xf32, #tpu.memory_space<vmem>>, vector<16x512xf32>
    %c0_25 = arith.constant 0 : index
    %c0_26 = arith.constant 0 : index
    %26 = vector.load %arg11[%c0_25, %c0_26] : memref<16x128xf32, #tpu.memory_space<vmem>>, vector<16x128xf32>
    %27 = arith.truncf %26 : vector<16x128xf32> to vector<16x128xbf16>
    %c0_27 = arith.constant 0 : index
    %c0_28 = arith.constant 0 : index
    %28 = vector.load %arg3[%c0_27, %c0_28] : memref<128x512xbf16, #tpu.memory_space<vmem>>, vector<128x512xbf16>
    %cst_29 = arith.constant dense<0.000000e+00> : vector<16x512xf32>
    %29 = tpu.matmul %27, %28, %cst_29 {dimension_numbers = #tpu.dot_dimension_numbers<[1], [0], [0], [1], [0, 0, 1, 1], [], []>} : vector<16x128xbf16>, vector<128x512xbf16>, vector<16x512xf32> -> vector<16x512xf32>
    %30 = arith.addf %25, %29 : vector<16x512xf32>
    %31 = vector.extract_strided_slice %30 {offsets = [0, 0], sizes = [16, 384], strides = [1, 1]} : vector<16x512xf32> to vector<16x384xf32>
    %32 = arith.negf %31 : vector<16x384xf32>
    %33 = math.exp %32 : vector<16x384xf32>
    %cst_30 = arith.constant 1.000000e+00 : f32
    %34 = vector.broadcast %cst_30 : f32 to vector<16x384xf32>
    %35 = arith.addf %34, %33 : vector<16x384xf32>
    %36 = arith.divf %34, %35 : vector<16x384xf32>
    %37 = vector.extract_strided_slice %36 {offsets = [0, 0], sizes = [16, 128], strides = [1, 1]} : vector<16x384xf32> to vector<16x128xf32>
    %38 = vector.extract_strided_slice %36 {offsets = [0, 128], sizes = [16, 128], strides = [1, 1]} : vector<16x384xf32> to vector<16x128xf32>
    %39 = vector.extract_strided_slice %36 {offsets = [0, 256], sizes = [16, 128], strides = [1, 1]} : vector<16x384xf32> to vector<16x128xf32>
    %40 = vector.extract_strided_slice %30 {offsets = [0, 384], sizes = [16, 128], strides = [1, 1]} : vector<16x512xf32> to vector<16x128xf32>
    %41 = math.tanh %40 : vector<16x128xf32>
    %c0_31 = arith.constant 0 : index
    %c0_32 = arith.constant 0 : index
    %42 = vector.load %arg12[%c0_31, %c0_32] : memref<16x128xf32, #tpu.memory_space<vmem>>, vector<16x128xf32>
    %43 = arith.mulf %38, %42 : vector<16x128xf32>
    %44 = arith.mulf %37, %41 : vector<16x128xf32>
    %45 = arith.addf %43, %44 : vector<16x128xf32>
    %46 = math.tanh %45 : vector<16x128xf32>
    %47 = arith.mulf %39, %46 : vector<16x128xf32>
    %c0_33 = arith.constant 0 : index
    %c0_34 = arith.constant 0 : index
    %48 = vector.load %arg12[%c0_33, %c0_34] : memref<16x128xf32, #tpu.memory_space<vmem>>, vector<16x128xf32>
    tpu.vector_store %arg12[%c0_33, %c0_34], %45 {strides = array<i32>} : memref<16x128xf32, #tpu.memory_space<vmem>>, vector<16x128xf32>,
    %c0_35 = arith.constant 0 : index
    %c0_36 = arith.constant 0 : index
    %49 = vector.load %arg11[%c0_35, %c0_36] : memref<16x128xf32, #tpu.memory_space<vmem>>, vector<16x128xf32>
    tpu.vector_store %arg11[%c0_35, %c0_36], %47 {strides = array<i32>} : memref<16x128xf32, #tpu.memory_space<vmem>>, vector<16x128xf32>,
    %50 = arith.truncf %47 : vector<16x128xf32> to vector<16x128xbf16>
    %c0_37 = arith.constant 0 : index
    %c0_38 = arith.constant 0 : index
    %51 = vector.load %arg6[%c0_37, %c0_38] : memref<128x128xbf16, #tpu.memory_space<vmem>>, vector<128x128xbf16>
    %cst_39 = arith.constant dense<0.000000e+00> : vector<16x128xf32>
    %52 = tpu.matmul %50, %51, %cst_39 {dimension_numbers = #tpu.dot_dimension_numbers<[1], [0], [0], [1], [0, 0, 1, 1], [], []>} : vector<16x128xbf16>, vector<128x128xbf16>, vector<16x128xf32> -> vector<16x128xf32>
    %c0_40 = arith.constant 0 : index
    %c0_41 = arith.constant 0 : index
    %53 = vector.load %arg7[%c0_40, %c0_41] : memref<1x128xf32, #tpu.memory_space<vmem>>, vector<1x128xf32>
    %54 = vector.broadcast %53 : vector<1x128xf32> to vector<16x128xf32>
    %55 = arith.addf %52, %54 : vector<16x128xf32>
    %56 = arith.index_cast %c0_i32 : i32 to index
    %c0_42 = arith.constant 0 : index
    %c0_43 = arith.constant 0 : index
    %57 = vector.load %arg10[%56, %c0_42, %c0_43] : memref<7x16x128xf32, #tpu.memory_space<vmem>>, vector<1x16x128xf32>
    %58 = vector.shape_cast %57 : vector<1x16x128xf32> to vector<16x128xf32>
    %59 = vector.shape_cast %55 : vector<16x128xf32> to vector<1x16x128xf32>
    tpu.vector_store %arg10[%56, %c0_42, %c0_43], %59 {strides = array<i32>} : memref<7x16x128xf32, #tpu.memory_space<vmem>>, vector<1x16x128xf32>,
    %c1_i32 = arith.constant 1 : i32
    %60 = arith.addi %c0_i32, %c1_i32 : i32
    %61 = arith.index_cast %60 : i32 to index
    %62 = memref.load %arg0[%61] : memref<8xi32, #tpu.memory_space<smem>>
    %c0_i32_44 = arith.constant 0 : i32
    %63 = arith.cmpi eq, %62, %c0_i32_44 : i32
    %64 = arith.extui %63 : i1 to i32
    %c0_i32_45 = arith.constant 0 : i32
    %65 = arith.cmpi ne, %64, %c0_i32_45 : i32
    scf.if %65 {
      %372 = tpu.iota {dimensions = array<i32: 1>} : vector<16x128xi32>
      %cst_221 = arith.constant dense<0xFF800000> : vector<16xf32>
      %373 = vector.multi_reduction <maximumf>, %55, %cst_221 [1] : vector<16x128xf32> to vector<16xf32>
      %374 = vector.shape_cast %373 : vector<16xf32> to vector<16x1xf32>
      %375 = vector.broadcast %374 : vector<16x1xf32> to vector<16x128xf32>
      %376 = arith.cmpf oeq, %55, %375 : vector<16x128xf32>
      %c128_i32 = arith.constant 128 : i32
      %377 = vector.broadcast %c128_i32 : i32 to vector<16x128xi32>
      %378 = arith.select %376, %372, %377 : vector<16x128xi1>, vector<16x128xi32>
      %cst_222 = arith.constant dense<2147483647> : vector<16xi32>
      %379 = vector.multi_reduction <minsi>, %378, %cst_222 [1] : vector<16x128xi32> to vector<16xi32>
      %380 = vector.shape_cast %379 : vector<16xi32> to vector<16x1xi32>
      %381 = vector.broadcast %380 : vector<16x1xi32> to vector<16x128xi32>
      %382 = arith.cmpi eq, %372, %381 : vector<16x128xi32>
      %383 = arith.extui %382 : vector<16x128xi1> to vector<16x128xi32>
      %384 = arith.sitofp %383 : vector<16x128xi32> to vector<16x128xf32>
      %385 = arith.truncf %384 : vector<16x128xf32> to vector<16x128xbf16>
      %c0_223 = arith.constant 0 : index
      %c0_224 = arith.constant 0 : index
      %386 = vector.load %arg5[%c0_223, %c0_224] : memref<128x128xbf16, #tpu.memory_space<vmem>>, vector<128x128xbf16>
      %cst_225 = arith.constant dense<0.000000e+00> : vector<16x128xf32>
      %387 = tpu.matmul %385, %386, %cst_225 {dimension_numbers = #tpu.dot_dimension_numbers<[1], [0], [0], [1], [0, 0, 1, 1], [], []>} : vector<16x128xbf16>, vector<128x128xbf16>, vector<16x128xf32> -> vector<16x128xf32>
      %c0_226 = arith.constant 0 : index
      %c0_227 = arith.constant 0 : index
      %388 = vector.load %arg13[%c0_226, %c0_227] : memref<16x128xf32, #tpu.memory_space<vmem>>, vector<16x128xf32>
      tpu.vector_store %arg13[%c0_226, %c0_227], %387 {strides = array<i32>} : memref<16x128xf32, #tpu.memory_space<vmem>>, vector<16x128xf32>,
    } else {
    }
    %c1_i32_46 = arith.constant 1 : i32
    %c0_i32_47 = arith.constant 0 : i32
    %66 = arith.cmpi eq, %c1_i32_46, %c0_i32_47 : i32
    %67 = arith.index_cast %c1_i32_46 : i32 to index
    %68 = memref.load %arg0[%67] : memref<8xi32, #tpu.memory_space<smem>>
    %c0_i32_48 = arith.constant 0 : i32
    %69 = arith.cmpi ne, %68, %c0_i32_48 : i32
    %70 = arith.ori %66, %69 : i1
    %71 = arith.extui %70 : i1 to i32
    %c0_i32_49 = arith.constant 0 : i32
    %72 = arith.cmpi ne, %71, %c0_i32_49 : i32
    scf.if %72 {
      %c16_i32 = arith.constant 16 : i32
      %372 = arith.muli %c1_i32_46, %c16_i32 : i32
      %373 = tpu.assume_multiple %372, 16 : i32
      %374 = arith.index_cast %373 : i32 to index
      %c0_221 = arith.constant 0 : index
      %375 = vector.load %arg15[%374, %c0_221] : memref<112x512xf32, #tpu.memory_space<vmem>>, vector<16x512xf32>
      %c0_222 = arith.constant 0 : index
      %c0_223 = arith.constant 0 : index
      %376 = vector.load %arg14[%c0_222, %c0_223] : memref<16x512xf32, #tpu.memory_space<vmem>>, vector<16x512xf32>
      tpu.vector_store %arg14[%c0_222, %c0_223], %375 {strides = array<i32>} : memref<16x512xf32, #tpu.memory_space<vmem>>, vector<16x512xf32>,
    } else {
    }
    %true_50 = arith.constant true
    %73 = arith.xori %70, %true_50 : i1
    %74 = arith.extui %73 : i1 to i32
    %c0_i32_51 = arith.constant 0 : i32
    %75 = arith.cmpi ne, %74, %c0_i32_51 : i32
    scf.if %75 {
      %c0_221 = arith.constant 0 : index
      %c0_222 = arith.constant 0 : index
      %372 = vector.load %arg13[%c0_221, %c0_222] : memref<16x128xf32, #tpu.memory_space<vmem>>, vector<16x128xf32>
      %373 = arith.truncf %372 : vector<16x128xf32> to vector<16x128xbf16>
      %c0_223 = arith.constant 0 : index
      %c0_224 = arith.constant 0 : index
      %374 = vector.load %arg2[%c0_223, %c0_224] : memref<128x512xbf16, #tpu.memory_space<vmem>>, vector<128x512xbf16>
      %cst_225 = arith.constant dense<0.000000e+00> : vector<16x512xf32>
      %375 = tpu.matmul %373, %374, %cst_225 {dimension_numbers = #tpu.dot_dimension_numbers<[1], [0], [0], [1], [0, 0, 1, 1], [], []>} : vector<16x128xbf16>, vector<128x512xbf16>, vector<16x512xf32> -> vector<16x512xf32>
      %c0_226 = arith.constant 0 : index
      %c0_227 = arith.constant 0 : index
      %376 = vector.load %arg4[%c0_226, %c0_227] : memref<1x512xf32, #tpu.memory_space<vmem>>, vector<1x512xf32>
      %377 = vector.broadcast %376 : vector<1x512xf32> to vector<16x512xf32>
      %378 = arith.addf %375, %377 : vector<16x512xf32>
      %c0_228 = arith.constant 0 : index
      %c0_229 = arith.constant 0 : index
      %379 = vector.load %arg14[%c0_228, %c0_229] : memref<16x512xf32, #tpu.memory_space<vmem>>, vector<16x512xf32>
      tpu.vector_store %arg14[%c0_228, %c0_229], %378 {strides = array<i32>} : memref<16x512xf32, #tpu.memory_space<vmem>>, vector<16x512xf32>,
    } else {
    }
    %c0_52 = arith.constant 0 : index
    %c0_53 = arith.constant 0 : index
    %76 = vector.load %arg14[%c0_52, %c0_53] : memref<16x512xf32, #tpu.memory_space<vmem>>, vector<16x512xf32>
    %c0_54 = arith.constant 0 : index
    %c0_55 = arith.constant 0 : index
    %77 = vector.load %arg11[%c0_54, %c0_55] : memref<16x128xf32, #tpu.memory_space<vmem>>, vector<16x128xf32>
    %78 = arith.truncf %77 : vector<16x128xf32> to vector<16x128xbf16>
    %c0_56 = arith.constant 0 : index
    %c0_57 = arith.constant 0 : index
    %79 = vector.load %arg3[%c0_56, %c0_57] : memref<128x512xbf16, #tpu.memory_space<vmem>>, vector<128x512xbf16>
    %cst_58 = arith.constant dense<0.000000e+00> : vector<16x512xf32>
    %80 = tpu.matmul %78, %79, %cst_58 {dimension_numbers = #tpu.dot_dimension_numbers<[1], [0], [0], [1], [0, 0, 1, 1], [], []>} : vector<16x128xbf16>, vector<128x512xbf16>, vector<16x512xf32> -> vector<16x512xf32>
    %81 = arith.addf %76, %80 : vector<16x512xf32>
    %82 = vector.extract_strided_slice %81 {offsets = [0, 0], sizes = [16, 384], strides = [1, 1]} : vector<16x512xf32> to vector<16x384xf32>
    %83 = arith.negf %82 : vector<16x384xf32>
    %84 = math.exp %83 : vector<16x384xf32>
    %cst_59 = arith.constant 1.000000e+00 : f32
    %85 = vector.broadcast %cst_59 : f32 to vector<16x384xf32>
    %86 = arith.addf %85, %84 : vector<16x384xf32>
    %87 = arith.divf %85, %86 : vector<16x384xf32>
    %88 = vector.extract_strided_slice %87 {offsets = [0, 0], sizes = [16, 128], strides = [1, 1]} : vector<16x384xf32> to vector<16x128xf32>
    %89 = vector.extract_strided_slice %87 {offsets = [0, 128], sizes = [16, 128], strides = [1, 1]} : vector<16x384xf32> to vector<16x128xf32>
    %90 = vector.extract_strided_slice %87 {offsets = [0, 256], sizes = [16, 128], strides = [1, 1]} : vector<16x384xf32> to vector<16x128xf32>
    %91 = vector.extract_strided_slice %81 {offsets = [0, 384], sizes = [16, 128], strides = [1, 1]} : vector<16x512xf32> to vector<16x128xf32>
    %92 = math.tanh %91 : vector<16x128xf32>
    %c0_60 = arith.constant 0 : index
    %c0_61 = arith.constant 0 : index
    %93 = vector.load %arg12[%c0_60, %c0_61] : memref<16x128xf32, #tpu.memory_space<vmem>>, vector<16x128xf32>
    %94 = arith.mulf %89, %93 : vector<16x128xf32>
    %95 = arith.mulf %88, %92 : vector<16x128xf32>
    %96 = arith.addf %94, %95 : vector<16x128xf32>
    %97 = math.tanh %96 : vector<16x128xf32>
    %98 = arith.mulf %90, %97 : vector<16x128xf32>
    %c0_62 = arith.constant 0 : index
    %c0_63 = arith.constant 0 : index
    %99 = vector.load %arg12[%c0_62, %c0_63] : memref<16x128xf32, #tpu.memory_space<vmem>>, vector<16x128xf32>
    tpu.vector_store %arg12[%c0_62, %c0_63], %96 {strides = array<i32>} : memref<16x128xf32, #tpu.memory_space<vmem>>, vector<16x128xf32>,
    %c0_64 = arith.constant 0 : index
    %c0_65 = arith.constant 0 : index
    %100 = vector.load %arg11[%c0_64, %c0_65] : memref<16x128xf32, #tpu.memory_space<vmem>>, vector<16x128xf32>
    tpu.vector_store %arg11[%c0_64, %c0_65], %98 {strides = array<i32>} : memref<16x128xf32, #tpu.memory_space<vmem>>, vector<16x128xf32>,
    %101 = arith.truncf %98 : vector<16x128xf32> to vector<16x128xbf16>
    %c0_66 = arith.constant 0 : index
    %c0_67 = arith.constant 0 : index
    %102 = vector.load %arg6[%c0_66, %c0_67] : memref<128x128xbf16, #tpu.memory_space<vmem>>, vector<128x128xbf16>
    %cst_68 = arith.constant dense<0.000000e+00> : vector<16x128xf32>
    %103 = tpu.matmul %101, %102, %cst_68 {dimension_numbers = #tpu.dot_dimension_numbers<[1], [0], [0], [1], [0, 0, 1, 1], [], []>} : vector<16x128xbf16>, vector<128x128xbf16>, vector<16x128xf32> -> vector<16x128xf32>
    %c0_69 = arith.constant 0 : index
    %c0_70 = arith.constant 0 : index
    %104 = vector.load %arg7[%c0_69, %c0_70] : memref<1x128xf32, #tpu.memory_space<vmem>>, vector<1x128xf32>
    %105 = vector.broadcast %104 : vector<1x128xf32> to vector<16x128xf32>
    %106 = arith.addf %103, %105 : vector<16x128xf32>
    %107 = arith.index_cast %c1_i32_46 : i32 to index
    %c0_71 = arith.constant 0 : index
    %c0_72 = arith.constant 0 : index
    %108 = vector.load %arg10[%107, %c0_71, %c0_72] : memref<7x16x128xf32, #tpu.memory_space<vmem>>, vector<1x16x128xf32>
    %109 = vector.shape_cast %108 : vector<1x16x128xf32> to vector<16x128xf32>
    %110 = vector.shape_cast %106 : vector<16x128xf32> to vector<1x16x128xf32>
    tpu.vector_store %arg10[%107, %c0_71, %c0_72], %110 {strides = array<i32>} : memref<7x16x128xf32, #tpu.memory_space<vmem>>, vector<1x16x128xf32>,
    %c1_i32_73 = arith.constant 1 : i32
    %111 = arith.addi %c1_i32_46, %c1_i32_73 : i32
    %112 = arith.index_cast %111 : i32 to index
    %113 = memref.load %arg0[%112] : memref<8xi32, #tpu.memory_space<smem>>
    %c0_i32_74 = arith.constant 0 : i32
    %114 = arith.cmpi eq, %113, %c0_i32_74 : i32
    %115 = arith.extui %114 : i1 to i32
    %c0_i32_75 = arith.constant 0 : i32
    %116 = arith.cmpi ne, %115, %c0_i32_75 : i32
    scf.if %116 {
      %372 = tpu.iota {dimensions = array<i32: 1>} : vector<16x128xi32>
      %cst_221 = arith.constant dense<0xFF800000> : vector<16xf32>
      %373 = vector.multi_reduction <maximumf>, %106, %cst_221 [1] : vector<16x128xf32> to vector<16xf32>
      %374 = vector.shape_cast %373 : vector<16xf32> to vector<16x1xf32>
      %375 = vector.broadcast %374 : vector<16x1xf32> to vector<16x128xf32>
      %376 = arith.cmpf oeq, %106, %375 : vector<16x128xf32>
      %c128_i32 = arith.constant 128 : i32
      %377 = vector.broadcast %c128_i32 : i32 to vector<16x128xi32>
      %378 = arith.select %376, %372, %377 : vector<16x128xi1>, vector<16x128xi32>
      %cst_222 = arith.constant dense<2147483647> : vector<16xi32>
      %379 = vector.multi_reduction <minsi>, %378, %cst_222 [1] : vector<16x128xi32> to vector<16xi32>
      %380 = vector.shape_cast %379 : vector<16xi32> to vector<16x1xi32>
      %381 = vector.broadcast %380 : vector<16x1xi32> to vector<16x128xi32>
      %382 = arith.cmpi eq, %372, %381 : vector<16x128xi32>
      %383 = arith.extui %382 : vector<16x128xi1> to vector<16x128xi32>
      %384 = arith.sitofp %383 : vector<16x128xi32> to vector<16x128xf32>
      %385 = arith.truncf %384 : vector<16x128xf32> to vector<16x128xbf16>
      %c0_223 = arith.constant 0 : index
      %c0_224 = arith.constant 0 : index
      %386 = vector.load %arg5[%c0_223, %c0_224] : memref<128x128xbf16, #tpu.memory_space<vmem>>, vector<128x128xbf16>
      %cst_225 = arith.constant dense<0.000000e+00> : vector<16x128xf32>
      %387 = tpu.matmul %385, %386, %cst_225 {dimension_numbers = #tpu.dot_dimension_numbers<[1], [0], [0], [1], [0, 0, 1, 1], [], []>} : vector<16x128xbf16>, vector<128x128xbf16>, vector<16x128xf32> -> vector<16x128xf32>
      %c0_226 = arith.constant 0 : index
      %c0_227 = arith.constant 0 : index
      %388 = vector.load %arg13[%c0_226, %c0_227] : memref<16x128xf32, #tpu.memory_space<vmem>>, vector<16x128xf32>
      tpu.vector_store %arg13[%c0_226, %c0_227], %387 {strides = array<i32>} : memref<16x128xf32, #tpu.memory_space<vmem>>, vector<16x128xf32>,
    } else {
    }
    %c2_i32 = arith.constant 2 : i32
    %c0_i32_76 = arith.constant 0 : i32
    %117 = arith.cmpi eq, %c2_i32, %c0_i32_76 : i32
    %118 = arith.index_cast %c2_i32 : i32 to index
    %119 = memref.load %arg0[%118] : memref<8xi32, #tpu.memory_space<smem>>
    %c0_i32_77 = arith.constant 0 : i32
    %120 = arith.cmpi ne, %119, %c0_i32_77 : i32
    %121 = arith.ori %117, %120 : i1
    %122 = arith.extui %121 : i1 to i32
    %c0_i32_78 = arith.constant 0 : i32
    %123 = arith.cmpi ne, %122, %c0_i32_78 : i32
    scf.if %123 {
      %c16_i32 = arith.constant 16 : i32
      %372 = arith.muli %c2_i32, %c16_i32 : i32
      %373 = tpu.assume_multiple %372, 16 : i32
      %374 = arith.index_cast %373 : i32 to index
      %c0_221 = arith.constant 0 : index
      %375 = vector.load %arg15[%374, %c0_221] : memref<112x512xf32, #tpu.memory_space<vmem>>, vector<16x512xf32>
      %c0_222 = arith.constant 0 : index
      %c0_223 = arith.constant 0 : index
      %376 = vector.load %arg14[%c0_222, %c0_223] : memref<16x512xf32, #tpu.memory_space<vmem>>, vector<16x512xf32>
      tpu.vector_store %arg14[%c0_222, %c0_223], %375 {strides = array<i32>} : memref<16x512xf32, #tpu.memory_space<vmem>>, vector<16x512xf32>,
    } else {
    }
    %true_79 = arith.constant true
    %124 = arith.xori %121, %true_79 : i1
    %125 = arith.extui %124 : i1 to i32
    %c0_i32_80 = arith.constant 0 : i32
    %126 = arith.cmpi ne, %125, %c0_i32_80 : i32
    scf.if %126 {
      %c0_221 = arith.constant 0 : index
      %c0_222 = arith.constant 0 : index
      %372 = vector.load %arg13[%c0_221, %c0_222] : memref<16x128xf32, #tpu.memory_space<vmem>>, vector<16x128xf32>
      %373 = arith.truncf %372 : vector<16x128xf32> to vector<16x128xbf16>
      %c0_223 = arith.constant 0 : index
      %c0_224 = arith.constant 0 : index
      %374 = vector.load %arg2[%c0_223, %c0_224] : memref<128x512xbf16, #tpu.memory_space<vmem>>, vector<128x512xbf16>
      %cst_225 = arith.constant dense<0.000000e+00> : vector<16x512xf32>
      %375 = tpu.matmul %373, %374, %cst_225 {dimension_numbers = #tpu.dot_dimension_numbers<[1], [0], [0], [1], [0, 0, 1, 1], [], []>} : vector<16x128xbf16>, vector<128x512xbf16>, vector<16x512xf32> -> vector<16x512xf32>
      %c0_226 = arith.constant 0 : index
      %c0_227 = arith.constant 0 : index
      %376 = vector.load %arg4[%c0_226, %c0_227] : memref<1x512xf32, #tpu.memory_space<vmem>>, vector<1x512xf32>
      %377 = vector.broadcast %376 : vector<1x512xf32> to vector<16x512xf32>
      %378 = arith.addf %375, %377 : vector<16x512xf32>
      %c0_228 = arith.constant 0 : index
      %c0_229 = arith.constant 0 : index
      %379 = vector.load %arg14[%c0_228, %c0_229] : memref<16x512xf32, #tpu.memory_space<vmem>>, vector<16x512xf32>
      tpu.vector_store %arg14[%c0_228, %c0_229], %378 {strides = array<i32>} : memref<16x512xf32, #tpu.memory_space<vmem>>, vector<16x512xf32>,
    } else {
    }
    %c0_81 = arith.constant 0 : index
    %c0_82 = arith.constant 0 : index
    %127 = vector.load %arg14[%c0_81, %c0_82] : memref<16x512xf32, #tpu.memory_space<vmem>>, vector<16x512xf32>
    %c0_83 = arith.constant 0 : index
    %c0_84 = arith.constant 0 : index
    %128 = vector.load %arg11[%c0_83, %c0_84] : memref<16x128xf32, #tpu.memory_space<vmem>>, vector<16x128xf32>
    %129 = arith.truncf %128 : vector<16x128xf32> to vector<16x128xbf16>
    %c0_85 = arith.constant 0 : index
    %c0_86 = arith.constant 0 : index
    %130 = vector.load %arg3[%c0_85, %c0_86] : memref<128x512xbf16, #tpu.memory_space<vmem>>, vector<128x512xbf16>
    %cst_87 = arith.constant dense<0.000000e+00> : vector<16x512xf32>
    %131 = tpu.matmul %129, %130, %cst_87 {dimension_numbers = #tpu.dot_dimension_numbers<[1], [0], [0], [1], [0, 0, 1, 1], [], []>} : vector<16x128xbf16>, vector<128x512xbf16>, vector<16x512xf32> -> vector<16x512xf32>
    %132 = arith.addf %127, %131 : vector<16x512xf32>
    %133 = vector.extract_strided_slice %132 {offsets = [0, 0], sizes = [16, 384], strides = [1, 1]} : vector<16x512xf32> to vector<16x384xf32>
    %134 = arith.negf %133 : vector<16x384xf32>
    %135 = math.exp %134 : vector<16x384xf32>
    %cst_88 = arith.constant 1.000000e+00 : f32
    %136 = vector.broadcast %cst_88 : f32 to vector<16x384xf32>
    %137 = arith.addf %136, %135 : vector<16x384xf32>
    %138 = arith.divf %136, %137 : vector<16x384xf32>
    %139 = vector.extract_strided_slice %138 {offsets = [0, 0], sizes = [16, 128], strides = [1, 1]} : vector<16x384xf32> to vector<16x128xf32>
    %140 = vector.extract_strided_slice %138 {offsets = [0, 128], sizes = [16, 128], strides = [1, 1]} : vector<16x384xf32> to vector<16x128xf32>
    %141 = vector.extract_strided_slice %138 {offsets = [0, 256], sizes = [16, 128], strides = [1, 1]} : vector<16x384xf32> to vector<16x128xf32>
    %142 = vector.extract_strided_slice %132 {offsets = [0, 384], sizes = [16, 128], strides = [1, 1]} : vector<16x512xf32> to vector<16x128xf32>
    %143 = math.tanh %142 : vector<16x128xf32>
    %c0_89 = arith.constant 0 : index
    %c0_90 = arith.constant 0 : index
    %144 = vector.load %arg12[%c0_89, %c0_90] : memref<16x128xf32, #tpu.memory_space<vmem>>, vector<16x128xf32>
    %145 = arith.mulf %140, %144 : vector<16x128xf32>
    %146 = arith.mulf %139, %143 : vector<16x128xf32>
    %147 = arith.addf %145, %146 : vector<16x128xf32>
    %148 = math.tanh %147 : vector<16x128xf32>
    %149 = arith.mulf %141, %148 : vector<16x128xf32>
    %c0_91 = arith.constant 0 : index
    %c0_92 = arith.constant 0 : index
    %150 = vector.load %arg12[%c0_91, %c0_92] : memref<16x128xf32, #tpu.memory_space<vmem>>, vector<16x128xf32>
    tpu.vector_store %arg12[%c0_91, %c0_92], %147 {strides = array<i32>} : memref<16x128xf32, #tpu.memory_space<vmem>>, vector<16x128xf32>,
    %c0_93 = arith.constant 0 : index
    %c0_94 = arith.constant 0 : index
    %151 = vector.load %arg11[%c0_93, %c0_94] : memref<16x128xf32, #tpu.memory_space<vmem>>, vector<16x128xf32>
    tpu.vector_store %arg11[%c0_93, %c0_94], %149 {strides = array<i32>} : memref<16x128xf32, #tpu.memory_space<vmem>>, vector<16x128xf32>,
    %152 = arith.truncf %149 : vector<16x128xf32> to vector<16x128xbf16>
    %c0_95 = arith.constant 0 : index
    %c0_96 = arith.constant 0 : index
    %153 = vector.load %arg6[%c0_95, %c0_96] : memref<128x128xbf16, #tpu.memory_space<vmem>>, vector<128x128xbf16>
    %cst_97 = arith.constant dense<0.000000e+00> : vector<16x128xf32>
    %154 = tpu.matmul %152, %153, %cst_97 {dimension_numbers = #tpu.dot_dimension_numbers<[1], [0], [0], [1], [0, 0, 1, 1], [], []>} : vector<16x128xbf16>, vector<128x128xbf16>, vector<16x128xf32> -> vector<16x128xf32>
    %c0_98 = arith.constant 0 : index
    %c0_99 = arith.constant 0 : index
    %155 = vector.load %arg7[%c0_98, %c0_99] : memref<1x128xf32, #tpu.memory_space<vmem>>, vector<1x128xf32>
    %156 = vector.broadcast %155 : vector<1x128xf32> to vector<16x128xf32>
    %157 = arith.addf %154, %156 : vector<16x128xf32>
    %158 = arith.index_cast %c2_i32 : i32 to index
    %c0_100 = arith.constant 0 : index
    %c0_101 = arith.constant 0 : index
    %159 = vector.load %arg10[%158, %c0_100, %c0_101] : memref<7x16x128xf32, #tpu.memory_space<vmem>>, vector<1x16x128xf32>
    %160 = vector.shape_cast %159 : vector<1x16x128xf32> to vector<16x128xf32>
    %161 = vector.shape_cast %157 : vector<16x128xf32> to vector<1x16x128xf32>
    tpu.vector_store %arg10[%158, %c0_100, %c0_101], %161 {strides = array<i32>} : memref<7x16x128xf32, #tpu.memory_space<vmem>>, vector<1x16x128xf32>,
    %c1_i32_102 = arith.constant 1 : i32
    %162 = arith.addi %c2_i32, %c1_i32_102 : i32
    %163 = arith.index_cast %162 : i32 to index
    %164 = memref.load %arg0[%163] : memref<8xi32, #tpu.memory_space<smem>>
    %c0_i32_103 = arith.constant 0 : i32
    %165 = arith.cmpi eq, %164, %c0_i32_103 : i32
    %166 = arith.extui %165 : i1 to i32
    %c0_i32_104 = arith.constant 0 : i32
    %167 = arith.cmpi ne, %166, %c0_i32_104 : i32
    scf.if %167 {
      %372 = tpu.iota {dimensions = array<i32: 1>} : vector<16x128xi32>
      %cst_221 = arith.constant dense<0xFF800000> : vector<16xf32>
      %373 = vector.multi_reduction <maximumf>, %157, %cst_221 [1] : vector<16x128xf32> to vector<16xf32>
      %374 = vector.shape_cast %373 : vector<16xf32> to vector<16x1xf32>
      %375 = vector.broadcast %374 : vector<16x1xf32> to vector<16x128xf32>
      %376 = arith.cmpf oeq, %157, %375 : vector<16x128xf32>
      %c128_i32 = arith.constant 128 : i32
      %377 = vector.broadcast %c128_i32 : i32 to vector<16x128xi32>
      %378 = arith.select %376, %372, %377 : vector<16x128xi1>, vector<16x128xi32>
      %cst_222 = arith.constant dense<2147483647> : vector<16xi32>
      %379 = vector.multi_reduction <minsi>, %378, %cst_222 [1] : vector<16x128xi32> to vector<16xi32>
      %380 = vector.shape_cast %379 : vector<16xi32> to vector<16x1xi32>
      %381 = vector.broadcast %380 : vector<16x1xi32> to vector<16x128xi32>
      %382 = arith.cmpi eq, %372, %381 : vector<16x128xi32>
      %383 = arith.extui %382 : vector<16x128xi1> to vector<16x128xi32>
      %384 = arith.sitofp %383 : vector<16x128xi32> to vector<16x128xf32>
      %385 = arith.truncf %384 : vector<16x128xf32> to vector<16x128xbf16>
      %c0_223 = arith.constant 0 : index
      %c0_224 = arith.constant 0 : index
      %386 = vector.load %arg5[%c0_223, %c0_224] : memref<128x128xbf16, #tpu.memory_space<vmem>>, vector<128x128xbf16>
      %cst_225 = arith.constant dense<0.000000e+00> : vector<16x128xf32>
      %387 = tpu.matmul %385, %386, %cst_225 {dimension_numbers = #tpu.dot_dimension_numbers<[1], [0], [0], [1], [0, 0, 1, 1], [], []>} : vector<16x128xbf16>, vector<128x128xbf16>, vector<16x128xf32> -> vector<16x128xf32>
      %c0_226 = arith.constant 0 : index
      %c0_227 = arith.constant 0 : index
      %388 = vector.load %arg13[%c0_226, %c0_227] : memref<16x128xf32, #tpu.memory_space<vmem>>, vector<16x128xf32>
      tpu.vector_store %arg13[%c0_226, %c0_227], %387 {strides = array<i32>} : memref<16x128xf32, #tpu.memory_space<vmem>>, vector<16x128xf32>,
    } else {
    }
    %c3_i32 = arith.constant 3 : i32
    %c0_i32_105 = arith.constant 0 : i32
    %168 = arith.cmpi eq, %c3_i32, %c0_i32_105 : i32
    %169 = arith.index_cast %c3_i32 : i32 to index
    %170 = memref.load %arg0[%169] : memref<8xi32, #tpu.memory_space<smem>>
    %c0_i32_106 = arith.constant 0 : i32
    %171 = arith.cmpi ne, %170, %c0_i32_106 : i32
    %172 = arith.ori %168, %171 : i1
    %173 = arith.extui %172 : i1 to i32
    %c0_i32_107 = arith.constant 0 : i32
    %174 = arith.cmpi ne, %173, %c0_i32_107 : i32
    scf.if %174 {
      %c16_i32 = arith.constant 16 : i32
      %372 = arith.muli %c3_i32, %c16_i32 : i32
      %373 = tpu.assume_multiple %372, 16 : i32
      %374 = arith.index_cast %373 : i32 to index
      %c0_221 = arith.constant 0 : index
      %375 = vector.load %arg15[%374, %c0_221] : memref<112x512xf32, #tpu.memory_space<vmem>>, vector<16x512xf32>
      %c0_222 = arith.constant 0 : index
      %c0_223 = arith.constant 0 : index
      %376 = vector.load %arg14[%c0_222, %c0_223] : memref<16x512xf32, #tpu.memory_space<vmem>>, vector<16x512xf32>
      tpu.vector_store %arg14[%c0_222, %c0_223], %375 {strides = array<i32>} : memref<16x512xf32, #tpu.memory_space<vmem>>, vector<16x512xf32>,
    } else {
    }
    %true_108 = arith.constant true
    %175 = arith.xori %172, %true_108 : i1
    %176 = arith.extui %175 : i1 to i32
    %c0_i32_109 = arith.constant 0 : i32
    %177 = arith.cmpi ne, %176, %c0_i32_109 : i32
    scf.if %177 {
      %c0_221 = arith.constant 0 : index
      %c0_222 = arith.constant 0 : index
      %372 = vector.load %arg13[%c0_221, %c0_222] : memref<16x128xf32, #tpu.memory_space<vmem>>, vector<16x128xf32>
      %373 = arith.truncf %372 : vector<16x128xf32> to vector<16x128xbf16>
      %c0_223 = arith.constant 0 : index
      %c0_224 = arith.constant 0 : index
      %374 = vector.load %arg2[%c0_223, %c0_224] : memref<128x512xbf16, #tpu.memory_space<vmem>>, vector<128x512xbf16>
      %cst_225 = arith.constant dense<0.000000e+00> : vector<16x512xf32>
      %375 = tpu.matmul %373, %374, %cst_225 {dimension_numbers = #tpu.dot_dimension_numbers<[1], [0], [0], [1], [0, 0, 1, 1], [], []>} : vector<16x128xbf16>, vector<128x512xbf16>, vector<16x512xf32> -> vector<16x512xf32>
      %c0_226 = arith.constant 0 : index
      %c0_227 = arith.constant 0 : index
      %376 = vector.load %arg4[%c0_226, %c0_227] : memref<1x512xf32, #tpu.memory_space<vmem>>, vector<1x512xf32>
      %377 = vector.broadcast %376 : vector<1x512xf32> to vector<16x512xf32>
      %378 = arith.addf %375, %377 : vector<16x512xf32>
      %c0_228 = arith.constant 0 : index
      %c0_229 = arith.constant 0 : index
      %379 = vector.load %arg14[%c0_228, %c0_229] : memref<16x512xf32, #tpu.memory_space<vmem>>, vector<16x512xf32>
      tpu.vector_store %arg14[%c0_228, %c0_229], %378 {strides = array<i32>} : memref<16x512xf32, #tpu.memory_space<vmem>>, vector<16x512xf32>,
    } else {
    }
    %c0_110 = arith.constant 0 : index
    %c0_111 = arith.constant 0 : index
    %178 = vector.load %arg14[%c0_110, %c0_111] : memref<16x512xf32, #tpu.memory_space<vmem>>, vector<16x512xf32>
    %c0_112 = arith.constant 0 : index
    %c0_113 = arith.constant 0 : index
    %179 = vector.load %arg11[%c0_112, %c0_113] : memref<16x128xf32, #tpu.memory_space<vmem>>, vector<16x128xf32>
    %180 = arith.truncf %179 : vector<16x128xf32> to vector<16x128xbf16>
    %c0_114 = arith.constant 0 : index
    %c0_115 = arith.constant 0 : index
    %181 = vector.load %arg3[%c0_114, %c0_115] : memref<128x512xbf16, #tpu.memory_space<vmem>>, vector<128x512xbf16>
    %cst_116 = arith.constant dense<0.000000e+00> : vector<16x512xf32>
    %182 = tpu.matmul %180, %181, %cst_116 {dimension_numbers = #tpu.dot_dimension_numbers<[1], [0], [0], [1], [0, 0, 1, 1], [], []>} : vector<16x128xbf16>, vector<128x512xbf16>, vector<16x512xf32> -> vector<16x512xf32>
    %183 = arith.addf %178, %182 : vector<16x512xf32>
    %184 = vector.extract_strided_slice %183 {offsets = [0, 0], sizes = [16, 384], strides = [1, 1]} : vector<16x512xf32> to vector<16x384xf32>
    %185 = arith.negf %184 : vector<16x384xf32>
    %186 = math.exp %185 : vector<16x384xf32>
    %cst_117 = arith.constant 1.000000e+00 : f32
    %187 = vector.broadcast %cst_117 : f32 to vector<16x384xf32>
    %188 = arith.addf %187, %186 : vector<16x384xf32>
    %189 = arith.divf %187, %188 : vector<16x384xf32>
    %190 = vector.extract_strided_slice %189 {offsets = [0, 0], sizes = [16, 128], strides = [1, 1]} : vector<16x384xf32> to vector<16x128xf32>
    %191 = vector.extract_strided_slice %189 {offsets = [0, 128], sizes = [16, 128], strides = [1, 1]} : vector<16x384xf32> to vector<16x128xf32>
    %192 = vector.extract_strided_slice %189 {offsets = [0, 256], sizes = [16, 128], strides = [1, 1]} : vector<16x384xf32> to vector<16x128xf32>
    %193 = vector.extract_strided_slice %183 {offsets = [0, 384], sizes = [16, 128], strides = [1, 1]} : vector<16x512xf32> to vector<16x128xf32>
    %194 = math.tanh %193 : vector<16x128xf32>
    %c0_118 = arith.constant 0 : index
    %c0_119 = arith.constant 0 : index
    %195 = vector.load %arg12[%c0_118, %c0_119] : memref<16x128xf32, #tpu.memory_space<vmem>>, vector<16x128xf32>
    %196 = arith.mulf %191, %195 : vector<16x128xf32>
    %197 = arith.mulf %190, %194 : vector<16x128xf32>
    %198 = arith.addf %196, %197 : vector<16x128xf32>
    %199 = math.tanh %198 : vector<16x128xf32>
    %200 = arith.mulf %192, %199 : vector<16x128xf32>
    %c0_120 = arith.constant 0 : index
    %c0_121 = arith.constant 0 : index
    %201 = vector.load %arg12[%c0_120, %c0_121] : memref<16x128xf32, #tpu.memory_space<vmem>>, vector<16x128xf32>
    tpu.vector_store %arg12[%c0_120, %c0_121], %198 {strides = array<i32>} : memref<16x128xf32, #tpu.memory_space<vmem>>, vector<16x128xf32>,
    %c0_122 = arith.constant 0 : index
    %c0_123 = arith.constant 0 : index
    %202 = vector.load %arg11[%c0_122, %c0_123] : memref<16x128xf32, #tpu.memory_space<vmem>>, vector<16x128xf32>
    tpu.vector_store %arg11[%c0_122, %c0_123], %200 {strides = array<i32>} : memref<16x128xf32, #tpu.memory_space<vmem>>, vector<16x128xf32>,
    %203 = arith.truncf %200 : vector<16x128xf32> to vector<16x128xbf16>
    %c0_124 = arith.constant 0 : index
    %c0_125 = arith.constant 0 : index
    %204 = vector.load %arg6[%c0_124, %c0_125] : memref<128x128xbf16, #tpu.memory_space<vmem>>, vector<128x128xbf16>
    %cst_126 = arith.constant dense<0.000000e+00> : vector<16x128xf32>
    %205 = tpu.matmul %203, %204, %cst_126 {dimension_numbers = #tpu.dot_dimension_numbers<[1], [0], [0], [1], [0, 0, 1, 1], [], []>} : vector<16x128xbf16>, vector<128x128xbf16>, vector<16x128xf32> -> vector<16x128xf32>
    %c0_127 = arith.constant 0 : index
    %c0_128 = arith.constant 0 : index
    %206 = vector.load %arg7[%c0_127, %c0_128] : memref<1x128xf32, #tpu.memory_space<vmem>>, vector<1x128xf32>
    %207 = vector.broadcast %206 : vector<1x128xf32> to vector<16x128xf32>
    %208 = arith.addf %205, %207 : vector<16x128xf32>
    %209 = arith.index_cast %c3_i32 : i32 to index
    %c0_129 = arith.constant 0 : index
    %c0_130 = arith.constant 0 : index
    %210 = vector.load %arg10[%209, %c0_129, %c0_130] : memref<7x16x128xf32, #tpu.memory_space<vmem>>, vector<1x16x128xf32>
    %211 = vector.shape_cast %210 : vector<1x16x128xf32> to vector<16x128xf32>
    %212 = vector.shape_cast %208 : vector<16x128xf32> to vector<1x16x128xf32>
    tpu.vector_store %arg10[%209, %c0_129, %c0_130], %212 {strides = array<i32>} : memref<7x16x128xf32, #tpu.memory_space<vmem>>, vector<1x16x128xf32>,
    %c1_i32_131 = arith.constant 1 : i32
    %213 = arith.addi %c3_i32, %c1_i32_131 : i32
    %214 = arith.index_cast %213 : i32 to index
    %215 = memref.load %arg0[%214] : memref<8xi32, #tpu.memory_space<smem>>
    %c0_i32_132 = arith.constant 0 : i32
    %216 = arith.cmpi eq, %215, %c0_i32_132 : i32
    %217 = arith.extui %216 : i1 to i32
    %c0_i32_133 = arith.constant 0 : i32
    %218 = arith.cmpi ne, %217, %c0_i32_133 : i32
    scf.if %218 {
      %372 = tpu.iota {dimensions = array<i32: 1>} : vector<16x128xi32>
      %cst_221 = arith.constant dense<0xFF800000> : vector<16xf32>
      %373 = vector.multi_reduction <maximumf>, %208, %cst_221 [1] : vector<16x128xf32> to vector<16xf32>
      %374 = vector.shape_cast %373 : vector<16xf32> to vector<16x1xf32>
      %375 = vector.broadcast %374 : vector<16x1xf32> to vector<16x128xf32>
      %376 = arith.cmpf oeq, %208, %375 : vector<16x128xf32>
      %c128_i32 = arith.constant 128 : i32
      %377 = vector.broadcast %c128_i32 : i32 to vector<16x128xi32>
      %378 = arith.select %376, %372, %377 : vector<16x128xi1>, vector<16x128xi32>
      %cst_222 = arith.constant dense<2147483647> : vector<16xi32>
      %379 = vector.multi_reduction <minsi>, %378, %cst_222 [1] : vector<16x128xi32> to vector<16xi32>
      %380 = vector.shape_cast %379 : vector<16xi32> to vector<16x1xi32>
      %381 = vector.broadcast %380 : vector<16x1xi32> to vector<16x128xi32>
      %382 = arith.cmpi eq, %372, %381 : vector<16x128xi32>
      %383 = arith.extui %382 : vector<16x128xi1> to vector<16x128xi32>
      %384 = arith.sitofp %383 : vector<16x128xi32> to vector<16x128xf32>
      %385 = arith.truncf %384 : vector<16x128xf32> to vector<16x128xbf16>
      %c0_223 = arith.constant 0 : index
      %c0_224 = arith.constant 0 : index
      %386 = vector.load %arg5[%c0_223, %c0_224] : memref<128x128xbf16, #tpu.memory_space<vmem>>, vector<128x128xbf16>
      %cst_225 = arith.constant dense<0.000000e+00> : vector<16x128xf32>
      %387 = tpu.matmul %385, %386, %cst_225 {dimension_numbers = #tpu.dot_dimension_numbers<[1], [0], [0], [1], [0, 0, 1, 1], [], []>} : vector<16x128xbf16>, vector<128x128xbf16>, vector<16x128xf32> -> vector<16x128xf32>
      %c0_226 = arith.constant 0 : index
      %c0_227 = arith.constant 0 : index
      %388 = vector.load %arg13[%c0_226, %c0_227] : memref<16x128xf32, #tpu.memory_space<vmem>>, vector<16x128xf32>
      tpu.vector_store %arg13[%c0_226, %c0_227], %387 {strides = array<i32>} : memref<16x128xf32, #tpu.memory_space<vmem>>, vector<16x128xf32>,
    } else {
    }
    %c4_i32 = arith.constant 4 : i32
    %c0_i32_134 = arith.constant 0 : i32
    %219 = arith.cmpi eq, %c4_i32, %c0_i32_134 : i32
    %220 = arith.index_cast %c4_i32 : i32 to index
    %221 = memref.load %arg0[%220] : memref<8xi32, #tpu.memory_space<smem>>
    %c0_i32_135 = arith.constant 0 : i32
    %222 = arith.cmpi ne, %221, %c0_i32_135 : i32
    %223 = arith.ori %219, %222 : i1
    %224 = arith.extui %223 : i1 to i32
    %c0_i32_136 = arith.constant 0 : i32
    %225 = arith.cmpi ne, %224, %c0_i32_136 : i32
    scf.if %225 {
      %c16_i32 = arith.constant 16 : i32
      %372 = arith.muli %c4_i32, %c16_i32 : i32
      %373 = tpu.assume_multiple %372, 16 : i32
      %374 = arith.index_cast %373 : i32 to index
      %c0_221 = arith.constant 0 : index
      %375 = vector.load %arg15[%374, %c0_221] : memref<112x512xf32, #tpu.memory_space<vmem>>, vector<16x512xf32>
      %c0_222 = arith.constant 0 : index
      %c0_223 = arith.constant 0 : index
      %376 = vector.load %arg14[%c0_222, %c0_223] : memref<16x512xf32, #tpu.memory_space<vmem>>, vector<16x512xf32>
      tpu.vector_store %arg14[%c0_222, %c0_223], %375 {strides = array<i32>} : memref<16x512xf32, #tpu.memory_space<vmem>>, vector<16x512xf32>,
    } else {
    }
    %true_137 = arith.constant true
    %226 = arith.xori %223, %true_137 : i1
    %227 = arith.extui %226 : i1 to i32
    %c0_i32_138 = arith.constant 0 : i32
    %228 = arith.cmpi ne, %227, %c0_i32_138 : i32
    scf.if %228 {
      %c0_221 = arith.constant 0 : index
      %c0_222 = arith.constant 0 : index
      %372 = vector.load %arg13[%c0_221, %c0_222] : memref<16x128xf32, #tpu.memory_space<vmem>>, vector<16x128xf32>
      %373 = arith.truncf %372 : vector<16x128xf32> to vector<16x128xbf16>
      %c0_223 = arith.constant 0 : index
      %c0_224 = arith.constant 0 : index
      %374 = vector.load %arg2[%c0_223, %c0_224] : memref<128x512xbf16, #tpu.memory_space<vmem>>, vector<128x512xbf16>
      %cst_225 = arith.constant dense<0.000000e+00> : vector<16x512xf32>
      %375 = tpu.matmul %373, %374, %cst_225 {dimension_numbers = #tpu.dot_dimension_numbers<[1], [0], [0], [1], [0, 0, 1, 1], [], []>} : vector<16x128xbf16>, vector<128x512xbf16>, vector<16x512xf32> -> vector<16x512xf32>
      %c0_226 = arith.constant 0 : index
      %c0_227 = arith.constant 0 : index
      %376 = vector.load %arg4[%c0_226, %c0_227] : memref<1x512xf32, #tpu.memory_space<vmem>>, vector<1x512xf32>
      %377 = vector.broadcast %376 : vector<1x512xf32> to vector<16x512xf32>
      %378 = arith.addf %375, %377 : vector<16x512xf32>
      %c0_228 = arith.constant 0 : index
      %c0_229 = arith.constant 0 : index
      %379 = vector.load %arg14[%c0_228, %c0_229] : memref<16x512xf32, #tpu.memory_space<vmem>>, vector<16x512xf32>
      tpu.vector_store %arg14[%c0_228, %c0_229], %378 {strides = array<i32>} : memref<16x512xf32, #tpu.memory_space<vmem>>, vector<16x512xf32>,
    } else {
    }
    %c0_139 = arith.constant 0 : index
    %c0_140 = arith.constant 0 : index
    %229 = vector.load %arg14[%c0_139, %c0_140] : memref<16x512xf32, #tpu.memory_space<vmem>>, vector<16x512xf32>
    %c0_141 = arith.constant 0 : index
    %c0_142 = arith.constant 0 : index
    %230 = vector.load %arg11[%c0_141, %c0_142] : memref<16x128xf32, #tpu.memory_space<vmem>>, vector<16x128xf32>
    %231 = arith.truncf %230 : vector<16x128xf32> to vector<16x128xbf16>
    %c0_143 = arith.constant 0 : index
    %c0_144 = arith.constant 0 : index
    %232 = vector.load %arg3[%c0_143, %c0_144] : memref<128x512xbf16, #tpu.memory_space<vmem>>, vector<128x512xbf16>
    %cst_145 = arith.constant dense<0.000000e+00> : vector<16x512xf32>
    %233 = tpu.matmul %231, %232, %cst_145 {dimension_numbers = #tpu.dot_dimension_numbers<[1], [0], [0], [1], [0, 0, 1, 1], [], []>} : vector<16x128xbf16>, vector<128x512xbf16>, vector<16x512xf32> -> vector<16x512xf32>
    %234 = arith.addf %229, %233 : vector<16x512xf32>
    %235 = vector.extract_strided_slice %234 {offsets = [0, 0], sizes = [16, 384], strides = [1, 1]} : vector<16x512xf32> to vector<16x384xf32>
    %236 = arith.negf %235 : vector<16x384xf32>
    %237 = math.exp %236 : vector<16x384xf32>
    %cst_146 = arith.constant 1.000000e+00 : f32
    %238 = vector.broadcast %cst_146 : f32 to vector<16x384xf32>
    %239 = arith.addf %238, %237 : vector<16x384xf32>
    %240 = arith.divf %238, %239 : vector<16x384xf32>
    %241 = vector.extract_strided_slice %240 {offsets = [0, 0], sizes = [16, 128], strides = [1, 1]} : vector<16x384xf32> to vector<16x128xf32>
    %242 = vector.extract_strided_slice %240 {offsets = [0, 128], sizes = [16, 128], strides = [1, 1]} : vector<16x384xf32> to vector<16x128xf32>
    %243 = vector.extract_strided_slice %240 {offsets = [0, 256], sizes = [16, 128], strides = [1, 1]} : vector<16x384xf32> to vector<16x128xf32>
    %244 = vector.extract_strided_slice %234 {offsets = [0, 384], sizes = [16, 128], strides = [1, 1]} : vector<16x512xf32> to vector<16x128xf32>
    %245 = math.tanh %244 : vector<16x128xf32>
    %c0_147 = arith.constant 0 : index
    %c0_148 = arith.constant 0 : index
    %246 = vector.load %arg12[%c0_147, %c0_148] : memref<16x128xf32, #tpu.memory_space<vmem>>, vector<16x128xf32>
    %247 = arith.mulf %242, %246 : vector<16x128xf32>
    %248 = arith.mulf %241, %245 : vector<16x128xf32>
    %249 = arith.addf %247, %248 : vector<16x128xf32>
    %250 = math.tanh %249 : vector<16x128xf32>
    %251 = arith.mulf %243, %250 : vector<16x128xf32>
    %c0_149 = arith.constant 0 : index
    %c0_150 = arith.constant 0 : index
    %252 = vector.load %arg12[%c0_149, %c0_150] : memref<16x128xf32, #tpu.memory_space<vmem>>, vector<16x128xf32>
    tpu.vector_store %arg12[%c0_149, %c0_150], %249 {strides = array<i32>} : memref<16x128xf32, #tpu.memory_space<vmem>>, vector<16x128xf32>,
    %c0_151 = arith.constant 0 : index
    %c0_152 = arith.constant 0 : index
    %253 = vector.load %arg11[%c0_151, %c0_152] : memref<16x128xf32, #tpu.memory_space<vmem>>, vector<16x128xf32>
    tpu.vector_store %arg11[%c0_151, %c0_152], %251 {strides = array<i32>} : memref<16x128xf32, #tpu.memory_space<vmem>>, vector<16x128xf32>,
    %254 = arith.truncf %251 : vector<16x128xf32> to vector<16x128xbf16>
    %c0_153 = arith.constant 0 : index
    %c0_154 = arith.constant 0 : index
    %255 = vector.load %arg6[%c0_153, %c0_154] : memref<128x128xbf16, #tpu.memory_space<vmem>>, vector<128x128xbf16>
    %cst_155 = arith.constant dense<0.000000e+00> : vector<16x128xf32>
    %256 = tpu.matmul %254, %255, %cst_155 {dimension_numbers = #tpu.dot_dimension_numbers<[1], [0], [0], [1], [0, 0, 1, 1], [], []>} : vector<16x128xbf16>, vector<128x128xbf16>, vector<16x128xf32> -> vector<16x128xf32>
    %c0_156 = arith.constant 0 : index
    %c0_157 = arith.constant 0 : index
    %257 = vector.load %arg7[%c0_156, %c0_157] : memref<1x128xf32, #tpu.memory_space<vmem>>, vector<1x128xf32>
    %258 = vector.broadcast %257 : vector<1x128xf32> to vector<16x128xf32>
    %259 = arith.addf %256, %258 : vector<16x128xf32>
    %260 = arith.index_cast %c4_i32 : i32 to index
    %c0_158 = arith.constant 0 : index
    %c0_159 = arith.constant 0 : index
    %261 = vector.load %arg10[%260, %c0_158, %c0_159] : memref<7x16x128xf32, #tpu.memory_space<vmem>>, vector<1x16x128xf32>
    %262 = vector.shape_cast %261 : vector<1x16x128xf32> to vector<16x128xf32>
    %263 = vector.shape_cast %259 : vector<16x128xf32> to vector<1x16x128xf32>
    tpu.vector_store %arg10[%260, %c0_158, %c0_159], %263 {strides = array<i32>} : memref<7x16x128xf32, #tpu.memory_space<vmem>>, vector<1x16x128xf32>,
    %c1_i32_160 = arith.constant 1 : i32
    %264 = arith.addi %c4_i32, %c1_i32_160 : i32
    %265 = arith.index_cast %264 : i32 to index
    %266 = memref.load %arg0[%265] : memref<8xi32, #tpu.memory_space<smem>>
    %c0_i32_161 = arith.constant 0 : i32
    %267 = arith.cmpi eq, %266, %c0_i32_161 : i32
    %268 = arith.extui %267 : i1 to i32
    %c0_i32_162 = arith.constant 0 : i32
    %269 = arith.cmpi ne, %268, %c0_i32_162 : i32
    scf.if %269 {
      %372 = tpu.iota {dimensions = array<i32: 1>} : vector<16x128xi32>
      %cst_221 = arith.constant dense<0xFF800000> : vector<16xf32>
      %373 = vector.multi_reduction <maximumf>, %259, %cst_221 [1] : vector<16x128xf32> to vector<16xf32>
      %374 = vector.shape_cast %373 : vector<16xf32> to vector<16x1xf32>
      %375 = vector.broadcast %374 : vector<16x1xf32> to vector<16x128xf32>
      %376 = arith.cmpf oeq, %259, %375 : vector<16x128xf32>
      %c128_i32 = arith.constant 128 : i32
      %377 = vector.broadcast %c128_i32 : i32 to vector<16x128xi32>
      %378 = arith.select %376, %372, %377 : vector<16x128xi1>, vector<16x128xi32>
      %cst_222 = arith.constant dense<2147483647> : vector<16xi32>
      %379 = vector.multi_reduction <minsi>, %378, %cst_222 [1] : vector<16x128xi32> to vector<16xi32>
      %380 = vector.shape_cast %379 : vector<16xi32> to vector<16x1xi32>
      %381 = vector.broadcast %380 : vector<16x1xi32> to vector<16x128xi32>
      %382 = arith.cmpi eq, %372, %381 : vector<16x128xi32>
      %383 = arith.extui %382 : vector<16x128xi1> to vector<16x128xi32>
      %384 = arith.sitofp %383 : vector<16x128xi32> to vector<16x128xf32>
      %385 = arith.truncf %384 : vector<16x128xf32> to vector<16x128xbf16>
      %c0_223 = arith.constant 0 : index
      %c0_224 = arith.constant 0 : index
      %386 = vector.load %arg5[%c0_223, %c0_224] : memref<128x128xbf16, #tpu.memory_space<vmem>>, vector<128x128xbf16>
      %cst_225 = arith.constant dense<0.000000e+00> : vector<16x128xf32>
      %387 = tpu.matmul %385, %386, %cst_225 {dimension_numbers = #tpu.dot_dimension_numbers<[1], [0], [0], [1], [0, 0, 1, 1], [], []>} : vector<16x128xbf16>, vector<128x128xbf16>, vector<16x128xf32> -> vector<16x128xf32>
      %c0_226 = arith.constant 0 : index
      %c0_227 = arith.constant 0 : index
      %388 = vector.load %arg13[%c0_226, %c0_227] : memref<16x128xf32, #tpu.memory_space<vmem>>, vector<16x128xf32>
      tpu.vector_store %arg13[%c0_226, %c0_227], %387 {strides = array<i32>} : memref<16x128xf32, #tpu.memory_space<vmem>>, vector<16x128xf32>,
    } else {
    }
    %c5_i32 = arith.constant 5 : i32
    %c0_i32_163 = arith.constant 0 : i32
    %270 = arith.cmpi eq, %c5_i32, %c0_i32_163 : i32
    %271 = arith.index_cast %c5_i32 : i32 to index
    %272 = memref.load %arg0[%271] : memref<8xi32, #tpu.memory_space<smem>>
    %c0_i32_164 = arith.constant 0 : i32
    %273 = arith.cmpi ne, %272, %c0_i32_164 : i32
    %274 = arith.ori %270, %273 : i1
    %275 = arith.extui %274 : i1 to i32
    %c0_i32_165 = arith.constant 0 : i32
    %276 = arith.cmpi ne, %275, %c0_i32_165 : i32
    scf.if %276 {
      %c16_i32 = arith.constant 16 : i32
      %372 = arith.muli %c5_i32, %c16_i32 : i32
      %373 = tpu.assume_multiple %372, 16 : i32
      %374 = arith.index_cast %373 : i32 to index
      %c0_221 = arith.constant 0 : index
      %375 = vector.load %arg15[%374, %c0_221] : memref<112x512xf32, #tpu.memory_space<vmem>>, vector<16x512xf32>
      %c0_222 = arith.constant 0 : index
      %c0_223 = arith.constant 0 : index
      %376 = vector.load %arg14[%c0_222, %c0_223] : memref<16x512xf32, #tpu.memory_space<vmem>>, vector<16x512xf32>
      tpu.vector_store %arg14[%c0_222, %c0_223], %375 {strides = array<i32>} : memref<16x512xf32, #tpu.memory_space<vmem>>, vector<16x512xf32>,
    } else {
    }
    %true_166 = arith.constant true
    %277 = arith.xori %274, %true_166 : i1
    %278 = arith.extui %277 : i1 to i32
    %c0_i32_167 = arith.constant 0 : i32
    %279 = arith.cmpi ne, %278, %c0_i32_167 : i32
    scf.if %279 {
      %c0_221 = arith.constant 0 : index
      %c0_222 = arith.constant 0 : index
      %372 = vector.load %arg13[%c0_221, %c0_222] : memref<16x128xf32, #tpu.memory_space<vmem>>, vector<16x128xf32>
      %373 = arith.truncf %372 : vector<16x128xf32> to vector<16x128xbf16>
      %c0_223 = arith.constant 0 : index
      %c0_224 = arith.constant 0 : index
      %374 = vector.load %arg2[%c0_223, %c0_224] : memref<128x512xbf16, #tpu.memory_space<vmem>>, vector<128x512xbf16>
      %cst_225 = arith.constant dense<0.000000e+00> : vector<16x512xf32>
      %375 = tpu.matmul %373, %374, %cst_225 {dimension_numbers = #tpu.dot_dimension_numbers<[1], [0], [0], [1], [0, 0, 1, 1], [], []>} : vector<16x128xbf16>, vector<128x512xbf16>, vector<16x512xf32> -> vector<16x512xf32>
      %c0_226 = arith.constant 0 : index
      %c0_227 = arith.constant 0 : index
      %376 = vector.load %arg4[%c0_226, %c0_227] : memref<1x512xf32, #tpu.memory_space<vmem>>, vector<1x512xf32>
      %377 = vector.broadcast %376 : vector<1x512xf32> to vector<16x512xf32>
      %378 = arith.addf %375, %377 : vector<16x512xf32>
      %c0_228 = arith.constant 0 : index
      %c0_229 = arith.constant 0 : index
      %379 = vector.load %arg14[%c0_228, %c0_229] : memref<16x512xf32, #tpu.memory_space<vmem>>, vector<16x512xf32>
      tpu.vector_store %arg14[%c0_228, %c0_229], %378 {strides = array<i32>} : memref<16x512xf32, #tpu.memory_space<vmem>>, vector<16x512xf32>,
    } else {
    }
    %c0_168 = arith.constant 0 : index
    %c0_169 = arith.constant 0 : index
    %280 = vector.load %arg14[%c0_168, %c0_169] : memref<16x512xf32, #tpu.memory_space<vmem>>, vector<16x512xf32>
    %c0_170 = arith.constant 0 : index
    %c0_171 = arith.constant 0 : index
    %281 = vector.load %arg11[%c0_170, %c0_171] : memref<16x128xf32, #tpu.memory_space<vmem>>, vector<16x128xf32>
    %282 = arith.truncf %281 : vector<16x128xf32> to vector<16x128xbf16>
    %c0_172 = arith.constant 0 : index
    %c0_173 = arith.constant 0 : index
    %283 = vector.load %arg3[%c0_172, %c0_173] : memref<128x512xbf16, #tpu.memory_space<vmem>>, vector<128x512xbf16>
    %cst_174 = arith.constant dense<0.000000e+00> : vector<16x512xf32>
    %284 = tpu.matmul %282, %283, %cst_174 {dimension_numbers = #tpu.dot_dimension_numbers<[1], [0], [0], [1], [0, 0, 1, 1], [], []>} : vector<16x128xbf16>, vector<128x512xbf16>, vector<16x512xf32> -> vector<16x512xf32>
    %285 = arith.addf %280, %284 : vector<16x512xf32>
    %286 = vector.extract_strided_slice %285 {offsets = [0, 0], sizes = [16, 384], strides = [1, 1]} : vector<16x512xf32> to vector<16x384xf32>
    %287 = arith.negf %286 : vector<16x384xf32>
    %288 = math.exp %287 : vector<16x384xf32>
    %cst_175 = arith.constant 1.000000e+00 : f32
    %289 = vector.broadcast %cst_175 : f32 to vector<16x384xf32>
    %290 = arith.addf %289, %288 : vector<16x384xf32>
    %291 = arith.divf %289, %290 : vector<16x384xf32>
    %292 = vector.extract_strided_slice %291 {offsets = [0, 0], sizes = [16, 128], strides = [1, 1]} : vector<16x384xf32> to vector<16x128xf32>
    %293 = vector.extract_strided_slice %291 {offsets = [0, 128], sizes = [16, 128], strides = [1, 1]} : vector<16x384xf32> to vector<16x128xf32>
    %294 = vector.extract_strided_slice %291 {offsets = [0, 256], sizes = [16, 128], strides = [1, 1]} : vector<16x384xf32> to vector<16x128xf32>
    %295 = vector.extract_strided_slice %285 {offsets = [0, 384], sizes = [16, 128], strides = [1, 1]} : vector<16x512xf32> to vector<16x128xf32>
    %296 = math.tanh %295 : vector<16x128xf32>
    %c0_176 = arith.constant 0 : index
    %c0_177 = arith.constant 0 : index
    %297 = vector.load %arg12[%c0_176, %c0_177] : memref<16x128xf32, #tpu.memory_space<vmem>>, vector<16x128xf32>
    %298 = arith.mulf %293, %297 : vector<16x128xf32>
    %299 = arith.mulf %292, %296 : vector<16x128xf32>
    %300 = arith.addf %298, %299 : vector<16x128xf32>
    %301 = math.tanh %300 : vector<16x128xf32>
    %302 = arith.mulf %294, %301 : vector<16x128xf32>
    %c0_178 = arith.constant 0 : index
    %c0_179 = arith.constant 0 : index
    %303 = vector.load %arg12[%c0_178, %c0_179] : memref<16x128xf32, #tpu.memory_space<vmem>>, vector<16x128xf32>
    tpu.vector_store %arg12[%c0_178, %c0_179], %300 {strides = array<i32>} : memref<16x128xf32, #tpu.memory_space<vmem>>, vector<16x128xf32>,
    %c0_180 = arith.constant 0 : index
    %c0_181 = arith.constant 0 : index
    %304 = vector.load %arg11[%c0_180, %c0_181] : memref<16x128xf32, #tpu.memory_space<vmem>>, vector<16x128xf32>
    tpu.vector_store %arg11[%c0_180, %c0_181], %302 {strides = array<i32>} : memref<16x128xf32, #tpu.memory_space<vmem>>, vector<16x128xf32>,
    %305 = arith.truncf %302 : vector<16x128xf32> to vector<16x128xbf16>
    %c0_182 = arith.constant 0 : index
    %c0_183 = arith.constant 0 : index
    %306 = vector.load %arg6[%c0_182, %c0_183] : memref<128x128xbf16, #tpu.memory_space<vmem>>, vector<128x128xbf16>
    %cst_184 = arith.constant dense<0.000000e+00> : vector<16x128xf32>
    %307 = tpu.matmul %305, %306, %cst_184 {dimension_numbers = #tpu.dot_dimension_numbers<[1], [0], [0], [1], [0, 0, 1, 1], [], []>} : vector<16x128xbf16>, vector<128x128xbf16>, vector<16x128xf32> -> vector<16x128xf32>
    %c0_185 = arith.constant 0 : index
    %c0_186 = arith.constant 0 : index
    %308 = vector.load %arg7[%c0_185, %c0_186] : memref<1x128xf32, #tpu.memory_space<vmem>>, vector<1x128xf32>
    %309 = vector.broadcast %308 : vector<1x128xf32> to vector<16x128xf32>
    %310 = arith.addf %307, %309 : vector<16x128xf32>
    %311 = arith.index_cast %c5_i32 : i32 to index
    %c0_187 = arith.constant 0 : index
    %c0_188 = arith.constant 0 : index
    %312 = vector.load %arg10[%311, %c0_187, %c0_188] : memref<7x16x128xf32, #tpu.memory_space<vmem>>, vector<1x16x128xf32>
    %313 = vector.shape_cast %312 : vector<1x16x128xf32> to vector<16x128xf32>
    %314 = vector.shape_cast %310 : vector<16x128xf32> to vector<1x16x128xf32>
    tpu.vector_store %arg10[%311, %c0_187, %c0_188], %314 {strides = array<i32>} : memref<7x16x128xf32, #tpu.memory_space<vmem>>, vector<1x16x128xf32>,
    %c1_i32_189 = arith.constant 1 : i32
    %315 = arith.addi %c5_i32, %c1_i32_189 : i32
    %316 = arith.index_cast %315 : i32 to index
    %317 = memref.load %arg0[%316] : memref<8xi32, #tpu.memory_space<smem>>
    %c0_i32_190 = arith.constant 0 : i32
    %318 = arith.cmpi eq, %317, %c0_i32_190 : i32
    %319 = arith.extui %318 : i1 to i32
    %c0_i32_191 = arith.constant 0 : i32
    %320 = arith.cmpi ne, %319, %c0_i32_191 : i32
    scf.if %320 {
      %372 = tpu.iota {dimensions = array<i32: 1>} : vector<16x128xi32>
      %cst_221 = arith.constant dense<0xFF800000> : vector<16xf32>
      %373 = vector.multi_reduction <maximumf>, %310, %cst_221 [1] : vector<16x128xf32> to vector<16xf32>
      %374 = vector.shape_cast %373 : vector<16xf32> to vector<16x1xf32>
      %375 = vector.broadcast %374 : vector<16x1xf32> to vector<16x128xf32>
      %376 = arith.cmpf oeq, %310, %375 : vector<16x128xf32>
      %c128_i32 = arith.constant 128 : i32
      %377 = vector.broadcast %c128_i32 : i32 to vector<16x128xi32>
      %378 = arith.select %376, %372, %377 : vector<16x128xi1>, vector<16x128xi32>
      %cst_222 = arith.constant dense<2147483647> : vector<16xi32>
      %379 = vector.multi_reduction <minsi>, %378, %cst_222 [1] : vector<16x128xi32> to vector<16xi32>
      %380 = vector.shape_cast %379 : vector<16xi32> to vector<16x1xi32>
      %381 = vector.broadcast %380 : vector<16x1xi32> to vector<16x128xi32>
      %382 = arith.cmpi eq, %372, %381 : vector<16x128xi32>
      %383 = arith.extui %382 : vector<16x128xi1> to vector<16x128xi32>
      %384 = arith.sitofp %383 : vector<16x128xi32> to vector<16x128xf32>
      %385 = arith.truncf %384 : vector<16x128xf32> to vector<16x128xbf16>
      %c0_223 = arith.constant 0 : index
      %c0_224 = arith.constant 0 : index
      %386 = vector.load %arg5[%c0_223, %c0_224] : memref<128x128xbf16, #tpu.memory_space<vmem>>, vector<128x128xbf16>
      %cst_225 = arith.constant dense<0.000000e+00> : vector<16x128xf32>
      %387 = tpu.matmul %385, %386, %cst_225 {dimension_numbers = #tpu.dot_dimension_numbers<[1], [0], [0], [1], [0, 0, 1, 1], [], []>} : vector<16x128xbf16>, vector<128x128xbf16>, vector<16x128xf32> -> vector<16x128xf32>
      %c0_226 = arith.constant 0 : index
      %c0_227 = arith.constant 0 : index
      %388 = vector.load %arg13[%c0_226, %c0_227] : memref<16x128xf32, #tpu.memory_space<vmem>>, vector<16x128xf32>
      tpu.vector_store %arg13[%c0_226, %c0_227], %387 {strides = array<i32>} : memref<16x128xf32, #tpu.memory_space<vmem>>, vector<16x128xf32>,
    } else {
    }
    %c6_i32 = arith.constant 6 : i32
    %c0_i32_192 = arith.constant 0 : i32
    %321 = arith.cmpi eq, %c6_i32, %c0_i32_192 : i32
    %322 = arith.index_cast %c6_i32 : i32 to index
    %323 = memref.load %arg0[%322] : memref<8xi32, #tpu.memory_space<smem>>
    %c0_i32_193 = arith.constant 0 : i32
    %324 = arith.cmpi ne, %323, %c0_i32_193 : i32
    %325 = arith.ori %321, %324 : i1
    %326 = arith.extui %325 : i1 to i32
    %c0_i32_194 = arith.constant 0 : i32
    %327 = arith.cmpi ne, %326, %c0_i32_194 : i32
    scf.if %327 {
      %c16_i32 = arith.constant 16 : i32
      %372 = arith.muli %c6_i32, %c16_i32 : i32
      %373 = tpu.assume_multiple %372, 16 : i32
      %374 = arith.index_cast %373 : i32 to index
      %c0_221 = arith.constant 0 : index
      %375 = vector.load %arg15[%374, %c0_221] : memref<112x512xf32, #tpu.memory_space<vmem>>, vector<16x512xf32>
      %c0_222 = arith.constant 0 : index
      %c0_223 = arith.constant 0 : index
      %376 = vector.load %arg14[%c0_222, %c0_223] : memref<16x512xf32, #tpu.memory_space<vmem>>, vector<16x512xf32>
      tpu.vector_store %arg14[%c0_222, %c0_223], %375 {strides = array<i32>} : memref<16x512xf32, #tpu.memory_space<vmem>>, vector<16x512xf32>,
    } else {
    }
    %true_195 = arith.constant true
    %328 = arith.xori %325, %true_195 : i1
    %329 = arith.extui %328 : i1 to i32
    %c0_i32_196 = arith.constant 0 : i32
    %330 = arith.cmpi ne, %329, %c0_i32_196 : i32
    scf.if %330 {
      %c0_221 = arith.constant 0 : index
      %c0_222 = arith.constant 0 : index
      %372 = vector.load %arg13[%c0_221, %c0_222] : memref<16x128xf32, #tpu.memory_space<vmem>>, vector<16x128xf32>
      %373 = arith.truncf %372 : vector<16x128xf32> to vector<16x128xbf16>
      %c0_223 = arith.constant 0 : index
      %c0_224 = arith.constant 0 : index
      %374 = vector.load %arg2[%c0_223, %c0_224] : memref<128x512xbf16, #tpu.memory_space<vmem>>, vector<128x512xbf16>
      %cst_225 = arith.constant dense<0.000000e+00> : vector<16x512xf32>
      %375 = tpu.matmul %373, %374, %cst_225 {dimension_numbers = #tpu.dot_dimension_numbers<[1], [0], [0], [1], [0, 0, 1, 1], [], []>} : vector<16x128xbf16>, vector<128x512xbf16>, vector<16x512xf32> -> vector<16x512xf32>
      %c0_226 = arith.constant 0 : index
      %c0_227 = arith.constant 0 : index
      %376 = vector.load %arg4[%c0_226, %c0_227] : memref<1x512xf32, #tpu.memory_space<vmem>>, vector<1x512xf32>
      %377 = vector.broadcast %376 : vector<1x512xf32> to vector<16x512xf32>
      %378 = arith.addf %375, %377 : vector<16x512xf32>
      %c0_228 = arith.constant 0 : index
      %c0_229 = arith.constant 0 : index
      %379 = vector.load %arg14[%c0_228, %c0_229] : memref<16x512xf32, #tpu.memory_space<vmem>>, vector<16x512xf32>
      tpu.vector_store %arg14[%c0_228, %c0_229], %378 {strides = array<i32>} : memref<16x512xf32, #tpu.memory_space<vmem>>, vector<16x512xf32>,
    } else {
    }
    %c0_197 = arith.constant 0 : index
    %c0_198 = arith.constant 0 : index
    %331 = vector.load %arg14[%c0_197, %c0_198] : memref<16x512xf32, #tpu.memory_space<vmem>>, vector<16x512xf32>
    %c0_199 = arith.constant 0 : index
    %c0_200 = arith.constant 0 : index
    %332 = vector.load %arg11[%c0_199, %c0_200] : memref<16x128xf32, #tpu.memory_space<vmem>>, vector<16x128xf32>
    %333 = arith.truncf %332 : vector<16x128xf32> to vector<16x128xbf16>
    %c0_201 = arith.constant 0 : index
    %c0_202 = arith.constant 0 : index
    %334 = vector.load %arg3[%c0_201, %c0_202] : memref<128x512xbf16, #tpu.memory_space<vmem>>, vector<128x512xbf16>
    %cst_203 = arith.constant dense<0.000000e+00> : vector<16x512xf32>
    %335 = tpu.matmul %333, %334, %cst_203 {dimension_numbers = #tpu.dot_dimension_numbers<[1], [0], [0], [1], [0, 0, 1, 1], [], []>} : vector<16x128xbf16>, vector<128x512xbf16>, vector<16x512xf32> -> vector<16x512xf32>
    %336 = arith.addf %331, %335 : vector<16x512xf32>
    %337 = vector.extract_strided_slice %336 {offsets = [0, 0], sizes = [16, 384], strides = [1, 1]} : vector<16x512xf32> to vector<16x384xf32>
    %338 = arith.negf %337 : vector<16x384xf32>
    %339 = math.exp %338 : vector<16x384xf32>
    %cst_204 = arith.constant 1.000000e+00 : f32
    %340 = vector.broadcast %cst_204 : f32 to vector<16x384xf32>
    %341 = arith.addf %340, %339 : vector<16x384xf32>
    %342 = arith.divf %340, %341 : vector<16x384xf32>
    %343 = vector.extract_strided_slice %342 {offsets = [0, 0], sizes = [16, 128], strides = [1, 1]} : vector<16x384xf32> to vector<16x128xf32>
    %344 = vector.extract_strided_slice %342 {offsets = [0, 128], sizes = [16, 128], strides = [1, 1]} : vector<16x384xf32> to vector<16x128xf32>
    %345 = vector.extract_strided_slice %342 {offsets = [0, 256], sizes = [16, 128], strides = [1, 1]} : vector<16x384xf32> to vector<16x128xf32>
    %346 = vector.extract_strided_slice %336 {offsets = [0, 384], sizes = [16, 128], strides = [1, 1]} : vector<16x512xf32> to vector<16x128xf32>
    %347 = math.tanh %346 : vector<16x128xf32>
    %c0_205 = arith.constant 0 : index
    %c0_206 = arith.constant 0 : index
    %348 = vector.load %arg12[%c0_205, %c0_206] : memref<16x128xf32, #tpu.memory_space<vmem>>, vector<16x128xf32>
    %349 = arith.mulf %344, %348 : vector<16x128xf32>
    %350 = arith.mulf %343, %347 : vector<16x128xf32>
    %351 = arith.addf %349, %350 : vector<16x128xf32>
    %352 = math.tanh %351 : vector<16x128xf32>
    %353 = arith.mulf %345, %352 : vector<16x128xf32>
    %c0_207 = arith.constant 0 : index
    %c0_208 = arith.constant 0 : index
    %354 = vector.load %arg12[%c0_207, %c0_208] : memref<16x128xf32, #tpu.memory_space<vmem>>, vector<16x128xf32>
    tpu.vector_store %arg12[%c0_207, %c0_208], %351 {strides = array<i32>} : memref<16x128xf32, #tpu.memory_space<vmem>>, vector<16x128xf32>,
    %c0_209 = arith.constant 0 : index
    %c0_210 = arith.constant 0 : index
    %355 = vector.load %arg11[%c0_209, %c0_210] : memref<16x128xf32, #tpu.memory_space<vmem>>, vector<16x128xf32>
    tpu.vector_store %arg11[%c0_209, %c0_210], %353 {strides = array<i32>} : memref<16x128xf32, #tpu.memory_space<vmem>>, vector<16x128xf32>,
    %356 = arith.truncf %353 : vector<16x128xf32> to vector<16x128xbf16>
    %c0_211 = arith.constant 0 : index
    %c0_212 = arith.constant 0 : index
    %357 = vector.load %arg6[%c0_211, %c0_212] : memref<128x128xbf16, #tpu.memory_space<vmem>>, vector<128x128xbf16>
    %cst_213 = arith.constant dense<0.000000e+00> : vector<16x128xf32>
    %358 = tpu.matmul %356, %357, %cst_213 {dimension_numbers = #tpu.dot_dimension_numbers<[1], [0], [0], [1], [0, 0, 1, 1], [], []>} : vector<16x128xbf16>, vector<128x128xbf16>, vector<16x128xf32> -> vector<16x128xf32>
    %c0_214 = arith.constant 0 : index
    %c0_215 = arith.constant 0 : index
    %359 = vector.load %arg7[%c0_214, %c0_215] : memref<1x128xf32, #tpu.memory_space<vmem>>, vector<1x128xf32>
    %360 = vector.broadcast %359 : vector<1x128xf32> to vector<16x128xf32>
    %361 = arith.addf %358, %360 : vector<16x128xf32>
    %362 = arith.index_cast %c6_i32 : i32 to index
    %c0_216 = arith.constant 0 : index
    %c0_217 = arith.constant 0 : index
    %363 = vector.load %arg10[%362, %c0_216, %c0_217] : memref<7x16x128xf32, #tpu.memory_space<vmem>>, vector<1x16x128xf32>
    %364 = vector.shape_cast %363 : vector<1x16x128xf32> to vector<16x128xf32>
    %365 = vector.shape_cast %361 : vector<16x128xf32> to vector<1x16x128xf32>
    tpu.vector_store %arg10[%362, %c0_216, %c0_217], %365 {strides = array<i32>} : memref<7x16x128xf32, #tpu.memory_space<vmem>>, vector<1x16x128xf32>,
    %c1_i32_218 = arith.constant 1 : i32
    %366 = arith.addi %c6_i32, %c1_i32_218 : i32
    %367 = arith.index_cast %366 : i32 to index
    %368 = memref.load %arg0[%367] : memref<8xi32, #tpu.memory_space<smem>>
    %c0_i32_219 = arith.constant 0 : i32
    %369 = arith.cmpi eq, %368, %c0_i32_219 : i32
    %370 = arith.extui %369 : i1 to i32
    %c0_i32_220 = arith.constant 0 : i32
    %371 = arith.cmpi ne, %370, %c0_i32_220 : i32
    scf.if %371 {
      %372 = tpu.iota {dimensions = array<i32: 1>} : vector<16x128xi32>
      %cst_221 = arith.constant dense<0xFF800000> : vector<16xf32>
      %373 = vector.multi_reduction <maximumf>, %361, %cst_221 [1] : vector<16x128xf32> to vector<16xf32>
      %374 = vector.shape_cast %373 : vector<16xf32> to vector<16x1xf32>
      %375 = vector.broadcast %374 : vector<16x1xf32> to vector<16x128xf32>
      %376 = arith.cmpf oeq, %361, %375 : vector<16x128xf32>
      %c128_i32 = arith.constant 128 : i32
      %377 = vector.broadcast %c128_i32 : i32 to vector<16x128xi32>
      %378 = arith.select %376, %372, %377 : vector<16x128xi1>, vector<16x128xi32>
      %cst_222 = arith.constant dense<2147483647> : vector<16xi32>
      %379 = vector.multi_reduction <minsi>, %378, %cst_222 [1] : vector<16x128xi32> to vector<16xi32>
      %380 = vector.shape_cast %379 : vector<16xi32> to vector<16x1xi32>
      %381 = vector.broadcast %380 : vector<16x1xi32> to vector<16x128xi32>
      %382 = arith.cmpi eq, %372, %381 : vector<16x128xi32>
      %383 = arith.extui %382 : vector<16x128xi1> to vector<16x128xi32>
      %384 = arith.sitofp %383 : vector<16x128xi32> to vector<16x128xf32>
      %385 = arith.truncf %384 : vector<16x128xf32> to vector<16x128xbf16>
      %c0_223 = arith.constant 0 : index
      %c0_224 = arith.constant 0 : index
      %386 = vector.load %arg5[%c0_223, %c0_224] : memref<128x128xbf16, #tpu.memory_space<vmem>>, vector<128x128xbf16>
      %cst_225 = arith.constant dense<0.000000e+00> : vector<16x128xf32>
      %387 = tpu.matmul %385, %386, %cst_225 {dimension_numbers = #tpu.dot_dimension_numbers<[1], [0], [0], [1], [0, 0, 1, 1], [], []>} : vector<16x128xbf16>, vector<128x128xbf16>, vector<16x128xf32> -> vector<16x128xf32>
      %c0_226 = arith.constant 0 : index
      %c0_227 = arith.constant 0 : index
      %388 = vector.load %arg13[%c0_226, %c0_227] : memref<16x128xf32, #tpu.memory_space<vmem>>, vector<16x128xf32>
      tpu.vector_store %arg13[%c0_226, %c0_227], %387 {strides = array<i32>} : memref<16x128xf32, #tpu.memory_space<vmem>>, vector<16x128xf32>,
    } else {
    }
    %c7_i32 = arith.constant 7 : i32
    return
  }
}

</mosaic_0001>

<bundles_post_ra>
// kernel: seq2seq_forward.2
= control target key start
LH: loop header
LB: loop body
LE: loop exit
PB: predicated region body
PF: predicated region fallthrough
CT: control target
= control target key end

     0   :  { %v6546_v1 = vmov 0   ;;  %s6540_s1 = inlined_call_operand.vmem [shape: bf16[128,512], index: 1, kind: input, shape index: {}]   ;;  %s6541_s2 = inlined_call_operand.vmem [shape: bf16[128,512], index: 2, kind: input, shape index: {}]   ;;  %s6542_s0 = inlined_call_operand.vmem [shape: f32[10,16,128], index: 0, kind: input, shape index: {}]   ;;  %s6543_s3 = inlined_call_operand.vmem [shape: f32[1,512], index: 3, kind: input, shape index: {}]   ;;  %s6544_s5 = inlined_call_operand.vmem [shape: f32[16,128], index: 5, kind: output, shape index: {1}]   ;;  %s6545_s4 = inlined_call_operand.vmem [shape: f32[16,128], index: 4, kind: output, shape index: {0}]  }
   0x1   :  { %v4585_v0 = vld [vmem:[%s6540_s1 + $0xe4] ss:$16 sps:$4 sm:$0xff]   ;;  %296 = vmatprep.mubr.bf16.mxu0 %v6546_v1  ;;  %429 = vmatprep.mubr.bf16.mxu1 %v6546_v1  ;;  %v4587_v2 = vld [vmem:[%s6540_s1 + $0xec] ss:$16 sps:$4 sm:$0xff]   ;;  %v4589_v3 = vld [vmem:[%s6540_s1 + $0xe0] ss:$16 sps:$4 sm:$0xff]  }
   0x2   :  { %264 = vmatprep.subr.bf16.mxu0 %v4585_v0  ;;  %v4590_v4 = vld [vmem:[%s6540_s1 + $0xe8] ss:$16 sps:$4 sm:$0xff]   ;;  %397 = vmatprep.subr.bf16.mxu1 %v4587_v2  ;;  %v4591_v5 = vld [vmem:[%s6540_s1 + $0xc4] ss:$16 sps:$4 sm:$0xff]   ;;  %v4593_v6 = vld [vmem:[%s6540_s1 + $0xcc] ss:$16 sps:$4 sm:$0xff]  }
   0x3   :  { %265 = vmatpush1.bf16.msra.mxu0 %v4589_v3  ;;  %398 = vmatpush1.bf16.msra.mxu1 %v4590_v4  ;;  %v4595_v7 = vld [vmem:[%s6540_s1 + $0xc0] ss:$16 sps:$4 sm:$0xff]   ;;  %v4596_v8 = vld [vmem:[%s6540_s1 + $0xc8] ss:$16 sps:$4 sm:$0xff]   ;;  %v4597_v9 = vld [vmem:[%s6540_s1 + $0xa4] ss:$16 sps:$4 sm:$0xff]  }
   0x4   :  { %266 = vmatprep.subr.bf16.mxu0 %v4591_v5  ;;  %399 = vmatprep.subr.bf16.mxu1 %v4593_v6  ;;  %v4599_v10 = vld [vmem:[%s6540_s1 + $0xac] ss:$16 sps:$4 sm:$0xff]   ;;  %v4601_v11 = vld [vmem:[%s6540_s1 + $0xa0] ss:$16 sps:$4 sm:$0xff]   ;;  %v4602_v12 = vld [vmem:[%s6540_s1 + $0xa8] ss:$16 sps:$4 sm:$0xff]  }
   0x5   :  { %v4603_v13 = vld [vmem:[%s6540_s1 + $0x84] ss:$16 sps:$4 sm:$0xff]   ;;  %v4605_v14 = vld [vmem:[%s6540_s1 + $0x8c] ss:$16 sps:$4 sm:$0xff]   ;;  %v4607_v15 = vld [vmem:[%s6540_s1 + $0x80] ss:$16 sps:$4 sm:$0xff]  }
   0x6   :  { %v4608_v16 = vld [vmem:[%s6540_s1 + $0x88] ss:$16 sps:$4 sm:$0xff]   ;;  %v4609_v17 = vld [vmem:[%s6540_s1 + $0x64] ss:$16 sps:$4 sm:$0xff]   ;;  %v4611_v18 = vld [vmem:[%s6540_s1 + $0x6c] ss:$16 sps:$4 sm:$0xff]  }
   0x7   :  { %267 = vmatpush1.bf16.msra.mxu0 %v4595_v7  ;;  %400 = vmatpush1.bf16.msra.mxu1 %v4596_v8  ;;  %v4613_v19 = vld [vmem:[%s6540_s1 + $0x60] ss:$16 sps:$4 sm:$0xff]   ;;  %v4614_v20 = vld [vmem:[%s6540_s1 + $0x68] ss:$16 sps:$4 sm:$0xff]   ;;  %v4615_v21 = vld [vmem:[%s6540_s1 + $0x44] ss:$16 sps:$4 sm:$0xff]  }
   0x8   :  { %268 = vmatprep.subr.bf16.mxu0 %v4597_v9  ;;  %401 = vmatprep.subr.bf16.mxu1 %v4599_v10  ;;  %v4617_v22 = vld [vmem:[%s6540_s1 + $0x4c] ss:$16 sps:$4 sm:$0xff]   ;;  %v4619_v23 = vld [vmem:[%s6540_s1 + $0x40] ss:$16 sps:$4 sm:$0xff]   ;;  %v4620_v24 = vld [vmem:[%s6540_s1 + $0x48] ss:$16 sps:$4 sm:$0xff]  }
   0x9   :  { %v4621_v25 = vld [vmem:[%s6540_s1 + $0x24] ss:$16 sps:$4 sm:$0xff]   ;;  %v4623_v26 = vld [vmem:[%s6540_s1 + $0x2c] ss:$16 sps:$4 sm:$0xff]   ;;  %v4625_v27 = vld [vmem:[%s6540_s1 + $0x20] ss:$16 sps:$4 sm:$0xff]  }
   0xa   :  { %v4626_v28 = vld [vmem:[%s6540_s1 + $0x28] ss:$16 sps:$4 sm:$0xff]   ;;  %v4627_v29 = vld [vmem:[%s6540_s1 + $0x4] ss:$16 sps:$4 sm:$0xff]   ;;  %v4629_v30 = vld [vmem:[%s6540_s1 + $0xc] ss:$16 sps:$4 sm:$0xff]  }
   0xb   :  { %269 = vmatpush1.bf16.msra.mxu0 %v4601_v11  ;;  %402 = vmatpush1.bf16.msra.mxu1 %v4602_v12  ;;  %v4631_v31 = vld [vmem:[%s6540_s1] ss:$16 sps:$4 sm:$0xff]   ;;  %v4632_v32 = vld [vmem:[%s6540_s1 + $0x8] ss:$16 sps:$4 sm:$0xff]   ;;  %v5236_v35 = vld [vmem:[%s6541_s2 + $0xe4] ss:$16 sps:$4 sm:$0xff]  }
   0xc   :  { %270 = vmatprep.subr.bf16.mxu0 %v4603_v13  ;;  %403 = vmatprep.subr.bf16.mxu1 %v4605_v14  ;;  %v20_v33 = vld [vmem:[%s6542_s0] sm:$0xff]  ;;  %v21_v34 = vld [vmem:[%s6542_s0 + $0x8] sm:$0xff]  ;;  %v22_v41 = vld [vmem:[%s6542_s0 + $0x10] sm:$0xff] }
   0xd   :  { %v5241_v36 = vld [vmem:[%s6541_s2 + $0xec] ss:$16 sps:$4 sm:$0xff]   ;;  %v40_v37 = vpack.c.bf16 %v21_v34, %v20_v33  ;;  %v5246_v38 = vld [vmem:[%s6541_s2 + $0xe0] ss:$16 sps:$4 sm:$0xff]   ;;  %v5252_v39 = vld [vmem:[%s6541_s2 + $0xc4] ss:$16 sps:$4 sm:$0xff]  }
   0xe   :  { %v5258_v40 = vld [vmem:[%s6541_s2 + $0xe8] ss:$16 sps:$4 sm:$0xff]   ;;  %v5266_v42 = vld [vmem:[%s6541_s2 + $0xcc] ss:$16 sps:$4 sm:$0xff]   ;;  %v5276_v44 = vld [vmem:[%s6541_s2 + $0xc0] ss:$16 sps:$4 sm:$0xff]  }
   0xf   :  { %271 = vmatpush1.bf16.msra.mxu0 %v4607_v15  ;;  %404 = vmatpush1.bf16.msra.mxu1 %v4608_v16  ;;  %v23_v43 = vld [vmem:[%s6542_s0 + $0x18] sm:$0xff]  ;;  %v5283_v45 = vld [vmem:[%s6541_s2 + $0xa4] ss:$16 sps:$4 sm:$0xff]   ;;  %v5296_v48 = vld [vmem:[%s6541_s2 + $0xa0] ss:$16 sps:$4 sm:$0xff]  }
  0x10   :  { %272 = vmatprep.subr.bf16.mxu0 %v4609_v17  ;;  %405 = vmatprep.subr.bf16.mxu1 %v4611_v18  ;;  %v5289_v46 = vld [vmem:[%s6541_s2 + $0xc8] ss:$16 sps:$4 sm:$0xff]   ;;  %v41_v47 = vpack.c.bf16 %v23_v43, %v22_v41  ;;  %v5302_v49 = vld [vmem:[%s6541_s2 + $0xac] ss:$16 sps:$4 sm:$0xff]   ;;  %v5308_v50 = vld [vmem:[%s6541_s2 + $0x84] ss:$16 sps:$4 sm:$0xff]  }
  0x11   :  { %v5313_v51 = vld [vmem:[%s6541_s2 + $0xa8] ss:$16 sps:$4 sm:$0xff]   ;;  %v5318_v52 = vld [vmem:[%s6541_s2 + $0x8c] ss:$16 sps:$4 sm:$0xff]   ;;  %v24_v53 = vld [vmem:[%s6542_s0 + $0x20] sm:$0xff] }
  0x12   :  { %v25_v54 = vld [vmem:[%s6542_s0 + $0x28] sm:$0xff]  ;;  %v5332_v55 = vld [vmem:[%s6541_s2 + $0x80] ss:$16 sps:$4 sm:$0xff]   ;;  %v5340_v56 = vld [vmem:[%s6541_s2 + $0x64] ss:$16 sps:$4 sm:$0xff]  }
  0x13   :  { %273 = vmatpush1.bf16.msra.mxu0 %v4613_v19  ;;  %406 = vmatpush1.bf16.msra.mxu1 %v4614_v20  ;;  %v5345_v57 = vld [vmem:[%s6541_s2 + $0x88] ss:$16 sps:$4 sm:$0xff]   ;;  %v42_v58 = vpack.c.bf16 %v25_v54, %v24_v53  ;;  %v5350_v59 = vld [vmem:[%s6541_s2 + $0x60] ss:$16 sps:$4 sm:$0xff]   ;;  %v5356_v60 = vld [vmem:[%s6541_s2 + $0x44] ss:$16 sps:$4 sm:$0xff]  }
  0x14   :  { %274 = vmatprep.subr.bf16.mxu0 %v4615_v21  ;;  %407 = vmatprep.subr.bf16.mxu1 %v4617_v22  ;;  %v5361_v61 = vld [vmem:[%s6541_s2 + $0x68] ss:$16 sps:$4 sm:$0xff]   ;;  %v5367_v62 = vld [vmem:[%s6541_s2 + $0x6c] ss:$16 sps:$4 sm:$0xff]   ;;  %v26_v0 = vld [vmem:[%s6542_s0 + $0x30] sm:$0xff] }
  0x15   :  { %v5372_v63 = vld [vmem:[%s6541_s2 + $0x4c] ss:$16 sps:$4 sm:$0xff]   ;;  %v5385_v3 = vld [vmem:[%s6541_s2 + $0x40] ss:$16 sps:$4 sm:$0xff]   ;;  %v5392_v4 = vld [vmem:[%s6541_s2 + $0x24] ss:$16 sps:$4 sm:$0xff]  }
  0x16   :  { %v27_v2 = vld [vmem:[%s6542_s0 + $0x38] sm:$0xff]  ;;  %v5406_v7 = vld [vmem:[%s6541_s2 + $0x20] ss:$16 sps:$4 sm:$0xff]   ;;  %v5417_v9 = vld [vmem:[%s6541_s2 + $0x4] ss:$16 sps:$4 sm:$0xff]  }
  0x17   :  { %275 = vmatpush1.bf16.msra.mxu0 %v4619_v23  ;;  %408 = vmatpush1.bf16.msra.mxu1 %v4620_v24  ;;  %v5397_v5 = vld [vmem:[%s6541_s2 + $0x48] ss:$16 sps:$4 sm:$0xff]   ;;  %v43_v6 = vpack.c.bf16 %v27_v2, %v26_v0  ;;  %v5412_v8 = vld [vmem:[%s6541_s2 + $0x2c] ss:$16 sps:$4 sm:$0xff]   ;;  %v28_v12 = vld [vmem:[%s6542_s0 + $0x40] sm:$0xff] }
  0x18   :  { %276 = vmatprep.subr.bf16.mxu0 %v4621_v25  ;;  %409 = vmatprep.subr.bf16.mxu1 %v4623_v26  ;;  %v5422_v10 = vld [vmem:[%s6541_s2 + $0x28] ss:$16 sps:$4 sm:$0xff]   ;;  %v5428_v11 = vld [vmem:[%s6541_s2 + $0xc] ss:$16 sps:$4 sm:$0xff]   ;;  %v5441_v14 = vld [vmem:[%s6541_s2] ss:$16 sps:$4 sm:$0xff]  }
  0x19   :  { %v29_v13 = vld [vmem:[%s6542_s0 + $0x48] sm:$0xff]  ;;  %v30_v17 = vld [vmem:[%s6542_s0 + $0x50] sm:$0xff]  ;;  %v31_v18 = vld [vmem:[%s6542_s0 + $0x58] sm:$0xff] }
  0x1a   :  { %v5448_v15 = vld [vmem:[%s6541_s2 + $0x8] ss:$16 sps:$4 sm:$0xff]   ;;  %v44_v16 = vpack.c.bf16 %v29_v13, %v28_v12  ;;  %v45_v19 = vpack.c.bf16 %v31_v18, %v30_v17  ;;  %v32_v20 = vld [vmem:[%s6542_s0 + $0x60] sm:$0xff]  ;;  %v34_v23 = vld [vmem:[%s6542_s0 + $0x70] sm:$0xff] }
  0x1b   :  { %277 = vmatpush1.bf16.msra.mxu0 %v4625_v27  ;;  %410 = vmatpush1.bf16.msra.mxu1 %v4626_v28  ;;  %v33_v21 = vld [vmem:[%s6542_s0 + $0x68] sm:$0xff]  ;;  %v35_v24 = vld [vmem:[%s6542_s0 + $0x78] sm:$0xff]  ;;  %v36_v26 = vld [vmem:[%s6542_s0 + $0x80] sm:$0xff] }
  0x1c   :  { %278 = vmatprep.subr.bf16.mxu0 %v4627_v29  ;;  %411 = vmatprep.subr.bf16.mxu1 %v4629_v30  ;;  %v46_v22 = vpack.c.bf16 %v33_v21, %v32_v20  ;;  %v47_v25 = vpack.c.bf16 %v35_v24, %v34_v23  ;;  %v37_v27 = vld [vmem:[%s6542_s0 + $0x88] sm:$0xff]  ;;  %v38_v29 = vld [vmem:[%s6542_s0 + $0x90] sm:$0xff]  ;;  %v39_v30 = vld [vmem:[%s6542_s0 + $0x98] sm:$0xff] }
  0x1d   :  { %v48_v28 = vpack.c.bf16 %v37_v27, %v36_v26 }
  0x1f   :  { %279 = vmatpush1.bf16.msra.mxu0 %v4631_v31  ;;  %412 = vmatpush1.bf16.msra.mxu1 %v4632_v32  ;;  %v49_v31 = vpack.c.bf16 %v39_v30, %v38_v29  ;;  %v5098_v32 = vmov 0.0|0.0  }
  0x20   :  { %820 = vmatprep.subr.bf16.mxu0 %v5236_v35  ;;  %863 = vmatprep.subr.bf16.mxu1 %v5241_v36 }
  0x22   :  { %297 = vmatmul.mubr.bf16.vlgmr.msra.gmra.mxu0 %v40_v37  ;;  %430 = vmatmul.mubr.bf16.vlgmr.msra.gmra.mxu1 %v40_v37 }
  0x23   :  { %821 = vmatpush1.bf16.msra.mxu0 %v5246_v38  ;;  %306 = vmatprep.mubr.bf16.mxu0 %v6546_v1 }
  0x24   :  { %439 = vmatprep.mubr.bf16.mxu1 %v6546_v1  ;;  %822 = vmatprep.subr.bf16.mxu0 %v5252_v39 }
  0x25   :  { %864 = vmatpush1.bf16.msra.mxu1 %v5258_v40 }
  0x26   :  { %865 = vmatprep.subr.bf16.mxu1 %v5266_v42 }
  0x27   :  { %823 = vmatpush1.bf16.msra.mxu0 %v5276_v44 }
  0x28   :  { %824 = vmatprep.subr.bf16.mxu0 %v5283_v45 }
  0x29   :  { %866 = vmatpush1.bf16.msra.mxu1 %v5289_v46 }
  0x2a   :  { %307 = vmatmul.mubr.bf16.gmra.mxu0 %v41_v47  ;;  %440 = vmatmul.mubr.bf16.gmra.mxu1 %v41_v47 }
  0x2b   :  { %316 = vmatprep.mubr.bf16.mxu0 %v6546_v1  ;;  %449 = vmatprep.mubr.bf16.mxu1 %v6546_v1 }
  0x2c   :  { %825 = vmatpush1.bf16.msra.mxu0 %v5296_v48  ;;  %867 = vmatprep.subr.bf16.mxu1 %v5302_v49 }
  0x2d   :  { %826 = vmatprep.subr.bf16.mxu0 %v5308_v50  ;;  %868 = vmatpush1.bf16.msra.mxu1 %v5313_v51 }
  0x2e   :  { %869 = vmatprep.subr.bf16.mxu1 %v5318_v52 }
  0x30   :  { %827 = vmatpush1.bf16.msra.mxu0 %v5332_v55 }
  0x31   :  { %828 = vmatprep.subr.bf16.mxu0 %v5340_v56  ;;  %870 = vmatpush1.bf16.msra.mxu1 %v5345_v57 }
  0x32   :  { %317 = vmatmul.mubr.bf16.gmra.mxu0 %v42_v58  ;;  %450 = vmatmul.mubr.bf16.gmra.mxu1 %v42_v58 }
  0x33   :  { %326 = vmatprep.mubr.bf16.mxu0 %v6546_v1  ;;  %459 = vmatprep.mubr.bf16.mxu1 %v6546_v1 }
  0x34   :  { %829 = vmatpush1.bf16.msra.mxu0 %v5350_v59  ;;  %871 = vmatprep.subr.bf16.mxu1 %v5367_v62 }
  0x35   :  { %830 = vmatprep.subr.bf16.mxu0 %v5356_v60  ;;  %872 = vmatpush1.bf16.msra.mxu1 %v5361_v61 }
  0x36   :  { %873 = vmatprep.subr.bf16.mxu1 %v5372_v63 }
  0x38   :  { %831 = vmatpush1.bf16.msra.mxu0 %v5385_v3 }
  0x39   :  { %832 = vmatprep.subr.bf16.mxu0 %v5392_v4  ;;  %874 = vmatpush1.bf16.msra.mxu1 %v5397_v5 }
  0x3a   :  { %327 = vmatmul.mubr.bf16.gmra.mxu0 %v43_v6  ;;  %460 = vmatmul.mubr.bf16.gmra.mxu1 %v43_v6 }
  0x3b   :  { %336 = vmatprep.mubr.bf16.mxu0 %v6546_v1  ;;  %469 = vmatprep.mubr.bf16.mxu1 %v6546_v1 }
  0x3c   :  { %833 = vmatpush1.bf16.msra.mxu0 %v5406_v7  ;;  %875 = vmatprep.subr.bf16.mxu1 %v5412_v8 }
  0x3d   :  { %834 = vmatprep.subr.bf16.mxu0 %v5417_v9  ;;  %876 = vmatpush1.bf16.msra.mxu1 %v5422_v10 }
  0x3e   :  { %877 = vmatprep.subr.bf16.mxu1 %v5428_v11 }
  0x40   :  { %835 = vmatpush1.bf16.msra.mxu0 %v5441_v14 }
  0x41   :  { %878 = vmatpush1.bf16.msra.mxu1 %v5448_v15  ;;  %1174 = vmatprep.subr.bf16.mxu0 %v5236_v35 }
  0x42   :  { %337 = vmatmul.mubr.bf16.gmra.mxu0 %v44_v16  ;;  %470 = vmatmul.mubr.bf16.gmra.mxu1 %v44_v16 }
  0x43   :  { %346 = vmatprep.mubr.bf16.mxu0 %v6546_v1  ;;  %479 = vmatprep.mubr.bf16.mxu1 %v6546_v1 }
  0x44   :  { %1217 = vmatprep.subr.bf16.mxu1 %v5241_v36 }
  0x4a   :  { %347 = vmatmul.mubr.bf16.gmra.mxu0 %v45_v19  ;;  %480 = vmatmul.mubr.bf16.gmra.mxu1 %v45_v19 }
  0x4b   :  { %356 = vmatprep.mubr.bf16.mxu0 %v6546_v1  ;;  %489 = vmatprep.mubr.bf16.mxu1 %v6546_v1 }
  0x52   :  { %357 = vmatmul.mubr.bf16.gmra.mxu0 %v46_v22  ;;  %490 = vmatmul.mubr.bf16.gmra.mxu1 %v46_v22 }
  0x53   :  { %366 = vmatprep.mubr.bf16.mxu0 %v6546_v1  ;;  %499 = vmatprep.mubr.bf16.mxu1 %v6546_v1 }
  0x5a   :  { %367 = vmatmul.mubr.bf16.gmra.mxu0 %v47_v25  ;;  %500 = vmatmul.mubr.bf16.gmra.mxu1 %v47_v25 }
  0x5b   :  { %376 = vmatprep.mubr.bf16.mxu0 %v6546_v1  ;;  %509 = vmatprep.mubr.bf16.mxu1 %v6546_v1 }
  0x62   :  { %377 = vmatmul.mubr.bf16.gmra.mxu0 %v48_v28  ;;  %510 = vmatmul.mubr.bf16.gmra.mxu1 %v48_v28 }
  0x63   :  { %386 = vmatprep.mubr.bf16.mxu0 %v6546_v1  ;;  %519 = vmatprep.mubr.bf16.mxu1 %v6546_v1 }
  0x6a   :  { %387 = vmatmul.mubr.bf16.gmra.mxu0 %v49_v31  ;;  %520 = vmatmul.mubr.bf16.gmra.mxu1 %v49_v31 }
  0x6b   :  { %852 = vmatprep.mubr.bf16.mxu0 %v6546_v1  ;;  %895 = vmatprep.mubr.bf16.mxu1 %v6546_v1 }
  0x72   :  { %853 = vmatmul.mubr.bf16.vlgmr.msra.gmra.mxu0 %v5098_v32  ;;  %896 = vmatmul.mubr.bf16.vlgmr.msra.gmra.mxu1 %v5098_v32 }
  0x73   :  { %1175 = vmatpush1.bf16.msra.mxu0 %v5246_v38  ;;  %1218 = vmatpush1.bf16.msra.mxu1 %v5258_v40 }
  0x74   :  { %1176 = vmatprep.subr.bf16.mxu0 %v5252_v39  ;;  %1219 = vmatprep.subr.bf16.mxu1 %v5266_v42 }
  0x75   :  { %1206 = vmatprep.mubr.bf16.mxu0 %v6546_v1  ;;  %1249 = vmatprep.mubr.bf16.mxu1 %v6546_v1 }
  0x77   :  { %1177 = vmatpush1.bf16.msra.mxu0 %v5276_v44  ;;  %1220 = vmatpush1.bf16.msra.mxu1 %v5289_v46 }
  0x78   :  { %1178 = vmatprep.subr.bf16.mxu0 %v5283_v45  ;;  %1221 = vmatprep.subr.bf16.mxu1 %v5302_v49 }
  0x7b   :  { %1179 = vmatpush1.bf16.msra.mxu0 %v5296_v48  ;;  %1222 = vmatpush1.bf16.msra.mxu1 %v5313_v51 }
  0x7c   :  { %1180 = vmatprep.subr.bf16.mxu0 %v5308_v50  ;;  %1223 = vmatprep.subr.bf16.mxu1 %v5318_v52 }
  0x7f   :  { %1181 = vmatpush1.bf16.msra.mxu0 %v5332_v55  ;;  %1224 = vmatpush1.bf16.msra.mxu1 %v5345_v57 }
  0x80   :  { %1182 = vmatprep.subr.bf16.mxu0 %v5340_v56  ;;  %1225 = vmatprep.subr.bf16.mxu1 %v5367_v62 }
  0x83   :  { %1183 = vmatpush1.bf16.msra.mxu0 %v5350_v59  ;;  %1226 = vmatpush1.bf16.msra.mxu1 %v5361_v61 }
  0x84   :  { %1184 = vmatprep.subr.bf16.mxu0 %v5356_v60  ;;  %1227 = vmatprep.subr.bf16.mxu1 %v5372_v63 }
  0x87   :  { %1185 = vmatpush1.bf16.msra.mxu0 %v5385_v3  ;;  %1228 = vmatpush1.bf16.msra.mxu1 %v5397_v5 }
  0x88   :  { %1186 = vmatprep.subr.bf16.mxu0 %v5392_v4  ;;  %1229 = vmatprep.subr.bf16.mxu1 %v5412_v8 }
  0x8b   :  { %1187 = vmatpush1.bf16.msra.mxu0 %v5406_v7  ;;  %1230 = vmatpush1.bf16.msra.mxu1 %v5422_v10 }
  0x8c   :  { %1188 = vmatprep.subr.bf16.mxu0 %v5417_v9  ;;  %1231 = vmatprep.subr.bf16.mxu1 %v5428_v11 }
  0x8f   :  { %1189 = vmatpush1.bf16.msra.mxu0 %v5441_v14  ;;  %1232 = vmatpush1.bf16.msra.mxu1 %v5448_v15 }
  0xe2   :  { %v5533_v33 = vpop.f32.mrf.mxu0  ;;  %v5535_v34 = vpop.f32.mrf.mxu1 }
  0xe4   :  { %v5537_v35 = vpop.f32.mrf.mxu0  ;;  %v5539_v36 = vpop.f32.mrf.mxu1 }
  0xe6   :  { %v5541_v37 = vpop.f32.mrf.mxu0  ;;  %v5543_v38 = vpop.f32.mrf.mxu1 }
  0xe8   :  { %v5545_v39 = vpop.f32.mrf.mxu0  ;;  %v5547_v40 = vpop.f32.mrf.mxu1 }
  0xea   :  { %v5549_v41 = vpop.f32.mrf.mxu0  ;;  %v5551_v42 = vpop.f32.mrf.mxu1 }
  0xec   :  { %v5553_v43 = vpop.f32.mrf.mxu0  ;;  %v5555_v44 = vpop.f32.mrf.mxu1 }
  0xee   :  { %v5557_v45 = vpop.f32.mrf.mxu0  ;;  %v5559_v46 = vpop.f32.mrf.mxu1 }
  0xf0   :  { %v5561_v47 = vpop.f32.mrf.mxu0  ;;  %v5563_v48 = vpop.f32.mrf.mxu1 }
  0xf2   :  { %v5565_v49 = vpop.f32.mrf.mxu0  ;;  %v5567_v50 = vpop.f32.mrf.mxu1 }
  0xf4   :  { %v5569_v51 = vpop.f32.mrf.mxu0  ;;  %v5571_v52 = vpop.f32.mrf.mxu1 }
  0xf6   :  { %v5573_v53 = vpop.f32.mrf.mxu0  ;;  %v5575_v54 = vpop.f32.mrf.mxu1 }
  0xf8   :  { %v5577_v55 = vpop.f32.mrf.mxu0  ;;  %v5579_v56 = vpop.f32.mrf.mxu1 }
  0xfa   :  { %v5581_v57 = vpop.f32.mrf.mxu0  ;;  %v5583_v58 = vpop.f32.mrf.mxu1 }
  0xfb   :  { %6548 = vst [vmem:[#allocation3_spill] sm:$0xff] %v5583_v58 }
  0xfc   :  { %v5585_v59 = vpop.f32.mrf.mxu0  ;;  %v5587_v60 = vpop.f32.mrf.mxu1 }
  0xfd   :  { %6549 = vst [vmem:[#allocation4_spill] sm:$0xff] %v5587_v60 }
  0xfe   :  { %v5589_v0 = vpop.f32.mrf.mxu0  ;;  %v5591_v2 = vpop.f32.mrf.mxu1 }
  0xff   :  { %6550 = vst [vmem:[#allocation5_spill] sm:$0xff] %v5589_v0  ;;  %6551 = vst [vmem:[#allocation6_spill] sm:$0xff] %v5591_v2 }
 0x100   :  { %v5593_v3 = vpop.f32.mrf.mxu0  ;;  %v5595_v4 = vpop.f32.mrf.mxu1 }
 0x101   :  { %6552 = vst [vmem:[#allocation7_spill] sm:$0xff] %v5593_v3  ;;  %6553 = vst [vmem:[#allocation8_spill] sm:$0xff] %v5595_v4 }
 0x102   :  { %v5597_v6 = vpop.f32.mrf.mxu0  ;;  %v5599_v7 = vpop.f32.mrf.mxu1 }
 0x103   :  { %6554 = vst [vmem:[#allocation9_spill] sm:$0xff] %v5597_v6  ;;  %6555 = vst [vmem:[#allocation10_spill] sm:$0xff] %v5599_v7 }
 0x104   :  { %v5601_v9 = vpop.f32.mrf.mxu0  ;;  %v5603_v12 = vpop.f32.mrf.mxu1 }
 0x105   :  { %6556 = vst [vmem:[#allocation11_spill] sm:$0xff] %v5601_v9  ;;  %6557 = vst [vmem:[#allocation12_spill] sm:$0xff] %v5603_v12 }
 0x106   :  { %v5605_v13 = vpop.f32.mrf.mxu0  ;;  %v5607_v14 = vpop.f32.mrf.mxu1 }
 0x107   :  { %6558 = vst [vmem:[#allocation13_spill] sm:$0xff] %v5605_v13  ;;  %6559 = vst [vmem:[#allocation14_spill] sm:$0xff] %v5607_v14 }
 0x108   :  { %v5609_v16 = vpop.f32.mrf.mxu0  ;;  %v5611_v17 = vpop.f32.mrf.mxu1 }
 0x109   :  { %6560 = vst [vmem:[#allocation15_spill] sm:$0xff] %v5609_v16  ;;  %6561 = vst [vmem:[#allocation16_spill] sm:$0xff] %v5611_v17 }
 0x10a   :  { %v5613_v18 = vpop.f32.mrf.mxu0  ;;  %v5615_v19 = vpop.f32.mrf.mxu1 }
 0x10b   :  { %6562 = vst [vmem:[#allocation17_spill] sm:$0xff] %v5613_v18  ;;  %6563 = vst [vmem:[#allocation18_spill] sm:$0xff] %v5615_v19 }
 0x10c   :  { %v5617_v20 = vpop.f32.mrf.mxu0  ;;  %v5619_v21 = vpop.f32.mrf.mxu1 }
 0x10d   :  { %6564 = vst [vmem:[#allocation19_spill] sm:$0xff] %v5617_v20  ;;  %6565 = vst [vmem:[#allocation20_spill] sm:$0xff] %v5619_v21 }
 0x10e   :  { %v5621_v22 = vpop.f32.mrf.mxu0  ;;  %v5623_v23 = vpop.f32.mrf.mxu1 }
 0x10f   :  { %6566 = vst [vmem:[#allocation21_spill] sm:$0xff] %v5621_v22  ;;  %6567 = vst [vmem:[#allocation22_spill] sm:$0xff] %v5623_v23 }
 0x110   :  { %v5625_v24 = vpop.f32.mrf.mxu0  ;;  %v5627_v25 = vpop.f32.mrf.mxu1 }
 0x111   :  { %6568 = vst [vmem:[#allocation23_spill] sm:$0xff] %v5625_v24  ;;  %6569 = vst [vmem:[#allocation24_spill] sm:$0xff] %v5627_v25 }
 0x112   :  { %v5629_v26 = vpop.f32.mrf.mxu0  ;;  %v5631_v27 = vpop.f32.mrf.mxu1 }
 0x113   :  { %6570 = vst [vmem:[#allocation25_spill] sm:$0xff] %v5629_v26  ;;  %6571 = vst [vmem:[#allocation26_spill] sm:$0xff] %v5631_v27 }
 0x114   :  { %v5633_v28 = vpop.f32.mrf.mxu0  ;;  %v5635_v29 = vpop.f32.mrf.mxu1 }
 0x115   :  { %6572 = vst [vmem:[#allocation27_spill] sm:$0xff] %v5633_v28  ;;  %6573 = vst [vmem:[#allocation28_spill] sm:$0xff] %v5635_v29 }
 0x116   :  { %v5637_v30 = vpop.f32.mrf.mxu0  ;;  %v5639_v31 = vpop.f32.mrf.mxu1 }
 0x117   :  { %6574 = vst [vmem:[#allocation29_spill] sm:$0xff] %v5637_v30  ;;  %6575 = vst [vmem:[#allocation30_spill] sm:$0xff] %v5639_v31  ;;  %v84_v31 = vlaneseq }
 0x118   :  { %v5641_v32 = vpop.f32.mrf.mxu0  ;;  %v5643_v1 = vpop.f32.mrf.mxu1 }
 0x119   :  { %6576 = vst [vmem:[#allocation31_spill] sm:$0xff] %v5641_v32  ;;  %6577 = vst [vmem:[#allocation32_spill] sm:$0xff] %v5643_v1 }
 0x11a   :  { %v5645_v21 = vpop.f32.mrf.mxu0  ;;  %v5647_v23 = vpop.f32.mrf.mxu1 }
 0x11b   :  { %6578 = vst [vmem:[#allocation33_spill] sm:$0xff] %v5645_v21  ;;  %6579 = vst [vmem:[#allocation34_spill] sm:$0xff] %v5647_v23 }
 0x11c   :  { %v5649_v25 = vpop.f32.mrf.mxu0  ;;  %v5651_v26 = vpop.f32.mrf.mxu1 }
 0x11d   :  { %6580 = vst [vmem:[#allocation35_spill] sm:$0xff] %v5649_v25  ;;  %6581 = vst [vmem:[#allocation36_spill] sm:$0xff] %v5651_v26  ;;  %v85_v25 = vshrl.u32 %v84_v31, 7 }
 0x11e   :  { %v5653_v27 = vpop.f32.mrf.mxu0  ;;  %v5655_v28 = vpop.f32.mrf.mxu1 }
 0x11f   :  { %6582 = vst [vmem:[#allocation37_spill] sm:$0xff] %v5653_v27  ;;  %6583 = vst [vmem:[#allocation38_spill] sm:$0xff] %v5655_v28  ;;  %v98_v14 = vsub.s32 3, %v85_v25 }
 0x120   :  { %v5657_v29 = vpop.f32.mrf.mxu0  ;;  %v5659_v30 = vpop.f32.mrf.mxu1 }
 0x121   :  { %6584 = vst [vmem:[#allocation39_spill] sm:$0xff] %v5657_v29  ;;  %6585 = vst [vmem:[#allocation40_spill] sm:$0xff] %v5659_v30  ;;  %v86_v29 = vsub.s32 0, %v85_v25 }
 0x122   :  { %v5661_v32 = vpop.f32.mrf.mxu0  ;;  %v5663_v1 = vpop.f32.mrf.mxu1 }
 0x123   :  { %6586 = vst [vmem:[#allocation41_spill] sm:$0xff] %v5661_v32  ;;  %6587 = vst [vmem:[#allocation42_spill] sm:$0xff] %v5663_v1  ;;  %v82_v32 = vld [vmem:[%s6543_s3] sm:$0xf] }
 0x124   :  { %v5665_v21 = vpop.f32.mrf.mxu0  ;;  %v5667_v23 = vpop.f32.mrf.mxu1 }
 0x125   :  { %6588 = vst [vmem:[#allocation43_spill] sm:$0xff] %v5665_v21  ;;  %6589 = vst [vmem:[#allocation44_spill] sm:$0xff] %v5667_v23  ;;  %v90_v21 = vsub.s32 1, %v85_v25 }
 0x126   :  { %v5669_v19 = vpop.f32.mrf.mxu0  ;;  %v5671_v26 = vpop.f32.mrf.mxu1 }
 0x127   :  { %6590 = vst [vmem:[#allocation45_spill] sm:$0xff] %v5669_v19  ;;  %6591 = vst [vmem:[#allocation46_spill] sm:$0xff] %v5671_v26  ;;  %v5688_v19 = vrot.slane %v82_v32, %v86_v29 }
 0x128   :  { %v5673_v27 = vpop.f32.mrf.mxu0  ;;  %v5675_v28 = vpop.f32.mrf.mxu1 }
 0x129   :  { %6592 = vst [vmem:[#allocation47_spill] sm:$0xff] %v5673_v27  ;;  %6593 = vst [vmem:[#allocation48_spill] sm:$0xff] %v5675_v28  ;;  %v5694_v28 = vrot.slane %v82_v32, %v90_v21 }
 0x12a   :  { %v5680_v30 = vpop.f32.mrf.mxu0  ;;  %v5682_v1 = vpop.f32.mrf.mxu1 }
 0x12b   :  { %6594 = vst [vmem:[#allocation49_spill] sm:$0xff] %v5680_v30  ;;  %6595 = vst [vmem:[#allocation50_spill] sm:$0xff] %v5682_v1  ;;  %v299_v30 = vadd.f32 %v5533_v33, %v5688_v19  ;;  %v94_v1 = vsub.s32 2, %v85_v25  ;;  %v305_v33 = vadd.f32 %v5545_v39, %v5694_v28  ;;  %v315_v60 = vadd.f32 %v5561_v47, %v5694_v28 }
 0x12c   :  { %v5684_v23 = vpop.f32.mrf.mxu0  ;;  %v5686_v31 = vpop.f32.mrf.mxu1 }
 0x12d   :  { %6596 = vst [vmem:[#allocation51_spill] sm:$0xff] %v5684_v23  ;;  %6597 = vst [vmem:[#allocation52_spill] sm:$0xff] %v5686_v31  ;;  %v301_v31 = vadd.f32 %v5537_v35, %v5694_v28  ;;  %v5706_v17 = vrot.slane %v82_v32, %v94_v1  ;;  %v5712_v1 = vrot.slane %v82_v32, %v98_v14 }
 0x12e   :  { %v5690_v26 = vpop.f32.mrf.mxu0  ;;  %v5692_v27 = vpop.f32.mrf.mxu1 }
 0x12f   :  { %6598 = vst [vmem:[#allocation53_spill] sm:$0xff] %v5690_v26  ;;  %6599 = vst [vmem:[#allocation54_spill] sm:$0xff] %v5692_v27  ;;  %v303_v26 = vadd.f32 %v5541_v37, %v5688_v19  ;;  %v432_v37 = vadd.f32 %v5535_v34, %v5706_v17  ;;  %v436_v39 = vadd.f32 %v5543_v38, %v5706_v17 }
 0x130   :  { %v5696_v24 = vpop.f32.mrf.mxu0  ;;  %v5700_v22 = vpop.f32.mrf.mxu1  ;;  %v438_v34 = vadd.f32 %v5547_v40, %v5712_v1  ;;  %v444_v47 = vadd.f32 %v5555_v44, %v5712_v1 }
 0x131   :  { %6600 = vst [vmem:[#allocation55_spill] sm:$0xff] %v5696_v24  ;;  %6601 = vst [vmem:[#allocation56_spill] sm:$0xff] %v5700_v22 }
 0x132   :  { %v854_v20 = vpop.f32.mrf.mxu0  ;;  %v897_v21 = vpop.f32.mrf.mxu1 }
 0x133   :  { %v906_v29 = vadd.f32 %v854_v20, %v299_v30 }
 0x134   :  { %v856_v23 = vpop.f32.mrf.mxu0  ;;  %v899_v35 = vpop.f32.mrf.mxu1 }
 0x135   :  { %v4235_v27 = vmul.f32 -1.442695, %v906_v29  ;;  %v907_v18 = vadd.f32 %v856_v23, %v301_v31  ;;  %v908_v31 = vadd.f32 %v897_v21, %v432_v37 }
 0x136   :  { %v858_v24 = vpop.f32.mrf.mxu0  ;;  %v901_v29 = vpop.f32.mrf.mxu1 }
 0x137   :  { %4777 = vpow2.f32 %v4235_v27  ;;  %v4236_v22 = vmul.f32 -1.442695, %v907_v18  ;;  %v910_v12 = vadd.f32 %v858_v24, %v303_v26  ;;  %v434_v18 = vadd.f32 %v5539_v36, %v5712_v1 }
 0x138   :  { %v860_v7 = vpop.f32.mrf.mxu0  ;;  %v4237_v24 = vmul.f32 -1.442695, %v908_v31 }
 0x139   :  { %4779 = vpow2.f32 %v4236_v22  ;;  %v4238_v20 = vmul.f32 -1.442695, %v910_v12  ;;  %v911_v30 = vadd.f32 %v860_v7, %v305_v33  ;;  %v912_v22 = vadd.f32 %v901_v29, %v436_v39  ;;  %v903_v7 = vpop.f32.mrf.mxu1 }
 0x13a   :  { %v909_v12 = vadd.f32 %v899_v35, %v434_v18  ;;  %v913_v32 = vadd.f32 %v903_v7, %v438_v34 }
 0x13b   :  { %4781 = vpow2.f32 %v4238_v20  ;;  %v4239_v23 = vmul.f32 -1.442695, %v911_v30  ;;  %v4240_v26 = vmul.f32 -1.442695, %v912_v22 }
 0x13d   :  { %4783 = vpow2.f32 %v4239_v23 }
 0x13e   :  { %4785 = vpow2.f32 %v4237_v24 }
 0x13f   :  { %4787 = vtanh.f32 %v909_v12 }
 0x144   :  { %v4778_v25 = vpop.eup %4777 }
 0x145   :  { %v932_v14 = vadd.f32 1.0, %v4778_v25 }
 0x146   :  { %v4780_v27 = vpop.eup %4779 }
 0x147   :  { %4789 = vrcp.f32 %v932_v14  ;;  %v933_v21 = vadd.f32 1.0, %v4780_v27 }
 0x148   :  { %v4782_v38 = vpop.eup %4781  ;;  %4791 = vpow2.f32 %v4240_v26 }
 0x149   :  { %4793 = vrcp.f32 %v933_v21  ;;  %v935_v36 = vadd.f32 1.0, %v4782_v38 }
 0x14a   :  { %v4784_v33 = vpop.eup %4783  ;;  %4795 = vtanh.f32 %v913_v32 }
 0x14b   :  { %4797 = vrcp.f32 %v935_v36  ;;  %v936_v35 = vadd.f32 1.0, %v4784_v33  ;;  %v4786_v20 = vpop.eup %4785 }
 0x14c   :  { %v4788_v30 = vpop.eup %4787  ;;  %v934_v22 = vadd.f32 1.0, %v4786_v20  ;;  %v5731_v20 = vld [vmem:[%s6541_s2 + $0xe4] ss:$16 sps:$4 sm:$0xff]  }
 0x14d   :  { %4799 = vrcp.f32 %v936_v35  ;;  %v6602_v35 = vmov 0   ;;  %1528 = vmatprep.subr.bf16.mxu0 %v5731_v20 }
 0x14e   :  { %4801 = vrcp.f32 %v934_v22  ;;  %v5784_v22 = vld [vmem:[%s6541_s2 + $0xac] ss:$16 sps:$4 sm:$0xff]  }
 0x154   :  { %v4790_v40 = vpop.eup %4789 }
 0x155   :  { %v4792_v37 = vpop.eup %4791  ;;  %v956_v23 = vmul.f32 %v4790_v40, %v4788_v30  ;;  %v5736_v30 = vld [vmem:[%s6541_s2 + $0xec] ss:$16 sps:$4 sm:$0xff]   ;;  %v5741_v40 = vld [vmem:[%s6541_s2 + $0xe0] ss:$16 sps:$4 sm:$0xff]  }
 0x156   :  { %v4794_v31 = vpop.eup %4793  ;;  %v937_v25 = vadd.f32 1.0, %v4792_v37  ;;  %v5746_v37 = vld [vmem:[%s6541_s2 + $0xe8] ss:$16 sps:$4 sm:$0xff]   ;;  %1571 = vmatprep.subr.bf16.mxu1 %v5736_v30 }
 0x157   :  { %v4796_v29 = vpop.eup %4795  ;;  %v954_v39 = vmul.f32 0.0, %v4794_v31  ;;  %v5760_v31 = vld [vmem:[%s6541_s2 + $0xcc] ss:$16 sps:$4 sm:$0xff]  }
 0x158   :  { %v4798_v18 = vpop.eup %4797 }
 0x159   :  { %v5720_v24 = vadd.f32 %v956_v23, %v954_v39  ;;  %v957_v12 = vmul.f32 %v4798_v18, %v4796_v29  ;;  %v5755_v23 = vld [vmem:[%s6541_s2 + $0xc4] ss:$16 sps:$4 sm:$0xff]   ;;  %v5765_v29 = vld [vmem:[%s6541_s2 + $0xc0] ss:$16 sps:$4 sm:$0xff]   ;;  %v5770_v39 = vld [vmem:[%s6541_s2 + $0xc8] ss:$16 sps:$4 sm:$0xff]  }
 0x15a   :  { %v4800_v7 = vpop.eup %4799  ;;  %v5779_v18 = vld [vmem:[%s6541_s2 + $0xa4] ss:$16 sps:$4 sm:$0xff]  }
 0x15b   :  { %v955_v34 = vmul.f32 0.0, %v4800_v7  ;;  %4803 = vtanh.f32 %v5720_v24  ;;  %v4802_v14 = vpop.eup %4801  ;;  %v5794_v7 = vld [vmem:[%s6541_s2 + $0xa8] ss:$16 sps:$4 sm:$0xff]  }
 0x15c   :  { %4805 = vrcp.f32 %v937_v25  ;;  %v5803_v25 = vld [vmem:[%s6541_s2 + $0x84] ss:$16 sps:$4 sm:$0xff]  }
 0x15d   :  { %v5723_v26 = vadd.f32 %v957_v12, %v955_v34  ;;  %v5789_v12 = vld [vmem:[%s6541_s2 + $0xa0] ss:$16 sps:$4 sm:$0xff]   ;;  %v5808_v34 = vld [vmem:[%s6541_s2 + $0x8c] ss:$16 sps:$4 sm:$0xff]  }
 0x15f   :  { %4807 = vtanh.f32 %v5723_v26 }
 0x168   :  { %v4804_v27 = vpop.eup %4803 }
 0x169   :  { %v4806_v32 = vpop.eup %4805  ;;  %v964_v38 = vmul.f32 %v4804_v27, %v4802_v14  ;;  %v5813_v14 = vld [vmem:[%s6541_s2 + $0x80] ss:$16 sps:$4 sm:$0xff]   ;;  %v5818_v27 = vld [vmem:[%s6541_s2 + $0x88] ss:$16 sps:$4 sm:$0xff]  }
 0x16c   :  { %v4808_v21 = vpop.eup %4807 }
 0x16d   :  { %v965_v36 = vmul.f32 %v4808_v21, %v4806_v32  ;;  %v5827_v32 = vld [vmem:[%s6541_s2 + $0x64] ss:$16 sps:$4 sm:$0xff]   ;;  %v5833_v21 = vld [vmem:[%s6541_s2 + $0x60] ss:$16 sps:$4 sm:$0xff]  }
 0x16f   :  { %v981_v33 = vpack.c.bf16 %v965_v36, %v964_v38  ;;  %v5841_v38 = vld [vmem:[%s6541_s2 + $0x44] ss:$16 sps:$4 sm:$0xff]  }
 0x171   :  { %1207 = vmatmul.mubr.bf16.vlgmr.msra.gmra.mxu0 %v981_v33  ;;  %1250 = vmatmul.mubr.bf16.vlgmr.msra.gmra.mxu1 %v981_v33  ;;  %v311_v33 = vadd.f32 %v5553_v43, %v5694_v28 }
 0x172   :  { %1560 = vmatprep.mubr.bf16.mxu0 %v6602_v35  ;;  %1603 = vmatprep.mubr.bf16.mxu1 %v6602_v35 }
 0x173   :  { %1529 = vmatpush1.bf16.msra.mxu0 %v5741_v40  ;;  %1572 = vmatpush1.bf16.msra.mxu1 %v5746_v37 }
 0x174   :  { %1530 = vmatprep.subr.bf16.mxu0 %v5755_v23  ;;  %1573 = vmatprep.subr.bf16.mxu1 %v5760_v31 }
 0x177   :  { %1531 = vmatpush1.bf16.msra.mxu0 %v5765_v29  ;;  %1574 = vmatpush1.bf16.msra.mxu1 %v5770_v39 }
 0x178   :  { %1532 = vmatprep.subr.bf16.mxu0 %v5779_v18  ;;  %1575 = vmatprep.subr.bf16.mxu1 %v5784_v22 }
 0x17b   :  { %1533 = vmatpush1.bf16.msra.mxu0 %v5789_v12  ;;  %1576 = vmatpush1.bf16.msra.mxu1 %v5794_v7 }
 0x17c   :  { %1534 = vmatprep.subr.bf16.mxu0 %v5803_v25  ;;  %1577 = vmatprep.subr.bf16.mxu1 %v5808_v34 }
 0x17f   :  { %1535 = vmatpush1.bf16.msra.mxu0 %v5813_v14  ;;  %1578 = vmatpush1.bf16.msra.mxu1 %v5818_v27 }
 0x180   :  { %1579 = vmatprep.subr.bf16.mxu1 %v5367_v62  ;;  %1536 = vmatprep.subr.bf16.mxu0 %v5827_v32  ;;  %v5847_v62 = vld [vmem:[%s6541_s2 + $0x40] ss:$16 sps:$4 sm:$0xff]  }
 0x183   :  { %1537 = vmatpush1.bf16.msra.mxu0 %v5833_v21  ;;  %1580 = vmatpush1.bf16.msra.mxu1 %v5361_v61  ;;  %v5855_v61 = vld [vmem:[%s6541_s2 + $0x24] ss:$16 sps:$4 sm:$0xff]  }
 0x184   :  { %1581 = vmatprep.subr.bf16.mxu1 %v5372_v63  ;;  %1538 = vmatprep.subr.bf16.mxu0 %v5841_v38  ;;  %v5861_v63 = vld [vmem:[%s6541_s2 + $0x20] ss:$16 sps:$4 sm:$0xff]  }
 0x187   :  { %1539 = vmatpush1.bf16.msra.mxu0 %v5847_v62  ;;  %1582 = vmatpush1.bf16.msra.mxu1 %v5397_v5  ;;  %v5869_v5 = vld [vmem:[%s6541_s2] ss:$16 sps:$4 sm:$0xff]  }
 0x188   :  { %1583 = vmatprep.subr.bf16.mxu1 %v5412_v8  ;;  %1540 = vmatprep.subr.bf16.mxu0 %v5855_v61  ;;  %v5874_v8 = vld [vmem:[%s6541_s2 + $0x4] ss:$16 sps:$4 sm:$0xff]  }
 0x18b   :  { %1541 = vmatpush1.bf16.msra.mxu0 %v5861_v63  ;;  %1584 = vmatpush1.bf16.msra.mxu1 %v5422_v10  ;;  %v309_v10 = vadd.f32 %v5549_v41, %v5688_v19 }
 0x18c   :  { %1585 = vmatprep.subr.bf16.mxu1 %v5428_v11  ;;  %1542 = vmatprep.subr.bf16.mxu0 %v5874_v8  ;;  %v313_v11 = vadd.f32 %v5557_v45, %v5688_v19 }
 0x18f   :  { %1543 = vmatpush1.bf16.msra.mxu0 %v5869_v5  ;;  %1586 = vmatpush1.bf16.msra.mxu1 %v5448_v15 }
 0x190   :  { %1882 = vmatprep.subr.bf16.mxu0 %v5731_v20  ;;  %1925 = vmatprep.subr.bf16.mxu1 %v5736_v30 }
 0x231   :  { %v1208_v36 = vpop.f32.mrf.mxu0  ;;  %v1251_v6 = vpop.f32.mrf.mxu1 }
 0x232   :  { %v1260_v16 = vadd.f32 %v1208_v36, %v309_v10  ;;  %v442_v10 = vadd.f32 %v5551_v42, %v5706_v17 }
 0x233   :  { %v1210_v13 = vpop.f32.mrf.mxu0  ;;  %v1253_v3 = vpop.f32.mrf.mxu1 }
 0x234   :  { %v4273_v9 = vmul.f32 -1.442695, %v1260_v16  ;;  %v1261_v4 = vadd.f32 %v1210_v13, %v311_v33  ;;  %v1262_v16 = vadd.f32 %v1251_v6, %v442_v10  ;;  %v446_v13 = vadd.f32 %v5559_v46, %v5706_v17 }
 0x235   :  { %v1212_v15 = vpop.f32.mrf.mxu0  ;;  %v1255_v36 = vpop.f32.mrf.mxu1 }
 0x236   :  { %4809 = vpow2.f32 %v4273_v9  ;;  %v4274_v2 = vmul.f32 -1.442695, %v1261_v4  ;;  %v1264_v58 = vadd.f32 %v1212_v15, %v313_v11  ;;  %v1266_v4 = vadd.f32 %v1255_v36, %v446_v13 }
 0x237   :  { %v1214_v41 = vpop.f32.mrf.mxu0  ;;  %v4275_v9 = vmul.f32 -1.442695, %v1262_v16  ;;  %v1257_v33 = vpop.f32.mrf.mxu1 }
 0x238   :  { %4811 = vpow2.f32 %v4274_v2  ;;  %v4276_v0 = vmul.f32 -1.442695, %v1264_v58  ;;  %v1265_v43 = vadd.f32 %v1214_v41, %v315_v60  ;;  %v1263_v2 = vadd.f32 %v1253_v3, %v444_v47 }
 0x239   :  { %v448_v60 = vadd.f32 %v5563_v48, %v5712_v1  ;;  %v4278_v42 = vmul.f32 -1.442695, %v1266_v4 }
 0x23a   :  { %4813 = vpow2.f32 %v4276_v0  ;;  %v4277_v45 = vmul.f32 -1.442695, %v1265_v43 }
 0x23b   :  { %v1267_v11 = vadd.f32 %v1257_v33, %v448_v60 }
 0x23c   :  { %4815 = vpow2.f32 %v4277_v45 }
 0x23d   :  { %4817 = vpow2.f32 %v4275_v9 }
 0x23e   :  { %4819 = vtanh.f32 %v1263_v2 }
 0x243   :  { %v4810_v58 = vpop.eup %4809 }
 0x244   :  { %v1286_v0 = vadd.f32 1.0, %v4810_v58 }
 0x245   :  { %v4812_v6 = vpop.eup %4811 }
 0x246   :  { %4821 = vrcp.f32 %v1286_v0  ;;  %v1287_v15 = vadd.f32 1.0, %v4812_v6 }
 0x247   :  { %v4814_v46 = vpop.eup %4813  ;;  %4823 = vpow2.f32 %v4278_v42 }
 0x248   :  { %4825 = vrcp.f32 %v1287_v15  ;;  %v1289_v44 = vadd.f32 1.0, %v4814_v46 }
 0x249   :  { %v4816_v41 = vpop.eup %4815  ;;  %4827 = vtanh.f32 %v1267_v11 }
 0x24a   :  { %4829 = vrcp.f32 %v1289_v44  ;;  %v1290_v3 = vadd.f32 1.0, %v4816_v41  ;;  %v4818_v43 = vpop.eup %4817 }
 0x24b   :  { %v4820_v10 = vpop.eup %4819  ;;  %v1288_v9 = vadd.f32 1.0, %v4818_v43  ;;  %v5946_v43 = vld [vmem:[%s6541_s2 + $0x4c] ss:$16 sps:$4 sm:$0xff]  }
 0x24c   :  { %4831 = vrcp.f32 %v1290_v3  ;;  %v5939_v3 = vld [vmem:[%s6541_s2 + $0x68] ss:$16 sps:$4 sm:$0xff]  }
 0x24d   :  { %4833 = vrcp.f32 %v1288_v9 }
 0x253   :  { %v4822_v48 = vpop.eup %4821 }
 0x254   :  { %v4824_v45 = vpop.eup %4823  ;;  %v1310_v16 = vmul.f32 %v4822_v48, %v4820_v10  ;;  %v5951_v10 = vld [vmem:[%s6541_s2 + $0x48] ss:$16 sps:$4 sm:$0xff]   ;;  %v5958_v48 = vld [vmem:[%s6541_s2 + $0x2c] ss:$16 sps:$4 sm:$0xff]  }
 0x255   :  { %v4826_v36 = vpop.eup %4825  ;;  %v1291_v60 = vadd.f32 1.0, %v4824_v45  ;;  %v5963_v45 = vld [vmem:[%s6541_s2 + $0x28] ss:$16 sps:$4 sm:$0xff]  }
 0x256   :  { %v4828_v13 = vpop.eup %4827  ;;  %v1308_v47 = vmul.f32 %v4826_v36, %v5720_v24  ;;  %v5975_v36 = vld [vmem:[%s6541_s2 + $0xc] ss:$16 sps:$4 sm:$0xff]  }
 0x257   :  { %v4830_v4 = vpop.eup %4829 }
 0x258   :  { %v5899_v2 = vadd.f32 %v1310_v16, %v1308_v47  ;;  %v1311_v33 = vmul.f32 %v4830_v4, %v4828_v13  ;;  %v5970_v16 = vld [vmem:[%s6541_s2 + $0x8] ss:$16 sps:$4 sm:$0xff]   ;;  %v319_v13 = vadd.f32 %v5565_v49, %v5688_v19  ;;  %v321_v4 = vadd.f32 %v5569_v51, %v5694_v28 }
 0x259   :  { %v4832_v58 = vpop.eup %4831 }
 0x25a   :  { %v1309_v42 = vmul.f32 %v4832_v58, %v5723_v26  ;;  %4835 = vtanh.f32 %v5899_v2  ;;  %v4834_v6 = vpop.eup %4833  ;;  %v5934_v26 = vld [vmem:[%s6541_s2 + $0x6c] ss:$16 sps:$4 sm:$0xff]   ;;  %v323_v58 = vadd.f32 %v5573_v53, %v5688_v19 }
 0x25b   :  { %4837 = vrcp.f32 %v1291_v60 }
 0x25c   :  { %v5903_v0 = vadd.f32 %v1311_v33, %v1309_v42 }
 0x25e   :  { %4839 = vtanh.f32 %v5903_v0 }
 0x267   :  { %v4836_v11 = vpop.eup %4835 }
 0x268   :  { %v4838_v24 = vpop.eup %4837  ;;  %v1318_v46 = vmul.f32 %v4836_v11, %v4834_v6 }
 0x26b   :  { %v4840_v15 = vpop.eup %4839 }
 0x26c   :  { %v1319_v44 = vmul.f32 %v4840_v15, %v4838_v24  ;;  %v325_v24 = vadd.f32 %v5577_v55, %v5694_v28  ;;  %v454_v55 = vadd.f32 %v5571_v52, %v5712_v1 }
 0x26e   :  { %v1335_v41 = vpack.c.bf16 %v1319_v44, %v1318_v46 }
 0x270   :  { %1561 = vmatmul.mubr.bf16.vlgmr.msra.gmra.mxu0 %v1335_v41  ;;  %1604 = vmatmul.mubr.bf16.vlgmr.msra.gmra.mxu1 %v1335_v41 }
 0x271   :  { %1883 = vmatpush1.bf16.msra.mxu0 %v5741_v40  ;;  %1926 = vmatpush1.bf16.msra.mxu1 %v5746_v37 }
 0x272   :  { %1884 = vmatprep.subr.bf16.mxu0 %v5755_v23  ;;  %1927 = vmatprep.subr.bf16.mxu1 %v5760_v31 }
 0x273   :  { %1914 = vmatprep.mubr.bf16.mxu0 %v6602_v35  ;;  %1957 = vmatprep.mubr.bf16.mxu1 %v6602_v35 }
 0x275   :  { %1885 = vmatpush1.bf16.msra.mxu0 %v5765_v29  ;;  %1928 = vmatpush1.bf16.msra.mxu1 %v5770_v39 }
 0x276   :  { %1886 = vmatprep.subr.bf16.mxu0 %v5779_v18  ;;  %1929 = vmatprep.subr.bf16.mxu1 %v5784_v22 }
 0x279   :  { %1887 = vmatpush1.bf16.msra.mxu0 %v5789_v12  ;;  %1930 = vmatpush1.bf16.msra.mxu1 %v5794_v7 }
 0x27a   :  { %1888 = vmatprep.subr.bf16.mxu0 %v5803_v25  ;;  %1931 = vmatprep.subr.bf16.mxu1 %v5808_v34 }
 0x27d   :  { %1889 = vmatpush1.bf16.msra.mxu0 %v5813_v14  ;;  %1932 = vmatpush1.bf16.msra.mxu1 %v5818_v27 }
 0x27e   :  { %1890 = vmatprep.subr.bf16.mxu0 %v5827_v32  ;;  %1933 = vmatprep.subr.bf16.mxu1 %v5934_v26 }
 0x281   :  { %1891 = vmatpush1.bf16.msra.mxu0 %v5833_v21  ;;  %1934 = vmatpush1.bf16.msra.mxu1 %v5939_v3 }
 0x282   :  { %1892 = vmatprep.subr.bf16.mxu0 %v5841_v38  ;;  %1935 = vmatprep.subr.bf16.mxu1 %v5946_v43 }
 0x285   :  { %1893 = vmatpush1.bf16.msra.mxu0 %v5847_v62  ;;  %1936 = vmatpush1.bf16.msra.mxu1 %v5951_v10 }
 0x286   :  { %1894 = vmatprep.subr.bf16.mxu0 %v5855_v61  ;;  %1937 = vmatprep.subr.bf16.mxu1 %v5958_v48 }
 0x289   :  { %1895 = vmatpush1.bf16.msra.mxu0 %v5861_v63  ;;  %1938 = vmatpush1.bf16.msra.mxu1 %v5963_v45 }
 0x28a   :  { %1896 = vmatprep.subr.bf16.mxu0 %v5874_v8  ;;  %1939 = vmatprep.subr.bf16.mxu1 %v5975_v36 }
 0x28d   :  { %1897 = vmatpush1.bf16.msra.mxu0 %v5869_v5  ;;  %1940 = vmatpush1.bf16.msra.mxu1 %v5970_v16 }
 0x28e   :  { %2236 = vmatprep.subr.bf16.mxu0 %v5731_v20  ;;  %2279 = vmatprep.subr.bf16.mxu1 %v5736_v30 }
 0x330   :  { %v1562_v47 = vpop.f32.mrf.mxu0  ;;  %v1605_v42 = vpop.f32.mrf.mxu1 }
 0x331   :  { %v1614_v9 = vadd.f32 %v1562_v47, %v319_v13  ;;  %v452_v13 = vadd.f32 %v5567_v50, %v5706_v17 }
 0x332   :  { %v1564_v33 = vpop.f32.mrf.mxu0  ;;  %v1607_v44 = vpop.f32.mrf.mxu1 }
 0x333   :  { %v4311_v60 = vmul.f32 -1.442695, %v1614_v9  ;;  %v1615_v6 = vadd.f32 %v1564_v33, %v321_v4  ;;  %v1616_v47 = vadd.f32 %v1605_v42, %v452_v13  ;;  %v456_v4 = vadd.f32 %v5575_v54, %v5706_v17 }
 0x334   :  { %v1566_v11 = vpop.f32.mrf.mxu0  ;;  %v1609_v9 = vpop.f32.mrf.mxu1 }
 0x335   :  { %4841 = vpow2.f32 %v4311_v60  ;;  %v4312_v15 = vmul.f32 -1.442695, %v1615_v6  ;;  %v1618_v46 = vadd.f32 %v1566_v11, %v323_v58  ;;  %v1620_v33 = vadd.f32 %v1609_v9, %v456_v4 }
 0x336   :  { %v1568_v49 = vpop.f32.mrf.mxu0  ;;  %v4313_v58 = vmul.f32 -1.442695, %v1616_v47  ;;  %v1617_v60 = vadd.f32 %v1607_v44, %v454_v55  ;;  %v1611_v6 = vpop.f32.mrf.mxu1 }
 0x337   :  { %4843 = vpow2.f32 %v4312_v15  ;;  %v4314_v41 = vmul.f32 -1.442695, %v1618_v46  ;;  %v1619_v51 = vadd.f32 %v1568_v49, %v325_v24  ;;  %v458_v24 = vadd.f32 %v5579_v56, %v5712_v1 }
 0x338   :  { %v4316_v50 = vmul.f32 -1.442695, %v1620_v33 }
 0x339   :  { %4845 = vpow2.f32 %v4314_v41  ;;  %v4315_v53 = vmul.f32 -1.442695, %v1619_v51  ;;  %v1621_v46 = vadd.f32 %v1611_v6, %v458_v24 }
 0x33b   :  { %4847 = vpow2.f32 %v4315_v53 }
 0x33c   :  { %4849 = vpow2.f32 %v4313_v58 }
 0x33d   :  { %4851 = vtanh.f32 %v1617_v60 }
 0x342   :  { %v4842_v11 = vpop.eup %4841 }
 0x343   :  { %v1640_v15 = vadd.f32 1.0, %v4842_v11 }
 0x344   :  { %v4844_v42 = vpop.eup %4843 }
 0x345   :  { %4853 = vrcp.f32 %v1640_v15  ;;  %v1641_v49 = vadd.f32 1.0, %v4844_v42 }
 0x346   :  { %v4846_v54 = vpop.eup %4845  ;;  %4855 = vpow2.f32 %v4316_v50 }
 0x347   :  { %4857 = vrcp.f32 %v1641_v49  ;;  %v1643_v52 = vadd.f32 1.0, %v4846_v54 }
 0x348   :  { %v4848_v41 = vpop.eup %4847  ;;  %4859 = vtanh.f32 %v1621_v46 }
 0x349   :  { %4861 = vrcp.f32 %v1643_v52  ;;  %v1644_v44 = vadd.f32 1.0, %v4848_v41  ;;  %v4850_v51 = vpop.eup %4849 }
 0x34a   :  { %v4852_v13 = vpop.eup %4851  ;;  %v1642_v58 = vadd.f32 1.0, %v4850_v51  ;;  %v331_v51 = vadd.f32 %v5585_v59, %v5694_v28 }
 0x34b   :  { %4863 = vrcp.f32 %v1644_v44 }
 0x34c   :  { %4865 = vrcp.f32 %v1642_v58 }
 0x352   :  { %v4854_v56 = vpop.eup %4853 }
 0x353   :  { %v4856_v53 = vpop.eup %4855  ;;  %v1664_v47 = vmul.f32 %v4854_v56, %v4852_v13 }
 0x354   :  { %v4858_v9 = vpop.eup %4857  ;;  %v1645_v24 = vadd.f32 1.0, %v4856_v53  ;;  %v6603_v53 = vld [vmem:[#allocation5_spill] sm:$0xff] }
 0x355   :  { %v4860_v4 = vpop.eup %4859  ;;  %v1662_v55 = vmul.f32 %v4858_v9, %v5899_v2 }
 0x356   :  { %v4862_v33 = vpop.eup %4861 }
 0x357   :  { %v5997_v60 = vadd.f32 %v1664_v47, %v1662_v55  ;;  %v1665_v6 = vmul.f32 %v4862_v33, %v4860_v4  ;;  %v333_v47 = vadd.f32 %v6603_v53, %v5688_v19 }
 0x358   :  { %v4864_v11 = vpop.eup %4863 }
 0x359   :  { %v1663_v50 = vmul.f32 %v4864_v11, %v5903_v0  ;;  %4867 = vtanh.f32 %v5997_v60  ;;  %v4866_v42 = vpop.eup %4865  ;;  %v329_v0 = vadd.f32 %v5581_v57, %v5688_v19 }
 0x35a   :  { %4869 = vrcp.f32 %v1645_v24 }
 0x35b   :  { %v6001_v15 = vadd.f32 %v1665_v6, %v1663_v50  ;;  %v6605_v50 = vld [vmem:[#allocation3_spill] sm:$0xff] }
 0x35d   :  { %4871 = vtanh.f32 %v6001_v15 }
 0x366   :  { %v4868_v46 = vpop.eup %4867 }
 0x367   :  { %v4870_v2 = vpop.eup %4869  ;;  %v1672_v54 = vmul.f32 %v4868_v46, %v4866_v42  ;;  %v462_v42 = vadd.f32 %v6605_v50, %v5706_v17 }
 0x36a   :  { %v4872_v49 = vpop.eup %4871 }
 0x36b   :  { %v1673_v52 = vmul.f32 %v4872_v49, %v4870_v2 }
 0x36d   :  { %v1689_v41 = vpack.c.bf16 %v1673_v52, %v1672_v54  ;;  %v6606_v54 = vld [vmem:[#allocation6_spill] sm:$0xff] }
 0x36e   :  { %v466_v52 = vadd.f32 %v6606_v54, %v5706_v17 }
 0x36f   :  { %1915 = vmatmul.mubr.bf16.vlgmr.msra.gmra.mxu0 %v1689_v41  ;;  %1958 = vmatmul.mubr.bf16.vlgmr.msra.gmra.mxu1 %v1689_v41  ;;  %v6607_v41 = vld [vmem:[#allocation4_spill] sm:$0xff] }
 0x370   :  { %2237 = vmatpush1.bf16.msra.mxu0 %v5741_v40  ;;  %2280 = vmatpush1.bf16.msra.mxu1 %v5746_v37 }
 0x371   :  { %2238 = vmatprep.subr.bf16.mxu0 %v5755_v23  ;;  %2281 = vmatprep.subr.bf16.mxu1 %v5760_v31 }
 0x372   :  { %2268 = vmatprep.mubr.bf16.mxu0 %v6602_v35  ;;  %2311 = vmatprep.mubr.bf16.mxu1 %v6602_v35 }
 0x374   :  { %2239 = vmatpush1.bf16.msra.mxu0 %v5765_v29  ;;  %2282 = vmatpush1.bf16.msra.mxu1 %v5770_v39 }
 0x375   :  { %2240 = vmatprep.subr.bf16.mxu0 %v5779_v18  ;;  %2283 = vmatprep.subr.bf16.mxu1 %v5784_v22 }
 0x378   :  { %2241 = vmatpush1.bf16.msra.mxu0 %v5789_v12  ;;  %2284 = vmatpush1.bf16.msra.mxu1 %v5794_v7 }
 0x379   :  { %2242 = vmatprep.subr.bf16.mxu0 %v5803_v25  ;;  %2285 = vmatprep.subr.bf16.mxu1 %v5808_v34 }
 0x37c   :  { %2243 = vmatpush1.bf16.msra.mxu0 %v5813_v14  ;;  %2286 = vmatpush1.bf16.msra.mxu1 %v5818_v27 }
 0x37d   :  { %2244 = vmatprep.subr.bf16.mxu0 %v5827_v32  ;;  %2287 = vmatprep.subr.bf16.mxu1 %v5934_v26 }
 0x380   :  { %2245 = vmatpush1.bf16.msra.mxu0 %v5833_v21  ;;  %2288 = vmatpush1.bf16.msra.mxu1 %v5939_v3 }
 0x381   :  { %2246 = vmatprep.subr.bf16.mxu0 %v5841_v38  ;;  %2289 = vmatprep.subr.bf16.mxu1 %v5946_v43 }
 0x384   :  { %2247 = vmatpush1.bf16.msra.mxu0 %v5847_v62  ;;  %2290 = vmatpush1.bf16.msra.mxu1 %v5951_v10 }
 0x385   :  { %2248 = vmatprep.subr.bf16.mxu0 %v5855_v61  ;;  %2291 = vmatprep.subr.bf16.mxu1 %v5958_v48 }
 0x388   :  { %2249 = vmatpush1.bf16.msra.mxu0 %v5861_v63  ;;  %2292 = vmatpush1.bf16.msra.mxu1 %v5963_v45 }
 0x389   :  { %2250 = vmatprep.subr.bf16.mxu0 %v5874_v8  ;;  %2293 = vmatprep.subr.bf16.mxu1 %v5975_v36 }
 0x38c   :  { %2251 = vmatpush1.bf16.msra.mxu0 %v5869_v5  ;;  %2294 = vmatpush1.bf16.msra.mxu1 %v5970_v16 }
 0x38d   :  { %2590 = vmatprep.subr.bf16.mxu0 %v5731_v20  ;;  %2633 = vmatprep.subr.bf16.mxu1 %v5736_v30  ;;  %v6604_v20 = vld [vmem:[#allocation7_spill] sm:$0xff] }
 0x38e   :  { %v335_v58 = vadd.f32 %v6604_v20, %v5694_v28 }
 0x42f   :  { %v1916_v44 = vpop.f32.mrf.mxu0  ;;  %v1959_v4 = vpop.f32.mrf.mxu1 }
 0x430   :  { %v1968_v13 = vadd.f32 %v1916_v44, %v329_v0  ;;  %v1970_v2 = vadd.f32 %v1959_v4, %v462_v42  ;;  %v464_v0 = vadd.f32 %v6607_v41, %v5712_v1 }
 0x431   :  { %v1918_v56 = vpop.f32.mrf.mxu0  ;;  %v1961_v11 = vpop.f32.mrf.mxu1 }
 0x432   :  { %v4349_v9 = vmul.f32 -1.442695, %v1968_v13  ;;  %v1969_v55 = vadd.f32 %v1918_v56, %v331_v51  ;;  %v4351_v51 = vmul.f32 -1.442695, %v1970_v2  ;;  %v1971_v13 = vadd.f32 %v1961_v11, %v464_v0 }
 0x433   :  { %v1920_v33 = vpop.f32.mrf.mxu0  ;;  %v1963_v49 = vpop.f32.mrf.mxu1 }
 0x434   :  { %4873 = vpow2.f32 %v4349_v9  ;;  %v4350_v30 = vmul.f32 -1.442695, %v1969_v55  ;;  %v1972_v6 = vadd.f32 %v1920_v33, %v333_v47  ;;  %v1974_v44 = vadd.f32 %v1963_v49, %v466_v52  ;;  %v6608_v47 = vld [vmem:[#allocation8_spill] sm:$0xff] }
 0x435   :  { %v1922_v57 = vpop.f32.mrf.mxu0  ;;  %v1965_v56 = vpop.f32.mrf.mxu1  ;;  %v468_v9 = vadd.f32 %v6608_v47, %v5712_v1 }
 0x436   :  { %4875 = vpow2.f32 %v4350_v30  ;;  %v4352_v24 = vmul.f32 -1.442695, %v1972_v6  ;;  %v1973_v59 = vadd.f32 %v1922_v57, %v335_v58  ;;  %v4354_v55 = vmul.f32 -1.442695, %v1974_v44 }
 0x437   :  { %v1975_v20 = vadd.f32 %v1965_v56, %v468_v9 }
 0x438   :  { %4877 = vpow2.f32 %v4352_v24  ;;  %v4353_v46 = vmul.f32 -1.442695, %v1973_v59 }
 0x43a   :  { %4879 = vpow2.f32 %v4353_v46 }
 0x43b   :  { %4881 = vpow2.f32 %v4351_v51 }
 0x43c   :  { %4883 = vtanh.f32 %v1971_v13 }
 0x441   :  { %v4874_v53 = vpop.eup %4873 }
 0x442   :  { %v1994_v33 = vadd.f32 1.0, %v4874_v53 }
 0x443   :  { %v4876_v4 = vpop.eup %4875 }
 0x444   :  { %4885 = vrcp.f32 %v1994_v33  ;;  %v1995_v58 = vadd.f32 1.0, %v4876_v4 }
 0x445   :  { %v4878_v30 = vpop.eup %4877  ;;  %4887 = vpow2.f32 %v4354_v55 }
 0x446   :  { %4889 = vrcp.f32 %v1995_v58  ;;  %v1997_v6 = vadd.f32 1.0, %v4878_v30 }
 0x447   :  { %v4880_v57 = vpop.eup %4879  ;;  %4891 = vtanh.f32 %v1975_v20 }
 0x448   :  { %4893 = vrcp.f32 %v1997_v6  ;;  %v1998_v11 = vadd.f32 1.0, %v4880_v57  ;;  %v4882_v24 = vpop.eup %4881  ;;  %v6614_v57 = vld [vmem:[#allocation14_spill] sm:$0xff] }
 0x449   :  { %v4884_v59 = vpop.eup %4883  ;;  %v1996_v41 = vadd.f32 1.0, %v4882_v24  ;;  %v6615_v24 = vld [vmem:[#allocation12_spill] sm:$0xff] }
 0x44a   :  { %4895 = vrcp.f32 %v1998_v11  ;;  %v476_v11 = vadd.f32 %v6614_v57, %v5706_v17  ;;  %v6171_v57 = vld [vmem:[%s6541_s2 + $0xa4] ss:$16 sps:$4 sm:$0xff]  }
 0x44b   :  { %4897 = vrcp.f32 %v1996_v41 }
 0x451   :  { %v4886_v50 = vpop.eup %4885 }
 0x452   :  { %v4888_v42 = vpop.eup %4887  ;;  %v2018_v46 = vmul.f32 %v4886_v50, %v4884_v59  ;;  %v474_v59 = vadd.f32 %v6615_v24, %v5712_v1  ;;  %v6181_v24 = vld [vmem:[%s6541_s2 + $0xa0] ss:$16 sps:$4 sm:$0xff]  }
 0x453   :  { %v4890_v2 = vpop.eup %4889  ;;  %v1999_v13 = vadd.f32 1.0, %v4888_v42 }
 0x454   :  { %v4892_v49 = vpop.eup %4891  ;;  %v2016_v54 = vmul.f32 %v4890_v2, %v5997_v60 }
 0x455   :  { %v4894_v52 = vpop.eup %4893 }
 0x456   :  { %v6055_v0 = vadd.f32 %v2018_v46, %v2016_v54  ;;  %v2019_v44 = vmul.f32 %v4894_v52, %v4892_v49  ;;  %v6616_v54 = vld [vmem:[#allocation16_spill] sm:$0xff] }
 0x457   :  { %v4896_v51 = vpop.eup %4895  ;;  %v478_v52 = vadd.f32 %v6616_v54, %v5712_v1  ;;  %v6225_v54 = vld [vmem:[%s6541_s2 + $0x60] ss:$16 sps:$4 sm:$0xff]  }
 0x458   :  { %v2017_v56 = vmul.f32 %v4896_v51, %v6001_v15  ;;  %4899 = vtanh.f32 %v6055_v0  ;;  %v4898_v47 = vpop.eup %4897 }
 0x459   :  { %4901 = vrcp.f32 %v1999_v13 }
 0x45a   :  { %v6059_v53 = vadd.f32 %v2019_v44, %v2017_v56 }
 0x45c   :  { %4903 = vtanh.f32 %v6059_v53 }
 0x465   :  { %v4900_v9 = vpop.eup %4899 }
 0x466   :  { %v4902_v60 = vpop.eup %4901  ;;  %v2026_v33 = vmul.f32 %v4900_v9, %v4898_v47 }
 0x469   :  { %v4904_v55 = vpop.eup %4903 }
 0x46a   :  { %v2027_v4 = vmul.f32 %v4904_v55, %v4902_v60 }
 0x46c   :  { %v2043_v20 = vpack.c.bf16 %v2027_v4, %v2026_v33 }
 0x46e   :  { %2269 = vmatmul.mubr.bf16.vlgmr.msra.gmra.mxu0 %v2043_v20  ;;  %2312 = vmatmul.mubr.bf16.vlgmr.msra.gmra.mxu1 %v2043_v20 }
 0x46f   :  { %2591 = vmatpush1.bf16.msra.mxu0 %v5741_v40  ;;  %2634 = vmatpush1.bf16.msra.mxu1 %v5746_v37  ;;  %v6609_v40 = vld [vmem:[#allocation9_spill] sm:$0xff] }
 0x470   :  { %2592 = vmatprep.subr.bf16.mxu0 %v5755_v23  ;;  %2635 = vmatprep.subr.bf16.mxu1 %v5760_v31  ;;  %v339_v37 = vadd.f32 %v6609_v40, %v5688_v19  ;;  %v6610_v31 = vld [vmem:[#allocation11_spill] sm:$0xff] }
 0x471   :  { %2622 = vmatprep.mubr.bf16.mxu0 %v6602_v35  ;;  %2665 = vmatprep.mubr.bf16.mxu1 %v6602_v35 }
 0x473   :  { %2593 = vmatpush1.bf16.msra.mxu0 %v5765_v29  ;;  %2636 = vmatpush1.bf16.msra.mxu1 %v5770_v39  ;;  %v341_v29 = vadd.f32 %v6610_v31, %v5694_v28 }
 0x474   :  { %2594 = vmatprep.subr.bf16.mxu0 %v5779_v18  ;;  %2637 = vmatprep.subr.bf16.mxu1 %v5784_v22  ;;  %v6611_v22 = vld [vmem:[#allocation13_spill] sm:$0xff] }
 0x477   :  { %2595 = vmatpush1.bf16.msra.mxu0 %v5789_v12  ;;  %2638 = vmatpush1.bf16.msra.mxu1 %v5794_v7  ;;  %v343_v12 = vadd.f32 %v6611_v22, %v5688_v19 }
 0x478   :  { %2596 = vmatprep.subr.bf16.mxu0 %v5803_v25  ;;  %2639 = vmatprep.subr.bf16.mxu1 %v5808_v34 }
 0x47b   :  { %2597 = vmatpush1.bf16.msra.mxu0 %v5813_v14  ;;  %2640 = vmatpush1.bf16.msra.mxu1 %v5818_v27  ;;  %v6612_v27 = vld [vmem:[#allocation15_spill] sm:$0xff] }
 0x47c   :  { %2598 = vmatprep.subr.bf16.mxu0 %v5827_v32  ;;  %2641 = vmatprep.subr.bf16.mxu1 %v5934_v26  ;;  %v345_v32 = vadd.f32 %v6612_v27, %v5694_v28 }
 0x47f   :  { %2599 = vmatpush1.bf16.msra.mxu0 %v5833_v21  ;;  %2642 = vmatpush1.bf16.msra.mxu1 %v5939_v3 }
 0x480   :  { %2600 = vmatprep.subr.bf16.mxu0 %v5841_v38  ;;  %2643 = vmatprep.subr.bf16.mxu1 %v5946_v43 }
 0x483   :  { %2601 = vmatpush1.bf16.msra.mxu0 %v5847_v62  ;;  %2644 = vmatpush1.bf16.msra.mxu1 %v5951_v10 }
 0x484   :  { %2602 = vmatprep.subr.bf16.mxu0 %v5855_v61  ;;  %2645 = vmatprep.subr.bf16.mxu1 %v5958_v48 }
 0x487   :  { %2603 = vmatpush1.bf16.msra.mxu0 %v5861_v63  ;;  %2646 = vmatpush1.bf16.msra.mxu1 %v5963_v45 }
 0x488   :  { %2604 = vmatprep.subr.bf16.mxu0 %v5874_v8  ;;  %2647 = vmatprep.subr.bf16.mxu1 %v5975_v36  ;;  %v6613_v8 = vld [vmem:[#allocation10_spill] sm:$0xff] }
 0x489   :  { %v472_v15 = vadd.f32 %v6613_v8, %v5706_v17  ;;  %v6138_v8 = vld [vmem:[%s6541_s2 + $0xe8] ss:$16 sps:$4 sm:$0xff]  }
 0x48b   :  { %2605 = vmatpush1.bf16.msra.mxu0 %v5869_v5  ;;  %2648 = vmatpush1.bf16.msra.mxu1 %v5970_v16 }
 0x52e   :  { %v2270_v23 = vpop.f32.mrf.mxu0  ;;  %v2313_v25 = vpop.f32.mrf.mxu1 }
 0x52f   :  { %v2322_v39 = vadd.f32 %v2270_v23, %v339_v37  ;;  %v2324_v30 = vadd.f32 %v2313_v25, %v472_v15  ;;  %v6147_v15 = vld [vmem:[%s6541_s2 + $0xc4] ss:$16 sps:$4 sm:$0xff]  }
 0x530   :  { %v2272_v18 = vpop.f32.mrf.mxu0  ;;  %v2315_v61 = vpop.f32.mrf.mxu1 }
 0x531   :  { %v4387_v7 = vmul.f32 -1.442695, %v2322_v39  ;;  %v2323_v34 = vadd.f32 %v2272_v18, %v341_v29  ;;  %v4389_v42 = vmul.f32 -1.442695, %v2324_v30  ;;  %v2325_v46 = vadd.f32 %v2315_v61, %v474_v59  ;;  %v6157_v30 = vld [vmem:[%s6541_s2 + $0xc0] ss:$16 sps:$4 sm:$0xff]  }
 0x532   :  { %v2274_v14 = vpop.f32.mrf.mxu0  ;;  %v2317_v6 = vpop.f32.mrf.mxu1  ;;  %v6186_v59 = vld [vmem:[%s6541_s2 + $0xa8] ss:$16 sps:$4 sm:$0xff]  }
 0x533   :  { %4905 = vpow2.f32 %v4387_v7  ;;  %v4388_v21 = vmul.f32 -1.442695, %v2323_v34  ;;  %v2326_v38 = vadd.f32 %v2274_v14, %v343_v12  ;;  %v2328_v50 = vadd.f32 %v2317_v6, %v476_v11  ;;  %v6162_v6 = vld [vmem:[%s6541_s2 + $0xc8] ss:$16 sps:$4 sm:$0xff]   ;;  %v6176_v11 = vld [vmem:[%s6541_s2 + $0xac] ss:$16 sps:$4 sm:$0xff]  }
 0x534   :  { %v2276_v62 = vpop.f32.mrf.mxu0  ;;  %v2319_v2 = vpop.f32.mrf.mxu1 }
 0x535   :  { %4907 = vpow2.f32 %v4388_v21  ;;  %v4390_v63 = vmul.f32 -1.442695, %v2326_v38  ;;  %v2327_v5 = vadd.f32 %v2276_v62, %v345_v32  ;;  %v4392_v41 = vmul.f32 -1.442695, %v2328_v50  ;;  %v6195_v50 = vld [vmem:[%s6541_s2 + $0x84] ss:$16 sps:$4 sm:$0xff]  }
 0x536   :  { %v2329_v13 = vadd.f32 %v2319_v2, %v478_v52  ;;  %v6210_v2 = vld [vmem:[%s6541_s2 + $0x88] ss:$16 sps:$4 sm:$0xff]   ;;  %v6233_v52 = vld [vmem:[%s6541_s2 + $0x44] ss:$16 sps:$4 sm:$0xff]  }
 0x537   :  { %4909 = vpow2.f32 %v4390_v63  ;;  %v4391_v58 = vmul.f32 -1.442695, %v2327_v5  ;;  %v6128_v63 = vld [vmem:[%s6541_s2 + $0xec] ss:$16 sps:$4 sm:$0xff]   ;;  %v6133_v5 = vld [vmem:[%s6541_s2 + $0xe0] ss:$16 sps:$4 sm:$0xff]  }
 0x538   :  { %2987 = vmatprep.subr.bf16.mxu1 %v6128_v63 }
 0x539   :  { %4911 = vpow2.f32 %v4391_v58  ;;  %v6152_v58 = vld [vmem:[%s6541_s2 + $0xcc] ss:$16 sps:$4 sm:$0xff]  }
 0x53a   :  { %4913 = vpow2.f32 %v4389_v42  ;;  %v6200_v42 = vld [vmem:[%s6541_s2 + $0x8c] ss:$16 sps:$4 sm:$0xff]  }
 0x53b   :  { %4915 = vtanh.f32 %v2325_v46  ;;  %v6205_v46 = vld [vmem:[%s6541_s2 + $0x80] ss:$16 sps:$4 sm:$0xff]  }
 0x540   :  { %v4906_v49 = vpop.eup %4905 }
 0x541   :  { %v2348_v44 = vadd.f32 1.0, %v4906_v49  ;;  %v6219_v49 = vld [vmem:[%s6541_s2 + $0x64] ss:$16 sps:$4 sm:$0xff]  }
 0x542   :  { %v4908_v51 = vpop.eup %4907 }
 0x543   :  { %4917 = vrcp.f32 %v2348_v44  ;;  %v2349_v56 = vadd.f32 1.0, %v4908_v51  ;;  %v6618_v51 = vld [vmem:[#allocation19_spill] sm:$0xff] }
 0x544   :  { %v4910_v47 = vpop.eup %4909  ;;  %4919 = vpow2.f32 %v4392_v41 }
 0x545   :  { %4921 = vrcp.f32 %v2349_v56  ;;  %v2351_v9 = vadd.f32 1.0, %v4910_v47 }
 0x546   :  { %v4912_v60 = vpop.eup %4911  ;;  %4923 = vtanh.f32 %v2329_v13  ;;  %v351_v13 = vadd.f32 %v6618_v51, %v5694_v28 }
 0x547   :  { %4925 = vrcp.f32 %v2351_v9  ;;  %v2352_v55 = vadd.f32 1.0, %v4912_v60  ;;  %v4914_v33 = vpop.eup %4913 }
 0x548   :  { %v4916_v4 = vpop.eup %4915  ;;  %v2350_v18 = vadd.f32 1.0, %v4914_v33 }
 0x549   :  { %4927 = vrcp.f32 %v2352_v55 }
 0x54a   :  { %4929 = vrcp.f32 %v2350_v18  ;;  %v6621_v18 = vld [vmem:[#allocation18_spill] sm:$0xff] }
 0x550   :  { %v4918_v20 = vpop.eup %4917 }
 0x551   :  { %v4920_v40 = vpop.eup %4919  ;;  %v2372_v37 = vmul.f32 %v4918_v20, %v4916_v4  ;;  %v6620_v4 = vld [vmem:[#allocation23_spill] sm:$0xff] }
 0x552   :  { %v4922_v23 = vpop.eup %4921  ;;  %v2353_v25 = vadd.f32 1.0, %v4920_v40  ;;  %v355_v20 = vadd.f32 %v6620_v4, %v5694_v28 }
 0x553   :  { %v4924_v31 = vpop.eup %4923  ;;  %v2370_v29 = vmul.f32 %v4922_v23, %v6055_v0 }
 0x554   :  { %v4926_v39 = vpop.eup %4925 }
 0x555   :  { %v6111_v22 = vadd.f32 %v2372_v37, %v2370_v29  ;;  %v2373_v12 = vmul.f32 %v4926_v39, %v4924_v31 }
 0x556   :  { %v4928_v7 = vpop.eup %4927 }
 0x557   :  { %v2371_v34 = vmul.f32 %v4928_v7, %v6059_v53  ;;  %4931 = vtanh.f32 %v6111_v22  ;;  %v4930_v27 = vpop.eup %4929  ;;  %v6123_v53 = vld [vmem:[%s6541_s2 + $0xe4] ss:$16 sps:$4 sm:$0xff]  }
 0x558   :  { %4933 = vrcp.f32 %v2353_v25  ;;  %2944 = vmatprep.subr.bf16.mxu0 %v6123_v53 }
 0x559   :  { %v6115_v14 = vadd.f32 %v2373_v12, %v2371_v34  ;;  %v482_v12 = vadd.f32 %v6621_v18, %v5706_v17 }
 0x55b   :  { %4935 = vtanh.f32 %v6115_v14 }
 0x564   :  { %v4932_v32 = vpop.eup %4931 }
 0x565   :  { %v4934_v0 = vpop.eup %4933  ;;  %v2380_v38 = vmul.f32 %v4932_v32, %v4930_v27  ;;  %v6622_v27 = vld [vmem:[#allocation22_spill] sm:$0xff] }
 0x566   :  { %v486_v32 = vadd.f32 %v6622_v27, %v5706_v17 }
 0x568   :  { %v4936_v21 = vpop.eup %4935 }
 0x569   :  { %v2381_v62 = vmul.f32 %v4936_v21, %v4934_v0  ;;  %v6623_v0 = vld [vmem:[#allocation20_spill] sm:$0xff] }
 0x56a   :  { %v484_v21 = vadd.f32 %v6623_v0, %v5712_v1 }
 0x56b   :  { %v2397_v61 = vpack.c.bf16 %v2381_v62, %v2380_v38 }
 0x56d   :  { %2623 = vmatmul.mubr.bf16.vlgmr.msra.gmra.mxu0 %v2397_v61  ;;  %2666 = vmatmul.mubr.bf16.vlgmr.msra.gmra.mxu1 %v2397_v61 }
 0x56e   :  { %2976 = vmatprep.mubr.bf16.mxu0 %v6602_v35  ;;  %3019 = vmatprep.mubr.bf16.mxu1 %v6602_v35 }
 0x56f   :  { %2945 = vmatpush1.bf16.msra.mxu0 %v6133_v5  ;;  %2988 = vmatpush1.bf16.msra.mxu1 %v6138_v8 }
 0x570   :  { %2946 = vmatprep.subr.bf16.mxu0 %v6147_v15  ;;  %2989 = vmatprep.subr.bf16.mxu1 %v6152_v58 }
 0x573   :  { %2947 = vmatpush1.bf16.msra.mxu0 %v6157_v30  ;;  %2990 = vmatpush1.bf16.msra.mxu1 %v6162_v6 }
 0x574   :  { %2948 = vmatprep.subr.bf16.mxu0 %v6171_v57  ;;  %2991 = vmatprep.subr.bf16.mxu1 %v6176_v11 }
 0x577   :  { %2949 = vmatpush1.bf16.msra.mxu0 %v6181_v24  ;;  %2992 = vmatpush1.bf16.msra.mxu1 %v6186_v59 }
 0x578   :  { %2950 = vmatprep.subr.bf16.mxu0 %v6195_v50  ;;  %2993 = vmatprep.subr.bf16.mxu1 %v6200_v42 }
 0x57b   :  { %2951 = vmatpush1.bf16.msra.mxu0 %v6205_v46  ;;  %2994 = vmatpush1.bf16.msra.mxu1 %v6210_v2 }
 0x57c   :  { %2995 = vmatprep.subr.bf16.mxu1 %v5934_v26  ;;  %2952 = vmatprep.subr.bf16.mxu0 %v6219_v49  ;;  %v6239_v26 = vld [vmem:[%s6541_s2 + $0x40] ss:$16 sps:$4 sm:$0xff]  }
 0x57f   :  { %2953 = vmatpush1.bf16.msra.mxu0 %v6225_v54  ;;  %2996 = vmatpush1.bf16.msra.mxu1 %v5939_v3  ;;  %v6247_v3 = vld [vmem:[%s6541_s2 + $0x24] ss:$16 sps:$4 sm:$0xff]  }
 0x580   :  { %2997 = vmatprep.subr.bf16.mxu1 %v5946_v43  ;;  %2954 = vmatprep.subr.bf16.mxu0 %v6233_v52  ;;  %v6253_v43 = vld [vmem:[%s6541_s2 + $0x20] ss:$16 sps:$4 sm:$0xff]  }
 0x583   :  { %2955 = vmatpush1.bf16.msra.mxu0 %v6239_v26  ;;  %2998 = vmatpush1.bf16.msra.mxu1 %v5951_v10  ;;  %v6261_v10 = vld [vmem:[%s6541_s2] ss:$16 sps:$4 sm:$0xff]  }
 0x584   :  { %2999 = vmatprep.subr.bf16.mxu1 %v5958_v48  ;;  %2956 = vmatprep.subr.bf16.mxu0 %v6247_v3  ;;  %v6266_v48 = vld [vmem:[%s6541_s2 + $0x4] ss:$16 sps:$4 sm:$0xff]  }
 0x587   :  { %2957 = vmatpush1.bf16.msra.mxu0 %v6253_v43  ;;  %3000 = vmatpush1.bf16.msra.mxu1 %v5963_v45  ;;  %v6617_v45 = vld [vmem:[#allocation17_spill] sm:$0xff] }
 0x588   :  { %3001 = vmatprep.subr.bf16.mxu1 %v5975_v36  ;;  %2958 = vmatprep.subr.bf16.mxu0 %v6266_v48  ;;  %v349_v41 = vadd.f32 %v6617_v45, %v5688_v19  ;;  %v6619_v36 = vld [vmem:[#allocation21_spill] sm:$0xff] }
 0x589   :  { %v353_v9 = vadd.f32 %v6619_v36, %v5688_v19 }
 0x58b   :  { %2959 = vmatpush1.bf16.msra.mxu0 %v6261_v10  ;;  %3002 = vmatpush1.bf16.msra.mxu1 %v5970_v16 }
 0x58c   :  { %3298 = vmatprep.subr.bf16.mxu0 %v6123_v53  ;;  %3341 = vmatprep.subr.bf16.mxu1 %v6128_v63 }
 0x62d   :  { %v2624_v44 = vpop.f32.mrf.mxu0  ;;  %v2667_v55 = vpop.f32.mrf.mxu1 }
 0x62e   :  { %v2676_v56 = vadd.f32 %v2624_v44, %v349_v41  ;;  %v2678_v25 = vadd.f32 %v2667_v55, %v482_v12  ;;  %v6624_v44 = vld [vmem:[#allocation24_spill] sm:$0xff] }
 0x62f   :  { %v2626_v47 = vpop.f32.mrf.mxu0  ;;  %v2669_v31 = vpop.f32.mrf.mxu1  ;;  %v488_v51 = vadd.f32 %v6624_v44, %v5712_v1  ;;  %v6331_v44 = vld [vmem:[%s6541_s2 + $0x68] ss:$16 sps:$4 sm:$0xff]  }
 0x630   :  { %v4425_v60 = vmul.f32 -1.442695, %v2676_v56  ;;  %v2677_v33 = vadd.f32 %v2626_v47, %v351_v13  ;;  %v4427_v62 = vmul.f32 -1.442695, %v2678_v25  ;;  %v2679_v61 = vadd.f32 %v2669_v31, %v484_v21 }
 0x631   :  { %v2628_v16 = vpop.f32.mrf.mxu0  ;;  %v2671_v34 = vpop.f32.mrf.mxu1 }
 0x632   :  { %4937 = vpow2.f32 %v4425_v60  ;;  %v4426_v40 = vmul.f32 -1.442695, %v2677_v33  ;;  %v2680_v37 = vadd.f32 %v2628_v16, %v353_v9  ;;  %v2682_v38 = vadd.f32 %v2671_v34, %v486_v32 }
 0x633   :  { %v2630_v23 = vpop.f32.mrf.mxu0  ;;  %v2673_v45 = vpop.f32.mrf.mxu1 }
 0x634   :  { %4939 = vpow2.f32 %v4426_v40  ;;  %v4428_v29 = vmul.f32 -1.442695, %v2680_v37  ;;  %v2681_v39 = vadd.f32 %v2630_v23, %v355_v20  ;;  %v4430_v13 = vmul.f32 -1.442695, %v2682_v38 }
 0x635   :  { %v2683_v36 = vadd.f32 %v2673_v45, %v488_v51  ;;  %v6338_v51 = vld [vmem:[%s6541_s2 + $0x4c] ss:$16 sps:$4 sm:$0xff]  }
 0x636   :  { %4941 = vpow2.f32 %v4428_v29  ;;  %v4429_v7 = vmul.f32 -1.442695, %v2681_v39 }
 0x638   :  { %4943 = vpow2.f32 %v4429_v7 }
 0x639   :  { %4945 = vpow2.f32 %v4427_v62 }
 0x63a   :  { %4947 = vtanh.f32 %v2679_v61 }
 0x63f   :  { %v4938_v41 = vpop.eup %4937 }
 0x640   :  { %v2702_v56 = vadd.f32 1.0, %v4938_v41 }
 0x641   :  { %v4940_v47 = vpop.eup %4939 }
 0x642   :  { %4949 = vrcp.f32 %v2702_v56  ;;  %v2703_v9 = vadd.f32 1.0, %v4940_v47  ;;  %v6350_v56 = vld [vmem:[%s6541_s2 + $0x2c] ss:$16 sps:$4 sm:$0xff]   ;;  %v6355_v47 = vld [vmem:[%s6541_s2 + $0x28] ss:$16 sps:$4 sm:$0xff]  }
 0x643   :  { %v4942_v60 = vpop.eup %4941  ;;  %4951 = vpow2.f32 %v4430_v13  ;;  %v6343_v13 = vld [vmem:[%s6541_s2 + $0x48] ss:$16 sps:$4 sm:$0xff]  }
 0x644   :  { %4953 = vrcp.f32 %v2703_v9  ;;  %v2705_v55 = vadd.f32 1.0, %v4942_v60  ;;  %v6367_v9 = vld [vmem:[%s6541_s2 + $0xc] ss:$16 sps:$4 sm:$0xff]   ;;  %v6625_v60 = vld [vmem:[#allocation25_spill] sm:$0xff] }
 0x645   :  { %v4944_v33 = vpop.eup %4943  ;;  %4955 = vtanh.f32 %v2683_v36  ;;  %v6362_v36 = vld [vmem:[%s6541_s2 + $0x8] ss:$16 sps:$4 sm:$0xff]  }
 0x646   :  { %4957 = vrcp.f32 %v2705_v55  ;;  %v2706_v16 = vadd.f32 1.0, %v4944_v33  ;;  %v4946_v4 = vpop.eup %4945  ;;  %v359_v55 = vadd.f32 %v6625_v60, %v5688_v19 }
 0x647   :  { %v4948_v20 = vpop.eup %4947  ;;  %v2704_v12 = vadd.f32 1.0, %v4946_v4 }
 0x648   :  { %4959 = vrcp.f32 %v2706_v16  ;;  %v6626_v16 = vld [vmem:[#allocation27_spill] sm:$0xff] }
 0x649   :  { %4961 = vrcp.f32 %v2704_v12  ;;  %v361_v4 = vadd.f32 %v6626_v16, %v5694_v28  ;;  %v6628_v12 = vld [vmem:[#allocation31_spill] sm:$0xff]  ;;  %v6631_v16 = vld [vmem:[#allocation28_spill] sm:$0xff] }
 0x64f   :  { %v4950_v40 = vpop.eup %4949 }
 0x650   :  { %v4952_v37 = vpop.eup %4951  ;;  %v2726_v23 = vmul.f32 %v4950_v40, %v4948_v20 }
 0x651   :  { %v4954_v31 = vpop.eup %4953  ;;  %v2707_v27 = vadd.f32 1.0, %v4952_v37  ;;  %v6627_v37 = vld [vmem:[#allocation29_spill] sm:$0xff] }
 0x652   :  { %v4956_v29 = vpop.eup %4955  ;;  %v2724_v39 = vmul.f32 %v4954_v31, %v6111_v22 }
 0x653   :  { %v4958_v18 = vpop.eup %4957 }
 0x654   :  { %v6291_v7 = vadd.f32 %v2726_v23, %v2724_v39  ;;  %v2727_v25 = vmul.f32 %v4958_v18, %v4956_v29  ;;  %v363_v23 = vadd.f32 %v6627_v37, %v5688_v19 }
 0x655   :  { %v4960_v34 = vpop.eup %4959 }
 0x656   :  { %v2725_v32 = vmul.f32 %v4960_v34, %v6115_v14  ;;  %4963 = vtanh.f32 %v6291_v7  ;;  %v4962_v21 = vpop.eup %4961  ;;  %v6326_v14 = vld [vmem:[%s6541_s2 + $0x6c] ss:$16 sps:$4 sm:$0xff]  }
 0x657   :  { %4965 = vrcp.f32 %v2707_v27 }
 0x658   :  { %v6295_v0 = vadd.f32 %v2727_v25, %v2725_v32  ;;  %v365_v25 = vadd.f32 %v6628_v12, %v5694_v28 }
 0x65a   :  { %4967 = vtanh.f32 %v6295_v0 }
 0x663   :  { %v4964_v38 = vpop.eup %4963 }
 0x664   :  { %v4966_v22 = vpop.eup %4965  ;;  %v2734_v61 = vmul.f32 %v4964_v38, %v4962_v21 }
 0x667   :  { %v4968_v62 = vpop.eup %4967 }
 0x668   :  { %v2735_v45 = vmul.f32 %v4968_v62, %v4966_v22  ;;  %v6629_v62 = vld [vmem:[#allocation26_spill] sm:$0xff] }
 0x66a   :  { %v2751_v41 = vpack.c.bf16 %v2735_v45, %v2734_v61  ;;  %v492_v61 = vadd.f32 %v6629_v62, %v5706_v17 }
 0x66c   :  { %2977 = vmatmul.mubr.bf16.vlgmr.msra.gmra.mxu0 %v2751_v41  ;;  %3020 = vmatmul.mubr.bf16.vlgmr.msra.gmra.mxu1 %v2751_v41 }
 0x66d   :  { %3299 = vmatpush1.bf16.msra.mxu0 %v6133_v5  ;;  %3342 = vmatpush1.bf16.msra.mxu1 %v6138_v8 }
 0x66e   :  { %3300 = vmatprep.subr.bf16.mxu0 %v6147_v15  ;;  %3343 = vmatprep.subr.bf16.mxu1 %v6152_v58 }
 0x66f   :  { %3330 = vmatprep.mubr.bf16.mxu0 %v6602_v35  ;;  %3373 = vmatprep.mubr.bf16.mxu1 %v6602_v35 }
 0x671   :  { %3301 = vmatpush1.bf16.msra.mxu0 %v6157_v30  ;;  %3344 = vmatpush1.bf16.msra.mxu1 %v6162_v6 }
 0x672   :  { %3302 = vmatprep.subr.bf16.mxu0 %v6171_v57  ;;  %3345 = vmatprep.subr.bf16.mxu1 %v6176_v11 }
 0x675   :  { %3303 = vmatpush1.bf16.msra.mxu0 %v6181_v24  ;;  %3346 = vmatpush1.bf16.msra.mxu1 %v6186_v59 }
 0x676   :  { %3304 = vmatprep.subr.bf16.mxu0 %v6195_v50  ;;  %3347 = vmatprep.subr.bf16.mxu1 %v6200_v42 }
 0x679   :  { %3305 = vmatpush1.bf16.msra.mxu0 %v6205_v46  ;;  %3348 = vmatpush1.bf16.msra.mxu1 %v6210_v2 }
 0x67a   :  { %3306 = vmatprep.subr.bf16.mxu0 %v6219_v49  ;;  %3349 = vmatprep.subr.bf16.mxu1 %v6326_v14 }
 0x67d   :  { %3307 = vmatpush1.bf16.msra.mxu0 %v6225_v54  ;;  %3350 = vmatpush1.bf16.msra.mxu1 %v6331_v44 }
 0x67e   :  { %3308 = vmatprep.subr.bf16.mxu0 %v6233_v52  ;;  %3351 = vmatprep.subr.bf16.mxu1 %v6338_v51 }
 0x681   :  { %3309 = vmatpush1.bf16.msra.mxu0 %v6239_v26  ;;  %3352 = vmatpush1.bf16.msra.mxu1 %v6343_v13 }
 0x682   :  { %3310 = vmatprep.subr.bf16.mxu0 %v6247_v3  ;;  %3353 = vmatprep.subr.bf16.mxu1 %v6350_v56 }
 0x685   :  { %3311 = vmatpush1.bf16.msra.mxu0 %v6253_v43  ;;  %3354 = vmatpush1.bf16.msra.mxu1 %v6355_v47 }
 0x686   :  { %3312 = vmatprep.subr.bf16.mxu0 %v6266_v48  ;;  %3355 = vmatprep.subr.bf16.mxu1 %v6367_v9 }
 0x689   :  { %3313 = vmatpush1.bf16.msra.mxu0 %v6261_v10  ;;  %3356 = vmatpush1.bf16.msra.mxu1 %v6362_v36 }
 0x68a   :  { %3652 = vmatprep.subr.bf16.mxu0 %v6123_v53  ;;  %3695 = vmatprep.subr.bf16.mxu1 %v6128_v63 }
 0x72c   :  { %v2978_v33 = vpop.f32.mrf.mxu0  ;;  %v3021_v29 = vpop.f32.mrf.mxu1 }
 0x72d   :  { %v3030_v20 = vadd.f32 %v2978_v33, %v359_v55  ;;  %v3032_v41 = vadd.f32 %v3021_v29, %v492_v61  ;;  %v6630_v55 = vld [vmem:[#allocation30_spill] sm:$0xff] }
 0x72e   :  { %v2980_v40 = vpop.f32.mrf.mxu0  ;;  %v3023_v21 = vpop.f32.mrf.mxu1  ;;  %v496_v33 = vadd.f32 %v6630_v55, %v5706_v17 }
 0x72f   :  { %v4463_v31 = vmul.f32 -1.442695, %v3030_v20  ;;  %v3031_v39 = vadd.f32 %v2980_v40, %v361_v4  ;;  %v494_v4 = vadd.f32 %v6631_v16, %v5712_v1  ;;  %v4465_v40 = vmul.f32 -1.442695, %v3032_v41 }
 0x730   :  { %v2982_v18 = vpop.f32.mrf.mxu0  ;;  %v3025_v60 = vpop.f32.mrf.mxu1 }
 0x731   :  { %4969 = vpow2.f32 %v4463_v31  ;;  %v4464_v34 = vmul.f32 -1.442695, %v3031_v39  ;;  %v3034_v27 = vadd.f32 %v2982_v18, %v363_v23  ;;  %v3036_v20 = vadd.f32 %v3025_v60, %v496_v33  ;;  %v6632_v39 = vld [vmem:[#allocation32_spill] sm:$0xff] }
 0x732   :  { %v2984_v32 = vpop.f32.mrf.mxu0  ;;  %v3033_v37 = vadd.f32 %v3023_v21, %v494_v4  ;;  %v3027_v23 = vpop.f32.mrf.mxu1  ;;  %v498_v18 = vadd.f32 %v6632_v39, %v5712_v1 }
 0x733   :  { %4971 = vpow2.f32 %v4464_v34  ;;  %v4466_v38 = vmul.f32 -1.442695, %v3034_v27  ;;  %v3035_v22 = vadd.f32 %v2984_v32, %v365_v25  ;;  %v4468_v12 = vmul.f32 -1.442695, %v3036_v20 }
 0x734   :  { %v3037_v34 = vadd.f32 %v3027_v23, %v498_v18 }
 0x735   :  { %4973 = vpow2.f32 %v4466_v38  ;;  %v4467_v45 = vmul.f32 -1.442695, %v3035_v22 }
 0x737   :  { %4975 = vpow2.f32 %v4467_v45 }
 0x738   :  { %4977 = vpow2.f32 %v4465_v40 }
 0x739   :  { %4979 = vtanh.f32 %v3033_v37 }
 0x73e   :  { %v4970_v31 = vpop.eup %4969 }
 0x73f   :  { %v3056_v25 = vadd.f32 1.0, %v4970_v31 }
 0x740   :  { %v4972_v29 = vpop.eup %4971 }
 0x741   :  { %4981 = vrcp.f32 %v3056_v25  ;;  %v3057_v27 = vadd.f32 1.0, %v4972_v29 }
 0x742   :  { %v4974_v32 = vpop.eup %4973  ;;  %4983 = vpow2.f32 %v4468_v12 }
 0x743   :  { %4985 = vrcp.f32 %v3057_v27  ;;  %v3059_v38 = vadd.f32 1.0, %v4974_v32 }
 0x744   :  { %v4976_v22 = vpop.eup %4975  ;;  %4987 = vtanh.f32 %v3037_v34 }
 0x745   :  { %4989 = vrcp.f32 %v3059_v38  ;;  %v3060_v21 = vadd.f32 1.0, %v4976_v22  ;;  %v4978_v62 = vpop.eup %4977 }
 0x746   :  { %v4980_v61 = vpop.eup %4979  ;;  %v3058_v20 = vadd.f32 1.0, %v4978_v62 }
 0x747   :  { %4991 = vrcp.f32 %v3060_v21  ;;  %v6634_v21 = vld [vmem:[#allocation35_spill] sm:$0xff] }
 0x748   :  { %4993 = vrcp.f32 %v3058_v20  ;;  %v371_v62 = vadd.f32 %v6634_v21, %v5694_v28 }
 0x74e   :  { %v4982_v45 = vpop.eup %4981 }
 0x74f   :  { %v4984_v41 = vpop.eup %4983  ;;  %v3080_v60 = vmul.f32 %v4982_v45, %v4980_v61 }
 0x750   :  { %v4986_v55 = vpop.eup %4985  ;;  %v3061_v31 = vadd.f32 1.0, %v4984_v41  ;;  %v6635_v41 = vld [vmem:[#allocation37_spill] sm:$0xff] }
 0x751   :  { %v4988_v33 = vpop.eup %4987  ;;  %v3078_v16 = vmul.f32 %v4986_v55, %v6291_v7 }
 0x752   :  { %v4990_v4 = vpop.eup %4989 }
 0x753   :  { %v6389_v40 = vadd.f32 %v3080_v60, %v3078_v16  ;;  %v3081_v37 = vmul.f32 %v4990_v4, %v4988_v33  ;;  %v373_v60 = vadd.f32 %v6635_v41, %v5688_v19 }
 0x754   :  { %v4992_v23 = vpop.eup %4991 }
 0x755   :  { %v3079_v39 = vmul.f32 %v4992_v23, %v6295_v0  ;;  %4995 = vtanh.f32 %v6389_v40  ;;  %v4994_v12 = vpop.eup %4993  ;;  %v6633_v0 = vld [vmem:[#allocation33_spill] sm:$0xff] }
 0x756   :  { %4997 = vrcp.f32 %v3061_v31  ;;  %v369_v38 = vadd.f32 %v6633_v0, %v5688_v19 }
 0x757   :  { %v6393_v18 = vadd.f32 %v3081_v37, %v3079_v39 }
 0x759   :  { %4999 = vtanh.f32 %v6393_v18 }
 0x762   :  { %v4996_v25 = vpop.eup %4995 }
 0x763   :  { %v4998_v7 = vpop.eup %4997  ;;  %v3088_v34 = vmul.f32 %v4996_v25, %v4994_v12  ;;  %v6637_v25 = vld [vmem:[#allocation34_spill] sm:$0xff] }
 0x766   :  { %v5000_v29 = vpop.eup %4999 }
 0x767   :  { %v3089_v27 = vmul.f32 %v5000_v29, %v4998_v7  ;;  %v502_v7 = vadd.f32 %v6637_v25, %v5706_v17 }
 0x769   :  { %v3105_v32 = vpack.c.bf16 %v3089_v27, %v3088_v34 }
 0x76b   :  { %3331 = vmatmul.mubr.bf16.vlgmr.msra.gmra.mxu0 %v3105_v32  ;;  %3374 = vmatmul.mubr.bf16.vlgmr.msra.gmra.mxu1 %v3105_v32  ;;  %v6638_v32 = vld [vmem:[#allocation38_spill] sm:$0xff] }
 0x76c   :  { %3653 = vmatpush1.bf16.msra.mxu0 %v6133_v5  ;;  %3696 = vmatpush1.bf16.msra.mxu1 %v6138_v8  ;;  %v506_v0 = vadd.f32 %v6638_v32, %v5706_v17 }
 0x76d   :  { %3654 = vmatprep.subr.bf16.mxu0 %v6147_v15  ;;  %3697 = vmatprep.subr.bf16.mxu1 %v6152_v58 }
 0x76e   :  { %3684 = vmatprep.mubr.bf16.mxu0 %v6602_v35  ;;  %3727 = vmatprep.mubr.bf16.mxu1 %v6602_v35 }
 0x770   :  { %3655 = vmatpush1.bf16.msra.mxu0 %v6157_v30  ;;  %3698 = vmatpush1.bf16.msra.mxu1 %v6162_v6 }
 0x771   :  { %3656 = vmatprep.subr.bf16.mxu0 %v6171_v57  ;;  %3699 = vmatprep.subr.bf16.mxu1 %v6176_v11 }
 0x774   :  { %3657 = vmatpush1.bf16.msra.mxu0 %v6181_v24  ;;  %3700 = vmatpush1.bf16.msra.mxu1 %v6186_v59 }
 0x775   :  { %3658 = vmatprep.subr.bf16.mxu0 %v6195_v50  ;;  %3701 = vmatprep.subr.bf16.mxu1 %v6200_v42 }
 0x778   :  { %3659 = vmatpush1.bf16.msra.mxu0 %v6205_v46  ;;  %3702 = vmatpush1.bf16.msra.mxu1 %v6210_v2 }
 0x779   :  { %3660 = vmatprep.subr.bf16.mxu0 %v6219_v49  ;;  %3703 = vmatprep.subr.bf16.mxu1 %v6326_v14 }
 0x77c   :  { %3661 = vmatpush1.bf16.msra.mxu0 %v6225_v54  ;;  %3704 = vmatpush1.bf16.msra.mxu1 %v6331_v44 }
 0x77d   :  { %3662 = vmatprep.subr.bf16.mxu0 %v6233_v52  ;;  %3705 = vmatprep.subr.bf16.mxu1 %v6338_v51 }
 0x780   :  { %3663 = vmatpush1.bf16.msra.mxu0 %v6239_v26  ;;  %3706 = vmatpush1.bf16.msra.mxu1 %v6343_v13 }
 0x781   :  { %3664 = vmatprep.subr.bf16.mxu0 %v6247_v3  ;;  %3707 = vmatprep.subr.bf16.mxu1 %v6350_v56 }
 0x784   :  { %3665 = vmatpush1.bf16.msra.mxu0 %v6253_v43  ;;  %3708 = vmatpush1.bf16.msra.mxu1 %v6355_v47 }
 0x785   :  { %3666 = vmatprep.subr.bf16.mxu0 %v6266_v48  ;;  %3709 = vmatprep.subr.bf16.mxu1 %v6367_v9 }
 0x788   :  { %3667 = vmatpush1.bf16.msra.mxu0 %v6261_v10  ;;  %3710 = vmatpush1.bf16.msra.mxu1 %v6362_v36 }
 0x789   :  { %4006 = vmatprep.subr.bf16.mxu0 %v6123_v53  ;;  %4049 = vmatprep.subr.bf16.mxu1 %v6128_v63  ;;  %v6636_v53 = vld [vmem:[#allocation39_spill] sm:$0xff] }
 0x78a   :  { %v375_v20 = vadd.f32 %v6636_v53, %v5694_v28 }
 0x82b   :  { %v3332_v22 = vpop.f32.mrf.mxu0  ;;  %v3375_v33 = vpop.f32.mrf.mxu1 }
 0x82c   :  { %v3384_v61 = vadd.f32 %v3332_v22, %v369_v38  ;;  %v3386_v34 = vadd.f32 %v3375_v33, %v502_v7  ;;  %v6639_v38 = vld [vmem:[#allocation36_spill] sm:$0xff] }
 0x82d   :  { %v3334_v45 = vpop.f32.mrf.mxu0  ;;  %v3377_v31 = vpop.f32.mrf.mxu1  ;;  %v504_v22 = vadd.f32 %v6639_v38, %v5712_v1 }
 0x82e   :  { %v4501_v55 = vmul.f32 -1.442695, %v3384_v61  ;;  %v3385_v16 = vadd.f32 %v3334_v45, %v371_v62  ;;  %v4503_v62 = vmul.f32 -1.442695, %v3386_v34 }
 0x82f   :  { %v3336_v4 = vpop.f32.mrf.mxu0  ;;  %v3379_v27 = vpop.f32.mrf.mxu1  ;;  %v3387_v61 = vadd.f32 %v3377_v31, %v504_v22 }
 0x830   :  { %5001 = vpow2.f32 %v4501_v55  ;;  %v4502_v63 = vmul.f32 -1.442695, %v3385_v16  ;;  %v3388_v37 = vadd.f32 %v3336_v4, %v373_v60  ;;  %v3390_v21 = vadd.f32 %v3379_v27, %v506_v0  ;;  %v6640_v60 = vld [vmem:[#allocation40_spill] sm:$0xff] }
 0x831   :  { %v3338_v23 = vpop.f32.mrf.mxu0  ;;  %v3381_v45 = vpop.f32.mrf.mxu1  ;;  %v508_v55 = vadd.f32 %v6640_v60, %v5712_v1 }
 0x832   :  { %5003 = vpow2.f32 %v4502_v63  ;;  %v4504_v39 = vmul.f32 -1.442695, %v3388_v37  ;;  %v3389_v12 = vadd.f32 %v3338_v23, %v375_v20  ;;  %v4506_v16 = vmul.f32 -1.442695, %v3390_v21 }
 0x833   :  { %v3391_v53 = vadd.f32 %v3381_v45, %v508_v55 }
 0x834   :  { %5005 = vpow2.f32 %v4504_v39  ;;  %v4505_v29 = vmul.f32 -1.442695, %v3389_v12 }
 0x836   :  { %5007 = vpow2.f32 %v4505_v29 }
 0x837   :  { %5009 = vpow2.f32 %v4503_v62 }
 0x838   :  { %5011 = vtanh.f32 %v3387_v61 }
 0x83d   :  { %v5002_v41 = vpop.eup %5001 }
 0x83e   :  { %v3410_v4 = vadd.f32 1.0, %v5002_v41 }
 0x83f   :  { %v5004_v33 = vpop.eup %5003 }
 0x840   :  { %5013 = vrcp.f32 %v3410_v4  ;;  %v3411_v20 = vadd.f32 1.0, %v5004_v33 }
 0x841   :  { %v5006_v63 = vpop.eup %5005  ;;  %5015 = vpow2.f32 %v4506_v16 }
 0x842   :  { %5017 = vrcp.f32 %v3411_v20  ;;  %v3413_v37 = vadd.f32 1.0, %v5006_v63 }
 0x843   :  { %v5008_v23 = vpop.eup %5007  ;;  %5019 = vtanh.f32 %v3391_v53 }
 0x844   :  { %5021 = vrcp.f32 %v3413_v37  ;;  %v3414_v31 = vadd.f32 1.0, %v5008_v23  ;;  %v5010_v39 = vpop.eup %5009  ;;  %v6648_v23 = vld [vmem:[#allocation48_spill] sm:$0xff] }
 0x845   :  { %v5012_v12 = vpop.eup %5011  ;;  %v3412_v38 = vadd.f32 1.0, %v5010_v39 }
 0x846   :  { %5023 = vrcp.f32 %v3414_v31  ;;  %v518_v31 = vadd.f32 %v6648_v23, %v5712_v1 }
 0x847   :  { %5025 = vrcp.f32 %v3412_v38 }
 0x84d   :  { %v5014_v25 = vpop.eup %5013 }
 0x84e   :  { %v5016_v7 = vpop.eup %5015  ;;  %v3434_v29 = vmul.f32 %v5014_v25, %v5012_v12 }
 0x84f   :  { %v5018_v34 = vpop.eup %5017  ;;  %v3415_v61 = vadd.f32 1.0, %v5016_v7 }
 0x850   :  { %v5020_v27 = vpop.eup %5019  ;;  %v3432_v32 = vmul.f32 %v5018_v34, %v6389_v40 }
 0x851   :  { %v5022_v0 = vpop.eup %5021 }
 0x852   :  { %v6447_v22 = vadd.f32 %v3434_v29, %v3432_v32  ;;  %v3435_v21 = vmul.f32 %v5022_v0, %v5020_v27 }
 0x853   :  { %v5024_v62 = vpop.eup %5023 }
 0x854   :  { %v3433_v45 = vmul.f32 %v5024_v62, %v6393_v18  ;;  %5027 = vtanh.f32 %v6447_v22  ;;  %v5026_v60 = vpop.eup %5025 }
 0x855   :  { %5029 = vrcp.f32 %v3415_v61 }
 0x856   :  { %v6451_v41 = vadd.f32 %v3435_v21, %v3433_v45 }
 0x858   :  { %5031 = vtanh.f32 %v6451_v41 }
 0x861   :  { %v5028_v55 = vpop.eup %5027 }
 0x862   :  { %v5030_v40 = vpop.eup %5029  ;;  %v3442_v4 = vmul.f32 %v5028_v55, %v5026_v60 }
 0x865   :  { %v5032_v16 = vpop.eup %5031 }
 0x866   :  { %v3443_v33 = vmul.f32 %v5032_v16, %v5030_v40 }
 0x868   :  { %v3459_v53 = vpack.c.bf16 %v3443_v33, %v3442_v4 }
 0x86a   :  { %3685 = vmatmul.mubr.bf16.vlgmr.msra.gmra.mxu0 %v3459_v53  ;;  %3728 = vmatmul.mubr.bf16.vlgmr.msra.gmra.mxu1 %v3459_v53 }
 0x86b   :  { %4007 = vmatpush1.bf16.msra.mxu0 %v6133_v5  ;;  %4050 = vmatpush1.bf16.msra.mxu1 %v6138_v8 }
 0x86c   :  { %4008 = vmatprep.subr.bf16.mxu0 %v6147_v15  ;;  %4051 = vmatprep.subr.bf16.mxu1 %v6152_v58  ;;  %v6642_v15 = vld [vmem:[#allocation43_spill] sm:$0xff] }
 0x86d   :  { %4038 = vmatprep.mubr.bf16.mxu0 %v6602_v35  ;;  %4081 = vmatprep.mubr.bf16.mxu1 %v6602_v35  ;;  %v6641_v35 = vld [vmem:[#allocation41_spill] sm:$0xff]  ;;  %v381_v58 = vadd.f32 %v6642_v15, %v5694_v28 }
 0x86e   :  { %v379_v5 = vadd.f32 %v6641_v35, %v5688_v19 }
 0x86f   :  { %4009 = vmatpush1.bf16.msra.mxu0 %v6157_v30  ;;  %4052 = vmatpush1.bf16.msra.mxu1 %v6162_v6 }
 0x870   :  { %4010 = vmatprep.subr.bf16.mxu0 %v6171_v57  ;;  %4053 = vmatprep.subr.bf16.mxu1 %v6176_v11  ;;  %v6643_v57 = vld [vmem:[#allocation45_spill] sm:$0xff] }
 0x871   :  { %v383_v11 = vadd.f32 %v6643_v57, %v5688_v19 }
 0x873   :  { %4011 = vmatpush1.bf16.msra.mxu0 %v6181_v24  ;;  %4054 = vmatpush1.bf16.msra.mxu1 %v6186_v59 }
 0x874   :  { %4012 = vmatprep.subr.bf16.mxu0 %v6195_v50  ;;  %4055 = vmatprep.subr.bf16.mxu1 %v6200_v42 }
 0x877   :  { %4013 = vmatpush1.bf16.msra.mxu0 %v6205_v46  ;;  %4056 = vmatpush1.bf16.msra.mxu1 %v6210_v2  ;;  %v6644_v46 = vld [vmem:[#allocation47_spill] sm:$0xff] }
 0x878   :  { %4014 = vmatprep.subr.bf16.mxu0 %v6219_v49  ;;  %4057 = vmatprep.subr.bf16.mxu1 %v6326_v14  ;;  %v385_v2 = vadd.f32 %v6644_v46, %v5694_v28 }
 0x87b   :  { %4015 = vmatpush1.bf16.msra.mxu0 %v6225_v54  ;;  %4058 = vmatpush1.bf16.msra.mxu1 %v6331_v44 }
 0x87c   :  { %4016 = vmatprep.subr.bf16.mxu0 %v6233_v52  ;;  %4059 = vmatprep.subr.bf16.mxu1 %v6338_v51 }
 0x87f   :  { %4017 = vmatpush1.bf16.msra.mxu0 %v6239_v26  ;;  %4060 = vmatpush1.bf16.msra.mxu1 %v6343_v13  ;;  %v6646_v13 = vld [vmem:[#allocation46_spill] sm:$0xff] }
 0x880   :  { %4018 = vmatprep.subr.bf16.mxu0 %v6247_v3  ;;  %4061 = vmatprep.subr.bf16.mxu1 %v6350_v56  ;;  %v516_v56 = vadd.f32 %v6646_v13, %v5706_v17 }
 0x883   :  { %4019 = vmatpush1.bf16.msra.mxu0 %v6253_v43  ;;  %4062 = vmatpush1.bf16.msra.mxu1 %v6355_v47  ;;  %v6647_v47 = vld [vmem:[#allocation44_spill] sm:$0xff] }
 0x884   :  { %4020 = vmatprep.subr.bf16.mxu0 %v6266_v48  ;;  %4063 = vmatprep.subr.bf16.mxu1 %v6367_v9 }
 0x887   :  { %4021 = vmatpush1.bf16.msra.mxu0 %v6261_v10  ;;  %4064 = vmatpush1.bf16.msra.mxu1 %v6362_v36  ;;  %v6645_v10 = vld [vmem:[#allocation42_spill] sm:$0xff]  ;;  %v514_v36 = vadd.f32 %v6647_v47, %v5712_v1 }
 0x888   :  { %v512_v48 = vadd.f32 %v6645_v10, %v5706_v17 }
 0x92a   :  { %v3686_v8 = vpop.f32.mrf.mxu0  ;;  %v3729_v59 = vpop.f32.mrf.mxu1 }
 0x92b   :  { %v3738_v30 = vadd.f32 %v3686_v8, %v379_v5  ;;  %v3740_v44 = vadd.f32 %v3729_v59, %v512_v48  ;;  %v6649_v59 = vld [vmem:[#allocation49_spill] sm:$0xff]  ;;  %v6652_v48 = vld [vmem:[#allocation55_spill] sm:$0xff] }
 0x92c   :  { %v3688_v6 = vpop.f32.mrf.mxu0  ;;  %v3731_v26 = vpop.f32.mrf.mxu1 }
 0x92d   :  { %v4539_v24 = vmul.f32 -1.442695, %v3738_v30  ;;  %v3739_v50 = vadd.f32 %v3688_v6, %v381_v58  ;;  %v4541_v18 = vmul.f32 -1.442695, %v3740_v44  ;;  %v3741_v20 = vadd.f32 %v3731_v26, %v514_v36 }
 0x92e   :  { %v3690_v42 = vpop.f32.mrf.mxu0  ;;  %v3733_v51 = vpop.f32.mrf.mxu1 }
 0x92f   :  { %5033 = vpow2.f32 %v4539_v24  ;;  %v4540_v49 = vmul.f32 -1.442695, %v3739_v50  ;;  %v3742_v54 = vadd.f32 %v3690_v42, %v383_v11  ;;  %v3744_v9 = vadd.f32 %v3733_v51, %v516_v56  ;;  %v6650_v42 = vld [vmem:[#allocation51_spill] sm:$0xff] }
 0x930   :  { %v3692_v52 = vpop.f32.mrf.mxu0  ;;  %v3735_v63 = vpop.f32.mrf.mxu1  ;;  %v391_v46 = vadd.f32 %v6650_v42, %v5694_v28 }
 0x931   :  { %5035 = vpow2.f32 %v4540_v49  ;;  %v4542_v3 = vmul.f32 -1.442695, %v3742_v54  ;;  %v3743_v43 = vadd.f32 %v3692_v52, %v385_v2  ;;  %v4544_v39 = vmul.f32 -1.442695, %v3744_v9  ;;  %v6651_v54 = vld [vmem:[#allocation53_spill] sm:$0xff]  ;;  %v6653_v9 = vld [vmem:[#allocation50_spill] sm:$0xff] }
 0x932   :  { %v3745_v7 = vadd.f32 %v3735_v63, %v518_v31  ;;  %v393_v52 = vadd.f32 %v6651_v54, %v5688_v19 }
 0x933   :  { %5037 = vpow2.f32 %v4542_v3  ;;  %v4543_v14 = vmul.f32 -1.442695, %v3743_v43 }
 0x935   :  { %5039 = vpow2.f32 %v4543_v14  ;;  %v395_v14 = vadd.f32 %v6652_v48, %v5694_v28  ;;  %v6655_v28 = vld [vmem:[#allocation52_spill] sm:$0xff] }
 0x936   :  { %5041 = vpow2.f32 %v4541_v18  ;;  %v522_v18 = vadd.f32 %v6653_v9, %v5706_v17  ;;  %v524_v31 = vadd.f32 %v6655_v28, %v5712_v1 }
 0x937   :  { %5043 = vtanh.f32 %v3741_v20 }
 0x93c   :  { %v5034_v37 = vpop.eup %5033 }
 0x93d   :  { %v3764_v12 = vadd.f32 1.0, %v5034_v37  ;;  %v6654_v37 = vld [vmem:[#allocation54_spill] sm:$0xff] }
 0x93e   :  { %v5036_v25 = vpop.eup %5035  ;;  %v526_v23 = vadd.f32 %v6654_v37, %v5706_v17 }
 0x93f   :  { %5045 = vrcp.f32 %v3764_v12  ;;  %v3765_v29 = vadd.f32 1.0, %v5036_v25 }
 0x940   :  { %v5038_v34 = vpop.eup %5037  ;;  %5047 = vpow2.f32 %v4544_v39 }
 0x941   :  { %5049 = vrcp.f32 %v3765_v29  ;;  %v3767_v27 = vadd.f32 1.0, %v5038_v34  ;;  %v6656_v34 = vld [vmem:[#allocation56_spill] sm:$0xff] }
 0x942   :  { %v5040_v32 = vpop.eup %5039  ;;  %5051 = vtanh.f32 %v3745_v7 }
 0x943   :  { %5053 = vrcp.f32 %v3767_v27  ;;  %v3768_v0 = vadd.f32 1.0, %v5040_v32  ;;  %v5042_v38 = vpop.eup %5041  ;;  %v528_v27 = vadd.f32 %v6656_v34, %v5712_v1 }
 0x944   :  { %v5044_v21 = vpop.eup %5043  ;;  %v3766_v4 = vadd.f32 1.0, %v5042_v38 }
 0x945   :  { %5055 = vrcp.f32 %v3768_v0 }
 0x946   :  { %5057 = vrcp.f32 %v3766_v4 }
 0x94c   :  { %v5046_v62 = vpop.eup %5045 }
 0x94d   :  { %v5048_v61 = vpop.eup %5047  ;;  %v3788_v45 = vmul.f32 %v5046_v62, %v5044_v21 }
 0x94e   :  { %v5050_v60 = vpop.eup %5049  ;;  %v3769_v5 = vadd.f32 1.0, %v5048_v61 }
 0x94f   :  { %v5052_v55 = vpop.eup %5051  ;;  %v3786_v40 = vmul.f32 %v5050_v60, %v6447_v22 }
 0x950   :  { %v5054_v16 = vpop.eup %5053 }
 0x951   :  { %v6503_v33 = vadd.f32 %v3788_v45, %v3786_v40  ;;  %v3789_v53 = vmul.f32 %v5054_v16, %v5052_v55 }
 0x952   :  { %v5056_v35 = vpop.eup %5055 }
 0x953   :  { %v3787_v8 = vmul.f32 %v5056_v35, %v6451_v41  ;;  %5059 = vtanh.f32 %v6503_v33  ;;  %v5058_v58 = vpop.eup %5057  ;;  %v389_v41 = vadd.f32 %v6649_v59, %v5688_v19 }
 0x954   :  { %5061 = vrcp.f32 %v3769_v5 }
 0x955   :  { %v6507_v15 = vadd.f32 %v3789_v53, %v3787_v8 }
 0x957   :  { %5063 = vtanh.f32 %v6507_v15 }
 0x960   :  { %v5060_v30 = vpop.eup %5059 }
 0x961   :  { %v5062_v22 = vpop.eup %5061  ;;  %v3796_v57 = vmul.f32 %v5060_v30, %v5058_v58 }
 0x964   :  { %v5064_v6 = vpop.eup %5063 }
 0x965   :  { %v3797_v11 = vmul.f32 %v5064_v6, %v5062_v22 }
 0x967   :  { %v3813_v24 = vpack.c.bf16 %v3797_v11, %v3796_v57 }
 0x969   :  { %4039 = vmatmul.mubr.bf16.vlgmr.msra.gmra.mxu0 %v3813_v24  ;;  %4082 = vmatmul.mubr.bf16.vlgmr.msra.gmra.mxu1 %v3813_v24 }
 0xa29   :  { %v4040_v50 = vpop.f32.mrf.mxu0  ;;  %v4083_v3 = vpop.f32.mrf.mxu1 }
 0xa2a   :  { %v4092_v2 = vadd.f32 %v4040_v50, %v389_v41  ;;  %v4094_v20 = vadd.f32 %v4083_v3, %v522_v18 }
 0xa2b   :  { %v4042_v49 = vpop.f32.mrf.mxu0  ;;  %v4085_v56 = vpop.f32.mrf.mxu1 }
 0xa2c   :  { %v4577_v26 = vmul.f32 -1.442695, %v4092_v2  ;;  %v4093_v43 = vadd.f32 %v4042_v49, %v391_v46  ;;  %v4579_v12 = vmul.f32 -1.442695, %v4094_v20  ;;  %v4095_v25 = vadd.f32 %v4085_v56, %v524_v31 }
 0xa2d   :  { %v4044_v10 = vpop.f32.mrf.mxu0  ;;  %v4087_v63 = vpop.f32.mrf.mxu1 }
 0xa2e   :  { %5065 = vpow2.f32 %v4577_v26  ;;  %v4578_v44 = vmul.f32 -1.442695, %v4093_v43  ;;  %v4096_v51 = vadd.f32 %v4044_v10, %v393_v52  ;;  %v4098_v39 = vadd.f32 %v4087_v63, %v526_v23 }
 0xa2f   :  { %v4046_v13 = vpop.f32.mrf.mxu0  ;;  %v4089_v7 = vpop.f32.mrf.mxu1 }
 0xa30   :  { %5067 = vpow2.f32 %v4578_v44  ;;  %v4580_v47 = vmul.f32 -1.442695, %v4096_v51  ;;  %v4097_v36 = vadd.f32 %v4046_v13, %v395_v14  ;;  %v4582_v32 = vmul.f32 -1.442695, %v4098_v39 }
 0xa31   :  { %v4099_v21 = vadd.f32 %v4089_v7, %v528_v27 }
 0xa32   :  { %5069 = vpow2.f32 %v4580_v47  ;;  %v4581_v19 = vmul.f32 -1.442695, %v4097_v36 }
 0xa34   :  { %5071 = vpow2.f32 %v4581_v19 }
 0xa35   :  { %5073 = vpow2.f32 %v4579_v12 }
 0xa36   :  { %5075 = vtanh.f32 %v4095_v25 }
 0xa3b   :  { %v5066_v29 = vpop.eup %5065 }
 0xa3c   :  { %v4118_v0 = vadd.f32 1.0, %v5066_v29 }
 0xa3d   :  { %v5068_v38 = vpop.eup %5067 }
 0xa3e   :  { %5077 = vrcp.f32 %v4118_v0  ;;  %v4119_v62 = vadd.f32 1.0, %v5068_v38 }
 0xa3f   :  { %v5070_v17 = vpop.eup %5069  ;;  %5079 = vpow2.f32 %v4582_v32 }
 0xa40   :  { %5081 = vrcp.f32 %v4119_v62  ;;  %v4121_v61 = vadd.f32 1.0, %v5070_v17 }
 0xa41   :  { %v5072_v45 = vpop.eup %5071  ;;  %5083 = vtanh.f32 %v4099_v21 }
 0xa42   :  { %5085 = vrcp.f32 %v4121_v61  ;;  %v4122_v60 = vadd.f32 1.0, %v5072_v45  ;;  %v5074_v55 = vpop.eup %5073 }
 0xa43   :  { %v5076_v40 = vpop.eup %5075  ;;  %v4120_v35 = vadd.f32 1.0, %v5074_v55 }
 0xa44   :  { %5087 = vrcp.f32 %v4122_v60 }
 0xa45   :  { %5089 = vrcp.f32 %v4120_v35 }
 0xa4b   :  { %v5078_v1 = vpop.eup %5077 }
 0xa4c   :  { %v5080_v16 = vpop.eup %5079  ;;  %v4142_v4 = vmul.f32 %v5078_v1, %v5076_v40 }
 0xa4d   :  { %v5082_v53 = vpop.eup %5081  ;;  %v4123_v57 = vadd.f32 1.0, %v5080_v16 }
 0xa4e   :  { %v5084_v5 = vpop.eup %5083  ;;  %v4140_v8 = vmul.f32 %v5082_v53, %v6503_v33 }
 0xa4f   :  { %v5086_v58 = vpop.eup %5085 }
 0xa50   :  { %v4144_v30 = vadd.f32 %v4142_v4, %v4140_v8  ;;  %v4143_v22 = vmul.f32 %v5086_v58, %v5084_v5 }
 0xa51   :  { %v5088_v6 = vpop.eup %5087 }
 0xa52   :  { %4146 = vst [vmem:[%s6544_s5] sm:$0xff] %v4144_v30  ;;  %5091 = vtanh.f32 %v4144_v30  ;;  %v4141_v11 = vmul.f32 %v5088_v6, %v6507_v15  ;;  %v5090_v33 = vpop.eup %5089 }
 0xa53   :  { %5093 = vrcp.f32 %v4123_v57 }
 0xa54   :  { %v4145_v24 = vadd.f32 %v4143_v22, %v4141_v11 }
 0xa56   :  { %4147 = vst [vmem:[%s6544_s5 + $0x8] sm:$0xff] %v4145_v24  ;;  %5095 = vtanh.f32 %v4145_v24 }
 0xa5f   :  { %v5092_v59 = vpop.eup %5091 }
 0xa60   :  { %v4150_v41 = vmul.f32 %v5092_v59, %v5090_v33  ;;  %v5094_v50 = vpop.eup %5093 }
 0xa62   :  { %4152 = vst [vmem:[%s6545_s4] sm:$0xff] %v4150_v41 }
 0xa63   :  { %v5096_v42 = vpop.eup %5095 }
 0xa64   :  { %v4151_v46 = vmul.f32 %v5096_v42, %v5094_v50 }
 0xa66   :  { %4153 = vst [vmem:[%s6545_s4 + $0x8] sm:$0xff] %v4151_v46 }

// kernel: seq2seq_forward.3
= control target key start
LH: loop header
LB: loop body
LE: loop exit
PB: predicated region body
PF: predicated region fallthrough
CT: control target
= control target key end

     0   :  { %15 = vsyncpa [#allocation8], 0  ;;  %s11316_s0 = inlined_call_operand.vmem [shape: s32[8], index: 0, kind: input, shape index: {}]   ;;  %s11317_s1 = inlined_call_operand.vmem [shape: f32[7,16,128], index: 1, kind: input, shape index: {}]   ;;  %s11318_s2 = inlined_call_operand.vmem [shape: bf16[128,512], index: 2, kind: input, shape index: {}]   ;;  %s11319_s3 = inlined_call_operand.vmem [shape: bf16[128,512], index: 3, kind: input, shape index: {}]   ;;  %s11320_s4 = inlined_call_operand.vmem [shape: f32[1,512], index: 4, kind: input, shape index: {}]   ;;  %s11321_s5 = inlined_call_operand.vmem [shape: bf16[128,128], index: 5, kind: input, shape index: {}]   ;;  %s11322_s6 = inlined_call_operand.vmem [shape: bf16[128,128], index: 6, kind: input, shape index: {}]   ;;  %s11323_s7 = inlined_call_operand.vmem [shape: f32[1,128], index: 7, kind: input, shape index: {}]   ;;  %s11324_s8 = inlined_call_operand.vmem [shape: f32[16,128], index: 8, kind: input, shape index: {}]   ;;  %s11325_s9 = inlined_call_operand.vmem [shape: f32[16,128], index: 9, kind: input, shape index: {}]   ;;  %s11326_s10 = inlined_call_operand.vmem [shape: f32[7,16,128], index: 10, kind: output, shape index: {}]  }
   0x1   :  { %s22_s15 = sshll.u32 %s11316_s0, 4  ;;  %s23_s15 = int_to_ptr.vmem [resolvable:$true] %s22_s15 }
   0x2   :  { %s9113_s16 = scalar_lea.vmem %s23_s15, 16  ;;  %p9118_p1 = scmp.lt.s32.totalorder %s23_s15, %s23_s15 }
   0x3   :  { %p9114_p0 = scmp.ne.s32.totalorder %s23_s15, %s9113_s16  ;;  %p9119_p2 = scmp.lt.s32.totalorder %s9113_s16, %s9113_s16 }
   0x5   :  { %p9120_p3 = por %p9119_p2, %p9118_p1 }
   0x7   :  { %p9121_p4 = pnand %p9120_p3, %p9114_p0 }
   0x9   :  { %9124 = shalt.err (!%p9121_p4)
}
   0xa   :  { %s9127_s17 = smov [#allocation7]  }
   0xb   :  { %25 = dma.vmem_to_smem %s23_s15, 16, %s9127_s17, [#allocation8]  }
   0xc   :  { %9125 = dma.done.wait [#allocation8], 16  }
   0xd   :  { %9126 = vsyncadd [#allocation8], 4294967280 }
   0xe   :  { %47 = sfence }
   0xf   :  { %v8105_v0 = vld [vmem:[%s11318_s2 + $0xe4] ss:$16 sps:$4 sm:$0xff]   ;;  %v8107_v1 = vld [vmem:[%s11318_s2 + $0xec] ss:$16 sps:$4 sm:$0xff]   ;;  %v9128_v2 = vmov 0   ;;  %vm9130_vm0 = vmmov 0  }
  0x10   :  { %316 = vmatprep.mubr.bf16.mxu0 %v9128_v2  ;;  %419 = vmatprep.mubr.bf16.mxu1 %v9128_v2  ;;  %v8109_v3 = vld [vmem:[%s11318_s2 + $0xe0] ss:$16 sps:$4 sm:$0xff]   ;;  %v8110_v4 = vld [vmem:[%s11318_s2 + $0xe8] ss:$16 sps:$4 sm:$0xff]   ;;  %v8111_v5 = vld [vmem:[%s11318_s2 + $0xc4] ss:$16 sps:$4 sm:$0xff]  }
  0x11   :  { %284 = vmatprep.subr.bf16.mxu0 %v8105_v0  ;;  %387 = vmatprep.subr.bf16.mxu1 %v8107_v1  ;;  %v8113_v6 = vld [vmem:[%s11318_s2 + $0xcc] ss:$16 sps:$4 sm:$0xff]   ;;  %v8115_v7 = vld [vmem:[%s11318_s2 + $0xc0] ss:$16 sps:$4 sm:$0xff]   ;;  %v8116_v8 = vld [vmem:[%s11318_s2 + $0xc8] ss:$16 sps:$4 sm:$0xff]  }
  0x12   :  { %285 = vmatpush1.bf16.msra.mxu0 %v8109_v3  ;;  %388 = vmatpush1.bf16.msra.mxu1 %v8110_v4  ;;  %v8117_v9 = vld [vmem:[%s11318_s2 + $0xa4] ss:$16 sps:$4 sm:$0xff]   ;;  %v8119_v10 = vld [vmem:[%s11318_s2 + $0xac] ss:$16 sps:$4 sm:$0xff]   ;;  %v8121_v11 = vld [vmem:[%s11318_s2 + $0xa0] ss:$16 sps:$4 sm:$0xff]  }
  0x13   :  { %286 = vmatprep.subr.bf16.mxu0 %v8111_v5  ;;  %389 = vmatprep.subr.bf16.mxu1 %v8113_v6  ;;  %v8122_v12 = vld [vmem:[%s11318_s2 + $0xa8] ss:$16 sps:$4 sm:$0xff]   ;;  %v8123_v13 = vld [vmem:[%s11318_s2 + $0x84] ss:$16 sps:$4 sm:$0xff]   ;;  %v8125_v14 = vld [vmem:[%s11318_s2 + $0x8c] ss:$16 sps:$4 sm:$0xff]  }
  0x14   :  { %v8127_v15 = vld [vmem:[%s11318_s2 + $0x80] ss:$16 sps:$4 sm:$0xff]   ;;  %v8128_v16 = vld [vmem:[%s11318_s2 + $0x88] ss:$16 sps:$4 sm:$0xff]   ;;  %v8129_v17 = vld [vmem:[%s11318_s2 + $0x64] ss:$16 sps:$4 sm:$0xff]  }
  0x15   :  { %v8131_v18 = vld [vmem:[%s11318_s2 + $0x6c] ss:$16 sps:$4 sm:$0xff]   ;;  %v8133_v19 = vld [vmem:[%s11318_s2 + $0x60] ss:$16 sps:$4 sm:$0xff]   ;;  %v8134_v20 = vld [vmem:[%s11318_s2 + $0x68] ss:$16 sps:$4 sm:$0xff]  }
  0x16   :  { %287 = vmatpush1.bf16.msra.mxu0 %v8115_v7  ;;  %390 = vmatpush1.bf16.msra.mxu1 %v8116_v8  ;;  %v8135_v21 = vld [vmem:[%s11318_s2 + $0x44] ss:$16 sps:$4 sm:$0xff]   ;;  %v8137_v22 = vld [vmem:[%s11318_s2 + $0x4c] ss:$16 sps:$4 sm:$0xff]   ;;  %v8139_v23 = vld [vmem:[%s11318_s2 + $0x40] ss:$16 sps:$4 sm:$0xff]  }
  0x17   :  { %288 = vmatprep.subr.bf16.mxu0 %v8117_v9  ;;  %391 = vmatprep.subr.bf16.mxu1 %v8119_v10  ;;  %v8140_v24 = vld [vmem:[%s11318_s2 + $0x48] ss:$16 sps:$4 sm:$0xff]   ;;  %v8141_v25 = vld [vmem:[%s11318_s2 + $0x24] ss:$16 sps:$4 sm:$0xff]   ;;  %v8143_v26 = vld [vmem:[%s11318_s2 + $0x2c] ss:$16 sps:$4 sm:$0xff]  }
  0x18   :  { %v8145_v27 = vld [vmem:[%s11318_s2 + $0x20] ss:$16 sps:$4 sm:$0xff]   ;;  %v8146_v28 = vld [vmem:[%s11318_s2 + $0x28] ss:$16 sps:$4 sm:$0xff]   ;;  %v8147_v29 = vld [vmem:[%s11318_s2 + $0x4] ss:$16 sps:$4 sm:$0xff]  }
  0x19   :  { %v8149_v30 = vld [vmem:[%s11318_s2 + $0xc] ss:$16 sps:$4 sm:$0xff]   ;;  %v8151_v31 = vld [vmem:[%s11318_s2] ss:$16 sps:$4 sm:$0xff]   ;;  %v8152_v32 = vld [vmem:[%s11318_s2 + $0x8] ss:$16 sps:$4 sm:$0xff]  }
  0x1a   :  { %289 = vmatpush1.bf16.msra.mxu0 %v8121_v11  ;;  %392 = vmatpush1.bf16.msra.mxu1 %v8122_v12  ;;  %v49_v33 = vld [vmem:[%s11317_s1] sm:$0xff]  ;;  %v50_v34 = vld [vmem:[%s11317_s1 + $0x8] sm:$0xff]  ;;  %v51_v43 = vld [vmem:[%s11317_s1 + $0x10] sm:$0xff] }
  0x1b   :  { %290 = vmatprep.subr.bf16.mxu0 %v8123_v13  ;;  %393 = vmatprep.subr.bf16.mxu1 %v8125_v14  ;;  %v8155_v35 = vld [vmem:[%s11319_s3 + $0xe4] ss:$16 sps:$4 sm:$0xff]   ;;  %v8164_v36 = vld [vmem:[%s11319_s3 + $0xec] ss:$16 sps:$4 sm:$0xff]   ;;  %v63_v37 = vpack.c.bf16 %v50_v34, %v49_v33  ;;  %v8153_v38 = vld [vmem:[%s11319_s3 + $0xe0] ss:$16 sps:$4 sm:$0xff]   ;;  %v104_v34 = vlaneseq }
  0x1c   :  { %v8158_v39 = vld [vmem:[%s11319_s3 + $0xc4] ss:$16 sps:$4 sm:$0xff]   ;;  %v8156_v40 = vld [vmem:[%s11319_s3 + $0xc0] ss:$16 sps:$4 sm:$0xff]   ;;  %v8162_v41 = vld [vmem:[%s11319_s3 + $0xe8] ss:$16 sps:$4 sm:$0xff]  }
  0x1d   :  { %v8170_v42 = vld [vmem:[%s11319_s3 + $0xcc] ss:$16 sps:$4 sm:$0xff]   ;;  %v8161_v45 = vld [vmem:[%s11319_s3 + $0xa4] ss:$16 sps:$4 sm:$0xff]   ;;  %v8168_v46 = vld [vmem:[%s11319_s3 + $0xc8] ss:$16 sps:$4 sm:$0xff]  }
  0x1e   :  { %291 = vmatpush1.bf16.msra.mxu0 %v8127_v15  ;;  %394 = vmatpush1.bf16.msra.mxu1 %v8128_v16  ;;  %v52_v44 = vld [vmem:[%s11317_s1 + $0x18] sm:$0xff]  ;;  %v8159_v48 = vld [vmem:[%s11319_s3 + $0xa0] ss:$16 sps:$4 sm:$0xff]   ;;  %v8167_v50 = vld [vmem:[%s11319_s3 + $0x84] ss:$16 sps:$4 sm:$0xff]  }
  0x1f   :  { %292 = vmatprep.subr.bf16.mxu0 %v8129_v17  ;;  %395 = vmatprep.subr.bf16.mxu1 %v8131_v18  ;;  %v64_v47 = vpack.c.bf16 %v52_v44, %v51_v43  ;;  %v8176_v49 = vld [vmem:[%s11319_s3 + $0xac] ss:$16 sps:$4 sm:$0xff]   ;;  %v8174_v51 = vld [vmem:[%s11319_s3 + $0xa8] ss:$16 sps:$4 sm:$0xff]   ;;  %v53_v53 = vld [vmem:[%s11317_s1 + $0x20] sm:$0xff] }
  0x20   :  { %v8182_v52 = vld [vmem:[%s11319_s3 + $0x8c] ss:$16 sps:$4 sm:$0xff]   ;;  %v8165_v55 = vld [vmem:[%s11319_s3 + $0x80] ss:$16 sps:$4 sm:$0xff]   ;;  %v8173_v56 = vld [vmem:[%s11319_s3 + $0x64] ss:$16 sps:$4 sm:$0xff]  }
  0x21   :  { %v54_v54 = vld [vmem:[%s11317_s1 + $0x28] sm:$0xff]  ;;  %v8171_v59 = vld [vmem:[%s11319_s3 + $0x60] ss:$16 sps:$4 sm:$0xff]   ;;  %v8179_v60 = vld [vmem:[%s11319_s3 + $0x44] ss:$16 sps:$4 sm:$0xff]  }
  0x22   :  { %293 = vmatpush1.bf16.msra.mxu0 %v8133_v19  ;;  %396 = vmatpush1.bf16.msra.mxu1 %v8134_v20  ;;  %v8180_v57 = vld [vmem:[%s11319_s3 + $0x88] ss:$16 sps:$4 sm:$0xff]   ;;  %v65_v58 = vpack.c.bf16 %v54_v54, %v53_v53  ;;  %v8185_v62 = vld [vmem:[%s11319_s3 + $0x6c] ss:$16 sps:$4 sm:$0xff]   ;;  %v55_v0 = vld [vmem:[%s11317_s1 + $0x30] sm:$0xff] }
  0x23   :  { %294 = vmatprep.subr.bf16.mxu0 %v8135_v21  ;;  %397 = vmatprep.subr.bf16.mxu1 %v8137_v22  ;;  %v8183_v61 = vld [vmem:[%s11319_s3 + $0x68] ss:$16 sps:$4 sm:$0xff]   ;;  %v8191_v63 = vld [vmem:[%s11319_s3 + $0x4c] ss:$16 sps:$4 sm:$0xff]   ;;  %v8177_v3 = vld [vmem:[%s11319_s3 + $0x40] ss:$16 sps:$4 sm:$0xff]  }
  0x24   :  { %v56_v1 = vld [vmem:[%s11317_s1 + $0x38] sm:$0xff]  ;;  %v8188_v4 = vld [vmem:[%s11319_s3 + $0x24] ss:$16 sps:$4 sm:$0xff]   ;;  %v8186_v7 = vld [vmem:[%s11319_s3 + $0x20] ss:$16 sps:$4 sm:$0xff]  }
  0x25   :  { %v8189_v5 = vld [vmem:[%s11319_s3 + $0x48] ss:$16 sps:$4 sm:$0xff]   ;;  %v66_v6 = vpack.c.bf16 %v56_v1, %v55_v0  ;;  %v8194_v8 = vld [vmem:[%s11319_s3 + $0x2c] ss:$16 sps:$4 sm:$0xff]   ;;  %v8197_v10 = vld [vmem:[%s11319_s3 + $0x4] ss:$16 sps:$4 sm:$0xff]  }
  0x26   :  { %295 = vmatpush1.bf16.msra.mxu0 %v8139_v23  ;;  %398 = vmatpush1.bf16.msra.mxu1 %v8140_v24  ;;  %v8192_v9 = vld [vmem:[%s11319_s3 + $0x28] ss:$16 sps:$4 sm:$0xff]   ;;  %v8200_v11 = vld [vmem:[%s11319_s3 + $0xc] ss:$16 sps:$4 sm:$0xff]   ;;  %v57_v12 = vld [vmem:[%s11317_s1 + $0x40] sm:$0xff] }
  0x27   :  { %296 = vmatprep.subr.bf16.mxu0 %v8141_v25  ;;  %399 = vmatprep.subr.bf16.mxu1 %v8143_v26  ;;  %v58_v13 = vld [vmem:[%s11317_s1 + $0x48] sm:$0xff]  ;;  %v8195_v14 = vld [vmem:[%s11319_s3] ss:$16 sps:$4 sm:$0xff]   ;;  %v60_v18 = vld [vmem:[%s11317_s1 + $0x58] sm:$0xff] }
  0x28   :  { %v8198_v15 = vld [vmem:[%s11319_s3 + $0x8] ss:$16 sps:$4 sm:$0xff]   ;;  %v67_v16 = vpack.c.bf16 %v58_v13, %v57_v12  ;;  %v59_v17 = vld [vmem:[%s11317_s1 + $0x50] sm:$0xff]  ;;  %v61_v20 = vld [vmem:[%s11317_s1 + $0x60] sm:$0xff] }
  0x29   :  { %v68_v19 = vpack.c.bf16 %v60_v18, %v59_v17  ;;  %v62_v21 = vld [vmem:[%s11317_s1 + $0x68] sm:$0xff]  ;;  %v546_v23 = vld [vmem:[%s11324_s8] sm:$0xff]  ;;  %v8201_v26 = vld [vmem:[%s11322_s6 + $0x38] sm:$0xff]  }
  0x2a   :  { %297 = vmatpush1.bf16.msra.mxu0 %v8145_v27  ;;  %400 = vmatpush1.bf16.msra.mxu1 %v8146_v28  ;;  %v69_v22 = vpack.c.bf16 %v62_v21, %v61_v20  ;;  %v547_v24 = vld [vmem:[%s11324_s8 + $0x8] sm:$0xff]  ;;  %v9129_v27 = vmov 0.0   ;;  %v8202_v28 = vld [vmem:[%s11322_s6 + $0x30] sm:$0xff]  }
  0x2b   :  { %298 = vmatprep.subr.bf16.mxu0 %v8147_v29  ;;  %401 = vmatprep.subr.bf16.mxu1 %v8149_v30  ;;  %v585_v25 = vpack.c.bf16 %v547_v24, %v546_v23  ;;  %554 = vst [vmem:[#allocation4 + $0x8] sm:$0xff] %v9129_v27  ;;  %555 = vst [vmem:[#allocation4] sm:$0xff] %v9129_v27  ;;  %v8203_v29 = vld [vmem:[%s11322_s6 + $0x28] sm:$0xff]   ;;  %v8204_v30 = vld [vmem:[%s11322_s6 + $0x20] sm:$0xff]  }
  0x2c   :  { %v8207_v33 = vld [vmem:[%s11322_s6 + $0x8] sm:$0xff]  }
  0x2e   :  { %299 = vmatpush1.bf16.msra.mxu0 %v8151_v31  ;;  %402 = vmatpush1.bf16.msra.mxu1 %v8152_v32  ;;  %v8205_v31 = vld [vmem:[%s11322_s6 + $0x18] sm:$0xff]   ;;  %v8206_v32 = vld [vmem:[%s11322_s6 + $0x10] sm:$0xff]  }
  0x2f   :  { %778 = vmatprep.subr.bf16.mxu0 %v8155_v35  ;;  %821 = vmatprep.subr.bf16.mxu1 %v8164_v36  ;;  %v8208_v35 = vld [vmem:[%s11322_s6] sm:$0xff]   ;;  %v105_v36 = vshrl.u32 %v104_v34, 7 }
  0x31   :  { %317 = vmatmul.mubr.bf16.vlgmr.msra.gmra.mxu0 %v63_v37  ;;  %420 = vmatmul.mubr.bf16.vlgmr.msra.gmra.mxu1 %v63_v37  ;;  %v9509_v37 = vsub.s32 0, %v105_v36 }
  0x32   :  { %779 = vmatpush1.bf16.msra.mxu0 %v8153_v38  ;;  %326 = vmatprep.mubr.bf16.mxu0 %v9128_v2  ;;  %v9511_v38 = vsub.s32 2, %v105_v36 }
  0x33   :  { %429 = vmatprep.mubr.bf16.mxu1 %v9128_v2  ;;  %780 = vmatprep.subr.bf16.mxu0 %v8158_v39  ;;  %v102_v39 = vld [vmem:[%s11320_s4] sm:$0xf] }
  0x34   :  { %822 = vmatpush1.bf16.msra.mxu1 %v8162_v41  ;;  %v9518_v41 = vsub.s32 3, %v105_v36  ;;  %v9524_v43 = vrot.slane %v102_v39, %v9511_v38 }
  0x35   :  { %823 = vmatprep.subr.bf16.mxu1 %v8170_v42  ;;  %v9521_v42 = vrot.slane %v102_v39, %v9509_v37 }
  0x36   :  { %781 = vmatpush1.bf16.msra.mxu0 %v8156_v40  ;;  %v9516_v40 = vsub.s32 1, %v105_v36 }
  0x37   :  { %782 = vmatprep.subr.bf16.mxu0 %v8161_v45  ;;  %v9530_v45 = vrot.slane %v102_v39, %v9518_v41 }
  0x38   :  { %824 = vmatpush1.bf16.msra.mxu1 %v8168_v46  ;;  %v9527_v44 = vrot.slane %v102_v39, %v9516_v40 }
  0x39   :  { %327 = vmatmul.mubr.bf16.gmra.mxu0 %v64_v47  ;;  %430 = vmatmul.mubr.bf16.gmra.mxu1 %v64_v47 }
  0x3a   :  { %336 = vmatprep.mubr.bf16.mxu0 %v9128_v2  ;;  %439 = vmatprep.mubr.bf16.mxu1 %v9128_v2 }
  0x3b   :  { %783 = vmatpush1.bf16.msra.mxu0 %v8159_v48  ;;  %825 = vmatprep.subr.bf16.mxu1 %v8176_v49 }
  0x3c   :  { %784 = vmatprep.subr.bf16.mxu0 %v8167_v50  ;;  %826 = vmatpush1.bf16.msra.mxu1 %v8174_v51 }
  0x3d   :  { %827 = vmatprep.subr.bf16.mxu1 %v8182_v52 }
  0x3f   :  { %785 = vmatpush1.bf16.msra.mxu0 %v8165_v55 }
  0x40   :  { %786 = vmatprep.subr.bf16.mxu0 %v8173_v56  ;;  %828 = vmatpush1.bf16.msra.mxu1 %v8180_v57 }
  0x41   :  { %337 = vmatmul.mubr.bf16.gmra.mxu0 %v65_v58  ;;  %440 = vmatmul.mubr.bf16.gmra.mxu1 %v65_v58 }
  0x42   :  { %346 = vmatprep.mubr.bf16.mxu0 %v9128_v2  ;;  %449 = vmatprep.mubr.bf16.mxu1 %v9128_v2 }
  0x43   :  { %787 = vmatpush1.bf16.msra.mxu0 %v8171_v59  ;;  %829 = vmatprep.subr.bf16.mxu1 %v8185_v62 }
  0x44   :  { %788 = vmatprep.subr.bf16.mxu0 %v8179_v60  ;;  %830 = vmatpush1.bf16.msra.mxu1 %v8183_v61 }
  0x45   :  { %831 = vmatprep.subr.bf16.mxu1 %v8191_v63 }
  0x47   :  { %789 = vmatpush1.bf16.msra.mxu0 %v8177_v3 }
  0x48   :  { %790 = vmatprep.subr.bf16.mxu0 %v8188_v4  ;;  %832 = vmatpush1.bf16.msra.mxu1 %v8189_v5 }
  0x49   :  { %347 = vmatmul.mubr.bf16.gmra.mxu0 %v66_v6  ;;  %450 = vmatmul.mubr.bf16.gmra.mxu1 %v66_v6 }
  0x4a   :  { %356 = vmatprep.mubr.bf16.mxu0 %v9128_v2  ;;  %459 = vmatprep.mubr.bf16.mxu1 %v9128_v2 }
  0x4b   :  { %791 = vmatpush1.bf16.msra.mxu0 %v8186_v7  ;;  %833 = vmatprep.subr.bf16.mxu1 %v8194_v8 }
  0x4c   :  { %792 = vmatprep.subr.bf16.mxu0 %v8197_v10  ;;  %834 = vmatpush1.bf16.msra.mxu1 %v8192_v9 }
  0x4d   :  { %835 = vmatprep.subr.bf16.mxu1 %v8200_v11 }
  0x4f   :  { %793 = vmatpush1.bf16.msra.mxu0 %v8195_v14 }
  0x50   :  { %836 = vmatpush1.bf16.msra.mxu1 %v8198_v15  ;;  %7794 = vmatprep.subr.bf16.mxu0 %v9129_v27 }
  0x51   :  { %357 = vmatmul.mubr.bf16.gmra.mxu0 %v67_v16  ;;  %460 = vmatmul.mubr.bf16.gmra.mxu1 %v67_v16 }
  0x52   :  { %366 = vmatprep.mubr.bf16.mxu0 %v9128_v2  ;;  %469 = vmatprep.mubr.bf16.mxu1 %v9128_v2 }
  0x59   :  { %367 = vmatmul.mubr.bf16.gmra.mxu0 %v68_v19  ;;  %470 = vmatmul.mubr.bf16.gmra.mxu1 %v68_v19 }
  0x5a   :  { %376 = vmatprep.mubr.bf16.mxu0 %v9128_v2  ;;  %479 = vmatprep.mubr.bf16.mxu1 %v9128_v2 }
  0x61   :  { %377 = vmatmul.mubr.bf16.gmra.mxu0 %v69_v22  ;;  %480 = vmatmul.mubr.bf16.gmra.mxu1 %v69_v22 }
  0x62   :  { %810 = vmatprep.mubr.bf16.mxu0 %v9128_v2  ;;  %853 = vmatprep.mubr.bf16.mxu1 %v9128_v2 }
  0x69   :  { %811 = vmatmul.mubr.bf16.vlgmr.msra.gmra.mxu0 %v585_v25  ;;  %854 = vmatmul.mubr.bf16.vlgmr.msra.gmra.mxu1 %v585_v25 }
  0x6a   :  { %7795 = vmatpush3.bf16.msra.mxu0 %v8201_v26  ;;  %7810 = vmatprep.mubr.msk.bf16.mxu0 %vm9130_vm0, %v9129_v27 }
  0x6b   :  { %7796 = vmatprep.subr.bf16.mxu0 %v9129_v27 }
  0x6e   :  { %7797 = vmatpush3.bf16.msra.mxu0 %v8202_v28 }
  0x6f   :  { %7798 = vmatprep.subr.bf16.mxu0 %v9129_v27 }
  0x72   :  { %7799 = vmatpush3.bf16.msra.mxu0 %v8203_v29 }
  0x73   :  { %7800 = vmatprep.subr.bf16.mxu0 %v9129_v27 }
  0x76   :  { %7801 = vmatpush3.bf16.msra.mxu0 %v8204_v30 }
  0x77   :  { %7802 = vmatprep.subr.bf16.mxu0 %v9129_v27 }
  0x7a   :  { %7803 = vmatpush3.bf16.msra.mxu0 %v8205_v31 }
  0x7b   :  { %7804 = vmatprep.subr.bf16.mxu0 %v9129_v27 }
  0x7e   :  { %7805 = vmatpush3.bf16.msra.mxu0 %v8206_v32 }
  0x7f   :  { %7806 = vmatprep.subr.bf16.mxu0 %v9129_v27 }
  0x82   :  { %7807 = vmatpush3.bf16.msra.mxu0 %v8207_v33 }
  0x83   :  { %7808 = vmatprep.subr.bf16.mxu0 %v9129_v27 }
  0x86   :  { %7809 = vmatpush3.bf16.msra.mxu0 %v8208_v35 }
  0xf1   :  { %v318_v46 = vpop.f32.mrf.mxu0  ;;  %v421_v47 = vpop.f32.mrf.mxu1 }
  0xf2   :  { %v9533_v48 = vadd.f32 %v318_v46, %v9521_v42  ;;  %v9536_v49 = vadd.f32 %v421_v47, %v9524_v43 }
  0xf3   :  { %v320_v50 = vpop.f32.mrf.mxu0  ;;  %v423_v51 = vpop.f32.mrf.mxu1 }
  0xf4   :  { %567 = vst [vmem:[#allocation5] sm:$0xff] %v9533_v48  ;;  %569 = vst [vmem:[#allocation5 + $0x8] sm:$0xff] %v9536_v49  ;;  %v9541_v52 = vadd.f32 %v320_v50, %v9527_v44  ;;  %v9544_v53 = vadd.f32 %v423_v51, %v9530_v45 }
  0xf5   :  { %v322_v54 = vpop.f32.mrf.mxu0  ;;  %v425_v55 = vpop.f32.mrf.mxu1 }
  0xf6   :  { %568 = vst [vmem:[#allocation5 + $0x38] sm:$0xff] %v9541_v52  ;;  %570 = vst [vmem:[#allocation5 + $0x18] sm:$0xff] %v9544_v53  ;;  %v9549_v56 = vadd.f32 %v322_v54, %v9521_v42  ;;  %v9552_v57 = vadd.f32 %v425_v55, %v9524_v43 }
  0xf7   :  { %v324_v58 = vpop.f32.mrf.mxu0  ;;  %v427_v59 = vpop.f32.mrf.mxu1 }
  0xf8   :  { %571 = vst [vmem:[#allocation5 + $0x20] sm:$0xff] %v9549_v56  ;;  %573 = vst [vmem:[#allocation5 + $0x30] sm:$0xff] %v9552_v57  ;;  %v9557_v60 = vadd.f32 %v324_v58, %v9527_v44  ;;  %v9560_v61 = vadd.f32 %v427_v59, %v9530_v45 }
  0xf9   :  { %v328_v62 = vpop.f32.mrf.mxu0  ;;  %v431_v63 = vpop.f32.mrf.mxu1 }
  0xfa   :  { %572 = vst [vmem:[#allocation5 + $0x10] sm:$0xff] %v9557_v60  ;;  %574 = vst [vmem:[#allocation5 + $0x28] sm:$0xff] %v9560_v61  ;;  %v329_v0 = vadd.f32 %v328_v62, %v9521_v42  ;;  %v432_v1 = vadd.f32 %v431_v63, %v9524_v43 }
  0xfb   :  { %v330_v3 = vpop.f32.mrf.mxu0  ;;  %v433_v4 = vpop.f32.mrf.mxu1 }
  0xfc   :  { %498 = vst [vmem:[#allocation6 + $0x140] sm:$0xff] %v329_v0  ;;  %500 = vst [vmem:[#allocation6 + $0xf8] sm:$0xff] %v432_v1  ;;  %v331_v5 = vadd.f32 %v330_v3, %v9527_v44  ;;  %v434_v6 = vadd.f32 %v433_v4, %v9530_v45 }
  0xfd   :  { %v332_v7 = vpop.f32.mrf.mxu0  ;;  %v435_v8 = vpop.f32.mrf.mxu1 }
  0xfe   :  { %499 = vst [vmem:[#allocation6 + $0xf0] sm:$0xff] %v331_v5  ;;  %501 = vst [vmem:[#allocation6 + $0x38] sm:$0xff] %v434_v6  ;;  %v333_v9 = vadd.f32 %v332_v7, %v9521_v42  ;;  %v436_v10 = vadd.f32 %v435_v8, %v9524_v43 }
  0xff   :  { %v334_v11 = vpop.f32.mrf.mxu0  ;;  %v437_v12 = vpop.f32.mrf.mxu1 }
 0x100   :  { %502 = vst [vmem:[#allocation6 + $0x160] sm:$0xff] %v333_v9  ;;  %504 = vst [vmem:[#allocation6 + $0x120] sm:$0xff] %v436_v10  ;;  %v335_v13 = vadd.f32 %v334_v11, %v9527_v44  ;;  %v438_v14 = vadd.f32 %v437_v12, %v9530_v45 }
 0x101   :  { %v338_v15 = vpop.f32.mrf.mxu0  ;;  %v441_v16 = vpop.f32.mrf.mxu1 }
 0x102   :  { %503 = vst [vmem:[#allocation6 + $0x170] sm:$0xff] %v335_v13  ;;  %505 = vst [vmem:[#allocation6 + $0x1a0] sm:$0xff] %v438_v14  ;;  %v339_v17 = vadd.f32 %v338_v15, %v9521_v42  ;;  %v442_v18 = vadd.f32 %v441_v16, %v9524_v43 }
 0x103   :  { %v340_v19 = vpop.f32.mrf.mxu0  ;;  %v443_v20 = vpop.f32.mrf.mxu1 }
 0x104   :  { %506 = vst [vmem:[#allocation6 + $0xb0] sm:$0xff] %v339_v17  ;;  %508 = vst [vmem:[#allocation6 + $0xe8] sm:$0xff] %v442_v18  ;;  %v341_v21 = vadd.f32 %v340_v19, %v9527_v44  ;;  %v444_v22 = vadd.f32 %v443_v20, %v9530_v45 }
 0x105   :  { %v342_v23 = vpop.f32.mrf.mxu0  ;;  %v445_v24 = vpop.f32.mrf.mxu1 }
 0x106   :  { %507 = vst [vmem:[#allocation6 + $0x118] sm:$0xff] %v341_v21  ;;  %509 = vst [vmem:[#allocation6 + $0x198] sm:$0xff] %v444_v22  ;;  %v343_v25 = vadd.f32 %v342_v23, %v9521_v42  ;;  %v446_v26 = vadd.f32 %v445_v24, %v9524_v43 }
 0x107   :  { %v344_v28 = vpop.f32.mrf.mxu0  ;;  %v447_v29 = vpop.f32.mrf.mxu1 }
 0x108   :  { %510 = vst [vmem:[#allocation6 + $0x68] sm:$0xff] %v343_v25  ;;  %512 = vst [vmem:[#allocation6 + $0x168] sm:$0xff] %v446_v26  ;;  %v345_v30 = vadd.f32 %v344_v28, %v9527_v44  ;;  %v448_v31 = vadd.f32 %v447_v29, %v9530_v45 }
 0x109   :  { %v348_v32 = vpop.f32.mrf.mxu0  ;;  %v451_v33 = vpop.f32.mrf.mxu1 }
 0x10a   :  { %511 = vst [vmem:[#allocation6 + $0xa8] sm:$0xff] %v345_v30  ;;  %513 = vst [vmem:[#allocation6 + $0x100] sm:$0xff] %v448_v31  ;;  %v349_v35 = vadd.f32 %v348_v32, %v9521_v42  ;;  %v452_v36 = vadd.f32 %v451_v33, %v9524_v43 }
 0x10b   :  { %v350_v39 = vpop.f32.mrf.mxu0  ;;  %v453_v46 = vpop.f32.mrf.mxu1 }
 0x10c   :  { %514 = vst [vmem:[#allocation6 + $0x188] sm:$0xff] %v349_v35  ;;  %516 = vst [vmem:[#allocation6 + $0x80] sm:$0xff] %v452_v36  ;;  %v351_v47 = vadd.f32 %v350_v39, %v9527_v44  ;;  %v454_v50 = vadd.f32 %v453_v46, %v9530_v45 }
 0x10d   :  { %v352_v51 = vpop.f32.mrf.mxu0  ;;  %v455_v54 = vpop.f32.mrf.mxu1 }
 0x10e   :  { %515 = vst [vmem:[#allocation6 + $0xb8] sm:$0xff] %v351_v47  ;;  %517 = vst [vmem:[#allocation6 + $0x138] sm:$0xff] %v454_v50  ;;  %v353_v55 = vadd.f32 %v352_v51, %v9521_v42  ;;  %v456_v58 = vadd.f32 %v455_v54, %v9524_v43 }
 0x10f   :  { %v354_v59 = vpop.f32.mrf.mxu0  ;;  %v457_v62 = vpop.f32.mrf.mxu1 }
 0x110   :  { %518 = vst [vmem:[#allocation6 + $0x1b0] sm:$0xff] %v353_v55  ;;  %520 = vst [vmem:[#allocation6 + $0xe0] sm:$0xff] %v456_v58  ;;  %v355_v63 = vadd.f32 %v354_v59, %v9527_v44  ;;  %v458_v0 = vadd.f32 %v457_v62, %v9530_v45 }
 0x111   :  { %v358_v1 = vpop.f32.mrf.mxu0  ;;  %v461_v3 = vpop.f32.mrf.mxu1 }
 0x112   :  { %519 = vst [vmem:[#allocation6 + $0x8] sm:$0xff] %v355_v63  ;;  %521 = vst [vmem:[#allocation6 + $0x158] sm:$0xff] %v458_v0  ;;  %v359_v4 = vadd.f32 %v358_v1, %v9521_v42  ;;  %v462_v5 = vadd.f32 %v461_v3, %v9524_v43 }
 0x113   :  { %v360_v6 = vpop.f32.mrf.mxu0  ;;  %v463_v7 = vpop.f32.mrf.mxu1 }
 0x114   :  { %522 = vst [vmem:[#allocation6 + $0x1a8] sm:$0xff] %v359_v4  ;;  %524 = vst [vmem:[#allocation6 + $0x30] sm:$0xff] %v462_v5  ;;  %v361_v8 = vadd.f32 %v360_v6, %v9527_v44  ;;  %v464_v9 = vadd.f32 %v463_v7, %v9530_v45 }
 0x115   :  { %v362_v10 = vpop.f32.mrf.mxu0  ;;  %v465_v11 = vpop.f32.mrf.mxu1 }
 0x116   :  { %523 = vst [vmem:[#allocation6 + $0xa0] sm:$0xff] %v361_v8  ;;  %525 = vst [vmem:[#allocation6 + $0x28] sm:$0xff] %v464_v9  ;;  %v363_v12 = vadd.f32 %v362_v10, %v9521_v42  ;;  %v466_v13 = vadd.f32 %v465_v11, %v9524_v43 }
 0x117   :  { %v364_v14 = vpop.f32.mrf.mxu0  ;;  %v467_v15 = vpop.f32.mrf.mxu1 }
 0x118   :  { %526 = vst [vmem:[#allocation6 + $0x48] sm:$0xff] %v363_v12  ;;  %528 = vst [vmem:[#allocation6 + $0x88] sm:$0xff] %v466_v13  ;;  %v365_v16 = vadd.f32 %v364_v14, %v9527_v44  ;;  %v468_v17 = vadd.f32 %v467_v15, %v9530_v45 }
 0x119   :  { %v368_v18 = vpop.f32.mrf.mxu0  ;;  %v471_v19 = vpop.f32.mrf.mxu1 }
 0x11a   :  { %527 = vst [vmem:[#allocation6 + $0x190] sm:$0xff] %v365_v16  ;;  %529 = vst [vmem:[#allocation6 + $0x70] sm:$0xff] %v468_v17  ;;  %v369_v20 = vadd.f32 %v368_v18, %v9521_v42  ;;  %v472_v21 = vadd.f32 %v471_v19, %v9524_v43 }
 0x11b   :  { %v370_v22 = vpop.f32.mrf.mxu0  ;;  %v473_v23 = vpop.f32.mrf.mxu1 }
 0x11c   :  { %530 = vst [vmem:[#allocation6 + $0x40] sm:$0xff] %v369_v20  ;;  %532 = vst [vmem:[#allocation6 + $0x90] sm:$0xff] %v472_v21  ;;  %v371_v24 = vadd.f32 %v370_v22, %v9527_v44  ;;  %v474_v25 = vadd.f32 %v473_v23, %v9530_v45 }
 0x11d   :  { %v372_v26 = vpop.f32.mrf.mxu0  ;;  %v475_v28 = vpop.f32.mrf.mxu1 }
 0x11e   :  { %531 = vst [vmem:[#allocation6 + $0x1b8] sm:$0xff] %v371_v24  ;;  %533 = vst [vmem:[#allocation6 + $0x130] sm:$0xff] %v474_v25  ;;  %v373_v29 = vadd.f32 %v372_v26, %v9521_v42  ;;  %v476_v30 = vadd.f32 %v475_v28, %v9524_v43  ;;  %v550_v26 = vld [vmem:[%s11325_s9] sm:$0xff] }
 0x11f   :  { %v374_v31 = vpop.f32.mrf.mxu0  ;;  %v477_v32 = vpop.f32.mrf.mxu1 }
 0x120   :  { %534 = vst [vmem:[#allocation6 + $0x58] sm:$0xff] %v373_v29  ;;  %536 = vst [vmem:[#allocation6 + $0x178] sm:$0xff] %v476_v30  ;;  %v375_v33 = vadd.f32 %v374_v31, %v9527_v44  ;;  %v478_v35 = vadd.f32 %v477_v32, %v9530_v45 }
 0x121   :  { %v378_v36 = vpop.f32.mrf.mxu0  ;;  %v481_v39 = vpop.f32.mrf.mxu1 }
 0x122   :  { %535 = vst [vmem:[#allocation6 + $0x128] sm:$0xff] %v375_v33  ;;  %537 = vst [vmem:[#allocation6 + $0x150] sm:$0xff] %v478_v35  ;;  %v379_v46 = vadd.f32 %v378_v36, %v9521_v42  ;;  %v482_v47 = vadd.f32 %v481_v39, %v9524_v43  ;;  %v551_v35 = vld [vmem:[%s11325_s9 + $0x8] sm:$0xff]  ;;  %s7066_s9 = sld [smem:[#allocation7 + $0x1]] }
 0x123   :  { %v380_v50 = vpop.f32.mrf.mxu0  ;;  %v483_v51 = vpop.f32.mrf.mxu1 }
 0x124   :  { %538 = vst [vmem:[#allocation6 + $0x10] sm:$0xff] %v379_v46  ;;  %540 = vst [vmem:[#allocation6] sm:$0xff] %v482_v47  ;;  %v381_v54 = vadd.f32 %v380_v50, %v9527_v44  ;;  %v484_v55 = vadd.f32 %v483_v51, %v9530_v45 }
 0x125   :  { %v382_v58 = vpop.f32.mrf.mxu0  ;;  %v485_v59 = vpop.f32.mrf.mxu1 }
 0x126   :  { %539 = vst [vmem:[#allocation6 + $0x110] sm:$0xff] %v381_v54  ;;  %541 = vst [vmem:[#allocation6 + $0x180] sm:$0xff] %v484_v55  ;;  %v383_v62 = vadd.f32 %v382_v58, %v9521_v42  ;;  %v486_v63 = vadd.f32 %v485_v59, %v9524_v43 }
 0x127   :  { %v384_v0 = vpop.f32.mrf.mxu0  ;;  %v487_v1 = vpop.f32.mrf.mxu1 }
 0x128   :  { %542 = vst [vmem:[#allocation6 + $0x148] sm:$0xff] %v383_v62  ;;  %544 = vst [vmem:[#allocation6 + $0x60] sm:$0xff] %v486_v63  ;;  %v385_v3 = vadd.f32 %v384_v0, %v9527_v44  ;;  %v488_v4 = vadd.f32 %v487_v1, %v9530_v45  ;;  %p7067_p5 = scmp.ne.s32.totalorder %s7066_s9, 0 }
 0x129   :  { %v812_v5 = vpop.f32.mrf.mxu0  ;;  %v855_v43 = vpop.f32.mrf.mxu1 }
 0x12a   :  { %543 = vst [vmem:[#allocation6 + $0x20] sm:$0xff] %v385_v3  ;;  %545 = vst [vmem:[#allocation6 + $0x78] sm:$0xff] %v488_v4  ;;  %v864_v6 = vadd.f32 %v812_v5, %v9533_v48  ;;  %v866_v48 = vadd.f32 %v855_v43, %v9536_v49  ;;  %v7057_v3 = vld [vmem:[%s11323_s7] ss:$0 sm:$0xff] }
 0x12b   :  { %v814_v7 = vpop.f32.mrf.mxu0  ;;  %v857_v13 = vpop.f32.mrf.mxu1 }
 0x12c   :  { %v7051_v8 = vmul.f32 -1.442695, %v864_v6  ;;  %v865_v9 = vadd.f32 %v814_v7, %v9541_v52  ;;  %v7053_v16 = vmul.f32 -1.442695, %v866_v48  ;;  %v867_v18 = vadd.f32 %v857_v13, %v9544_v53 }
 0x12d   :  { %v816_v42 = vpop.f32.mrf.mxu0  ;;  %v859_v15 = vpop.f32.mrf.mxu1 }
 0x12e   :  { %8209 = vpow2.f32 %v7051_v8  ;;  %v7052_v10 = vmul.f32 -1.442695, %v865_v9  ;;  %v868_v11 = vadd.f32 %v816_v42, %v9549_v56  ;;  %v870_v52 = vadd.f32 %v859_v15, %v9552_v57 }
 0x12f   :  { %v818_v12 = vpop.f32.mrf.mxu0  ;;  %v861_v56 = vpop.f32.mrf.mxu1 }
 0x130   :  { %8211 = vpow2.f32 %v7052_v10  ;;  %v7054_v44 = vmul.f32 -1.442695, %v868_v11  ;;  %v869_v45 = vadd.f32 %v818_v12, %v9557_v60  ;;  %v7056_v21 = vmul.f32 -1.442695, %v870_v52 }
 0x131   :  { %v871_v23 = vadd.f32 %v861_v56, %v9560_v61 }
 0x132   :  { %8213 = vpow2.f32 %v7054_v44  ;;  %v7055_v14 = vmul.f32 -1.442695, %v869_v45 }
 0x134   :  { %8215 = vpow2.f32 %v7055_v14 }
 0x135   :  { %8217 = vpow2.f32 %v7053_v16 }
 0x13b   :  { %v8210_v17 = vpop.eup %8209 }
 0x13c   :  { %v890_v19 = vadd.f32 1.0, %v8210_v17 }
 0x13d   :  { %v8212_v20 = vpop.eup %8211 }
 0x13e   :  { %8219 = vrcp.f32 %v890_v19  ;;  %v891_v60 = vadd.f32 1.0, %v8212_v20 }
 0x13f   :  { %v8214_v22 = vpop.eup %8213  ;;  %8221 = vtanh.f32 %v867_v18 }
 0x140   :  { %8223 = vrcp.f32 %v891_v60  ;;  %v893_v49 = vadd.f32 1.0, %v8214_v22 }
 0x141   :  { %v8216_v24 = vpop.eup %8215  ;;  %8225 = vpow2.f32 %v7056_v21 }
 0x142   :  { %8227 = vrcp.f32 %v893_v49  ;;  %v894_v57 = vadd.f32 1.0, %v8216_v24  ;;  %v8218_v53 = vpop.eup %8217 }
 0x143   :  { %8229 = vtanh.f32 %v871_v23  ;;  %v892_v30 = vadd.f32 1.0, %v8218_v53 }
 0x144   :  { %8231 = vrcp.f32 %v894_v57 }
 0x145   :  { %8233 = vrcp.f32 %v892_v30 }
 0x14b   :  { %v8220_v25 = vpop.eup %8219 }
 0x14c   :  { %v8222_v28 = vpop.eup %8221 }
 0x14d   :  { %v8224_v29 = vpop.eup %8223  ;;  %v914_v61 = vmul.f32 %v8222_v28, %v8220_v25 }
 0x14e   :  { %v8226_v31 = vpop.eup %8225  ;;  %v912_v32 = vmul.f32 %v8224_v29, %v550_v26 }
 0x14f   :  { %v8228_v33 = vpop.eup %8227  ;;  %v895_v47 = vadd.f32 1.0, %v8226_v31 }
 0x150   :  { %v8230_v36 = vpop.eup %8229  ;;  %v916_v39 = vadd.f32 %v914_v61, %v912_v32 }
 0x151   :  { %v8232_v46 = vpop.eup %8231  ;;  %v915_v51 = vmul.f32 %v8230_v36, %v8228_v33 }
 0x152   :  { %8235 = vtanh.f32 %v916_v39  ;;  %922 = vst [vmem:[#allocation3 + $0x8] sm:$0xff] %v916_v39  ;;  %v913_v50 = vmul.f32 %v8232_v46, %v551_v35  ;;  %v8234_v55 = vpop.eup %8233 }
 0x153   :  { %8237 = vrcp.f32 %v895_v47 }
 0x154   :  { %v917_v54 = vadd.f32 %v915_v51, %v913_v50 }
 0x156   :  { %8239 = vtanh.f32 %v917_v54  ;;  %923 = vst [vmem:[#allocation3] sm:$0xff] %v917_v54 }
 0x15f   :  { %v8236_v58 = vpop.eup %8235 }
 0x160   :  { %v920_v59 = vmul.f32 %v8236_v58, %v8234_v55  ;;  %v8238_v62 = vpop.eup %8237 }
 0x162   :  { %924 = vst [vmem:[#allocation2] sm:$0xff] %v920_v59 }
 0x163   :  { %v8240_v63 = vpop.eup %8239 }
 0x164   :  { %v921_v0 = vmul.f32 %v8240_v63, %v8238_v62 }
 0x166   :  { %925 = vst [vmem:[#allocation2 + $0x8] sm:$0xff] %v921_v0  ;;  %v926_v1 = vpack.c.bf16 %v921_v0, %v920_v59 }
 0x168   :  { %7811 = vmatmul.mubr.bf16.vlgmr.msra.gmra.mxu0 %v926_v1 }
 0x228   :  { %v1032_v4 = vpop.f32.mrf.mxu0 }
 0x229   :  { %v1033_v5 = vadd.f32 %v7057_v3, %v1032_v4 }
 0x22a   :  { %v7812_v6 = vpop.f32.mrf.mxu0 }
 0x22b   :  { %1039 = vst [vmem:[%s11326_s10] sm:$0xff] %v1033_v5  ;;  %1045 = sbr.rel (%p7067_p5) target bundleno = 1191 (0x4a7), region = 49 }
 0x22c   :  { %v1035_v7 = vpop.f32.mrf.mxu0 }
 0x22d   :  { %v1036_v8 = vadd.f32 %v7057_v3, %v1035_v7 }
 0x22e   :  { %v7813_v9 = vpop.f32.mrf.mxu0 }
 0x22f   :  { %1040 = vst [vmem:[%s11326_s10 + $0x8] sm:$0xff] %v1036_v8 }
 0x230   :  { %1048 = vmax.xlane.f32.xlu0 %v1033_v5  ;;  %v9636_v42 = vand.u32 127, %v104_v34  ;;  %v8241_v48 = vld [vmem:[%s11321_s5 + $0x38] sm:$0xff]   ;;  %v9131_v15 = vmov 0.0   ;;  %v8242_v16 = vld [vmem:[%s11321_s5 + $0x30] sm:$0xff]   ;;  %v8243_v52 = vld [vmem:[%s11321_s5 + $0x28] sm:$0xff]   ;;  %vm9132_vm5 = vmmov 0  }
 0x231   :  { %7814 = vmatprep.subr.bf16.mxu0 %v9131_v15  ;;  %v8244_v17 = vld [vmem:[%s11321_s5 + $0x20] sm:$0xff]   ;;  %v8245_v18 = vld [vmem:[%s11321_s5 + $0x18] sm:$0xff]   ;;  %v8246_v19 = vld [vmem:[%s11321_s5 + $0x10] sm:$0xff]   ;;  %7830 = vmatprep.mubr.msk.bf16.mxu0 %vm9132_vm5, %v9131_v15  ;;  %v9133_v36 = vmov 1.0|1.0  }
 0x232   :  { %7815 = vmatpush3.bf16.msra.mxu0 %v8241_v48  ;;  %v8247_v57 = vld [vmem:[%s11321_s5 + $0x8] sm:$0xff]   ;;  %v8248_v53 = vld [vmem:[%s11321_s5] sm:$0xff]  }
 0x233   :  { %7816 = vmatprep.subr.bf16.mxu0 %v9131_v15 }
 0x234   :  { %1050 = vmax.xlane.f32.xlu0 %v1036_v8 }
 0x236   :  { %7817 = vmatpush3.bf16.msra.mxu0 %v8242_v16 }
 0x237   :  { %7818 = vmatprep.subr.bf16.mxu0 %v9131_v15 }
 0x23a   :  { %7819 = vmatpush3.bf16.msra.mxu0 %v8243_v52 }
 0x23b   :  { %7820 = vmatprep.subr.bf16.mxu0 %v9131_v15 }
 0x23e   :  { %7821 = vmatpush3.bf16.msra.mxu0 %v8244_v17 }
 0x23f   :  { %7822 = vmatprep.subr.bf16.mxu0 %v9131_v15 }
 0x242   :  { %7823 = vmatpush3.bf16.msra.mxu0 %v8245_v18 }
 0x243   :  { %7824 = vmatprep.subr.bf16.mxu0 %v9131_v15 }
 0x246   :  { %7825 = vmatpush3.bf16.msra.mxu0 %v8246_v19 }
 0x247   :  { %7826 = vmatprep.subr.bf16.mxu0 %v9131_v15 }
 0x24a   :  { %7827 = vmatpush3.bf16.msra.mxu0 %v8247_v57 }
 0x24b   :  { %7828 = vmatprep.subr.bf16.mxu0 %v9131_v15 }
 0x24e   :  { %7829 = vmatpush3.bf16.msra.mxu0 %v8248_v53 }
 0x2b9   :  { %v1049_v43 = vpop.xlane.xlu0 %1048 }
 0x2ba   :  { %vm1052_vm1 = vcmp.eq.f32.partialorder %v1033_v5, %v1049_v43 }
 0x2bb   :  { %v1054_v10 = vsel %vm1052_vm1, %v9636_v42, 128 }
 0x2bc   :  { %v1057_v11 = vshra.s32 %v1054_v10, 16  ;;  %v1056_v56 = vand.u32 65535, %v1054_v10 }
 0x2bd   :  { %v1051_v12 = vpop.xlane.xlu0 %1050 }
 0x2be   :  { %vm1053_vm2 = vcmp.eq.f32.partialorder %v1036_v8, %v1051_v12  ;;  %v1059_v44 = vcvt.s32.f32 %v1057_v11  ;;  %v1058_v60 = vcvt.s32.f32 %v1056_v56 }
 0x2bf   :  { %v1055_v45 = vsel %vm1053_vm2, %v9636_v42, 128 }
 0x2c0   :  { %1060 = vmin.xlane.f32.xlu1 %v1059_v44  ;;  %v1071_v13 = vshra.s32 %v1055_v45, 16  ;;  %v1070_v20 = vand.u32 65535, %v1055_v45 }
 0x2c2   :  { %v1073_v14 = vcvt.s32.f32 %v1071_v13  ;;  %v1072_v49 = vcvt.s32.f32 %v1070_v20 }
 0x2c4   :  { %1074 = vmin.xlane.f32.xlu1 %v1073_v14 }
 0x349   :  { %v1061_v21 = vpop.xlane.xlu1 %1060 }
 0x34a   :  { %vm1062_vm3 = vcmp.eq.f32.partialorder %v1059_v44, %v1061_v21  ;;  %v1067_v25 = vcvt.f32.s32 %v1061_v21 }
 0x34b   :  { %v1063_v22 = vsel %vm1062_vm3, %v1058_v60, inf }
 0x34c   :  { %1064 = vmin.xlane.f32.xlu0 %v1063_v22  ;;  %v1068_v30 = vshll.u32 %v1067_v25, 16 }
 0x34d   :  { %v1075_v23 = vpop.xlane.xlu1 %1074 }
 0x34e   :  { %vm1076_vm4 = vcmp.eq.f32.partialorder %v1073_v14, %v1075_v23  ;;  %v1081_v28 = vcvt.f32.s32 %v1075_v23 }
 0x34f   :  { %v1077_v24 = vsel %vm1076_vm4, %v1072_v49, inf }
 0x350   :  { %1078 = vmin.xlane.f32.xlu1 %v1077_v24  ;;  %v1082_v32 = vshll.u32 %v1081_v28, 16 }
 0x3d5   :  { %v1065_v26 = vpop.xlane.xlu0 %1064 }
 0x3d6   :  { %v1066_v29 = vcvt.f32.s32 %v1065_v26 }
 0x3d8   :  { %v1069_v61 = vadd.s32 %v1068_v30, %v1066_v29 }
 0x3d9   :  { %v1079_v31 = vpop.xlane.xlu1 %1078 }
 0x3da   :  { %v1080_v33 = vcvt.f32.s32 %v1079_v31  ;;  %vm1084_vm6 = vcmp.eq.s32.totalorder %v9636_v42, %v1069_v61 }
 0x3dc   :  { %v1083_v35 = vadd.s32 %v1082_v32, %v1080_v33 }
 0x3de   :  { %vm1085_vm7 = vcmp.eq.s32.totalorder %v9636_v42, %v1083_v35 }
 0x3df   :  { %vm7078_vm8 = vmpackc.low %vm1085_vm7, %vm1084_vm6 }
 0x3e0   :  { %7831 = vmatmul.mubr.msk.bf16.vlgmr.msra.gmra.mxu0 %vm7078_vm8, %v9133_v36 }
 0x4a0   :  { %v1189_v39 = vpop.f32.mrf.mxu0 }
 0x4a1   :  { %1196 = vst [vmem:[#allocation4 + $0x8] sm:$0xff] %v1189_v39 }
 0x4a2   :  { %v7832_v46 = vpop.f32.mrf.mxu0 }
 0x4a4   :  { %v1192_v47 = vpop.f32.mrf.mxu0 }
 0x4a5   :  { %1197 = vst [vmem:[#allocation4] sm:$0xff] %v1192_v47 }
 0x4a6   :  { %v7833_v50 = vpop.f32.mrf.mxu0 }
 0x4a7 PF:  { %s7080_s28 = sld [smem:[#allocation7 + $0x1]] }
 0x4ad   :  { %p7081_p6 = scmp.eq.s32.totalorder %s7080_s28, 0 }
 0x4af   :  { %1202 = sbr.rel (%p7081_p6) target bundleno = 1209 (0x4b9), region = 53 }
 0x4b4   :  { %v1206_v51 = vld [vmem:[#allocation6 + $0x140] sm:$0xff]  ;;  %v1207_v54 = vld [vmem:[#allocation6 + $0xf0] sm:$0xff]  ;;  %v1208_v55 = vld [vmem:[#allocation6 + $0xf8] sm:$0xff] }
 0x4b5   :  { %1214 = vst [vmem:[#allocation5] sm:$0xff] %v1206_v51  ;;  %1215 = vst [vmem:[#allocation5 + $0x38] sm:$0xff] %v1207_v54  ;;  %v1209_v58 = vld [vmem:[#allocation6 + $0x38] sm:$0xff]  ;;  %v1210_v59 = vld [vmem:[#allocation6 + $0x160] sm:$0xff] }
 0x4b6   :  { %1216 = vst [vmem:[#allocation5 + $0x8] sm:$0xff] %v1208_v55  ;;  %v1211_v62 = vld [vmem:[#allocation6 + $0x170] sm:$0xff]  ;;  %1217 = vst [vmem:[#allocation5 + $0x18] sm:$0xff] %v1209_v58  ;;  %v1212_v63 = vld [vmem:[#allocation6 + $0x120] sm:$0xff] }
 0x4b7   :  { %1218 = vst [vmem:[#allocation5 + $0x20] sm:$0xff] %v1210_v59  ;;  %1219 = vst [vmem:[#allocation5 + $0x10] sm:$0xff] %v1211_v62  ;;  %v1213_v0 = vld [vmem:[#allocation6 + $0x1a0] sm:$0xff] }
 0x4b8   :  { %1220 = vst [vmem:[#allocation5 + $0x30] sm:$0xff] %v1212_v63  ;;  %1221 = vst [vmem:[#allocation5 + $0x28] sm:$0xff] %v1213_v0 }
 0x4b9 PF:  { %p7082_p7 = scmp.ne.s32.totalorder %s7080_s28, 0 }
 0x4bb   :  { %1225 = sbr.rel (%p7082_p7) target bundleno = 1452 (0x5ac), region = 57 }
 0x4c0   :  { %v8249_v1 = vld [vmem:[%s11318_s2 + $0xe4] ss:$16 sps:$4 sm:$0xff]   ;;  %v8251_v3 = vld [vmem:[%s11318_s2 + $0xec] ss:$16 sps:$4 sm:$0xff]   ;;  %v9134_v4 = vmov 0  }
 0x4c1   :  { %1475 = vmatprep.mubr.bf16.mxu0 %v9134_v4  ;;  %1518 = vmatprep.mubr.bf16.mxu1 %v9134_v4  ;;  %v8253_v5 = vld [vmem:[%s11318_s2 + $0xe0] ss:$16 sps:$4 sm:$0xff]   ;;  %v8254_v6 = vld [vmem:[%s11318_s2 + $0xe8] ss:$16 sps:$4 sm:$0xff]   ;;  %v8255_v7 = vld [vmem:[%s11318_s2 + $0xc4] ss:$16 sps:$4 sm:$0xff]  }
 0x4c2   :  { %1443 = vmatprep.subr.bf16.mxu0 %v8249_v1  ;;  %1486 = vmatprep.subr.bf16.mxu1 %v8251_v3  ;;  %v8257_v8 = vld [vmem:[%s11318_s2 + $0xcc] ss:$16 sps:$4 sm:$0xff]   ;;  %v8259_v9 = vld [vmem:[%s11318_s2 + $0xc0] ss:$16 sps:$4 sm:$0xff]   ;;  %v8260_v42 = vld [vmem:[%s11318_s2 + $0xc8] ss:$16 sps:$4 sm:$0xff]  }
 0x4c3   :  { %1444 = vmatpush1.bf16.msra.mxu0 %v8253_v5  ;;  %1487 = vmatpush1.bf16.msra.mxu1 %v8254_v6  ;;  %v8261_v43 = vld [vmem:[%s11318_s2 + $0xa4] ss:$16 sps:$4 sm:$0xff]   ;;  %v8263_v10 = vld [vmem:[%s11318_s2 + $0xac] ss:$16 sps:$4 sm:$0xff]   ;;  %v8265_v11 = vld [vmem:[%s11318_s2 + $0xa0] ss:$16 sps:$4 sm:$0xff]  }
 0x4c4   :  { %1445 = vmatprep.subr.bf16.mxu0 %v8255_v7  ;;  %1488 = vmatprep.subr.bf16.mxu1 %v8257_v8  ;;  %v8266_v12 = vld [vmem:[%s11318_s2 + $0xa8] ss:$16 sps:$4 sm:$0xff]   ;;  %v8267_v44 = vld [vmem:[%s11318_s2 + $0x84] ss:$16 sps:$4 sm:$0xff]   ;;  %v8269_v45 = vld [vmem:[%s11318_s2 + $0x8c] ss:$16 sps:$4 sm:$0xff]  }
 0x4c5   :  { %v8271_v13 = vld [vmem:[%s11318_s2 + $0x80] ss:$16 sps:$4 sm:$0xff]   ;;  %v8272_v14 = vld [vmem:[%s11318_s2 + $0x88] ss:$16 sps:$4 sm:$0xff]   ;;  %v8273_v48 = vld [vmem:[%s11318_s2 + $0x64] ss:$16 sps:$4 sm:$0xff]  }
 0x4c6   :  { %v8275_v15 = vld [vmem:[%s11318_s2 + $0x6c] ss:$16 sps:$4 sm:$0xff]   ;;  %v8277_v16 = vld [vmem:[%s11318_s2 + $0x60] ss:$16 sps:$4 sm:$0xff]   ;;  %v8278_v52 = vld [vmem:[%s11318_s2 + $0x68] ss:$16 sps:$4 sm:$0xff]  }
 0x4c7   :  { %1446 = vmatpush1.bf16.msra.mxu0 %v8259_v9  ;;  %1489 = vmatpush1.bf16.msra.mxu1 %v8260_v42  ;;  %v8279_v17 = vld [vmem:[%s11318_s2 + $0x44] ss:$16 sps:$4 sm:$0xff]   ;;  %v8281_v18 = vld [vmem:[%s11318_s2 + $0x4c] ss:$16 sps:$4 sm:$0xff]   ;;  %v8283_v19 = vld [vmem:[%s11318_s2 + $0x40] ss:$16 sps:$4 sm:$0xff]  }
 0x4c8   :  { %1447 = vmatprep.subr.bf16.mxu0 %v8261_v43  ;;  %1490 = vmatprep.subr.bf16.mxu1 %v8263_v10  ;;  %v8284_v56 = vld [vmem:[%s11318_s2 + $0x48] ss:$16 sps:$4 sm:$0xff]   ;;  %v8285_v20 = vld [vmem:[%s11318_s2 + $0x24] ss:$16 sps:$4 sm:$0xff]   ;;  %v8287_v21 = vld [vmem:[%s11318_s2 + $0x2c] ss:$16 sps:$4 sm:$0xff]  }
 0x4c9   :  { %v8289_v60 = vld [vmem:[%s11318_s2 + $0x20] ss:$16 sps:$4 sm:$0xff]   ;;  %v8290_v22 = vld [vmem:[%s11318_s2 + $0x28] ss:$16 sps:$4 sm:$0xff]   ;;  %v8291_v23 = vld [vmem:[%s11318_s2 + $0x4] ss:$16 sps:$4 sm:$0xff]  }
 0x4ca   :  { %v8293_v49 = vld [vmem:[%s11318_s2 + $0xc] ss:$16 sps:$4 sm:$0xff]   ;;  %v8295_v24 = vld [vmem:[%s11318_s2] ss:$16 sps:$4 sm:$0xff]   ;;  %v8296_v57 = vld [vmem:[%s11318_s2 + $0x8] ss:$16 sps:$4 sm:$0xff]  }
 0x4cb   :  { %1448 = vmatpush1.bf16.msra.mxu0 %v8265_v11  ;;  %1491 = vmatpush1.bf16.msra.mxu1 %v8266_v12  ;;  %v1226_v53 = vld [vmem:[#allocation4 + $0x8] sm:$0xff]  ;;  %v1227_v25 = vld [vmem:[#allocation4] sm:$0xff] }
 0x4cc   :  { %1449 = vmatprep.subr.bf16.mxu0 %v8267_v44  ;;  %1492 = vmatprep.subr.bf16.mxu1 %v8269_v45  ;;  %v1228_v26 = vpack.c.bf16 %v1227_v25, %v1226_v53  ;;  %v1261_v28 = vld [vmem:[%s11320_s4] sm:$0xf] }
 0x4cd   :  { %v1266_v29 = vrot.slane %v1261_v28, %v9509_v37  ;;  %v1274_v30 = vrot.slane %v1261_v28, %v9511_v38  ;;  %v1270_v31 = vrot.slane %v1261_v28, %v9516_v40  ;;  %v1278_v32 = vrot.slane %v1261_v28, %v9518_v41 }
 0x4cf   :  { %1450 = vmatpush1.bf16.msra.mxu0 %v8271_v13  ;;  %1493 = vmatpush1.bf16.msra.mxu1 %v8272_v14 }
 0x4d0   :  { %1451 = vmatprep.subr.bf16.mxu0 %v8273_v48  ;;  %1494 = vmatprep.subr.bf16.mxu1 %v8275_v15 }
 0x4d3   :  { %1452 = vmatpush1.bf16.msra.mxu0 %v8277_v16  ;;  %1495 = vmatpush1.bf16.msra.mxu1 %v8278_v52 }
 0x4d4   :  { %1453 = vmatprep.subr.bf16.mxu0 %v8279_v17  ;;  %1496 = vmatprep.subr.bf16.mxu1 %v8281_v18 }
 0x4d7   :  { %1454 = vmatpush1.bf16.msra.mxu0 %v8283_v19  ;;  %1497 = vmatpush1.bf16.msra.mxu1 %v8284_v56 }
 0x4d8   :  { %1455 = vmatprep.subr.bf16.mxu0 %v8285_v20  ;;  %1498 = vmatprep.subr.bf16.mxu1 %v8287_v21 }
 0x4db   :  { %1456 = vmatpush1.bf16.msra.mxu0 %v8289_v60  ;;  %1499 = vmatpush1.bf16.msra.mxu1 %v8290_v22 }
 0x4dc   :  { %1457 = vmatprep.subr.bf16.mxu0 %v8291_v23  ;;  %1500 = vmatprep.subr.bf16.mxu1 %v8293_v49 }
 0x4df   :  { %1458 = vmatpush1.bf16.msra.mxu0 %v8295_v24  ;;  %1501 = vmatpush1.bf16.msra.mxu1 %v8296_v57 }
 0x4e2   :  { %1476 = vmatmul.mubr.bf16.vlgmr.msra.gmra.mxu0 %v1228_v26  ;;  %1519 = vmatmul.mubr.bf16.vlgmr.msra.gmra.mxu1 %v1228_v26 }
 0x5a2   :  { %v1477_v61 = vpop.f32.mrf.mxu0  ;;  %v1520_v33 = vpop.f32.mrf.mxu1 }
 0x5a3   :  { %v1478_v35 = vadd.f32 %v1477_v61, %v1266_v29  ;;  %v1521_v36 = vadd.f32 %v1520_v33, %v1274_v30 }
 0x5a4   :  { %v1479_v39 = vpop.f32.mrf.mxu0  ;;  %v1522_v46 = vpop.f32.mrf.mxu1 }
 0x5a5   :  { %1529 = vst [vmem:[#allocation5] sm:$0xff] %v1478_v35  ;;  %1531 = vst [vmem:[#allocation5 + $0x8] sm:$0xff] %v1521_v36  ;;  %v1480_v47 = vadd.f32 %v1479_v39, %v1270_v31  ;;  %v1523_v50 = vadd.f32 %v1522_v46, %v1278_v32 }
 0x5a6   :  { %v1481_v51 = vpop.f32.mrf.mxu0  ;;  %v1524_v54 = vpop.f32.mrf.mxu1 }
 0x5a7   :  { %1530 = vst [vmem:[#allocation5 + $0x38] sm:$0xff] %v1480_v47  ;;  %1532 = vst [vmem:[#allocation5 + $0x18] sm:$0xff] %v1523_v50  ;;  %v1482_v55 = vadd.f32 %v1481_v51, %v1266_v29  ;;  %v1525_v58 = vadd.f32 %v1524_v54, %v1274_v30 }
 0x5a8   :  { %v1483_v59 = vpop.f32.mrf.mxu0  ;;  %v1526_v62 = vpop.f32.mrf.mxu1 }
 0x5a9   :  { %1533 = vst [vmem:[#allocation5 + $0x20] sm:$0xff] %v1482_v55  ;;  %1535 = vst [vmem:[#allocation5 + $0x30] sm:$0xff] %v1525_v58  ;;  %v1484_v63 = vadd.f32 %v1483_v59, %v1270_v31  ;;  %v1527_v0 = vadd.f32 %v1526_v62, %v1278_v32 }
 0x5ab   :  { %1534 = vst [vmem:[#allocation5 + $0x10] sm:$0xff] %v1484_v63  ;;  %1536 = vst [vmem:[#allocation5 + $0x28] sm:$0xff] %v1527_v0 }
 0x5ac PF:  { %v8297_v1 = vld [vmem:[%s11319_s3 + $0xe4] ss:$16 sps:$4 sm:$0xff]   ;;  %1772 = vmatprep.mubr.bf16.mxu0 %v9128_v2  ;;  %1815 = vmatprep.mubr.bf16.mxu1 %v9128_v2  ;;  %v8299_v3 = vld [vmem:[%s11319_s3 + $0xe0] ss:$16 sps:$4 sm:$0xff]   ;;  %v8308_v7 = vld [vmem:[%s11319_s3 + $0xec] ss:$16 sps:$4 sm:$0xff]  }
 0x5ad   :  { %1740 = vmatprep.subr.bf16.mxu0 %v8297_v1  ;;  %v8300_v4 = vld [vmem:[%s11319_s3 + $0xc4] ss:$16 sps:$4 sm:$0xff]   ;;  %v8302_v5 = vld [vmem:[%s11319_s3 + $0xc0] ss:$16 sps:$4 sm:$0xff]   ;;  %v8311_v8 = vld [vmem:[%s11319_s3 + $0xe8] ss:$16 sps:$4 sm:$0xff]   ;;  %1783 = vmatprep.subr.bf16.mxu1 %v8308_v7 }
 0x5ae   :  { %1741 = vmatpush1.bf16.msra.mxu0 %v8299_v3  ;;  %v8303_v6 = vld [vmem:[%s11319_s3 + $0xa4] ss:$16 sps:$4 sm:$0xff]   ;;  %v8305_v9 = vld [vmem:[%s11319_s3 + $0xa0] ss:$16 sps:$4 sm:$0xff]   ;;  %1784 = vmatpush1.bf16.msra.mxu1 %v8311_v8  ;;  %v8314_v43 = vld [vmem:[%s11319_s3 + $0xcc] ss:$16 sps:$4 sm:$0xff]  }
 0x5af   :  { %1742 = vmatprep.subr.bf16.mxu0 %v8300_v4  ;;  %v8306_v42 = vld [vmem:[%s11319_s3 + $0x84] ss:$16 sps:$4 sm:$0xff]   ;;  %v8317_v10 = vld [vmem:[%s11319_s3 + $0xc8] ss:$16 sps:$4 sm:$0xff]   ;;  %1785 = vmatprep.subr.bf16.mxu1 %v8314_v43  ;;  %v8310_v11 = vld [vmem:[%s11319_s3 + $0x80] ss:$16 sps:$4 sm:$0xff]  }
 0x5b0   :  { %v8312_v12 = vld [vmem:[%s11319_s3 + $0x64] ss:$16 sps:$4 sm:$0xff]   ;;  %v8320_v44 = vld [vmem:[%s11319_s3 + $0xac] ss:$16 sps:$4 sm:$0xff]   ;;  %v8323_v45 = vld [vmem:[%s11319_s3 + $0xa8] ss:$16 sps:$4 sm:$0xff]  }
 0x5b1   :  { %v8326_v13 = vld [vmem:[%s11319_s3 + $0x8c] ss:$16 sps:$4 sm:$0xff]   ;;  %v8316_v14 = vld [vmem:[%s11319_s3 + $0x60] ss:$16 sps:$4 sm:$0xff]   ;;  %v8318_v48 = vld [vmem:[%s11319_s3 + $0x44] ss:$16 sps:$4 sm:$0xff]  }
 0x5b2   :  { %1743 = vmatpush1.bf16.msra.mxu0 %v8302_v5  ;;  %1786 = vmatpush1.bf16.msra.mxu1 %v8317_v10  ;;  %v8329_v15 = vld [vmem:[%s11319_s3 + $0x88] ss:$16 sps:$4 sm:$0xff]   ;;  %v8332_v16 = vld [vmem:[%s11319_s3 + $0x6c] ss:$16 sps:$4 sm:$0xff]   ;;  %v8322_v52 = vld [vmem:[%s11319_s3 + $0x40] ss:$16 sps:$4 sm:$0xff]  }
 0x5b3   :  { %1744 = vmatprep.subr.bf16.mxu0 %v8303_v6  ;;  %1787 = vmatprep.subr.bf16.mxu1 %v8320_v44  ;;  %v8324_v17 = vld [vmem:[%s11319_s3 + $0x24] ss:$16 sps:$4 sm:$0xff]   ;;  %v8335_v18 = vld [vmem:[%s11319_s3 + $0x68] ss:$16 sps:$4 sm:$0xff]   ;;  %v8328_v19 = vld [vmem:[%s11319_s3 + $0x20] ss:$16 sps:$4 sm:$0xff]  }
 0x5b4   :  { %v8336_v56 = vld [vmem:[%s11319_s3 + $0x4c] ss:$16 sps:$4 sm:$0xff]   ;;  %v8330_v20 = vld [vmem:[%s11319_s3 + $0x4] ss:$16 sps:$4 sm:$0xff]   ;;  %v8338_v21 = vld [vmem:[%s11319_s3 + $0x48] ss:$16 sps:$4 sm:$0xff]  }
 0x5b5   :  { %v8339_v60 = vld [vmem:[%s11319_s3 + $0x2c] ss:$16 sps:$4 sm:$0xff]   ;;  %v8334_v22 = vld [vmem:[%s11319_s3] ss:$16 sps:$4 sm:$0xff]   ;;  %v8341_v24 = vld [vmem:[%s11319_s3 + $0x28] ss:$16 sps:$4 sm:$0xff]  }
 0x5b6   :  { %1745 = vmatpush1.bf16.msra.mxu0 %v8305_v9  ;;  %1788 = vmatpush1.bf16.msra.mxu1 %v8323_v45  ;;  %v1545_v23 = vld [vmem:[#allocation2] sm:$0xff]  ;;  %v1546_v49 = vld [vmem:[#allocation2 + $0x8] sm:$0xff]  ;;  %v8345_v26 = vld [vmem:[%s11322_s6 + $0x38] sm:$0xff]   ;;  %s7164_s30 = sld [smem:[#allocation7 + $0x2]] }
 0x5b7   :  { %1746 = vmatprep.subr.bf16.mxu0 %v8306_v42  ;;  %1789 = vmatprep.subr.bf16.mxu1 %v8326_v13  ;;  %v8342_v57 = vld [vmem:[%s11319_s3 + $0xc] ss:$16 sps:$4 sm:$0xff]   ;;  %v1547_v53 = vpack.c.bf16 %v1546_v49, %v1545_v23  ;;  %v8344_v25 = vld [vmem:[%s11319_s3 + $0x8] ss:$16 sps:$4 sm:$0xff]   ;;  %v8346_v28 = vld [vmem:[%s11322_s6 + $0x30] sm:$0xff]  }
 0x5b8   :  { %v8347_v29 = vld [vmem:[%s11322_s6 + $0x28] sm:$0xff]   ;;  %v8348_v30 = vld [vmem:[%s11322_s6 + $0x20] sm:$0xff]   ;;  %v8349_v31 = vld [vmem:[%s11322_s6 + $0x18] sm:$0xff]  }
 0x5b9   :  { %v8350_v32 = vld [vmem:[%s11322_s6 + $0x10] sm:$0xff]   ;;  %v8351_v61 = vld [vmem:[%s11322_s6 + $0x8] sm:$0xff]   ;;  %v8352_v33 = vld [vmem:[%s11322_s6] sm:$0xff]  }
 0x5ba   :  { %1747 = vmatpush1.bf16.msra.mxu0 %v8310_v11  ;;  %1790 = vmatpush1.bf16.msra.mxu1 %v8329_v15  ;;  %v1537_v35 = vld [vmem:[#allocation5] sm:$0xff]  ;;  %v1538_v39 = vld [vmem:[#allocation5 + $0x38] sm:$0xff]  ;;  %v1542_v58 = vld [vmem:[#allocation5 + $0x10] sm:$0xff] }
 0x5bb   :  { %1748 = vmatprep.subr.bf16.mxu0 %v8312_v12  ;;  %1791 = vmatprep.subr.bf16.mxu1 %v8332_v16  ;;  %v1541_v50 = vld [vmem:[#allocation5 + $0x20] sm:$0xff]  ;;  %v1539_v4 = vld [vmem:[#allocation5 + $0x8] sm:$0xff]  ;;  %v1540_v8 = vld [vmem:[#allocation5 + $0x18] sm:$0xff] }
 0x5bc   :  { %v1543_v9 = vld [vmem:[#allocation5 + $0x30] sm:$0xff]  ;;  %v1544_v45 = vld [vmem:[#allocation5 + $0x28] sm:$0xff]  ;;  %p7165_p8 = scmp.ne.s32.totalorder %s7164_s30, 0 }
 0x5be   :  { %1749 = vmatpush1.bf16.msra.mxu0 %v8316_v14  ;;  %1792 = vmatpush1.bf16.msra.mxu1 %v8335_v18 }
 0x5bf   :  { %1750 = vmatprep.subr.bf16.mxu0 %v8318_v48  ;;  %1793 = vmatprep.subr.bf16.mxu1 %v8336_v56 }
 0x5c2   :  { %1751 = vmatpush1.bf16.msra.mxu0 %v8322_v52  ;;  %1794 = vmatpush1.bf16.msra.mxu1 %v8338_v21 }
 0x5c3   :  { %1752 = vmatprep.subr.bf16.mxu0 %v8324_v17  ;;  %1795 = vmatprep.subr.bf16.mxu1 %v8339_v60  ;;  %v1872_v60 = vld [vmem:[#allocation3 + $0x8] sm:$0xff] }
 0x5c6   :  { %1753 = vmatpush1.bf16.msra.mxu0 %v8328_v19  ;;  %1796 = vmatpush1.bf16.msra.mxu1 %v8341_v24 }
 0x5c7   :  { %1754 = vmatprep.subr.bf16.mxu0 %v8330_v20  ;;  %1797 = vmatprep.subr.bf16.mxu1 %v8342_v57 }
 0x5ca   :  { %1755 = vmatpush1.bf16.msra.mxu0 %v8334_v22  ;;  %1798 = vmatpush1.bf16.msra.mxu1 %v8344_v25  ;;  %v1873_v25 = vld [vmem:[#allocation3] sm:$0xff] }
 0x5cb   :  { %7834 = vmatprep.subr.bf16.mxu0 %v9129_v27 }
 0x5cd   :  { %1773 = vmatmul.mubr.bf16.vlgmr.msra.gmra.mxu0 %v1547_v53  ;;  %1816 = vmatmul.mubr.bf16.vlgmr.msra.gmra.mxu1 %v1547_v53 }
 0x5ce   :  { %7850 = vmatprep.mubr.msk.bf16.mxu0 %vm9130_vm0, %v9129_v27  ;;  %7835 = vmatpush3.bf16.msra.mxu0 %v8345_v26 }
 0x5cf   :  { %7836 = vmatprep.subr.bf16.mxu0 %v9129_v27 }
 0x5d2   :  { %7837 = vmatpush3.bf16.msra.mxu0 %v8346_v28 }
 0x5d3   :  { %7838 = vmatprep.subr.bf16.mxu0 %v9129_v27 }
 0x5d6   :  { %7839 = vmatpush3.bf16.msra.mxu0 %v8347_v29 }
 0x5d7   :  { %7840 = vmatprep.subr.bf16.mxu0 %v9129_v27 }
 0x5da   :  { %7841 = vmatpush3.bf16.msra.mxu0 %v8348_v30 }
 0x5db   :  { %7842 = vmatprep.subr.bf16.mxu0 %v9129_v27 }
 0x5de   :  { %7843 = vmatpush3.bf16.msra.mxu0 %v8349_v31 }
 0x5df   :  { %7844 = vmatprep.subr.bf16.mxu0 %v9129_v27 }
 0x5e2   :  { %7845 = vmatpush3.bf16.msra.mxu0 %v8350_v32 }
 0x5e3   :  { %7846 = vmatprep.subr.bf16.mxu0 %v9129_v27 }
 0x5e6   :  { %7847 = vmatpush3.bf16.msra.mxu0 %v8351_v61 }
 0x5e7   :  { %7848 = vmatprep.subr.bf16.mxu0 %v9129_v27 }
 0x5ea   :  { %7849 = vmatpush3.bf16.msra.mxu0 %v8352_v33 }
 0x68d   :  { %v1774_v36 = vpop.f32.mrf.mxu0  ;;  %v1817_v3 = vpop.f32.mrf.mxu1 }
 0x68e   :  { %v1826_v46 = vadd.f32 %v1774_v36, %v1537_v35  ;;  %v1828_v6 = vadd.f32 %v1817_v3, %v1539_v4 }
 0x68f   :  { %v1776_v47 = vpop.f32.mrf.mxu0  ;;  %v1819_v7 = vpop.f32.mrf.mxu1 }
 0x690   :  { %v7147_v51 = vmul.f32 -1.442695, %v1826_v46  ;;  %v1827_v54 = vadd.f32 %v1776_v47, %v1538_v39  ;;  %v7149_v42 = vmul.f32 -1.442695, %v1828_v6  ;;  %v1829_v10 = vadd.f32 %v1819_v7, %v1540_v8 }
 0x691   :  { %v1778_v55 = vpop.f32.mrf.mxu0  ;;  %v1821_v43 = vpop.f32.mrf.mxu1 }
 0x692   :  { %8353 = vpow2.f32 %v7147_v51  ;;  %v7148_v59 = vmul.f32 -1.442695, %v1827_v54  ;;  %v1830_v62 = vadd.f32 %v1778_v55, %v1541_v50  ;;  %v1832_v11 = vadd.f32 %v1821_v43, %v1543_v9  ;;  %v7153_v51 = vld [vmem:[%s11323_s7] ss:$0 sm:$0xff] }
 0x693   :  { %v1780_v63 = vpop.f32.mrf.mxu0  ;;  %v1823_v13 = vpop.f32.mrf.mxu1 }
 0x694   :  { %8355 = vpow2.f32 %v7148_v59  ;;  %v7150_v0 = vmul.f32 -1.442695, %v1830_v62  ;;  %v1831_v1 = vadd.f32 %v1780_v63, %v1542_v58  ;;  %v7152_v48 = vmul.f32 -1.442695, %v1832_v11 }
 0x695   :  { %v1833_v52 = vadd.f32 %v1823_v13, %v1544_v45 }
 0x696   :  { %8357 = vpow2.f32 %v7150_v0  ;;  %v7151_v5 = vmul.f32 -1.442695, %v1831_v1 }
 0x698   :  { %8359 = vpow2.f32 %v7151_v5 }
 0x699   :  { %8361 = vpow2.f32 %v7149_v42 }
 0x69a   :  { %8363 = vtanh.f32 %v1829_v10 }
 0x69f   :  { %v8354_v12 = vpop.eup %8353 }
 0x6a0   :  { %v1852_v44 = vadd.f32 1.0, %v8354_v12 }
 0x6a1   :  { %v8356_v14 = vpop.eup %8355 }
 0x6a2   :  { %8365 = vrcp.f32 %v1852_v44  ;;  %v1853_v15 = vadd.f32 1.0, %v8356_v14 }
 0x6a3   :  { %v8358_v16 = vpop.eup %8357 }
 0x6a4   :  { %8367 = vrcp.f32 %v1853_v15  ;;  %v1855_v17 = vadd.f32 1.0, %v8358_v16 }
 0x6a5   :  { %v8360_v18 = vpop.eup %8359  ;;  %8369 = vpow2.f32 %v7152_v48 }
 0x6a6   :  { %8371 = vrcp.f32 %v1855_v17  ;;  %v1856_v19 = vadd.f32 1.0, %v8360_v18  ;;  %v8362_v56 = vpop.eup %8361 }
 0x6a7   :  { %8373 = vtanh.f32 %v1833_v52  ;;  %v8364_v20 = vpop.eup %8363  ;;  %v1854_v23 = vadd.f32 1.0, %v8362_v56 }
 0x6a8   :  { %8375 = vrcp.f32 %v1856_v19 }
 0x6a9   :  { %8377 = vrcp.f32 %v1854_v23 }
 0x6af   :  { %v8366_v21 = vpop.eup %8365 }
 0x6b0   :  { %v1876_v57 = vmul.f32 %v8366_v21, %v8364_v20 }
 0x6b1   :  { %v8368_v22 = vpop.eup %8367 }
 0x6b2   :  { %v8370_v49 = vpop.eup %8369  ;;  %v1874_v24 = vmul.f32 %v8368_v22, %v1872_v60 }
 0x6b3   :  { %v8372_v53 = vpop.eup %8371  ;;  %v1857_v30 = vadd.f32 1.0, %v8370_v49 }
 0x6b4   :  { %v8374_v26 = vpop.eup %8373  ;;  %v1878_v28 = vadd.f32 %v1876_v57, %v1874_v24 }
 0x6b5   :  { %v8376_v29 = vpop.eup %8375  ;;  %v1877_v32 = vmul.f32 %v8374_v26, %v8372_v53 }
 0x6b6   :  { %8379 = vtanh.f32 %v1878_v28  ;;  %1884 = vst [vmem:[#allocation3 + $0x8] sm:$0xff] %v1878_v28  ;;  %v1875_v31 = vmul.f32 %v8376_v29, %v1873_v25  ;;  %v8378_v33 = vpop.eup %8377 }
 0x6b7   :  { %8381 = vrcp.f32 %v1857_v30 }
 0x6b8   :  { %v1879_v61 = vadd.f32 %v1877_v32, %v1875_v31 }
 0x6ba   :  { %8383 = vtanh.f32 %v1879_v61  ;;  %1885 = vst [vmem:[#allocation3] sm:$0xff] %v1879_v61 }
 0x6c3   :  { %v8380_v35 = vpop.eup %8379 }
 0x6c4   :  { %v1882_v36 = vmul.f32 %v8380_v35, %v8378_v33  ;;  %v8382_v39 = vpop.eup %8381 }
 0x6c6   :  { %1886 = vst [vmem:[#allocation2] sm:$0xff] %v1882_v36 }
 0x6c7   :  { %v8384_v46 = vpop.eup %8383 }
 0x6c8   :  { %v1883_v47 = vmul.f32 %v8384_v46, %v8382_v39 }
 0x6ca   :  { %1887 = vst [vmem:[#allocation2 + $0x8] sm:$0xff] %v1883_v47  ;;  %v1888_v50 = vpack.c.bf16 %v1883_v47, %v1882_v36 }
 0x6cc   :  { %7851 = vmatmul.mubr.bf16.vlgmr.msra.gmra.mxu0 %v1888_v50 }
 0x78c   :  { %v1994_v54 = vpop.f32.mrf.mxu0 }
 0x78d   :  { %v1995_v55 = vadd.f32 %v7153_v51, %v1994_v54 }
 0x78e   :  { %v7852_v58 = vpop.f32.mrf.mxu0 }
 0x78f   :  { %7162 = vst [vmem:[%s11326_s10 + $0x10] sm:$0xff] %v1995_v55  ;;  %2008 = sbr.rel (%p7165_p8) target bundleno = 2571 (0xa0b), region = 61 }
 0x790   :  { %v1997_v59 = vpop.f32.mrf.mxu0 }
 0x791   :  { %v1998_v62 = vadd.f32 %v7153_v51, %v1997_v59 }
 0x792   :  { %v7853_v63 = vpop.f32.mrf.mxu0 }
 0x793   :  { %7163 = vst [vmem:[%s11326_s10 + $0x18] sm:$0xff] %v1998_v62 }
 0x794   :  { %2011 = vmax.xlane.f32.xlu0 %v1995_v55  ;;  %v9911_v0 = vand.u32 127, %v104_v34  ;;  %v8385_v42 = vld [vmem:[%s11321_s5 + $0x38] sm:$0xff]   ;;  %v9135_v43 = vmov 0.0   ;;  %v8386_v10 = vld [vmem:[%s11321_s5 + $0x30] sm:$0xff]   ;;  %v8387_v11 = vld [vmem:[%s11321_s5 + $0x28] sm:$0xff]   ;;  %vm9136_vm13 = vmmov 0  }
 0x795   :  { %7854 = vmatprep.subr.bf16.mxu0 %v9135_v43  ;;  %v8388_v12 = vld [vmem:[%s11321_s5 + $0x20] sm:$0xff]   ;;  %v8389_v44 = vld [vmem:[%s11321_s5 + $0x18] sm:$0xff]   ;;  %v8390_v45 = vld [vmem:[%s11321_s5 + $0x10] sm:$0xff]   ;;  %7870 = vmatprep.mubr.msk.bf16.mxu0 %vm9136_vm13, %v9135_v43  ;;  %v9137_v26 = vmov 1.0|1.0  }
 0x796   :  { %7855 = vmatpush3.bf16.msra.mxu0 %v8385_v42  ;;  %v8391_v19 = vld [vmem:[%s11321_s5 + $0x8] sm:$0xff]   ;;  %v8392_v56 = vld [vmem:[%s11321_s5] sm:$0xff]  }
 0x797   :  { %7856 = vmatprep.subr.bf16.mxu0 %v9135_v43 }
 0x798   :  { %2013 = vmax.xlane.f32.xlu0 %v1998_v62 }
 0x79a   :  { %7857 = vmatpush3.bf16.msra.mxu0 %v8386_v10 }
 0x79b   :  { %7858 = vmatprep.subr.bf16.mxu0 %v9135_v43 }
 0x79e   :  { %7859 = vmatpush3.bf16.msra.mxu0 %v8387_v11 }
 0x79f   :  { %7860 = vmatprep.subr.bf16.mxu0 %v9135_v43 }
 0x7a2   :  { %7861 = vmatpush3.bf16.msra.mxu0 %v8388_v12 }
 0x7a3   :  { %7862 = vmatprep.subr.bf16.mxu0 %v9135_v43 }
 0x7a6   :  { %7863 = vmatpush3.bf16.msra.mxu0 %v8389_v44 }
 0x7a7   :  { %7864 = vmatprep.subr.bf16.mxu0 %v9135_v43 }
 0x7aa   :  { %7865 = vmatpush3.bf16.msra.mxu0 %v8390_v45 }
 0x7ab   :  { %7866 = vmatprep.subr.bf16.mxu0 %v9135_v43 }
 0x7ae   :  { %7867 = vmatpush3.bf16.msra.mxu0 %v8391_v19 }
 0x7af   :  { %7868 = vmatprep.subr.bf16.mxu0 %v9135_v43 }
 0x7b2   :  { %7869 = vmatpush3.bf16.msra.mxu0 %v8392_v56 }
 0x81d   :  { %v2012_v1 = vpop.xlane.xlu0 %2011 }
 0x81e   :  { %vm2015_vm9 = vcmp.eq.f32.partialorder %v1995_v55, %v2012_v1 }
 0x81f   :  { %v2017_v3 = vsel %vm2015_vm9, %v9911_v0, 128 }
 0x820   :  { %v2020_v4 = vshra.s32 %v2017_v3, 16  ;;  %v2019_v13 = vand.u32 65535, %v2017_v3 }
 0x821   :  { %v2014_v5 = vpop.xlane.xlu0 %2013 }
 0x822   :  { %vm2016_vm10 = vcmp.eq.f32.partialorder %v1998_v62, %v2014_v5  ;;  %v2022_v6 = vcvt.s32.f32 %v2020_v4  ;;  %v2021_v15 = vcvt.s32.f32 %v2019_v13 }
 0x823   :  { %v2018_v7 = vsel %vm2016_vm10, %v9911_v0, 128 }
 0x824   :  { %2023 = vmin.xlane.f32.xlu1 %v2022_v6  ;;  %v2034_v8 = vshra.s32 %v2018_v7, 16  ;;  %v2033_v14 = vand.u32 65535, %v2018_v7 }
 0x826   :  { %v2036_v9 = vcvt.s32.f32 %v2034_v8  ;;  %v2035_v17 = vcvt.s32.f32 %v2033_v14 }
 0x828   :  { %2037 = vmin.xlane.f32.xlu1 %v2036_v9 }
 0x8ad   :  { %v2024_v48 = vpop.xlane.xlu1 %2023 }
 0x8ae   :  { %vm2025_vm11 = vcmp.eq.f32.partialorder %v2022_v6, %v2024_v48  ;;  %v2030_v20 = vcvt.f32.s32 %v2024_v48 }
 0x8af   :  { %v2026_v16 = vsel %vm2025_vm11, %v2021_v15, inf }
 0x8b0   :  { %2027 = vmin.xlane.f32.xlu0 %v2026_v16  ;;  %v2031_v23 = vshll.u32 %v2030_v20, 16 }
 0x8b1   :  { %v2038_v52 = vpop.xlane.xlu1 %2037 }
 0x8b2   :  { %vm2039_vm12 = vcmp.eq.f32.partialorder %v2036_v9, %v2038_v52  ;;  %v2044_v60 = vcvt.f32.s32 %v2038_v52 }
 0x8b3   :  { %v2040_v18 = vsel %vm2039_vm12, %v2035_v17, inf }
 0x8b4   :  { %2041 = vmin.xlane.f32.xlu1 %v2040_v18  ;;  %v2045_v24 = vshll.u32 %v2044_v60, 16 }
 0x939   :  { %v2028_v21 = vpop.xlane.xlu0 %2027 }
 0x93a   :  { %v2029_v22 = vcvt.f32.s32 %v2028_v21 }
 0x93c   :  { %v2032_v57 = vadd.s32 %v2031_v23, %v2029_v22 }
 0x93d   :  { %v2042_v49 = vpop.xlane.xlu1 %2041 }
 0x93e   :  { %v2043_v53 = vcvt.f32.s32 %v2042_v49  ;;  %vm2047_vm14 = vcmp.eq.s32.totalorder %v9911_v0, %v2032_v57 }
 0x940   :  { %v2046_v25 = vadd.s32 %v2045_v24, %v2043_v53 }
 0x942   :  { %vm2048_vm15 = vcmp.eq.s32.totalorder %v9911_v0, %v2046_v25 }
 0x943   :  { %vm7176_vm1 = vmpackc.low %vm2048_vm15, %vm2047_vm14 }
 0x944   :  { %7871 = vmatmul.mubr.msk.bf16.vlgmr.msra.gmra.mxu0 %vm7176_vm1, %v9137_v26 }
 0xa04   :  { %v2152_v28 = vpop.f32.mrf.mxu0 }
 0xa05   :  { %2159 = vst [vmem:[#allocation4 + $0x8] sm:$0xff] %v2152_v28 }
 0xa06   :  { %v7872_v29 = vpop.f32.mrf.mxu0 }
 0xa08   :  { %v2155_v30 = vpop.f32.mrf.mxu0 }
 0xa09   :  { %2160 = vst [vmem:[#allocation4] sm:$0xff] %v2155_v30 }
 0xa0a   :  { %v7873_v31 = vpop.f32.mrf.mxu0 }
 0xa0b PF:  { %s7178_s29 = sld [smem:[#allocation7 + $0x2]] }
 0xa11   :  { %p7179_p9 = scmp.eq.s32.totalorder %s7178_s29, 0 }
 0xa13   :  { %2165 = sbr.rel (%p7179_p9) target bundleno = 2589 (0xa1d), region = 65 }
 0xa18   :  { %v2169_v32 = vld [vmem:[#allocation6 + $0xb0] sm:$0xff]  ;;  %v2170_v61 = vld [vmem:[#allocation6 + $0x118] sm:$0xff]  ;;  %v2171_v33 = vld [vmem:[#allocation6 + $0xe8] sm:$0xff] }
 0xa19   :  { %2177 = vst [vmem:[#allocation5] sm:$0xff] %v2169_v32  ;;  %2178 = vst [vmem:[#allocation5 + $0x38] sm:$0xff] %v2170_v61  ;;  %v2172_v35 = vld [vmem:[#allocation6 + $0x198] sm:$0xff]  ;;  %v2173_v36 = vld [vmem:[#allocation6 + $0x68] sm:$0xff] }
 0xa1a   :  { %2179 = vst [vmem:[#allocation5 + $0x8] sm:$0xff] %v2171_v33  ;;  %v2174_v39 = vld [vmem:[#allocation6 + $0xa8] sm:$0xff]  ;;  %2180 = vst [vmem:[#allocation5 + $0x18] sm:$0xff] %v2172_v35  ;;  %v2176_v47 = vld [vmem:[#allocation6 + $0x100] sm:$0xff] }
 0xa1b   :  { %2181 = vst [vmem:[#allocation5 + $0x20] sm:$0xff] %v2173_v36  ;;  %2182 = vst [vmem:[#allocation5 + $0x10] sm:$0xff] %v2174_v39  ;;  %v2175_v46 = vld [vmem:[#allocation6 + $0x168] sm:$0xff] }
 0xa1c   :  { %2183 = vst [vmem:[#allocation5 + $0x30] sm:$0xff] %v2175_v46  ;;  %2184 = vst [vmem:[#allocation5 + $0x28] sm:$0xff] %v2176_v47 }
 0xa1d PF:  { %p7180_p10 = scmp.ne.s32.totalorder %s7178_s29, 0 }
 0xa1f   :  { %2188 = sbr.rel (%p7180_p10) target bundleno = 2832 (0xb10), region = 69 }
 0xa24   :  { %v8393_v50 = vld [vmem:[%s11318_s2 + $0xe4] ss:$16 sps:$4 sm:$0xff]   ;;  %v8395_v51 = vld [vmem:[%s11318_s2 + $0xec] ss:$16 sps:$4 sm:$0xff]   ;;  %v9138_v54 = vmov 0  }
 0xa25   :  { %2438 = vmatprep.mubr.bf16.mxu0 %v9138_v54  ;;  %2481 = vmatprep.mubr.bf16.mxu1 %v9138_v54  ;;  %v8397_v55 = vld [vmem:[%s11318_s2 + $0xe0] ss:$16 sps:$4 sm:$0xff]   ;;  %v8398_v58 = vld [vmem:[%s11318_s2 + $0xe8] ss:$16 sps:$4 sm:$0xff]   ;;  %v8399_v59 = vld [vmem:[%s11318_s2 + $0xc4] ss:$16 sps:$4 sm:$0xff]  }
 0xa26   :  { %2406 = vmatprep.subr.bf16.mxu0 %v8393_v50  ;;  %2449 = vmatprep.subr.bf16.mxu1 %v8395_v51  ;;  %v8401_v62 = vld [vmem:[%s11318_s2 + $0xcc] ss:$16 sps:$4 sm:$0xff]   ;;  %v8403_v63 = vld [vmem:[%s11318_s2 + $0xc0] ss:$16 sps:$4 sm:$0xff]   ;;  %v8404_v0 = vld [vmem:[%s11318_s2 + $0xc8] ss:$16 sps:$4 sm:$0xff]  }
 0xa27   :  { %2407 = vmatpush1.bf16.msra.mxu0 %v8397_v55  ;;  %2450 = vmatpush1.bf16.msra.mxu1 %v8398_v58  ;;  %v8405_v1 = vld [vmem:[%s11318_s2 + $0xa4] ss:$16 sps:$4 sm:$0xff]   ;;  %v8407_v3 = vld [vmem:[%s11318_s2 + $0xac] ss:$16 sps:$4 sm:$0xff]   ;;  %v8409_v4 = vld [vmem:[%s11318_s2 + $0xa0] ss:$16 sps:$4 sm:$0xff]  }
 0xa28   :  { %2408 = vmatprep.subr.bf16.mxu0 %v8399_v59  ;;  %2451 = vmatprep.subr.bf16.mxu1 %v8401_v62  ;;  %v8410_v5 = vld [vmem:[%s11318_s2 + $0xa8] ss:$16 sps:$4 sm:$0xff]   ;;  %v8411_v6 = vld [vmem:[%s11318_s2 + $0x84] ss:$16 sps:$4 sm:$0xff]   ;;  %v8413_v7 = vld [vmem:[%s11318_s2 + $0x8c] ss:$16 sps:$4 sm:$0xff]  }
 0xa29   :  { %v8415_v8 = vld [vmem:[%s11318_s2 + $0x80] ss:$16 sps:$4 sm:$0xff]   ;;  %v8416_v9 = vld [vmem:[%s11318_s2 + $0x88] ss:$16 sps:$4 sm:$0xff]   ;;  %v8417_v42 = vld [vmem:[%s11318_s2 + $0x64] ss:$16 sps:$4 sm:$0xff]  }
 0xa2a   :  { %v8419_v43 = vld [vmem:[%s11318_s2 + $0x6c] ss:$16 sps:$4 sm:$0xff]   ;;  %v8421_v10 = vld [vmem:[%s11318_s2 + $0x60] ss:$16 sps:$4 sm:$0xff]   ;;  %v8422_v11 = vld [vmem:[%s11318_s2 + $0x68] ss:$16 sps:$4 sm:$0xff]  }
 0xa2b   :  { %2409 = vmatpush1.bf16.msra.mxu0 %v8403_v63  ;;  %2452 = vmatpush1.bf16.msra.mxu1 %v8404_v0  ;;  %v8423_v12 = vld [vmem:[%s11318_s2 + $0x44] ss:$16 sps:$4 sm:$0xff]   ;;  %v8425_v44 = vld [vmem:[%s11318_s2 + $0x4c] ss:$16 sps:$4 sm:$0xff]   ;;  %v8427_v45 = vld [vmem:[%s11318_s2 + $0x40] ss:$16 sps:$4 sm:$0xff]  }
 0xa2c   :  { %2410 = vmatprep.subr.bf16.mxu0 %v8405_v1  ;;  %2453 = vmatprep.subr.bf16.mxu1 %v8407_v3  ;;  %v8428_v13 = vld [vmem:[%s11318_s2 + $0x48] ss:$16 sps:$4 sm:$0xff]   ;;  %v8429_v14 = vld [vmem:[%s11318_s2 + $0x24] ss:$16 sps:$4 sm:$0xff]   ;;  %v8431_v48 = vld [vmem:[%s11318_s2 + $0x2c] ss:$16 sps:$4 sm:$0xff]  }
 0xa2d   :  { %v8433_v15 = vld [vmem:[%s11318_s2 + $0x20] ss:$16 sps:$4 sm:$0xff]   ;;  %v8434_v16 = vld [vmem:[%s11318_s2 + $0x28] ss:$16 sps:$4 sm:$0xff]   ;;  %v8435_v52 = vld [vmem:[%s11318_s2 + $0x4] ss:$16 sps:$4 sm:$0xff]  }
 0xa2e   :  { %v8437_v17 = vld [vmem:[%s11318_s2 + $0xc] ss:$16 sps:$4 sm:$0xff]   ;;  %v8439_v18 = vld [vmem:[%s11318_s2] ss:$16 sps:$4 sm:$0xff]   ;;  %v8440_v19 = vld [vmem:[%s11318_s2 + $0x8] ss:$16 sps:$4 sm:$0xff]  }
 0xa2f   :  { %2411 = vmatpush1.bf16.msra.mxu0 %v8409_v4  ;;  %2454 = vmatpush1.bf16.msra.mxu1 %v8410_v5  ;;  %v2189_v56 = vld [vmem:[#allocation4 + $0x8] sm:$0xff]  ;;  %v2190_v20 = vld [vmem:[#allocation4] sm:$0xff] }
 0xa30   :  { %2412 = vmatprep.subr.bf16.mxu0 %v8411_v6  ;;  %2455 = vmatprep.subr.bf16.mxu1 %v8413_v7  ;;  %v2191_v21 = vpack.c.bf16 %v2190_v20, %v2189_v56  ;;  %v2224_v60 = vld [vmem:[%s11320_s4] sm:$0xf] }
 0xa31   :  { %v2229_v22 = vrot.slane %v2224_v60, %v9509_v37  ;;  %v2237_v23 = vrot.slane %v2224_v60, %v9511_v38  ;;  %v2233_v49 = vrot.slane %v2224_v60, %v9516_v40  ;;  %v2241_v24 = vrot.slane %v2224_v60, %v9518_v41 }
 0xa33   :  { %2413 = vmatpush1.bf16.msra.mxu0 %v8415_v8  ;;  %2456 = vmatpush1.bf16.msra.mxu1 %v8416_v9 }
 0xa34   :  { %2414 = vmatprep.subr.bf16.mxu0 %v8417_v42  ;;  %2457 = vmatprep.subr.bf16.mxu1 %v8419_v43 }
 0xa37   :  { %2415 = vmatpush1.bf16.msra.mxu0 %v8421_v10  ;;  %2458 = vmatpush1.bf16.msra.mxu1 %v8422_v11 }
 0xa38   :  { %2416 = vmatprep.subr.bf16.mxu0 %v8423_v12  ;;  %2459 = vmatprep.subr.bf16.mxu1 %v8425_v44 }
 0xa3b   :  { %2417 = vmatpush1.bf16.msra.mxu0 %v8427_v45  ;;  %2460 = vmatpush1.bf16.msra.mxu1 %v8428_v13 }
 0xa3c   :  { %2418 = vmatprep.subr.bf16.mxu0 %v8429_v14  ;;  %2461 = vmatprep.subr.bf16.mxu1 %v8431_v48 }
 0xa3f   :  { %2419 = vmatpush1.bf16.msra.mxu0 %v8433_v15  ;;  %2462 = vmatpush1.bf16.msra.mxu1 %v8434_v16 }
 0xa40   :  { %2420 = vmatprep.subr.bf16.mxu0 %v8435_v52  ;;  %2463 = vmatprep.subr.bf16.mxu1 %v8437_v17 }
 0xa43   :  { %2421 = vmatpush1.bf16.msra.mxu0 %v8439_v18  ;;  %2464 = vmatpush1.bf16.msra.mxu1 %v8440_v19 }
 0xa46   :  { %2439 = vmatmul.mubr.bf16.vlgmr.msra.gmra.mxu0 %v2191_v21  ;;  %2482 = vmatmul.mubr.bf16.vlgmr.msra.gmra.mxu1 %v2191_v21 }
 0xb06   :  { %v2440_v57 = vpop.f32.mrf.mxu0  ;;  %v2483_v53 = vpop.f32.mrf.mxu1 }
 0xb07   :  { %v2441_v25 = vadd.f32 %v2440_v57, %v2229_v22  ;;  %v2484_v26 = vadd.f32 %v2483_v53, %v2237_v23 }
 0xb08   :  { %v2442_v28 = vpop.f32.mrf.mxu0  ;;  %v2485_v29 = vpop.f32.mrf.mxu1 }
 0xb09   :  { %2492 = vst [vmem:[#allocation5] sm:$0xff] %v2441_v25  ;;  %2494 = vst [vmem:[#allocation5 + $0x8] sm:$0xff] %v2484_v26  ;;  %v2443_v30 = vadd.f32 %v2442_v28, %v2233_v49  ;;  %v2486_v31 = vadd.f32 %v2485_v29, %v2241_v24 }
 0xb0a   :  { %v2444_v32 = vpop.f32.mrf.mxu0  ;;  %v2487_v61 = vpop.f32.mrf.mxu1 }
 0xb0b   :  { %2493 = vst [vmem:[#allocation5 + $0x38] sm:$0xff] %v2443_v30  ;;  %2495 = vst [vmem:[#allocation5 + $0x18] sm:$0xff] %v2486_v31  ;;  %v2445_v33 = vadd.f32 %v2444_v32, %v2229_v22  ;;  %v2488_v35 = vadd.f32 %v2487_v61, %v2237_v23 }
 0xb0c   :  { %v2446_v36 = vpop.f32.mrf.mxu0  ;;  %v2489_v39 = vpop.f32.mrf.mxu1 }
 0xb0d   :  { %2496 = vst [vmem:[#allocation5 + $0x20] sm:$0xff] %v2445_v33  ;;  %2498 = vst [vmem:[#allocation5 + $0x30] sm:$0xff] %v2488_v35  ;;  %v2447_v46 = vadd.f32 %v2446_v36, %v2233_v49  ;;  %v2490_v47 = vadd.f32 %v2489_v39, %v2241_v24 }
 0xb0f   :  { %2497 = vst [vmem:[#allocation5 + $0x10] sm:$0xff] %v2447_v46  ;;  %2499 = vst [vmem:[#allocation5 + $0x28] sm:$0xff] %v2490_v47 }
 0xb10 PF:  { %v8441_v50 = vld [vmem:[%s11319_s3 + $0xe4] ss:$16 sps:$4 sm:$0xff]   ;;  %2735 = vmatprep.mubr.bf16.mxu0 %v9128_v2  ;;  %2778 = vmatprep.mubr.bf16.mxu1 %v9128_v2  ;;  %v8443_v51 = vld [vmem:[%s11319_s3 + $0xe0] ss:$16 sps:$4 sm:$0xff]   ;;  %v8452_v59 = vld [vmem:[%s11319_s3 + $0xec] ss:$16 sps:$4 sm:$0xff]  }
 0xb11   :  { %2703 = vmatprep.subr.bf16.mxu0 %v8441_v50  ;;  %v8444_v54 = vld [vmem:[%s11319_s3 + $0xc4] ss:$16 sps:$4 sm:$0xff]   ;;  %v8446_v55 = vld [vmem:[%s11319_s3 + $0xc0] ss:$16 sps:$4 sm:$0xff]   ;;  %v8455_v62 = vld [vmem:[%s11319_s3 + $0xe8] ss:$16 sps:$4 sm:$0xff]   ;;  %2746 = vmatprep.subr.bf16.mxu1 %v8452_v59 }
 0xb12   :  { %2704 = vmatpush1.bf16.msra.mxu0 %v8443_v51  ;;  %v8447_v58 = vld [vmem:[%s11319_s3 + $0xa4] ss:$16 sps:$4 sm:$0xff]   ;;  %v8449_v63 = vld [vmem:[%s11319_s3 + $0xa0] ss:$16 sps:$4 sm:$0xff]   ;;  %2747 = vmatpush1.bf16.msra.mxu1 %v8455_v62  ;;  %v8458_v1 = vld [vmem:[%s11319_s3 + $0xcc] ss:$16 sps:$4 sm:$0xff]  }
 0xb13   :  { %2705 = vmatprep.subr.bf16.mxu0 %v8444_v54  ;;  %v8450_v0 = vld [vmem:[%s11319_s3 + $0x84] ss:$16 sps:$4 sm:$0xff]   ;;  %v8461_v3 = vld [vmem:[%s11319_s3 + $0xc8] ss:$16 sps:$4 sm:$0xff]   ;;  %2748 = vmatprep.subr.bf16.mxu1 %v8458_v1  ;;  %v8454_v4 = vld [vmem:[%s11319_s3 + $0x80] ss:$16 sps:$4 sm:$0xff]  }
 0xb14   :  { %v8456_v5 = vld [vmem:[%s11319_s3 + $0x64] ss:$16 sps:$4 sm:$0xff]   ;;  %v8464_v6 = vld [vmem:[%s11319_s3 + $0xac] ss:$16 sps:$4 sm:$0xff]   ;;  %v8467_v7 = vld [vmem:[%s11319_s3 + $0xa8] ss:$16 sps:$4 sm:$0xff]  }
 0xb15   :  { %v8470_v8 = vld [vmem:[%s11319_s3 + $0x8c] ss:$16 sps:$4 sm:$0xff]   ;;  %v8460_v9 = vld [vmem:[%s11319_s3 + $0x60] ss:$16 sps:$4 sm:$0xff]   ;;  %v8462_v42 = vld [vmem:[%s11319_s3 + $0x44] ss:$16 sps:$4 sm:$0xff]  }
 0xb16   :  { %2706 = vmatpush1.bf16.msra.mxu0 %v8446_v55  ;;  %2749 = vmatpush1.bf16.msra.mxu1 %v8461_v3  ;;  %v8473_v43 = vld [vmem:[%s11319_s3 + $0x88] ss:$16 sps:$4 sm:$0xff]   ;;  %v8476_v10 = vld [vmem:[%s11319_s3 + $0x6c] ss:$16 sps:$4 sm:$0xff]   ;;  %v8466_v11 = vld [vmem:[%s11319_s3 + $0x40] ss:$16 sps:$4 sm:$0xff]  }
 0xb17   :  { %2707 = vmatprep.subr.bf16.mxu0 %v8447_v58  ;;  %2750 = vmatprep.subr.bf16.mxu1 %v8464_v6  ;;  %v8468_v12 = vld [vmem:[%s11319_s3 + $0x24] ss:$16 sps:$4 sm:$0xff]   ;;  %v8479_v44 = vld [vmem:[%s11319_s3 + $0x68] ss:$16 sps:$4 sm:$0xff]   ;;  %v8472_v45 = vld [vmem:[%s11319_s3 + $0x20] ss:$16 sps:$4 sm:$0xff]  }
 0xb18   :  { %v8480_v13 = vld [vmem:[%s11319_s3 + $0x4c] ss:$16 sps:$4 sm:$0xff]   ;;  %v8474_v14 = vld [vmem:[%s11319_s3 + $0x4] ss:$16 sps:$4 sm:$0xff]   ;;  %v8482_v48 = vld [vmem:[%s11319_s3 + $0x48] ss:$16 sps:$4 sm:$0xff]  }
 0xb19   :  { %v8483_v15 = vld [vmem:[%s11319_s3 + $0x2c] ss:$16 sps:$4 sm:$0xff]   ;;  %v8478_v16 = vld [vmem:[%s11319_s3] ss:$16 sps:$4 sm:$0xff]   ;;  %v8485_v18 = vld [vmem:[%s11319_s3 + $0x28] ss:$16 sps:$4 sm:$0xff]  }
 0xb1a   :  { %2708 = vmatpush1.bf16.msra.mxu0 %v8449_v63  ;;  %2751 = vmatpush1.bf16.msra.mxu1 %v8467_v7  ;;  %v2508_v52 = vld [vmem:[#allocation2] sm:$0xff]  ;;  %v2509_v17 = vld [vmem:[#allocation2 + $0x8] sm:$0xff]  ;;  %v8489_v21 = vld [vmem:[%s11322_s6 + $0x38] sm:$0xff]   ;;  %s7262_s11 = sld [smem:[#allocation7 + $0x3]] }
 0xb1b   :  { %2709 = vmatprep.subr.bf16.mxu0 %v8450_v0  ;;  %2752 = vmatprep.subr.bf16.mxu1 %v8470_v8  ;;  %v8486_v19 = vld [vmem:[%s11319_s3 + $0xc] ss:$16 sps:$4 sm:$0xff]   ;;  %v2510_v56 = vpack.c.bf16 %v2509_v17, %v2508_v52  ;;  %v8488_v20 = vld [vmem:[%s11319_s3 + $0x8] ss:$16 sps:$4 sm:$0xff]   ;;  %v8490_v60 = vld [vmem:[%s11322_s6 + $0x30] sm:$0xff]  }
 0xb1c   :  { %v8491_v22 = vld [vmem:[%s11322_s6 + $0x28] sm:$0xff]   ;;  %v8492_v23 = vld [vmem:[%s11322_s6 + $0x20] sm:$0xff]   ;;  %v8493_v49 = vld [vmem:[%s11322_s6 + $0x18] sm:$0xff]  }
 0xb1d   :  { %v8494_v24 = vld [vmem:[%s11322_s6 + $0x10] sm:$0xff]   ;;  %v8495_v57 = vld [vmem:[%s11322_s6 + $0x8] sm:$0xff]   ;;  %v8496_v53 = vld [vmem:[%s11322_s6] sm:$0xff]  }
 0xb1e   :  { %2710 = vmatpush1.bf16.msra.mxu0 %v8454_v4  ;;  %2753 = vmatpush1.bf16.msra.mxu1 %v8473_v43  ;;  %v2500_v25 = vld [vmem:[#allocation5] sm:$0xff]  ;;  %v2501_v28 = vld [vmem:[#allocation5 + $0x38] sm:$0xff]  ;;  %v2505_v35 = vld [vmem:[#allocation5 + $0x10] sm:$0xff] }
 0xb1f   :  { %2711 = vmatprep.subr.bf16.mxu0 %v8456_v5  ;;  %2754 = vmatprep.subr.bf16.mxu1 %v8476_v10  ;;  %v2504_v31 = vld [vmem:[#allocation5 + $0x20] sm:$0xff]  ;;  %v2502_v54 = vld [vmem:[#allocation5 + $0x8] sm:$0xff]  ;;  %v2503_v62 = vld [vmem:[#allocation5 + $0x18] sm:$0xff] }
 0xb20   :  { %v2506_v63 = vld [vmem:[#allocation5 + $0x30] sm:$0xff]  ;;  %v2507_v7 = vld [vmem:[#allocation5 + $0x28] sm:$0xff]  ;;  %p7263_p11 = scmp.ne.s32.totalorder %s7262_s11, 0 }
 0xb22   :  { %2712 = vmatpush1.bf16.msra.mxu0 %v8460_v9  ;;  %2755 = vmatpush1.bf16.msra.mxu1 %v8479_v44 }
 0xb23   :  { %2713 = vmatprep.subr.bf16.mxu0 %v8462_v42  ;;  %2756 = vmatprep.subr.bf16.mxu1 %v8480_v13 }
 0xb26   :  { %2714 = vmatpush1.bf16.msra.mxu0 %v8466_v11  ;;  %2757 = vmatpush1.bf16.msra.mxu1 %v8482_v48 }
 0xb27   :  { %2715 = vmatprep.subr.bf16.mxu0 %v8468_v12  ;;  %2758 = vmatprep.subr.bf16.mxu1 %v8483_v15  ;;  %v2835_v15 = vld [vmem:[#allocation3 + $0x8] sm:$0xff] }
 0xb2a   :  { %2716 = vmatpush1.bf16.msra.mxu0 %v8472_v45  ;;  %2759 = vmatpush1.bf16.msra.mxu1 %v8485_v18 }
 0xb2b   :  { %2717 = vmatprep.subr.bf16.mxu0 %v8474_v14  ;;  %2760 = vmatprep.subr.bf16.mxu1 %v8486_v19 }
 0xb2e   :  { %2718 = vmatpush1.bf16.msra.mxu0 %v8478_v16  ;;  %2761 = vmatpush1.bf16.msra.mxu1 %v8488_v20  ;;  %v2836_v20 = vld [vmem:[#allocation3] sm:$0xff] }
 0xb2f   :  { %7874 = vmatprep.subr.bf16.mxu0 %v9129_v27 }
 0xb31   :  { %2736 = vmatmul.mubr.bf16.vlgmr.msra.gmra.mxu0 %v2510_v56  ;;  %2779 = vmatmul.mubr.bf16.vlgmr.msra.gmra.mxu1 %v2510_v56 }
 0xb32   :  { %7890 = vmatprep.mubr.msk.bf16.mxu0 %vm9130_vm0, %v9129_v27  ;;  %7875 = vmatpush3.bf16.msra.mxu0 %v8489_v21 }
 0xb33   :  { %7876 = vmatprep.subr.bf16.mxu0 %v9129_v27 }
 0xb36   :  { %7877 = vmatpush3.bf16.msra.mxu0 %v8490_v60 }
 0xb37   :  { %7878 = vmatprep.subr.bf16.mxu0 %v9129_v27 }
 0xb3a   :  { %7879 = vmatpush3.bf16.msra.mxu0 %v8491_v22 }
 0xb3b   :  { %7880 = vmatprep.subr.bf16.mxu0 %v9129_v27 }
 0xb3e   :  { %7881 = vmatpush3.bf16.msra.mxu0 %v8492_v23 }
 0xb3f   :  { %7882 = vmatprep.subr.bf16.mxu0 %v9129_v27 }
 0xb42   :  { %7883 = vmatpush3.bf16.msra.mxu0 %v8493_v49 }
 0xb43   :  { %7884 = vmatprep.subr.bf16.mxu0 %v9129_v27 }
 0xb46   :  { %7885 = vmatpush3.bf16.msra.mxu0 %v8494_v24 }
 0xb47   :  { %7886 = vmatprep.subr.bf16.mxu0 %v9129_v27 }
 0xb4a   :  { %7887 = vmatpush3.bf16.msra.mxu0 %v8495_v57 }
 0xb4b   :  { %7888 = vmatprep.subr.bf16.mxu0 %v9129_v27 }
 0xb4e   :  { %7889 = vmatpush3.bf16.msra.mxu0 %v8496_v53 }
 0xbf1   :  { %v2737_v26 = vpop.f32.mrf.mxu0  ;;  %v2780_v51 = vpop.f32.mrf.mxu1 }
 0xbf2   :  { %v2789_v29 = vadd.f32 %v2737_v26, %v2500_v25  ;;  %v2791_v58 = vadd.f32 %v2780_v51, %v2502_v54 }
 0xbf3   :  { %v2739_v30 = vpop.f32.mrf.mxu0  ;;  %v2782_v59 = vpop.f32.mrf.mxu1 }
 0xbf4   :  { %v7245_v32 = vmul.f32 -1.442695, %v2789_v29  ;;  %v2790_v61 = vadd.f32 %v2739_v30, %v2501_v28  ;;  %v7247_v0 = vmul.f32 -1.442695, %v2791_v58  ;;  %v2792_v3 = vadd.f32 %v2782_v59, %v2503_v62 }
 0xbf5   :  { %v2741_v33 = vpop.f32.mrf.mxu0  ;;  %v2784_v1 = vpop.f32.mrf.mxu1 }
 0xbf6   :  { %8497 = vpow2.f32 %v7245_v32  ;;  %v7246_v36 = vmul.f32 -1.442695, %v2790_v61  ;;  %v2793_v39 = vadd.f32 %v2741_v33, %v2504_v31  ;;  %v2795_v4 = vadd.f32 %v2784_v1, %v2506_v63  ;;  %v7251_v32 = vld [vmem:[%s11323_s7] ss:$0 sm:$0xff] }
 0xbf7   :  { %v2743_v46 = vpop.f32.mrf.mxu0  ;;  %v2786_v8 = vpop.f32.mrf.mxu1 }
 0xbf8   :  { %8499 = vpow2.f32 %v7246_v36  ;;  %v7248_v47 = vmul.f32 -1.442695, %v2793_v39  ;;  %v2794_v50 = vadd.f32 %v2743_v46, %v2505_v35  ;;  %v7250_v42 = vmul.f32 -1.442695, %v2795_v4 }
 0xbf9   :  { %v2796_v11 = vadd.f32 %v2786_v8, %v2507_v7 }
 0xbfa   :  { %8501 = vpow2.f32 %v7248_v47  ;;  %v7249_v55 = vmul.f32 -1.442695, %v2794_v50 }
 0xbfc   :  { %8503 = vpow2.f32 %v7249_v55 }
 0xbfd   :  { %8505 = vpow2.f32 %v7247_v0 }
 0xbfe   :  { %8507 = vtanh.f32 %v2792_v3 }
 0xc03   :  { %v8498_v5 = vpop.eup %8497 }
 0xc04   :  { %v2815_v6 = vadd.f32 1.0, %v8498_v5 }
 0xc05   :  { %v8500_v9 = vpop.eup %8499 }
 0xc06   :  { %8509 = vrcp.f32 %v2815_v6  ;;  %v2816_v43 = vadd.f32 1.0, %v8500_v9 }
 0xc07   :  { %v8502_v10 = vpop.eup %8501 }
 0xc08   :  { %8511 = vrcp.f32 %v2816_v43  ;;  %v2818_v12 = vadd.f32 1.0, %v8502_v10 }
 0xc09   :  { %v8504_v44 = vpop.eup %8503  ;;  %8513 = vpow2.f32 %v7250_v42 }
 0xc0a   :  { %8515 = vrcp.f32 %v2818_v12  ;;  %v2819_v45 = vadd.f32 1.0, %v8504_v44  ;;  %v8506_v13 = vpop.eup %8505 }
 0xc0b   :  { %8517 = vtanh.f32 %v2796_v11  ;;  %v8508_v14 = vpop.eup %8507  ;;  %v2817_v52 = vadd.f32 1.0, %v8506_v13 }
 0xc0c   :  { %8519 = vrcp.f32 %v2819_v45 }
 0xc0d   :  { %8521 = vrcp.f32 %v2817_v52 }
 0xc13   :  { %v8510_v48 = vpop.eup %8509 }
 0xc14   :  { %v2839_v19 = vmul.f32 %v8510_v48, %v8508_v14 }
 0xc15   :  { %v8512_v16 = vpop.eup %8511 }
 0xc16   :  { %v8514_v17 = vpop.eup %8513  ;;  %v2837_v18 = vmul.f32 %v8512_v16, %v2835_v15 }
 0xc17   :  { %v8516_v56 = vpop.eup %8515  ;;  %v2820_v23 = vadd.f32 1.0, %v8514_v17 }
 0xc18   :  { %v8518_v21 = vpop.eup %8517  ;;  %v2841_v60 = vadd.f32 %v2839_v19, %v2837_v18 }
 0xc19   :  { %v8520_v22 = vpop.eup %8519  ;;  %v2840_v24 = vmul.f32 %v8518_v21, %v8516_v56 }
 0xc1a   :  { %8523 = vtanh.f32 %v2841_v60  ;;  %2847 = vst [vmem:[#allocation3 + $0x8] sm:$0xff] %v2841_v60  ;;  %v2838_v49 = vmul.f32 %v8520_v22, %v2836_v20  ;;  %v8522_v53 = vpop.eup %8521 }
 0xc1b   :  { %8525 = vrcp.f32 %v2820_v23 }
 0xc1c   :  { %v2842_v57 = vadd.f32 %v2840_v24, %v2838_v49 }
 0xc1e   :  { %8527 = vtanh.f32 %v2842_v57  ;;  %2848 = vst [vmem:[#allocation3] sm:$0xff] %v2842_v57 }
 0xc27   :  { %v8524_v25 = vpop.eup %8523 }
 0xc28   :  { %v2845_v26 = vmul.f32 %v8524_v25, %v8522_v53  ;;  %v8526_v28 = vpop.eup %8525 }
 0xc2a   :  { %2849 = vst [vmem:[#allocation2] sm:$0xff] %v2845_v26 }
 0xc2b   :  { %v8528_v29 = vpop.eup %8527 }
 0xc2c   :  { %v2846_v30 = vmul.f32 %v8528_v29, %v8526_v28 }
 0xc2e   :  { %2850 = vst [vmem:[#allocation2 + $0x8] sm:$0xff] %v2846_v30  ;;  %v2851_v31 = vpack.c.bf16 %v2846_v30, %v2845_v26 }
 0xc30   :  { %7891 = vmatmul.mubr.bf16.vlgmr.msra.gmra.mxu0 %v2851_v31 }
 0xcf0   :  { %v2957_v61 = vpop.f32.mrf.mxu0 }
 0xcf1   :  { %v2958_v33 = vadd.f32 %v7251_v32, %v2957_v61 }
 0xcf2   :  { %v7892_v35 = vpop.f32.mrf.mxu0 }
 0xcf3   :  { %7260 = vst [vmem:[%s11326_s10 + $0x20] sm:$0xff] %v2958_v33  ;;  %2971 = sbr.rel (%p7263_p11) target bundleno = 3951 (0xf6f), region = 73 }
 0xcf4   :  { %v2960_v36 = vpop.f32.mrf.mxu0 }
 0xcf5   :  { %v2961_v39 = vadd.f32 %v7251_v32, %v2960_v36 }
 0xcf6   :  { %v7893_v46 = vpop.f32.mrf.mxu0 }
 0xcf7   :  { %7261 = vst [vmem:[%s11326_s10 + $0x28] sm:$0xff] %v2961_v39 }
 0xcf8   :  { %2974 = vmax.xlane.f32.xlu0 %v2958_v33  ;;  %v10186_v47 = vand.u32 127, %v104_v34  ;;  %v8529_v0 = vld [vmem:[%s11321_s5 + $0x38] sm:$0xff]   ;;  %v9139_v1 = vmov 0.0   ;;  %v8530_v3 = vld [vmem:[%s11321_s5 + $0x30] sm:$0xff]   ;;  %v8531_v4 = vld [vmem:[%s11321_s5 + $0x28] sm:$0xff]   ;;  %vm9140_vm6 = vmmov 0  }
 0xcf9   :  { %7894 = vmatprep.subr.bf16.mxu0 %v9139_v1  ;;  %v8532_v5 = vld [vmem:[%s11321_s5 + $0x20] sm:$0xff]   ;;  %v8533_v6 = vld [vmem:[%s11321_s5 + $0x18] sm:$0xff]   ;;  %v8534_v7 = vld [vmem:[%s11321_s5 + $0x10] sm:$0xff]   ;;  %7910 = vmatprep.mubr.msk.bf16.mxu0 %vm9140_vm6, %v9139_v1  ;;  %v9141_v21 = vmov 1.0|1.0  }
 0xcfa   :  { %7895 = vmatpush3.bf16.msra.mxu0 %v8529_v0  ;;  %v8535_v45 = vld [vmem:[%s11321_s5 + $0x8] sm:$0xff]   ;;  %v8536_v13 = vld [vmem:[%s11321_s5] sm:$0xff]  }
 0xcfb   :  { %7896 = vmatprep.subr.bf16.mxu0 %v9139_v1 }
 0xcfc   :  { %2976 = vmax.xlane.f32.xlu0 %v2961_v39 }
 0xcfe   :  { %7897 = vmatpush3.bf16.msra.mxu0 %v8530_v3 }
 0xcff   :  { %7898 = vmatprep.subr.bf16.mxu0 %v9139_v1 }
 0xd02   :  { %7899 = vmatpush3.bf16.msra.mxu0 %v8531_v4 }
 0xd03   :  { %7900 = vmatprep.subr.bf16.mxu0 %v9139_v1 }
 0xd06   :  { %7901 = vmatpush3.bf16.msra.mxu0 %v8532_v5 }
 0xd07   :  { %7902 = vmatprep.subr.bf16.mxu0 %v9139_v1 }
 0xd0a   :  { %7903 = vmatpush3.bf16.msra.mxu0 %v8533_v6 }
 0xd0b   :  { %7904 = vmatprep.subr.bf16.mxu0 %v9139_v1 }
 0xd0e   :  { %7905 = vmatpush3.bf16.msra.mxu0 %v8534_v7 }
 0xd0f   :  { %7906 = vmatprep.subr.bf16.mxu0 %v9139_v1 }
 0xd12   :  { %7907 = vmatpush3.bf16.msra.mxu0 %v8535_v45 }
 0xd13   :  { %7908 = vmatprep.subr.bf16.mxu0 %v9139_v1 }
 0xd16   :  { %7909 = vmatpush3.bf16.msra.mxu0 %v8536_v13 }
 0xd81   :  { %v2975_v50 = vpop.xlane.xlu0 %2974 }
 0xd82   :  { %vm2978_vm2 = vcmp.eq.f32.partialorder %v2958_v33, %v2975_v50 }
 0xd83   :  { %v2980_v51 = vsel %vm2978_vm2, %v10186_v47, 128 }
 0xd84   :  { %v2983_v54 = vshra.s32 %v2980_v51, 16  ;;  %v2982_v8 = vand.u32 65535, %v2980_v51 }
 0xd85   :  { %v2977_v55 = vpop.xlane.xlu0 %2976 }
 0xd86   :  { %vm2979_vm3 = vcmp.eq.f32.partialorder %v2961_v39, %v2977_v55  ;;  %v2985_v58 = vcvt.s32.f32 %v2983_v54  ;;  %v2984_v43 = vcvt.s32.f32 %v2982_v8 }
 0xd87   :  { %v2981_v59 = vsel %vm2979_vm3, %v10186_v47, 128 }
 0xd88   :  { %2986 = vmin.xlane.f32.xlu1 %v2985_v58  ;;  %v2997_v62 = vshra.s32 %v2981_v59, 16  ;;  %v2996_v9 = vand.u32 65535, %v2981_v59 }
 0xd8a   :  { %v2999_v63 = vcvt.s32.f32 %v2997_v62  ;;  %v2998_v12 = vcvt.s32.f32 %v2996_v9 }
 0xd8c   :  { %3000 = vmin.xlane.f32.xlu1 %v2999_v63 }
 0xe11   :  { %v2987_v42 = vpop.xlane.xlu1 %2986 }
 0xe12   :  { %vm2988_vm4 = vcmp.eq.f32.partialorder %v2985_v58, %v2987_v42  ;;  %v2993_v14 = vcvt.f32.s32 %v2987_v42 }
 0xe13   :  { %v2989_v10 = vsel %vm2988_vm4, %v2984_v43, inf }
 0xe14   :  { %2990 = vmin.xlane.f32.xlu0 %v2989_v10  ;;  %v2994_v52 = vshll.u32 %v2993_v14, 16 }
 0xe15   :  { %v3001_v11 = vpop.xlane.xlu1 %3000 }
 0xe16   :  { %vm3002_vm5 = vcmp.eq.f32.partialorder %v2999_v63, %v3001_v11  ;;  %v3007_v15 = vcvt.f32.s32 %v3001_v11 }
 0xe17   :  { %v3003_v44 = vsel %vm3002_vm5, %v2998_v12, inf }
 0xe18   :  { %3004 = vmin.xlane.f32.xlu1 %v3003_v44  ;;  %v3008_v18 = vshll.u32 %v3007_v15, 16 }
 0xe9d   :  { %v2991_v48 = vpop.xlane.xlu0 %2990 }
 0xe9e   :  { %v2992_v16 = vcvt.f32.s32 %v2991_v48 }
 0xea0   :  { %v2995_v19 = vadd.s32 %v2994_v52, %v2992_v16 }
 0xea1   :  { %v3005_v17 = vpop.xlane.xlu1 %3004 }
 0xea2   :  { %v3006_v56 = vcvt.f32.s32 %v3005_v17  ;;  %vm3010_vm7 = vcmp.eq.s32.totalorder %v10186_v47, %v2995_v19 }
 0xea4   :  { %v3009_v20 = vadd.s32 %v3008_v18, %v3006_v56 }
 0xea6   :  { %vm3011_vm8 = vcmp.eq.s32.totalorder %v10186_v47, %v3009_v20 }
 0xea7   :  { %vm7274_vm9 = vmpackc.low %vm3011_vm8, %vm3010_vm7 }
 0xea8   :  { %7911 = vmatmul.mubr.msk.bf16.vlgmr.msra.gmra.mxu0 %vm7274_vm9, %v9141_v21 }
 0xf68   :  { %v3115_v60 = vpop.f32.mrf.mxu0 }
 0xf69   :  { %3122 = vst [vmem:[#allocation4 + $0x8] sm:$0xff] %v3115_v60 }
 0xf6a   :  { %v7912_v22 = vpop.f32.mrf.mxu0 }
 0xf6c   :  { %v3118_v23 = vpop.f32.mrf.mxu0 }
 0xf6d   :  { %3123 = vst [vmem:[#allocation4] sm:$0xff] %v3118_v23 }
 0xf6e   :  { %v7913_v49 = vpop.f32.mrf.mxu0 }
 0xf6f PF:  { %s7276_s1 = sld [smem:[#allocation7 + $0x3]] }
 0xf75   :  { %p7277_p12 = scmp.eq.s32.totalorder %s7276_s1, 0 }
 0xf77   :  { %3128 = sbr.rel (%p7277_p12) target bundleno = 3969 (0xf81), region = 77 }
 0xf7c   :  { %v3132_v24 = vld [vmem:[#allocation6 + $0x188] sm:$0xff]  ;;  %v3133_v57 = vld [vmem:[#allocation6 + $0xb8] sm:$0xff]  ;;  %v3134_v53 = vld [vmem:[#allocation6 + $0x80] sm:$0xff] }
 0xf7d   :  { %3140 = vst [vmem:[#allocation5] sm:$0xff] %v3132_v24  ;;  %3141 = vst [vmem:[#allocation5 + $0x38] sm:$0xff] %v3133_v57  ;;  %v3135_v25 = vld [vmem:[#allocation6 + $0x138] sm:$0xff]  ;;  %v3136_v26 = vld [vmem:[#allocation6 + $0x1b0] sm:$0xff] }
 0xf7e   :  { %3142 = vst [vmem:[#allocation5 + $0x8] sm:$0xff] %v3134_v53  ;;  %v3137_v28 = vld [vmem:[#allocation6 + $0x8] sm:$0xff]  ;;  %3143 = vst [vmem:[#allocation5 + $0x18] sm:$0xff] %v3135_v25  ;;  %v3138_v29 = vld [vmem:[#allocation6 + $0xe0] sm:$0xff] }
 0xf7f   :  { %3144 = vst [vmem:[#allocation5 + $0x20] sm:$0xff] %v3136_v26  ;;  %3145 = vst [vmem:[#allocation5 + $0x10] sm:$0xff] %v3137_v28  ;;  %v3139_v30 = vld [vmem:[#allocation6 + $0x158] sm:$0xff] }
 0xf80   :  { %3146 = vst [vmem:[#allocation5 + $0x30] sm:$0xff] %v3138_v29  ;;  %3147 = vst [vmem:[#allocation5 + $0x28] sm:$0xff] %v3139_v30 }
 0xf81 PF:  { %p7278_p13 = scmp.ne.s32.totalorder %s7276_s1, 0 }
 0xf83   :  { %3151 = sbr.rel (%p7278_p13) target bundleno = 4212 (0x1074), region = 81 }
 0xf88   :  { %v8537_v31 = vld [vmem:[%s11318_s2 + $0xe4] ss:$16 sps:$4 sm:$0xff]   ;;  %v8539_v32 = vld [vmem:[%s11318_s2 + $0xec] ss:$16 sps:$4 sm:$0xff]   ;;  %v9142_v61 = vmov 0  }
 0xf89   :  { %3401 = vmatprep.mubr.bf16.mxu0 %v9142_v61  ;;  %3444 = vmatprep.mubr.bf16.mxu1 %v9142_v61  ;;  %v8541_v33 = vld [vmem:[%s11318_s2 + $0xe0] ss:$16 sps:$4 sm:$0xff]   ;;  %v8542_v35 = vld [vmem:[%s11318_s2 + $0xe8] ss:$16 sps:$4 sm:$0xff]   ;;  %v8543_v36 = vld [vmem:[%s11318_s2 + $0xc4] ss:$16 sps:$4 sm:$0xff]  }
 0xf8a   :  { %3369 = vmatprep.subr.bf16.mxu0 %v8537_v31  ;;  %3412 = vmatprep.subr.bf16.mxu1 %v8539_v32  ;;  %v8545_v39 = vld [vmem:[%s11318_s2 + $0xcc] ss:$16 sps:$4 sm:$0xff]   ;;  %v8547_v46 = vld [vmem:[%s11318_s2 + $0xc0] ss:$16 sps:$4 sm:$0xff]   ;;  %v8548_v47 = vld [vmem:[%s11318_s2 + $0xc8] ss:$16 sps:$4 sm:$0xff]  }
 0xf8b   :  { %3370 = vmatpush1.bf16.msra.mxu0 %v8541_v33  ;;  %3413 = vmatpush1.bf16.msra.mxu1 %v8542_v35  ;;  %v8549_v50 = vld [vmem:[%s11318_s2 + $0xa4] ss:$16 sps:$4 sm:$0xff]   ;;  %v8551_v51 = vld [vmem:[%s11318_s2 + $0xac] ss:$16 sps:$4 sm:$0xff]   ;;  %v8553_v54 = vld [vmem:[%s11318_s2 + $0xa0] ss:$16 sps:$4 sm:$0xff]  }
 0xf8c   :  { %3371 = vmatprep.subr.bf16.mxu0 %v8543_v36  ;;  %3414 = vmatprep.subr.bf16.mxu1 %v8545_v39  ;;  %v8554_v55 = vld [vmem:[%s11318_s2 + $0xa8] ss:$16 sps:$4 sm:$0xff]   ;;  %v8555_v58 = vld [vmem:[%s11318_s2 + $0x84] ss:$16 sps:$4 sm:$0xff]   ;;  %v8557_v59 = vld [vmem:[%s11318_s2 + $0x8c] ss:$16 sps:$4 sm:$0xff]  }
 0xf8d   :  { %v8559_v62 = vld [vmem:[%s11318_s2 + $0x80] ss:$16 sps:$4 sm:$0xff]   ;;  %v8560_v63 = vld [vmem:[%s11318_s2 + $0x88] ss:$16 sps:$4 sm:$0xff]   ;;  %v8561_v0 = vld [vmem:[%s11318_s2 + $0x64] ss:$16 sps:$4 sm:$0xff]  }
 0xf8e   :  { %v8563_v1 = vld [vmem:[%s11318_s2 + $0x6c] ss:$16 sps:$4 sm:$0xff]   ;;  %v8565_v3 = vld [vmem:[%s11318_s2 + $0x60] ss:$16 sps:$4 sm:$0xff]   ;;  %v8566_v4 = vld [vmem:[%s11318_s2 + $0x68] ss:$16 sps:$4 sm:$0xff]  }
 0xf8f   :  { %3372 = vmatpush1.bf16.msra.mxu0 %v8547_v46  ;;  %3415 = vmatpush1.bf16.msra.mxu1 %v8548_v47  ;;  %v8567_v5 = vld [vmem:[%s11318_s2 + $0x44] ss:$16 sps:$4 sm:$0xff]   ;;  %v8569_v6 = vld [vmem:[%s11318_s2 + $0x4c] ss:$16 sps:$4 sm:$0xff]   ;;  %v8571_v7 = vld [vmem:[%s11318_s2 + $0x40] ss:$16 sps:$4 sm:$0xff]  }
 0xf90   :  { %3373 = vmatprep.subr.bf16.mxu0 %v8549_v50  ;;  %3416 = vmatprep.subr.bf16.mxu1 %v8551_v51  ;;  %v8572_v8 = vld [vmem:[%s11318_s2 + $0x48] ss:$16 sps:$4 sm:$0xff]   ;;  %v8573_v9 = vld [vmem:[%s11318_s2 + $0x24] ss:$16 sps:$4 sm:$0xff]   ;;  %v8575_v42 = vld [vmem:[%s11318_s2 + $0x2c] ss:$16 sps:$4 sm:$0xff]  }
 0xf91   :  { %v8577_v43 = vld [vmem:[%s11318_s2 + $0x20] ss:$16 sps:$4 sm:$0xff]   ;;  %v8578_v10 = vld [vmem:[%s11318_s2 + $0x28] ss:$16 sps:$4 sm:$0xff]   ;;  %v8579_v11 = vld [vmem:[%s11318_s2 + $0x4] ss:$16 sps:$4 sm:$0xff]  }
 0xf92   :  { %v8581_v12 = vld [vmem:[%s11318_s2 + $0xc] ss:$16 sps:$4 sm:$0xff]   ;;  %v8583_v44 = vld [vmem:[%s11318_s2] ss:$16 sps:$4 sm:$0xff]   ;;  %v8584_v45 = vld [vmem:[%s11318_s2 + $0x8] ss:$16 sps:$4 sm:$0xff]  }
 0xf93   :  { %3374 = vmatpush1.bf16.msra.mxu0 %v8553_v54  ;;  %3417 = vmatpush1.bf16.msra.mxu1 %v8554_v55  ;;  %v3152_v13 = vld [vmem:[#allocation4 + $0x8] sm:$0xff]  ;;  %v3153_v14 = vld [vmem:[#allocation4] sm:$0xff] }
 0xf94   :  { %3375 = vmatprep.subr.bf16.mxu0 %v8555_v58  ;;  %3418 = vmatprep.subr.bf16.mxu1 %v8557_v59  ;;  %v3154_v48 = vpack.c.bf16 %v3153_v14, %v3152_v13  ;;  %v3187_v15 = vld [vmem:[%s11320_s4] sm:$0xf] }
 0xf95   :  { %v3192_v16 = vrot.slane %v3187_v15, %v9509_v37  ;;  %v3200_v52 = vrot.slane %v3187_v15, %v9511_v38  ;;  %v3196_v17 = vrot.slane %v3187_v15, %v9516_v40  ;;  %v3204_v18 = vrot.slane %v3187_v15, %v9518_v41 }
 0xf97   :  { %3376 = vmatpush1.bf16.msra.mxu0 %v8559_v62  ;;  %3419 = vmatpush1.bf16.msra.mxu1 %v8560_v63 }
 0xf98   :  { %3377 = vmatprep.subr.bf16.mxu0 %v8561_v0  ;;  %3420 = vmatprep.subr.bf16.mxu1 %v8563_v1 }
 0xf9b   :  { %3378 = vmatpush1.bf16.msra.mxu0 %v8565_v3  ;;  %3421 = vmatpush1.bf16.msra.mxu1 %v8566_v4 }
 0xf9c   :  { %3379 = vmatprep.subr.bf16.mxu0 %v8567_v5  ;;  %3422 = vmatprep.subr.bf16.mxu1 %v8569_v6 }
 0xf9f   :  { %3380 = vmatpush1.bf16.msra.mxu0 %v8571_v7  ;;  %3423 = vmatpush1.bf16.msra.mxu1 %v8572_v8 }
 0xfa0   :  { %3381 = vmatprep.subr.bf16.mxu0 %v8573_v9  ;;  %3424 = vmatprep.subr.bf16.mxu1 %v8575_v42 }
 0xfa3   :  { %3382 = vmatpush1.bf16.msra.mxu0 %v8577_v43  ;;  %3425 = vmatpush1.bf16.msra.mxu1 %v8578_v10 }
 0xfa4   :  { %3383 = vmatprep.subr.bf16.mxu0 %v8579_v11  ;;  %3426 = vmatprep.subr.bf16.mxu1 %v8581_v12 }
 0xfa7   :  { %3384 = vmatpush1.bf16.msra.mxu0 %v8583_v44  ;;  %3427 = vmatpush1.bf16.msra.mxu1 %v8584_v45 }
 0xfaa   :  { %3402 = vmatmul.mubr.bf16.vlgmr.msra.gmra.mxu0 %v3154_v48  ;;  %3445 = vmatmul.mubr.bf16.vlgmr.msra.gmra.mxu1 %v3154_v48 }
0x106a   :  { %v3403_v19 = vpop.f32.mrf.mxu0  ;;  %v3446_v56 = vpop.f32.mrf.mxu1 }
0x106b   :  { %v3404_v20 = vadd.f32 %v3403_v19, %v3192_v16  ;;  %v3447_v21 = vadd.f32 %v3446_v56, %v3200_v52 }
0x106c   :  { %v3405_v60 = vpop.f32.mrf.mxu0  ;;  %v3448_v22 = vpop.f32.mrf.mxu1 }
0x106d   :  { %3455 = vst [vmem:[#allocation5] sm:$0xff] %v3404_v20  ;;  %3457 = vst [vmem:[#allocation5 + $0x8] sm:$0xff] %v3447_v21  ;;  %v3406_v23 = vadd.f32 %v3405_v60, %v3196_v17  ;;  %v3449_v49 = vadd.f32 %v3448_v22, %v3204_v18 }
0x106e   :  { %v3407_v24 = vpop.f32.mrf.mxu0  ;;  %v3450_v57 = vpop.f32.mrf.mxu1 }
0x106f   :  { %3456 = vst [vmem:[#allocation5 + $0x38] sm:$0xff] %v3406_v23  ;;  %3458 = vst [vmem:[#allocation5 + $0x18] sm:$0xff] %v3449_v49  ;;  %v3408_v53 = vadd.f32 %v3407_v24, %v3192_v16  ;;  %v3451_v25 = vadd.f32 %v3450_v57, %v3200_v52 }
0x1070   :  { %v3409_v26 = vpop.f32.mrf.mxu0  ;;  %v3452_v28 = vpop.f32.mrf.mxu1 }
0x1071   :  { %3459 = vst [vmem:[#allocation5 + $0x20] sm:$0xff] %v3408_v53  ;;  %3461 = vst [vmem:[#allocation5 + $0x30] sm:$0xff] %v3451_v25  ;;  %v3410_v29 = vadd.f32 %v3409_v26, %v3196_v17  ;;  %v3453_v30 = vadd.f32 %v3452_v28, %v3204_v18 }
0x1073   :  { %3460 = vst [vmem:[#allocation5 + $0x10] sm:$0xff] %v3410_v29  ;;  %3462 = vst [vmem:[#allocation5 + $0x28] sm:$0xff] %v3453_v30 }
0x1074 PF:  { %v8585_v31 = vld [vmem:[%s11319_s3 + $0xe4] ss:$16 sps:$4 sm:$0xff]   ;;  %3698 = vmatprep.mubr.bf16.mxu0 %v9128_v2  ;;  %3741 = vmatprep.mubr.bf16.mxu1 %v9128_v2  ;;  %v8587_v32 = vld [vmem:[%s11319_s3 + $0xe0] ss:$16 sps:$4 sm:$0xff]   ;;  %v8596_v36 = vld [vmem:[%s11319_s3 + $0xec] ss:$16 sps:$4 sm:$0xff]  }
0x1075   :  { %3666 = vmatprep.subr.bf16.mxu0 %v8585_v31  ;;  %v8588_v61 = vld [vmem:[%s11319_s3 + $0xc4] ss:$16 sps:$4 sm:$0xff]   ;;  %v8590_v33 = vld [vmem:[%s11319_s3 + $0xc0] ss:$16 sps:$4 sm:$0xff]   ;;  %v8599_v39 = vld [vmem:[%s11319_s3 + $0xe8] ss:$16 sps:$4 sm:$0xff]   ;;  %3709 = vmatprep.subr.bf16.mxu1 %v8596_v36 }
0x1076   :  { %3667 = vmatpush1.bf16.msra.mxu0 %v8587_v32  ;;  %v8591_v35 = vld [vmem:[%s11319_s3 + $0xa4] ss:$16 sps:$4 sm:$0xff]   ;;  %v8593_v46 = vld [vmem:[%s11319_s3 + $0xa0] ss:$16 sps:$4 sm:$0xff]   ;;  %3710 = vmatpush1.bf16.msra.mxu1 %v8599_v39  ;;  %v8602_v50 = vld [vmem:[%s11319_s3 + $0xcc] ss:$16 sps:$4 sm:$0xff]  }
0x1077   :  { %3668 = vmatprep.subr.bf16.mxu0 %v8588_v61  ;;  %v8594_v47 = vld [vmem:[%s11319_s3 + $0x84] ss:$16 sps:$4 sm:$0xff]   ;;  %v8605_v51 = vld [vmem:[%s11319_s3 + $0xc8] ss:$16 sps:$4 sm:$0xff]   ;;  %3711 = vmatprep.subr.bf16.mxu1 %v8602_v50  ;;  %v8598_v54 = vld [vmem:[%s11319_s3 + $0x80] ss:$16 sps:$4 sm:$0xff]  }
0x1078   :  { %v8600_v55 = vld [vmem:[%s11319_s3 + $0x64] ss:$16 sps:$4 sm:$0xff]   ;;  %v8608_v58 = vld [vmem:[%s11319_s3 + $0xac] ss:$16 sps:$4 sm:$0xff]   ;;  %v8611_v59 = vld [vmem:[%s11319_s3 + $0xa8] ss:$16 sps:$4 sm:$0xff]  }
0x1079   :  { %v8614_v62 = vld [vmem:[%s11319_s3 + $0x8c] ss:$16 sps:$4 sm:$0xff]   ;;  %v8604_v63 = vld [vmem:[%s11319_s3 + $0x60] ss:$16 sps:$4 sm:$0xff]   ;;  %v8606_v0 = vld [vmem:[%s11319_s3 + $0x44] ss:$16 sps:$4 sm:$0xff]  }
0x107a   :  { %3669 = vmatpush1.bf16.msra.mxu0 %v8590_v33  ;;  %3712 = vmatpush1.bf16.msra.mxu1 %v8605_v51  ;;  %v8617_v1 = vld [vmem:[%s11319_s3 + $0x88] ss:$16 sps:$4 sm:$0xff]   ;;  %v8620_v3 = vld [vmem:[%s11319_s3 + $0x6c] ss:$16 sps:$4 sm:$0xff]   ;;  %v8610_v4 = vld [vmem:[%s11319_s3 + $0x40] ss:$16 sps:$4 sm:$0xff]  }
0x107b   :  { %3670 = vmatprep.subr.bf16.mxu0 %v8591_v35  ;;  %3713 = vmatprep.subr.bf16.mxu1 %v8608_v58  ;;  %v8612_v5 = vld [vmem:[%s11319_s3 + $0x24] ss:$16 sps:$4 sm:$0xff]   ;;  %v8623_v6 = vld [vmem:[%s11319_s3 + $0x68] ss:$16 sps:$4 sm:$0xff]   ;;  %v8616_v7 = vld [vmem:[%s11319_s3 + $0x20] ss:$16 sps:$4 sm:$0xff]  }
0x107c   :  { %v8624_v8 = vld [vmem:[%s11319_s3 + $0x4c] ss:$16 sps:$4 sm:$0xff]   ;;  %v8618_v9 = vld [vmem:[%s11319_s3 + $0x4] ss:$16 sps:$4 sm:$0xff]   ;;  %v8626_v42 = vld [vmem:[%s11319_s3 + $0x48] ss:$16 sps:$4 sm:$0xff]  }
0x107d   :  { %v8627_v43 = vld [vmem:[%s11319_s3 + $0x2c] ss:$16 sps:$4 sm:$0xff]   ;;  %v8622_v10 = vld [vmem:[%s11319_s3] ss:$16 sps:$4 sm:$0xff]   ;;  %v8629_v44 = vld [vmem:[%s11319_s3 + $0x28] ss:$16 sps:$4 sm:$0xff]  }
0x107e   :  { %3671 = vmatpush1.bf16.msra.mxu0 %v8593_v46  ;;  %3714 = vmatpush1.bf16.msra.mxu1 %v8611_v59  ;;  %v3471_v11 = vld [vmem:[#allocation2] sm:$0xff]  ;;  %v3472_v12 = vld [vmem:[#allocation2 + $0x8] sm:$0xff]  ;;  %v8633_v48 = vld [vmem:[%s11322_s6 + $0x38] sm:$0xff]   ;;  %s7360_s8 = sld [smem:[#allocation7 + $0x4]] }
0x107f   :  { %3672 = vmatprep.subr.bf16.mxu0 %v8594_v47  ;;  %3715 = vmatprep.subr.bf16.mxu1 %v8614_v62  ;;  %v8630_v45 = vld [vmem:[%s11319_s3 + $0xc] ss:$16 sps:$4 sm:$0xff]   ;;  %v3473_v13 = vpack.c.bf16 %v3472_v12, %v3471_v11  ;;  %v8632_v14 = vld [vmem:[%s11319_s3 + $0x8] ss:$16 sps:$4 sm:$0xff]   ;;  %v8634_v15 = vld [vmem:[%s11322_s6 + $0x30] sm:$0xff]  }
0x1080   :  { %v8635_v16 = vld [vmem:[%s11322_s6 + $0x28] sm:$0xff]   ;;  %v8636_v52 = vld [vmem:[%s11322_s6 + $0x20] sm:$0xff]   ;;  %v8637_v17 = vld [vmem:[%s11322_s6 + $0x18] sm:$0xff]  }
0x1081   :  { %v8638_v18 = vld [vmem:[%s11322_s6 + $0x10] sm:$0xff]   ;;  %v8639_v19 = vld [vmem:[%s11322_s6 + $0x8] sm:$0xff]   ;;  %v8640_v56 = vld [vmem:[%s11322_s6] sm:$0xff]  }
0x1082   :  { %3673 = vmatpush1.bf16.msra.mxu0 %v8598_v54  ;;  %3716 = vmatpush1.bf16.msra.mxu1 %v8617_v1  ;;  %v3463_v20 = vld [vmem:[#allocation5] sm:$0xff]  ;;  %v3464_v60 = vld [vmem:[#allocation5 + $0x38] sm:$0xff]  ;;  %v3468_v25 = vld [vmem:[#allocation5 + $0x10] sm:$0xff] }
0x1083   :  { %3674 = vmatprep.subr.bf16.mxu0 %v8600_v55  ;;  %3717 = vmatprep.subr.bf16.mxu1 %v8620_v3  ;;  %v3467_v49 = vld [vmem:[#allocation5 + $0x20] sm:$0xff]  ;;  %v3465_v61 = vld [vmem:[#allocation5 + $0x8] sm:$0xff]  ;;  %v3466_v39 = vld [vmem:[#allocation5 + $0x18] sm:$0xff] }
0x1084   :  { %v3469_v46 = vld [vmem:[#allocation5 + $0x30] sm:$0xff]  ;;  %v3470_v59 = vld [vmem:[#allocation5 + $0x28] sm:$0xff]  ;;  %p7361_p0 = scmp.ne.s32.totalorder %s7360_s8, 0 }
0x1086   :  { %3675 = vmatpush1.bf16.msra.mxu0 %v8604_v63  ;;  %3718 = vmatpush1.bf16.msra.mxu1 %v8623_v6 }
0x1087   :  { %3676 = vmatprep.subr.bf16.mxu0 %v8606_v0  ;;  %3719 = vmatprep.subr.bf16.mxu1 %v8624_v8 }
0x108a   :  { %3677 = vmatpush1.bf16.msra.mxu0 %v8610_v4  ;;  %3720 = vmatpush1.bf16.msra.mxu1 %v8626_v42 }
0x108b   :  { %3678 = vmatprep.subr.bf16.mxu0 %v8612_v5  ;;  %3721 = vmatprep.subr.bf16.mxu1 %v8627_v43  ;;  %v3798_v43 = vld [vmem:[#allocation3 + $0x8] sm:$0xff] }
0x108e   :  { %3679 = vmatpush1.bf16.msra.mxu0 %v8616_v7  ;;  %3722 = vmatpush1.bf16.msra.mxu1 %v8629_v44 }
0x108f   :  { %3680 = vmatprep.subr.bf16.mxu0 %v8618_v9  ;;  %3723 = vmatprep.subr.bf16.mxu1 %v8630_v45 }
0x1092   :  { %3681 = vmatpush1.bf16.msra.mxu0 %v8622_v10  ;;  %3724 = vmatpush1.bf16.msra.mxu1 %v8632_v14  ;;  %v3799_v14 = vld [vmem:[#allocation3] sm:$0xff] }
0x1093   :  { %7914 = vmatprep.subr.bf16.mxu0 %v9129_v27 }
0x1095   :  { %3699 = vmatmul.mubr.bf16.vlgmr.msra.gmra.mxu0 %v3473_v13  ;;  %3742 = vmatmul.mubr.bf16.vlgmr.msra.gmra.mxu1 %v3473_v13 }
0x1096   :  { %7930 = vmatprep.mubr.msk.bf16.mxu0 %vm9130_vm0, %v9129_v27  ;;  %7915 = vmatpush3.bf16.msra.mxu0 %v8633_v48 }
0x1097   :  { %7916 = vmatprep.subr.bf16.mxu0 %v9129_v27 }
0x109a   :  { %7917 = vmatpush3.bf16.msra.mxu0 %v8634_v15 }
0x109b   :  { %7918 = vmatprep.subr.bf16.mxu0 %v9129_v27 }
0x109e   :  { %7919 = vmatpush3.bf16.msra.mxu0 %v8635_v16 }
0x109f   :  { %7920 = vmatprep.subr.bf16.mxu0 %v9129_v27 }
0x10a2   :  { %7921 = vmatpush3.bf16.msra.mxu0 %v8636_v52 }
0x10a3   :  { %7922 = vmatprep.subr.bf16.mxu0 %v9129_v27 }
0x10a6   :  { %7923 = vmatpush3.bf16.msra.mxu0 %v8637_v17 }
0x10a7   :  { %7924 = vmatprep.subr.bf16.mxu0 %v9129_v27 }
0x10aa   :  { %7925 = vmatpush3.bf16.msra.mxu0 %v8638_v18 }
0x10ab   :  { %7926 = vmatprep.subr.bf16.mxu0 %v9129_v27 }
0x10ae   :  { %7927 = vmatpush3.bf16.msra.mxu0 %v8639_v19 }
0x10af   :  { %7928 = vmatprep.subr.bf16.mxu0 %v9129_v27 }
0x10b2   :  { %7929 = vmatpush3.bf16.msra.mxu0 %v8640_v56 }
0x1155   :  { %v3700_v21 = vpop.f32.mrf.mxu0  ;;  %v3743_v32 = vpop.f32.mrf.mxu1 }
0x1156   :  { %v3752_v22 = vadd.f32 %v3700_v21, %v3463_v20  ;;  %v3754_v35 = vadd.f32 %v3743_v32, %v3465_v61 }
0x1157   :  { %v3702_v23 = vpop.f32.mrf.mxu0  ;;  %v3745_v36 = vpop.f32.mrf.mxu1 }
0x1158   :  { %v7343_v24 = vmul.f32 -1.442695, %v3752_v22  ;;  %v3753_v57 = vadd.f32 %v3702_v23, %v3464_v60  ;;  %v7345_v47 = vmul.f32 -1.442695, %v3754_v35  ;;  %v3755_v51 = vadd.f32 %v3745_v36, %v3466_v39 }
0x1159   :  { %v3704_v53 = vpop.f32.mrf.mxu0  ;;  %v3747_v50 = vpop.f32.mrf.mxu1 }
0x115a   :  { %8641 = vpow2.f32 %v7343_v24  ;;  %v7344_v26 = vmul.f32 -1.442695, %v3753_v57  ;;  %v3756_v28 = vadd.f32 %v3704_v53, %v3467_v49  ;;  %v3758_v54 = vadd.f32 %v3747_v50, %v3469_v46  ;;  %v7349_v24 = vld [vmem:[%s11323_s7] ss:$0 sm:$0xff] }
0x115b   :  { %v3706_v29 = vpop.f32.mrf.mxu0  ;;  %v3749_v62 = vpop.f32.mrf.mxu1 }
0x115c   :  { %8643 = vpow2.f32 %v7344_v26  ;;  %v7346_v30 = vmul.f32 -1.442695, %v3756_v28  ;;  %v3757_v31 = vadd.f32 %v3706_v29, %v3468_v25  ;;  %v7348_v0 = vmul.f32 -1.442695, %v3758_v54 }
0x115d   :  { %v3759_v4 = vadd.f32 %v3749_v62, %v3470_v59 }
0x115e   :  { %8645 = vpow2.f32 %v7346_v30  ;;  %v7347_v33 = vmul.f32 -1.442695, %v3757_v31 }
0x1160   :  { %8647 = vpow2.f32 %v7347_v33 }
0x1161   :  { %8649 = vpow2.f32 %v7345_v47 }
0x1162   :  { %8651 = vtanh.f32 %v3755_v51 }
0x1167   :  { %v8642_v55 = vpop.eup %8641 }
0x1168   :  { %v3778_v58 = vadd.f32 1.0, %v8642_v55 }
0x1169   :  { %v8644_v63 = vpop.eup %8643 }
0x116a   :  { %8653 = vrcp.f32 %v3778_v58  ;;  %v3779_v1 = vadd.f32 1.0, %v8644_v63 }
0x116b   :  { %v8646_v3 = vpop.eup %8645 }
0x116c   :  { %8655 = vrcp.f32 %v3779_v1  ;;  %v3781_v5 = vadd.f32 1.0, %v8646_v3 }
0x116d   :  { %v8648_v6 = vpop.eup %8647  ;;  %8657 = vpow2.f32 %v7348_v0 }
0x116e   :  { %8659 = vrcp.f32 %v3781_v5  ;;  %v3782_v7 = vadd.f32 1.0, %v8648_v6  ;;  %v8650_v8 = vpop.eup %8649 }
0x116f   :  { %8661 = vtanh.f32 %v3759_v4  ;;  %v8652_v9 = vpop.eup %8651  ;;  %v3780_v11 = vadd.f32 1.0, %v8650_v8 }
0x1170   :  { %8663 = vrcp.f32 %v3782_v7 }
0x1171   :  { %8665 = vrcp.f32 %v3780_v11 }
0x1177   :  { %v8654_v42 = vpop.eup %8653 }
0x1178   :  { %v3802_v45 = vmul.f32 %v8654_v42, %v8652_v9 }
0x1179   :  { %v8656_v10 = vpop.eup %8655 }
0x117a   :  { %v8658_v12 = vpop.eup %8657  ;;  %v3800_v44 = vmul.f32 %v8656_v10, %v3798_v43 }
0x117b   :  { %v8660_v13 = vpop.eup %8659  ;;  %v3783_v52 = vadd.f32 1.0, %v8658_v12 }
0x117c   :  { %v8662_v48 = vpop.eup %8661  ;;  %v3804_v15 = vadd.f32 %v3802_v45, %v3800_v44 }
0x117d   :  { %v8664_v16 = vpop.eup %8663  ;;  %v3803_v18 = vmul.f32 %v8662_v48, %v8660_v13 }
0x117e   :  { %8667 = vtanh.f32 %v3804_v15  ;;  %3810 = vst [vmem:[#allocation3 + $0x8] sm:$0xff] %v3804_v15  ;;  %v3801_v17 = vmul.f32 %v8664_v16, %v3799_v14  ;;  %v8666_v56 = vpop.eup %8665 }
0x117f   :  { %8669 = vrcp.f32 %v3783_v52 }
0x1180   :  { %v3805_v19 = vadd.f32 %v3803_v18, %v3801_v17 }
0x1182   :  { %8671 = vtanh.f32 %v3805_v19  ;;  %3811 = vst [vmem:[#allocation3] sm:$0xff] %v3805_v19 }
0x118b   :  { %v8668_v20 = vpop.eup %8667 }
0x118c   :  { %v3808_v21 = vmul.f32 %v8668_v20, %v8666_v56  ;;  %v8670_v60 = vpop.eup %8669 }
0x118e   :  { %3812 = vst [vmem:[#allocation2] sm:$0xff] %v3808_v21 }
0x118f   :  { %v8672_v22 = vpop.eup %8671 }
0x1190   :  { %v3809_v23 = vmul.f32 %v8672_v22, %v8670_v60 }
0x1192   :  { %3813 = vst [vmem:[#allocation2 + $0x8] sm:$0xff] %v3809_v23  ;;  %v3814_v49 = vpack.c.bf16 %v3809_v23, %v3808_v21 }
0x1194   :  { %7931 = vmatmul.mubr.bf16.vlgmr.msra.gmra.mxu0 %v3814_v49 }
0x1254   :  { %v3920_v57 = vpop.f32.mrf.mxu0 }
0x1255   :  { %v3921_v53 = vadd.f32 %v7349_v24, %v3920_v57 }
0x1256   :  { %v7932_v25 = vpop.f32.mrf.mxu0 }
0x1257   :  { %7358 = vst [vmem:[%s11326_s10 + $0x30] sm:$0xff] %v3921_v53  ;;  %3934 = sbr.rel (%p7361_p0) target bundleno = 5331 (0x14d3), region = 85 }
0x1258   :  { %v3923_v26 = vpop.f32.mrf.mxu0 }
0x1259   :  { %v3924_v28 = vadd.f32 %v7349_v24, %v3923_v26 }
0x125a   :  { %v7933_v29 = vpop.f32.mrf.mxu0 }
0x125b   :  { %7359 = vst [vmem:[%s11326_s10 + $0x38] sm:$0xff] %v3924_v28 }
0x125c   :  { %3937 = vmax.xlane.f32.xlu0 %v3921_v53  ;;  %v10461_v30 = vand.u32 127, %v104_v34  ;;  %v8673_v47 = vld [vmem:[%s11321_s5 + $0x38] sm:$0xff]   ;;  %v9143_v50 = vmov 0.0   ;;  %v8674_v51 = vld [vmem:[%s11321_s5 + $0x30] sm:$0xff]   ;;  %v8675_v54 = vld [vmem:[%s11321_s5 + $0x28] sm:$0xff]   ;;  %vm9144_vm14 = vmmov 0  }
0x125d   :  { %7934 = vmatprep.subr.bf16.mxu0 %v9143_v50  ;;  %v8676_v55 = vld [vmem:[%s11321_s5 + $0x20] sm:$0xff]   ;;  %v8677_v58 = vld [vmem:[%s11321_s5 + $0x18] sm:$0xff]   ;;  %v8678_v59 = vld [vmem:[%s11321_s5 + $0x10] sm:$0xff]   ;;  %7950 = vmatprep.mubr.msk.bf16.mxu0 %vm9144_vm14, %v9143_v50  ;;  %v9145_v48 = vmov 1.0|1.0  }
0x125e   :  { %7935 = vmatpush3.bf16.msra.mxu0 %v8673_v47  ;;  %v8679_v7 = vld [vmem:[%s11321_s5 + $0x8] sm:$0xff]   ;;  %v8680_v8 = vld [vmem:[%s11321_s5] sm:$0xff]  }
0x125f   :  { %7936 = vmatprep.subr.bf16.mxu0 %v9143_v50 }
0x1260   :  { %3939 = vmax.xlane.f32.xlu0 %v3924_v28 }
0x1262   :  { %7937 = vmatpush3.bf16.msra.mxu0 %v8674_v51 }
0x1263   :  { %7938 = vmatprep.subr.bf16.mxu0 %v9143_v50 }
0x1266   :  { %7939 = vmatpush3.bf16.msra.mxu0 %v8675_v54 }
0x1267   :  { %7940 = vmatprep.subr.bf16.mxu0 %v9143_v50 }
0x126a   :  { %7941 = vmatpush3.bf16.msra.mxu0 %v8676_v55 }
0x126b   :  { %7942 = vmatprep.subr.bf16.mxu0 %v9143_v50 }
0x126e   :  { %7943 = vmatpush3.bf16.msra.mxu0 %v8677_v58 }
0x126f   :  { %7944 = vmatprep.subr.bf16.mxu0 %v9143_v50 }
0x1272   :  { %7945 = vmatpush3.bf16.msra.mxu0 %v8678_v59 }
0x1273   :  { %7946 = vmatprep.subr.bf16.mxu0 %v9143_v50 }
0x1276   :  { %7947 = vmatpush3.bf16.msra.mxu0 %v8679_v7 }
0x1277   :  { %7948 = vmatprep.subr.bf16.mxu0 %v9143_v50 }
0x127a   :  { %7949 = vmatpush3.bf16.msra.mxu0 %v8680_v8 }
0x12e5   :  { %v3938_v31 = vpop.xlane.xlu0 %3937 }
0x12e6   :  { %vm3941_vm10 = vcmp.eq.f32.partialorder %v3921_v53, %v3938_v31 }
0x12e7   :  { %v3943_v32 = vsel %vm3941_vm10, %v10461_v30, 128 }
0x12e8   :  { %v3946_v61 = vshra.s32 %v3943_v32, 16  ;;  %v3945_v62 = vand.u32 65535, %v3943_v32 }
0x12e9   :  { %v3940_v33 = vpop.xlane.xlu0 %3939 }
0x12ea   :  { %vm3942_vm11 = vcmp.eq.f32.partialorder %v3924_v28, %v3940_v33  ;;  %v3948_v35 = vcvt.s32.f32 %v3946_v61  ;;  %v3947_v1 = vcvt.s32.f32 %v3945_v62 }
0x12eb   :  { %v3944_v36 = vsel %vm3942_vm11, %v10461_v30, 128 }
0x12ec   :  { %3949 = vmin.xlane.f32.xlu1 %v3948_v35  ;;  %v3960_v39 = vshra.s32 %v3944_v36, 16  ;;  %v3959_v63 = vand.u32 65535, %v3944_v36 }
0x12ee   :  { %v3962_v46 = vcvt.s32.f32 %v3960_v39  ;;  %v3961_v5 = vcvt.s32.f32 %v3959_v63 }
0x12f0   :  { %3963 = vmin.xlane.f32.xlu1 %v3962_v46 }
0x1375   :  { %v3950_v0 = vpop.xlane.xlu1 %3949 }
0x1376   :  { %vm3951_vm12 = vcmp.eq.f32.partialorder %v3948_v35, %v3950_v0  ;;  %v3956_v9 = vcvt.f32.s32 %v3950_v0 }
0x1377   :  { %v3952_v3 = vsel %vm3951_vm12, %v3947_v1, inf }
0x1378   :  { %3953 = vmin.xlane.f32.xlu0 %v3952_v3  ;;  %v3957_v11 = vshll.u32 %v3956_v9, 16 }
0x1379   :  { %v3964_v4 = vpop.xlane.xlu1 %3963 }
0x137a   :  { %vm3965_vm13 = vcmp.eq.f32.partialorder %v3962_v46, %v3964_v4  ;;  %v3970_v43 = vcvt.f32.s32 %v3964_v4 }
0x137b   :  { %v3966_v6 = vsel %vm3965_vm13, %v3961_v5, inf }
0x137c   :  { %3967 = vmin.xlane.f32.xlu1 %v3966_v6  ;;  %v3971_v44 = vshll.u32 %v3970_v43, 16 }
0x1401   :  { %v3954_v42 = vpop.xlane.xlu0 %3953 }
0x1402   :  { %v3955_v10 = vcvt.f32.s32 %v3954_v42 }
0x1404   :  { %v3958_v45 = vadd.s32 %v3957_v11, %v3955_v10 }
0x1405   :  { %v3968_v12 = vpop.xlane.xlu1 %3967 }
0x1406   :  { %v3969_v13 = vcvt.f32.s32 %v3968_v12  ;;  %vm3973_vm15 = vcmp.eq.s32.totalorder %v10461_v30, %v3958_v45 }
0x1408   :  { %v3972_v14 = vadd.s32 %v3971_v44, %v3969_v13 }
0x140a   :  { %vm3974_vm1 = vcmp.eq.s32.totalorder %v10461_v30, %v3972_v14 }
0x140b   :  { %vm7372_vm2 = vmpackc.low %vm3974_vm1, %vm3973_vm15 }
0x140c   :  { %7951 = vmatmul.mubr.msk.bf16.vlgmr.msra.gmra.mxu0 %vm7372_vm2, %v9145_v48 }
0x14cc   :  { %v4078_v15 = vpop.f32.mrf.mxu0 }
0x14cd   :  { %4085 = vst [vmem:[#allocation4 + $0x8] sm:$0xff] %v4078_v15 }
0x14ce   :  { %v7952_v16 = vpop.f32.mrf.mxu0 }
0x14d0   :  { %v4081_v52 = vpop.f32.mrf.mxu0 }
0x14d1   :  { %4086 = vst [vmem:[#allocation4] sm:$0xff] %v4081_v52 }
0x14d2   :  { %v7953_v17 = vpop.f32.mrf.mxu0 }
0x14d3 PF:  { %s7374_s12 = sld [smem:[#allocation7 + $0x4]] }
0x14d9   :  { %p7375_p1 = scmp.eq.s32.totalorder %s7374_s12, 0 }
0x14db   :  { %4091 = sbr.rel (%p7375_p1) target bundleno = 5349 (0x14e5), region = 89 }
0x14e0   :  { %v4095_v18 = vld [vmem:[#allocation6 + $0x1a8] sm:$0xff]  ;;  %v4096_v19 = vld [vmem:[#allocation6 + $0xa0] sm:$0xff]  ;;  %v4097_v56 = vld [vmem:[#allocation6 + $0x30] sm:$0xff] }
0x14e1   :  { %4103 = vst [vmem:[#allocation5] sm:$0xff] %v4095_v18  ;;  %4104 = vst [vmem:[#allocation5 + $0x38] sm:$0xff] %v4096_v19  ;;  %v4098_v20 = vld [vmem:[#allocation6 + $0x28] sm:$0xff]  ;;  %v4100_v60 = vld [vmem:[#allocation6 + $0x190] sm:$0xff] }
0x14e2   :  { %4105 = vst [vmem:[#allocation5 + $0x8] sm:$0xff] %v4097_v56  ;;  %v4099_v21 = vld [vmem:[#allocation6 + $0x48] sm:$0xff]  ;;  %4106 = vst [vmem:[#allocation5 + $0x18] sm:$0xff] %v4098_v20  ;;  %v4102_v23 = vld [vmem:[#allocation6 + $0x70] sm:$0xff] }
0x14e3   :  { %4107 = vst [vmem:[#allocation5 + $0x20] sm:$0xff] %v4099_v21  ;;  %4108 = vst [vmem:[#allocation5 + $0x10] sm:$0xff] %v4100_v60  ;;  %v4101_v22 = vld [vmem:[#allocation6 + $0x88] sm:$0xff] }
0x14e4   :  { %4109 = vst [vmem:[#allocation5 + $0x30] sm:$0xff] %v4101_v22  ;;  %4110 = vst [vmem:[#allocation5 + $0x28] sm:$0xff] %v4102_v23 }
0x14e5 PF:  { %p7376_p2 = scmp.ne.s32.totalorder %s7374_s12, 0 }
0x14e7   :  { %4114 = sbr.rel (%p7376_p2) target bundleno = 5592 (0x15d8), region = 93 }
0x14ec   :  { %v8681_v49 = vld [vmem:[%s11318_s2 + $0xe4] ss:$16 sps:$4 sm:$0xff]   ;;  %v8683_v24 = vld [vmem:[%s11318_s2 + $0xec] ss:$16 sps:$4 sm:$0xff]   ;;  %v9146_v57 = vmov 0  }
0x14ed   :  { %4364 = vmatprep.mubr.bf16.mxu0 %v9146_v57  ;;  %4407 = vmatprep.mubr.bf16.mxu1 %v9146_v57  ;;  %v8685_v53 = vld [vmem:[%s11318_s2 + $0xe0] ss:$16 sps:$4 sm:$0xff]   ;;  %v8686_v25 = vld [vmem:[%s11318_s2 + $0xe8] ss:$16 sps:$4 sm:$0xff]   ;;  %v8687_v26 = vld [vmem:[%s11318_s2 + $0xc4] ss:$16 sps:$4 sm:$0xff]  }
0x14ee   :  { %4332 = vmatprep.subr.bf16.mxu0 %v8681_v49  ;;  %4375 = vmatprep.subr.bf16.mxu1 %v8683_v24  ;;  %v8689_v28 = vld [vmem:[%s11318_s2 + $0xcc] ss:$16 sps:$4 sm:$0xff]   ;;  %v8691_v29 = vld [vmem:[%s11318_s2 + $0xc0] ss:$16 sps:$4 sm:$0xff]   ;;  %v8692_v30 = vld [vmem:[%s11318_s2 + $0xc8] ss:$16 sps:$4 sm:$0xff]  }
0x14ef   :  { %4333 = vmatpush1.bf16.msra.mxu0 %v8685_v53  ;;  %4376 = vmatpush1.bf16.msra.mxu1 %v8686_v25  ;;  %v8693_v31 = vld [vmem:[%s11318_s2 + $0xa4] ss:$16 sps:$4 sm:$0xff]   ;;  %v8695_v32 = vld [vmem:[%s11318_s2 + $0xac] ss:$16 sps:$4 sm:$0xff]   ;;  %v8697_v61 = vld [vmem:[%s11318_s2 + $0xa0] ss:$16 sps:$4 sm:$0xff]  }
0x14f0   :  { %4334 = vmatprep.subr.bf16.mxu0 %v8687_v26  ;;  %4377 = vmatprep.subr.bf16.mxu1 %v8689_v28  ;;  %v8698_v33 = vld [vmem:[%s11318_s2 + $0xa8] ss:$16 sps:$4 sm:$0xff]   ;;  %v8699_v35 = vld [vmem:[%s11318_s2 + $0x84] ss:$16 sps:$4 sm:$0xff]   ;;  %v8701_v36 = vld [vmem:[%s11318_s2 + $0x8c] ss:$16 sps:$4 sm:$0xff]  }
0x14f1   :  { %v8703_v39 = vld [vmem:[%s11318_s2 + $0x80] ss:$16 sps:$4 sm:$0xff]   ;;  %v8704_v46 = vld [vmem:[%s11318_s2 + $0x88] ss:$16 sps:$4 sm:$0xff]   ;;  %v8705_v47 = vld [vmem:[%s11318_s2 + $0x64] ss:$16 sps:$4 sm:$0xff]  }
0x14f2   :  { %v8707_v50 = vld [vmem:[%s11318_s2 + $0x6c] ss:$16 sps:$4 sm:$0xff]   ;;  %v8709_v51 = vld [vmem:[%s11318_s2 + $0x60] ss:$16 sps:$4 sm:$0xff]   ;;  %v8710_v54 = vld [vmem:[%s11318_s2 + $0x68] ss:$16 sps:$4 sm:$0xff]  }
0x14f3   :  { %4335 = vmatpush1.bf16.msra.mxu0 %v8691_v29  ;;  %4378 = vmatpush1.bf16.msra.mxu1 %v8692_v30  ;;  %v8711_v55 = vld [vmem:[%s11318_s2 + $0x44] ss:$16 sps:$4 sm:$0xff]   ;;  %v8713_v58 = vld [vmem:[%s11318_s2 + $0x4c] ss:$16 sps:$4 sm:$0xff]   ;;  %v8715_v59 = vld [vmem:[%s11318_s2 + $0x40] ss:$16 sps:$4 sm:$0xff]  }
0x14f4   :  { %4336 = vmatprep.subr.bf16.mxu0 %v8693_v31  ;;  %4379 = vmatprep.subr.bf16.mxu1 %v8695_v32  ;;  %v8716_v62 = vld [vmem:[%s11318_s2 + $0x48] ss:$16 sps:$4 sm:$0xff]   ;;  %v8717_v63 = vld [vmem:[%s11318_s2 + $0x24] ss:$16 sps:$4 sm:$0xff]   ;;  %v8719_v0 = vld [vmem:[%s11318_s2 + $0x2c] ss:$16 sps:$4 sm:$0xff]  }
0x14f5   :  { %v8721_v1 = vld [vmem:[%s11318_s2 + $0x20] ss:$16 sps:$4 sm:$0xff]   ;;  %v8722_v3 = vld [vmem:[%s11318_s2 + $0x28] ss:$16 sps:$4 sm:$0xff]   ;;  %v8723_v4 = vld [vmem:[%s11318_s2 + $0x4] ss:$16 sps:$4 sm:$0xff]  }
0x14f6   :  { %v8725_v5 = vld [vmem:[%s11318_s2 + $0xc] ss:$16 sps:$4 sm:$0xff]   ;;  %v8727_v6 = vld [vmem:[%s11318_s2] ss:$16 sps:$4 sm:$0xff]   ;;  %v8728_v7 = vld [vmem:[%s11318_s2 + $0x8] ss:$16 sps:$4 sm:$0xff]  }
0x14f7   :  { %4337 = vmatpush1.bf16.msra.mxu0 %v8697_v61  ;;  %4380 = vmatpush1.bf16.msra.mxu1 %v8698_v33  ;;  %v4115_v8 = vld [vmem:[#allocation4 + $0x8] sm:$0xff]  ;;  %v4116_v9 = vld [vmem:[#allocation4] sm:$0xff] }
0x14f8   :  { %4338 = vmatprep.subr.bf16.mxu0 %v8699_v35  ;;  %4381 = vmatprep.subr.bf16.mxu1 %v8701_v36  ;;  %v4117_v42 = vpack.c.bf16 %v4116_v9, %v4115_v8  ;;  %v4150_v43 = vld [vmem:[%s11320_s4] sm:$0xf] }
0x14f9   :  { %v4155_v10 = vrot.slane %v4150_v43, %v9509_v37  ;;  %v4163_v11 = vrot.slane %v4150_v43, %v9511_v38  ;;  %v4159_v12 = vrot.slane %v4150_v43, %v9516_v40  ;;  %v4167_v44 = vrot.slane %v4150_v43, %v9518_v41 }
0x14fb   :  { %4339 = vmatpush1.bf16.msra.mxu0 %v8703_v39  ;;  %4382 = vmatpush1.bf16.msra.mxu1 %v8704_v46 }
0x14fc   :  { %4340 = vmatprep.subr.bf16.mxu0 %v8705_v47  ;;  %4383 = vmatprep.subr.bf16.mxu1 %v8707_v50 }
0x14ff   :  { %4341 = vmatpush1.bf16.msra.mxu0 %v8709_v51  ;;  %4384 = vmatpush1.bf16.msra.mxu1 %v8710_v54 }
0x1500   :  { %4342 = vmatprep.subr.bf16.mxu0 %v8711_v55  ;;  %4385 = vmatprep.subr.bf16.mxu1 %v8713_v58 }
0x1503   :  { %4343 = vmatpush1.bf16.msra.mxu0 %v8715_v59  ;;  %4386 = vmatpush1.bf16.msra.mxu1 %v8716_v62 }
0x1504   :  { %4344 = vmatprep.subr.bf16.mxu0 %v8717_v63  ;;  %4387 = vmatprep.subr.bf16.mxu1 %v8719_v0 }
0x1507   :  { %4345 = vmatpush1.bf16.msra.mxu0 %v8721_v1  ;;  %4388 = vmatpush1.bf16.msra.mxu1 %v8722_v3 }
0x1508   :  { %4346 = vmatprep.subr.bf16.mxu0 %v8723_v4  ;;  %4389 = vmatprep.subr.bf16.mxu1 %v8725_v5 }
0x150b   :  { %4347 = vmatpush1.bf16.msra.mxu0 %v8727_v6  ;;  %4390 = vmatpush1.bf16.msra.mxu1 %v8728_v7 }
0x150e   :  { %4365 = vmatmul.mubr.bf16.vlgmr.msra.gmra.mxu0 %v4117_v42  ;;  %4408 = vmatmul.mubr.bf16.vlgmr.msra.gmra.mxu1 %v4117_v42 }
0x15ce   :  { %v4366_v45 = vpop.f32.mrf.mxu0  ;;  %v4409_v13 = vpop.f32.mrf.mxu1 }
0x15cf   :  { %v4367_v14 = vadd.f32 %v4366_v45, %v4155_v10  ;;  %v4410_v48 = vadd.f32 %v4409_v13, %v4163_v11 }
0x15d0   :  { %v4368_v15 = vpop.f32.mrf.mxu0  ;;  %v4411_v16 = vpop.f32.mrf.mxu1 }
0x15d1   :  { %4418 = vst [vmem:[#allocation5] sm:$0xff] %v4367_v14  ;;  %4420 = vst [vmem:[#allocation5 + $0x8] sm:$0xff] %v4410_v48  ;;  %v4369_v52 = vadd.f32 %v4368_v15, %v4159_v12  ;;  %v4412_v17 = vadd.f32 %v4411_v16, %v4167_v44 }
0x15d2   :  { %v4370_v18 = vpop.f32.mrf.mxu0  ;;  %v4413_v19 = vpop.f32.mrf.mxu1 }
0x15d3   :  { %4419 = vst [vmem:[#allocation5 + $0x38] sm:$0xff] %v4369_v52  ;;  %4421 = vst [vmem:[#allocation5 + $0x18] sm:$0xff] %v4412_v17  ;;  %v4371_v56 = vadd.f32 %v4370_v18, %v4155_v10  ;;  %v4414_v20 = vadd.f32 %v4413_v19, %v4163_v11 }
0x15d4   :  { %v4372_v21 = vpop.f32.mrf.mxu0  ;;  %v4415_v60 = vpop.f32.mrf.mxu1 }
0x15d5   :  { %4422 = vst [vmem:[#allocation5 + $0x20] sm:$0xff] %v4371_v56  ;;  %4424 = vst [vmem:[#allocation5 + $0x30] sm:$0xff] %v4414_v20  ;;  %v4373_v22 = vadd.f32 %v4372_v21, %v4159_v12  ;;  %v4416_v23 = vadd.f32 %v4415_v60, %v4167_v44 }
0x15d7   :  { %4423 = vst [vmem:[#allocation5 + $0x10] sm:$0xff] %v4373_v22  ;;  %4425 = vst [vmem:[#allocation5 + $0x28] sm:$0xff] %v4416_v23 }
0x15d8 PF:  { %v8729_v49 = vld [vmem:[%s11319_s3 + $0xe4] ss:$16 sps:$4 sm:$0xff]   ;;  %4661 = vmatprep.mubr.bf16.mxu0 %v9128_v2  ;;  %4704 = vmatprep.mubr.bf16.mxu1 %v9128_v2  ;;  %v8731_v24 = vld [vmem:[%s11319_s3 + $0xe0] ss:$16 sps:$4 sm:$0xff]   ;;  %v8740_v26 = vld [vmem:[%s11319_s3 + $0xec] ss:$16 sps:$4 sm:$0xff]  }
0x15d9   :  { %4629 = vmatprep.subr.bf16.mxu0 %v8729_v49  ;;  %v8732_v57 = vld [vmem:[%s11319_s3 + $0xc4] ss:$16 sps:$4 sm:$0xff]   ;;  %v8734_v53 = vld [vmem:[%s11319_s3 + $0xc0] ss:$16 sps:$4 sm:$0xff]   ;;  %v8743_v28 = vld [vmem:[%s11319_s3 + $0xe8] ss:$16 sps:$4 sm:$0xff]   ;;  %4672 = vmatprep.subr.bf16.mxu1 %v8740_v26 }
0x15da   :  { %4630 = vmatpush1.bf16.msra.mxu0 %v8731_v24  ;;  %v8735_v25 = vld [vmem:[%s11319_s3 + $0xa4] ss:$16 sps:$4 sm:$0xff]   ;;  %v8737_v29 = vld [vmem:[%s11319_s3 + $0xa0] ss:$16 sps:$4 sm:$0xff]   ;;  %4673 = vmatpush1.bf16.msra.mxu1 %v8743_v28  ;;  %v8746_v31 = vld [vmem:[%s11319_s3 + $0xcc] ss:$16 sps:$4 sm:$0xff]  }
0x15db   :  { %4631 = vmatprep.subr.bf16.mxu0 %v8732_v57  ;;  %v8738_v30 = vld [vmem:[%s11319_s3 + $0x84] ss:$16 sps:$4 sm:$0xff]   ;;  %v8749_v32 = vld [vmem:[%s11319_s3 + $0xc8] ss:$16 sps:$4 sm:$0xff]   ;;  %4674 = vmatprep.subr.bf16.mxu1 %v8746_v31  ;;  %v8742_v61 = vld [vmem:[%s11319_s3 + $0x80] ss:$16 sps:$4 sm:$0xff]  }
0x15dc   :  { %v8744_v33 = vld [vmem:[%s11319_s3 + $0x64] ss:$16 sps:$4 sm:$0xff]   ;;  %v8752_v35 = vld [vmem:[%s11319_s3 + $0xac] ss:$16 sps:$4 sm:$0xff]   ;;  %v8755_v36 = vld [vmem:[%s11319_s3 + $0xa8] ss:$16 sps:$4 sm:$0xff]  }
0x15dd   :  { %v8758_v39 = vld [vmem:[%s11319_s3 + $0x8c] ss:$16 sps:$4 sm:$0xff]   ;;  %v8748_v46 = vld [vmem:[%s11319_s3 + $0x60] ss:$16 sps:$4 sm:$0xff]   ;;  %v8750_v47 = vld [vmem:[%s11319_s3 + $0x44] ss:$16 sps:$4 sm:$0xff]  }
0x15de   :  { %4632 = vmatpush1.bf16.msra.mxu0 %v8734_v53  ;;  %4675 = vmatpush1.bf16.msra.mxu1 %v8749_v32  ;;  %v8761_v50 = vld [vmem:[%s11319_s3 + $0x88] ss:$16 sps:$4 sm:$0xff]   ;;  %v8764_v51 = vld [vmem:[%s11319_s3 + $0x6c] ss:$16 sps:$4 sm:$0xff]   ;;  %v8754_v54 = vld [vmem:[%s11319_s3 + $0x40] ss:$16 sps:$4 sm:$0xff]  }
0x15df   :  { %4633 = vmatprep.subr.bf16.mxu0 %v8735_v25  ;;  %4676 = vmatprep.subr.bf16.mxu1 %v8752_v35  ;;  %v8756_v55 = vld [vmem:[%s11319_s3 + $0x24] ss:$16 sps:$4 sm:$0xff]   ;;  %v8767_v58 = vld [vmem:[%s11319_s3 + $0x68] ss:$16 sps:$4 sm:$0xff]   ;;  %v8760_v59 = vld [vmem:[%s11319_s3 + $0x20] ss:$16 sps:$4 sm:$0xff]  }
0x15e0   :  { %v8768_v62 = vld [vmem:[%s11319_s3 + $0x4c] ss:$16 sps:$4 sm:$0xff]   ;;  %v8762_v63 = vld [vmem:[%s11319_s3 + $0x4] ss:$16 sps:$4 sm:$0xff]   ;;  %v8770_v0 = vld [vmem:[%s11319_s3 + $0x48] ss:$16 sps:$4 sm:$0xff]  }
0x15e1   :  { %v8771_v1 = vld [vmem:[%s11319_s3 + $0x2c] ss:$16 sps:$4 sm:$0xff]   ;;  %v8766_v3 = vld [vmem:[%s11319_s3] ss:$16 sps:$4 sm:$0xff]   ;;  %v8773_v6 = vld [vmem:[%s11319_s3 + $0x28] ss:$16 sps:$4 sm:$0xff]  }
0x15e2   :  { %4634 = vmatpush1.bf16.msra.mxu0 %v8737_v29  ;;  %4677 = vmatpush1.bf16.msra.mxu1 %v8755_v36  ;;  %v4434_v4 = vld [vmem:[#allocation2] sm:$0xff]  ;;  %v4435_v5 = vld [vmem:[#allocation2 + $0x8] sm:$0xff]  ;;  %v8777_v42 = vld [vmem:[%s11322_s6 + $0x38] sm:$0xff]   ;;  %s7458_s14 = sld [smem:[#allocation7 + $0x5]] }
0x15e3   :  { %4635 = vmatprep.subr.bf16.mxu0 %v8738_v30  ;;  %4678 = vmatprep.subr.bf16.mxu1 %v8758_v39  ;;  %v8774_v7 = vld [vmem:[%s11319_s3 + $0xc] ss:$16 sps:$4 sm:$0xff]   ;;  %v4436_v8 = vpack.c.bf16 %v4435_v5, %v4434_v4  ;;  %v8776_v9 = vld [vmem:[%s11319_s3 + $0x8] ss:$16 sps:$4 sm:$0xff]   ;;  %v8778_v43 = vld [vmem:[%s11322_s6 + $0x30] sm:$0xff]  }
0x15e4   :  { %v8779_v10 = vld [vmem:[%s11322_s6 + $0x28] sm:$0xff]   ;;  %v8780_v11 = vld [vmem:[%s11322_s6 + $0x20] sm:$0xff]   ;;  %v8781_v12 = vld [vmem:[%s11322_s6 + $0x18] sm:$0xff]  }
0x15e5   :  { %v8782_v44 = vld [vmem:[%s11322_s6 + $0x10] sm:$0xff]   ;;  %v8783_v45 = vld [vmem:[%s11322_s6 + $0x8] sm:$0xff]   ;;  %v8784_v13 = vld [vmem:[%s11322_s6] sm:$0xff]  }
0x15e6   :  { %4636 = vmatpush1.bf16.msra.mxu0 %v8742_v61  ;;  %4679 = vmatpush1.bf16.msra.mxu1 %v8761_v50  ;;  %v4426_v14 = vld [vmem:[#allocation5] sm:$0xff]  ;;  %v4427_v15 = vld [vmem:[#allocation5 + $0x38] sm:$0xff]  ;;  %v4431_v20 = vld [vmem:[#allocation5 + $0x10] sm:$0xff] }
0x15e7   :  { %4637 = vmatprep.subr.bf16.mxu0 %v8744_v33  ;;  %4680 = vmatprep.subr.bf16.mxu1 %v8764_v51  ;;  %v4430_v17 = vld [vmem:[#allocation5 + $0x20] sm:$0xff]  ;;  %v4428_v57 = vld [vmem:[#allocation5 + $0x8] sm:$0xff]  ;;  %v4429_v28 = vld [vmem:[#allocation5 + $0x18] sm:$0xff] }
0x15e8   :  { %v4432_v29 = vld [vmem:[#allocation5 + $0x30] sm:$0xff]  ;;  %v4433_v36 = vld [vmem:[#allocation5 + $0x28] sm:$0xff]  ;;  %p7459_p3 = scmp.ne.s32.totalorder %s7458_s14, 0 }
0x15ea   :  { %4638 = vmatpush1.bf16.msra.mxu0 %v8748_v46  ;;  %4681 = vmatpush1.bf16.msra.mxu1 %v8767_v58 }
0x15eb   :  { %4639 = vmatprep.subr.bf16.mxu0 %v8750_v47  ;;  %4682 = vmatprep.subr.bf16.mxu1 %v8768_v62 }
0x15ee   :  { %4640 = vmatpush1.bf16.msra.mxu0 %v8754_v54  ;;  %4683 = vmatpush1.bf16.msra.mxu1 %v8770_v0 }
0x15ef   :  { %4641 = vmatprep.subr.bf16.mxu0 %v8756_v55  ;;  %4684 = vmatprep.subr.bf16.mxu1 %v8771_v1  ;;  %v4761_v1 = vld [vmem:[#allocation3 + $0x8] sm:$0xff] }
0x15f2   :  { %4642 = vmatpush1.bf16.msra.mxu0 %v8760_v59  ;;  %4685 = vmatpush1.bf16.msra.mxu1 %v8773_v6 }
0x15f3   :  { %4643 = vmatprep.subr.bf16.mxu0 %v8762_v63  ;;  %4686 = vmatprep.subr.bf16.mxu1 %v8774_v7 }
0x15f6   :  { %4644 = vmatpush1.bf16.msra.mxu0 %v8766_v3  ;;  %4687 = vmatpush1.bf16.msra.mxu1 %v8776_v9  ;;  %v4762_v9 = vld [vmem:[#allocation3] sm:$0xff] }
0x15f7   :  { %7954 = vmatprep.subr.bf16.mxu0 %v9129_v27 }
0x15f9   :  { %4662 = vmatmul.mubr.bf16.vlgmr.msra.gmra.mxu0 %v4436_v8  ;;  %4705 = vmatmul.mubr.bf16.vlgmr.msra.gmra.mxu1 %v4436_v8 }
0x15fa   :  { %7970 = vmatprep.mubr.msk.bf16.mxu0 %vm9130_vm0, %v9129_v27  ;;  %7955 = vmatpush3.bf16.msra.mxu0 %v8777_v42 }
0x15fb   :  { %7956 = vmatprep.subr.bf16.mxu0 %v9129_v27 }
0x15fe   :  { %7957 = vmatpush3.bf16.msra.mxu0 %v8778_v43 }
0x15ff   :  { %7958 = vmatprep.subr.bf16.mxu0 %v9129_v27 }
0x1602   :  { %7959 = vmatpush3.bf16.msra.mxu0 %v8779_v10 }
0x1603   :  { %7960 = vmatprep.subr.bf16.mxu0 %v9129_v27 }
0x1606   :  { %7961 = vmatpush3.bf16.msra.mxu0 %v8780_v11 }
0x1607   :  { %7962 = vmatprep.subr.bf16.mxu0 %v9129_v27 }
0x160a   :  { %7963 = vmatpush3.bf16.msra.mxu0 %v8781_v12 }
0x160b   :  { %7964 = vmatprep.subr.bf16.mxu0 %v9129_v27 }
0x160e   :  { %7965 = vmatpush3.bf16.msra.mxu0 %v8782_v44 }
0x160f   :  { %7966 = vmatprep.subr.bf16.mxu0 %v9129_v27 }
0x1612   :  { %7967 = vmatpush3.bf16.msra.mxu0 %v8783_v45 }
0x1613   :  { %7968 = vmatprep.subr.bf16.mxu0 %v9129_v27 }
0x1616   :  { %7969 = vmatpush3.bf16.msra.mxu0 %v8784_v13 }
0x16b9   :  { %v4663_v48 = vpop.f32.mrf.mxu0  ;;  %v4706_v24 = vpop.f32.mrf.mxu1 }
0x16ba   :  { %v4715_v16 = vadd.f32 %v4663_v48, %v4426_v14  ;;  %v4717_v25 = vadd.f32 %v4706_v24, %v4428_v57 }
0x16bb   :  { %v4665_v52 = vpop.f32.mrf.mxu0  ;;  %v4708_v26 = vpop.f32.mrf.mxu1 }
0x16bc   :  { %v7441_v18 = vmul.f32 -1.442695, %v4715_v16  ;;  %v4716_v19 = vadd.f32 %v4665_v52, %v4427_v15  ;;  %v7443_v30 = vmul.f32 -1.442695, %v4717_v25  ;;  %v4718_v32 = vadd.f32 %v4708_v26, %v4429_v28 }
0x16bd   :  { %v4667_v56 = vpop.f32.mrf.mxu0  ;;  %v4710_v31 = vpop.f32.mrf.mxu1 }
0x16be   :  { %8785 = vpow2.f32 %v7441_v18  ;;  %v7442_v21 = vmul.f32 -1.442695, %v4716_v19  ;;  %v4719_v60 = vadd.f32 %v4667_v56, %v4430_v17  ;;  %v4721_v61 = vadd.f32 %v4710_v31, %v4432_v29  ;;  %v7447_v18 = vld [vmem:[%s11323_s7] ss:$0 sm:$0xff] }
0x16bf   :  { %v4669_v22 = vpop.f32.mrf.mxu0  ;;  %v4712_v39 = vpop.f32.mrf.mxu1 }
0x16c0   :  { %8787 = vpow2.f32 %v7442_v21  ;;  %v7444_v23 = vmul.f32 -1.442695, %v4719_v60  ;;  %v4720_v49 = vadd.f32 %v4669_v22, %v4431_v20  ;;  %v7446_v47 = vmul.f32 -1.442695, %v4721_v61 }
0x16c1   :  { %v4722_v54 = vadd.f32 %v4712_v39, %v4433_v36 }
0x16c2   :  { %8789 = vpow2.f32 %v7444_v23  ;;  %v7445_v53 = vmul.f32 -1.442695, %v4720_v49 }
0x16c4   :  { %8791 = vpow2.f32 %v7445_v53 }
0x16c5   :  { %8793 = vpow2.f32 %v7443_v30 }
0x16c6   :  { %8795 = vtanh.f32 %v4718_v32 }
0x16cb   :  { %v8786_v33 = vpop.eup %8785 }
0x16cc   :  { %v4741_v35 = vadd.f32 1.0, %v8786_v33 }
0x16cd   :  { %v8788_v46 = vpop.eup %8787 }
0x16ce   :  { %8797 = vrcp.f32 %v4741_v35  ;;  %v4742_v50 = vadd.f32 1.0, %v8788_v46 }
0x16cf   :  { %v8790_v51 = vpop.eup %8789 }
0x16d0   :  { %8799 = vrcp.f32 %v4742_v50  ;;  %v4744_v55 = vadd.f32 1.0, %v8790_v51 }
0x16d1   :  { %v8792_v58 = vpop.eup %8791  ;;  %8801 = vpow2.f32 %v7446_v47 }
0x16d2   :  { %8803 = vrcp.f32 %v4744_v55  ;;  %v4745_v59 = vadd.f32 1.0, %v8792_v58  ;;  %v8794_v62 = vpop.eup %8793 }
0x16d3   :  { %8805 = vtanh.f32 %v4722_v54  ;;  %v8796_v63 = vpop.eup %8795  ;;  %v4743_v4 = vadd.f32 1.0, %v8794_v62 }
0x16d4   :  { %8807 = vrcp.f32 %v4745_v59 }
0x16d5   :  { %8809 = vrcp.f32 %v4743_v4 }
0x16db   :  { %v8798_v0 = vpop.eup %8797 }
0x16dc   :  { %v4765_v7 = vmul.f32 %v8798_v0, %v8796_v63 }
0x16dd   :  { %v8800_v3 = vpop.eup %8799 }
0x16de   :  { %v8802_v5 = vpop.eup %8801  ;;  %v4763_v6 = vmul.f32 %v8800_v3, %v4761_v1 }
0x16df   :  { %v8804_v8 = vpop.eup %8803  ;;  %v4746_v11 = vadd.f32 1.0, %v8802_v5 }
0x16e0   :  { %v8806_v42 = vpop.eup %8805  ;;  %v4767_v43 = vadd.f32 %v4765_v7, %v4763_v6 }
0x16e1   :  { %v8808_v10 = vpop.eup %8807  ;;  %v4766_v44 = vmul.f32 %v8806_v42, %v8804_v8 }
0x16e2   :  { %8811 = vtanh.f32 %v4767_v43  ;;  %4773 = vst [vmem:[#allocation3 + $0x8] sm:$0xff] %v4767_v43  ;;  %v4764_v12 = vmul.f32 %v8808_v10, %v4762_v9  ;;  %v8810_v13 = vpop.eup %8809 }
0x16e3   :  { %8813 = vrcp.f32 %v4746_v11 }
0x16e4   :  { %v4768_v45 = vadd.f32 %v4766_v44, %v4764_v12 }
0x16e6   :  { %8815 = vtanh.f32 %v4768_v45  ;;  %4774 = vst [vmem:[#allocation3] sm:$0xff] %v4768_v45 }
0x16ef   :  { %v8812_v14 = vpop.eup %8811 }
0x16f0   :  { %v4771_v48 = vmul.f32 %v8812_v14, %v8810_v13  ;;  %v8814_v15 = vpop.eup %8813 }
0x16f2   :  { %4775 = vst [vmem:[#allocation2] sm:$0xff] %v4771_v48 }
0x16f3   :  { %v8816_v16 = vpop.eup %8815 }
0x16f4   :  { %v4772_v52 = vmul.f32 %v8816_v16, %v8814_v15 }
0x16f6   :  { %4776 = vst [vmem:[#allocation2 + $0x8] sm:$0xff] %v4772_v52  ;;  %v4777_v17 = vpack.c.bf16 %v4772_v52, %v4771_v48 }
0x16f8   :  { %7971 = vmatmul.mubr.bf16.vlgmr.msra.gmra.mxu0 %v4777_v17 }
0x17b8   :  { %v4883_v19 = vpop.f32.mrf.mxu0 }
0x17b9   :  { %v4884_v56 = vadd.f32 %v7447_v18, %v4883_v19 }
0x17ba   :  { %v7972_v20 = vpop.f32.mrf.mxu0 }
0x17bb   :  { %7456 = vst [vmem:[%s11326_s10 + $0x40] sm:$0xff] %v4884_v56  ;;  %4897 = sbr.rel (%p7459_p3) target bundleno = 6711 (0x1a37), region = 97 }
0x17bc   :  { %v4886_v21 = vpop.f32.mrf.mxu0 }
0x17bd   :  { %v4887_v60 = vadd.f32 %v7447_v18, %v4886_v21 }
0x17be   :  { %v7973_v22 = vpop.f32.mrf.mxu0 }
0x17bf   :  { %7457 = vst [vmem:[%s11326_s10 + $0x48] sm:$0xff] %v4887_v60 }
0x17c0   :  { %4900 = vmax.xlane.f32.xlu0 %v4884_v56  ;;  %v10736_v23 = vand.u32 127, %v104_v34  ;;  %v8817_v30 = vld [vmem:[%s11321_s5 + $0x38] sm:$0xff]   ;;  %v9147_v31 = vmov 0.0   ;;  %v8818_v32 = vld [vmem:[%s11321_s5 + $0x30] sm:$0xff]   ;;  %v8819_v61 = vld [vmem:[%s11321_s5 + $0x28] sm:$0xff]   ;;  %vm9148_vm7 = vmmov 0  }
0x17c1   :  { %7974 = vmatprep.subr.bf16.mxu0 %v9147_v31  ;;  %v8820_v33 = vld [vmem:[%s11321_s5 + $0x20] sm:$0xff]   ;;  %v8821_v35 = vld [vmem:[%s11321_s5 + $0x18] sm:$0xff]   ;;  %v8822_v36 = vld [vmem:[%s11321_s5 + $0x10] sm:$0xff]   ;;  %7990 = vmatprep.mubr.msk.bf16.mxu0 %vm9148_vm7, %v9147_v31  ;;  %v9149_v42 = vmov 1.0|1.0  }
0x17c2   :  { %7975 = vmatpush3.bf16.msra.mxu0 %v8817_v30  ;;  %v8823_v59 = vld [vmem:[%s11321_s5 + $0x8] sm:$0xff]   ;;  %v8824_v62 = vld [vmem:[%s11321_s5] sm:$0xff]  }
0x17c3   :  { %7976 = vmatprep.subr.bf16.mxu0 %v9147_v31 }
0x17c4   :  { %4902 = vmax.xlane.f32.xlu0 %v4887_v60 }
0x17c6   :  { %7977 = vmatpush3.bf16.msra.mxu0 %v8818_v32 }
0x17c7   :  { %7978 = vmatprep.subr.bf16.mxu0 %v9147_v31 }
0x17ca   :  { %7979 = vmatpush3.bf16.msra.mxu0 %v8819_v61 }
0x17cb   :  { %7980 = vmatprep.subr.bf16.mxu0 %v9147_v31 }
0x17ce   :  { %7981 = vmatpush3.bf16.msra.mxu0 %v8820_v33 }
0x17cf   :  { %7982 = vmatprep.subr.bf16.mxu0 %v9147_v31 }
0x17d2   :  { %7983 = vmatpush3.bf16.msra.mxu0 %v8821_v35 }
0x17d3   :  { %7984 = vmatprep.subr.bf16.mxu0 %v9147_v31 }
0x17d6   :  { %7985 = vmatpush3.bf16.msra.mxu0 %v8822_v36 }
0x17d7   :  { %7986 = vmatprep.subr.bf16.mxu0 %v9147_v31 }
0x17da   :  { %7987 = vmatpush3.bf16.msra.mxu0 %v8823_v59 }
0x17db   :  { %7988 = vmatprep.subr.bf16.mxu0 %v9147_v31 }
0x17de   :  { %7989 = vmatpush3.bf16.msra.mxu0 %v8824_v62 }
0x1849   :  { %v4901_v49 = vpop.xlane.xlu0 %4900 }
0x184a   :  { %vm4904_vm3 = vcmp.eq.f32.partialorder %v4884_v56, %v4901_v49 }
0x184b   :  { %v4906_v24 = vsel %vm4904_vm3, %v10736_v23, 128 }
0x184c   :  { %v4909_v57 = vshra.s32 %v4906_v24, 16  ;;  %v4908_v39 = vand.u32 65535, %v4906_v24 }
0x184d   :  { %v4903_v53 = vpop.xlane.xlu0 %4902 }
0x184e   :  { %vm4905_vm4 = vcmp.eq.f32.partialorder %v4887_v60, %v4903_v53  ;;  %v4911_v25 = vcvt.s32.f32 %v4909_v57  ;;  %v4910_v50 = vcvt.s32.f32 %v4908_v39 }
0x184f   :  { %v4907_v26 = vsel %vm4905_vm4, %v10736_v23, 128 }
0x1850   :  { %4912 = vmin.xlane.f32.xlu1 %v4911_v25  ;;  %v4923_v28 = vshra.s32 %v4907_v26, 16  ;;  %v4922_v46 = vand.u32 65535, %v4907_v26 }
0x1852   :  { %v4925_v29 = vcvt.s32.f32 %v4923_v28  ;;  %v4924_v55 = vcvt.s32.f32 %v4922_v46 }
0x1854   :  { %4926 = vmin.xlane.f32.xlu1 %v4925_v29 }
0x18d9   :  { %v4913_v47 = vpop.xlane.xlu1 %4912 }
0x18da   :  { %vm4914_vm5 = vcmp.eq.f32.partialorder %v4911_v25, %v4913_v47  ;;  %v4919_v63 = vcvt.f32.s32 %v4913_v47 }
0x18db   :  { %v4915_v51 = vsel %vm4914_vm5, %v4910_v50, inf }
0x18dc   :  { %4916 = vmin.xlane.f32.xlu0 %v4915_v51  ;;  %v4920_v4 = vshll.u32 %v4919_v63, 16 }
0x18dd   :  { %v4927_v54 = vpop.xlane.xlu1 %4926 }
0x18de   :  { %vm4928_vm6 = vcmp.eq.f32.partialorder %v4925_v29, %v4927_v54  ;;  %v4933_v1 = vcvt.f32.s32 %v4927_v54 }
0x18df   :  { %v4929_v58 = vsel %vm4928_vm6, %v4924_v55, inf }
0x18e0   :  { %4930 = vmin.xlane.f32.xlu1 %v4929_v58  ;;  %v4934_v6 = vshll.u32 %v4933_v1, 16 }
0x1965   :  { %v4917_v0 = vpop.xlane.xlu0 %4916 }
0x1966   :  { %v4918_v3 = vcvt.f32.s32 %v4917_v0 }
0x1968   :  { %v4921_v7 = vadd.s32 %v4920_v4, %v4918_v3 }
0x1969   :  { %v4931_v5 = vpop.xlane.xlu1 %4930 }
0x196a   :  { %v4932_v8 = vcvt.f32.s32 %v4931_v5  ;;  %vm4936_vm8 = vcmp.eq.s32.totalorder %v10736_v23, %v4921_v7 }
0x196c   :  { %v4935_v9 = vadd.s32 %v4934_v6, %v4932_v8 }
0x196e   :  { %vm4937_vm9 = vcmp.eq.s32.totalorder %v10736_v23, %v4935_v9 }
0x196f   :  { %vm7470_vm10 = vmpackc.low %vm4937_vm9, %vm4936_vm8 }
0x1970   :  { %7991 = vmatmul.mubr.msk.bf16.vlgmr.msra.gmra.mxu0 %vm7470_vm10, %v9149_v42 }
0x1a30   :  { %v5041_v43 = vpop.f32.mrf.mxu0 }
0x1a31   :  { %5048 = vst [vmem:[#allocation4 + $0x8] sm:$0xff] %v5041_v43 }
0x1a32   :  { %v7992_v10 = vpop.f32.mrf.mxu0 }
0x1a34   :  { %v5044_v11 = vpop.f32.mrf.mxu0 }
0x1a35   :  { %5049 = vst [vmem:[#allocation4] sm:$0xff] %v5044_v11 }
0x1a36   :  { %v7993_v12 = vpop.f32.mrf.mxu0 }
0x1a37 PF:  { %s7472_s13 = sld [smem:[#allocation7 + $0x5]] }
0x1a3d   :  { %p7473_p4 = scmp.eq.s32.totalorder %s7472_s13, 0 }
0x1a3f   :  { %5054 = sbr.rel (%p7473_p4) target bundleno = 6729 (0x1a49), region = 101 }
0x1a44   :  { %v5058_v44 = vld [vmem:[#allocation6 + $0x40] sm:$0xff]  ;;  %v5059_v45 = vld [vmem:[#allocation6 + $0x1b8] sm:$0xff]  ;;  %v5060_v13 = vld [vmem:[#allocation6 + $0x90] sm:$0xff] }
0x1a45   :  { %5066 = vst [vmem:[#allocation5] sm:$0xff] %v5058_v44  ;;  %5067 = vst [vmem:[#allocation5 + $0x38] sm:$0xff] %v5059_v45  ;;  %v5061_v14 = vld [vmem:[#allocation6 + $0x130] sm:$0xff]  ;;  %v5062_v48 = vld [vmem:[#allocation6 + $0x58] sm:$0xff] }
0x1a46   :  { %5068 = vst [vmem:[#allocation5 + $0x8] sm:$0xff] %v5060_v13  ;;  %v5063_v15 = vld [vmem:[#allocation6 + $0x128] sm:$0xff]  ;;  %5069 = vst [vmem:[#allocation5 + $0x18] sm:$0xff] %v5061_v14  ;;  %v5064_v16 = vld [vmem:[#allocation6 + $0x178] sm:$0xff] }
0x1a47   :  { %5070 = vst [vmem:[#allocation5 + $0x20] sm:$0xff] %v5062_v48  ;;  %5071 = vst [vmem:[#allocation5 + $0x10] sm:$0xff] %v5063_v15  ;;  %v5065_v52 = vld [vmem:[#allocation6 + $0x150] sm:$0xff] }
0x1a48   :  { %5072 = vst [vmem:[#allocation5 + $0x30] sm:$0xff] %v5064_v16  ;;  %5073 = vst [vmem:[#allocation5 + $0x28] sm:$0xff] %v5065_v52 }
0x1a49 PF:  { %p7474_p5 = scmp.ne.s32.totalorder %s7472_s13, 0 }
0x1a4b   :  { %5077 = sbr.rel (%p7474_p5) target bundleno = 6972 (0x1b3c), region = 105 }
0x1a50   :  { %v8825_v17 = vld [vmem:[%s11318_s2 + $0xe4] ss:$16 sps:$4 sm:$0xff]   ;;  %v8827_v18 = vld [vmem:[%s11318_s2 + $0xec] ss:$16 sps:$4 sm:$0xff]   ;;  %v9150_v19 = vmov 0  }
0x1a51   :  { %5327 = vmatprep.mubr.bf16.mxu0 %v9150_v19  ;;  %5370 = vmatprep.mubr.bf16.mxu1 %v9150_v19  ;;  %v8829_v56 = vld [vmem:[%s11318_s2 + $0xe0] ss:$16 sps:$4 sm:$0xff]   ;;  %v8830_v20 = vld [vmem:[%s11318_s2 + $0xe8] ss:$16 sps:$4 sm:$0xff]   ;;  %v8831_v21 = vld [vmem:[%s11318_s2 + $0xc4] ss:$16 sps:$4 sm:$0xff]  }
0x1a52   :  { %5295 = vmatprep.subr.bf16.mxu0 %v8825_v17  ;;  %5338 = vmatprep.subr.bf16.mxu1 %v8827_v18  ;;  %v8833_v60 = vld [vmem:[%s11318_s2 + $0xcc] ss:$16 sps:$4 sm:$0xff]   ;;  %v8835_v22 = vld [vmem:[%s11318_s2 + $0xc0] ss:$16 sps:$4 sm:$0xff]   ;;  %v8836_v23 = vld [vmem:[%s11318_s2 + $0xc8] ss:$16 sps:$4 sm:$0xff]  }
0x1a53   :  { %5296 = vmatpush1.bf16.msra.mxu0 %v8829_v56  ;;  %5339 = vmatpush1.bf16.msra.mxu1 %v8830_v20  ;;  %v8837_v49 = vld [vmem:[%s11318_s2 + $0xa4] ss:$16 sps:$4 sm:$0xff]   ;;  %v8839_v24 = vld [vmem:[%s11318_s2 + $0xac] ss:$16 sps:$4 sm:$0xff]   ;;  %v8841_v57 = vld [vmem:[%s11318_s2 + $0xa0] ss:$16 sps:$4 sm:$0xff]  }
0x1a54   :  { %5297 = vmatprep.subr.bf16.mxu0 %v8831_v21  ;;  %5340 = vmatprep.subr.bf16.mxu1 %v8833_v60  ;;  %v8842_v53 = vld [vmem:[%s11318_s2 + $0xa8] ss:$16 sps:$4 sm:$0xff]   ;;  %v8843_v25 = vld [vmem:[%s11318_s2 + $0x84] ss:$16 sps:$4 sm:$0xff]   ;;  %v8845_v26 = vld [vmem:[%s11318_s2 + $0x8c] ss:$16 sps:$4 sm:$0xff]  }
0x1a55   :  { %v8847_v28 = vld [vmem:[%s11318_s2 + $0x80] ss:$16 sps:$4 sm:$0xff]   ;;  %v8848_v29 = vld [vmem:[%s11318_s2 + $0x88] ss:$16 sps:$4 sm:$0xff]   ;;  %v8849_v30 = vld [vmem:[%s11318_s2 + $0x64] ss:$16 sps:$4 sm:$0xff]  }
0x1a56   :  { %v8851_v31 = vld [vmem:[%s11318_s2 + $0x6c] ss:$16 sps:$4 sm:$0xff]   ;;  %v8853_v32 = vld [vmem:[%s11318_s2 + $0x60] ss:$16 sps:$4 sm:$0xff]   ;;  %v8854_v61 = vld [vmem:[%s11318_s2 + $0x68] ss:$16 sps:$4 sm:$0xff]  }
0x1a57   :  { %5298 = vmatpush1.bf16.msra.mxu0 %v8835_v22  ;;  %5341 = vmatpush1.bf16.msra.mxu1 %v8836_v23  ;;  %v8855_v33 = vld [vmem:[%s11318_s2 + $0x44] ss:$16 sps:$4 sm:$0xff]   ;;  %v8857_v35 = vld [vmem:[%s11318_s2 + $0x4c] ss:$16 sps:$4 sm:$0xff]   ;;  %v8859_v36 = vld [vmem:[%s11318_s2 + $0x40] ss:$16 sps:$4 sm:$0xff]  }
0x1a58   :  { %5299 = vmatprep.subr.bf16.mxu0 %v8837_v49  ;;  %5342 = vmatprep.subr.bf16.mxu1 %v8839_v24  ;;  %v8860_v39 = vld [vmem:[%s11318_s2 + $0x48] ss:$16 sps:$4 sm:$0xff]   ;;  %v8861_v46 = vld [vmem:[%s11318_s2 + $0x24] ss:$16 sps:$4 sm:$0xff]   ;;  %v8863_v47 = vld [vmem:[%s11318_s2 + $0x2c] ss:$16 sps:$4 sm:$0xff]  }
0x1a59   :  { %v8865_v50 = vld [vmem:[%s11318_s2 + $0x20] ss:$16 sps:$4 sm:$0xff]   ;;  %v8866_v51 = vld [vmem:[%s11318_s2 + $0x28] ss:$16 sps:$4 sm:$0xff]   ;;  %v8867_v54 = vld [vmem:[%s11318_s2 + $0x4] ss:$16 sps:$4 sm:$0xff]  }
0x1a5a   :  { %v8869_v55 = vld [vmem:[%s11318_s2 + $0xc] ss:$16 sps:$4 sm:$0xff]   ;;  %v8871_v58 = vld [vmem:[%s11318_s2] ss:$16 sps:$4 sm:$0xff]   ;;  %v8872_v59 = vld [vmem:[%s11318_s2 + $0x8] ss:$16 sps:$4 sm:$0xff]  }
0x1a5b   :  { %5300 = vmatpush1.bf16.msra.mxu0 %v8841_v57  ;;  %5343 = vmatpush1.bf16.msra.mxu1 %v8842_v53  ;;  %v5078_v62 = vld [vmem:[#allocation4 + $0x8] sm:$0xff]  ;;  %v5079_v63 = vld [vmem:[#allocation4] sm:$0xff] }
0x1a5c   :  { %5301 = vmatprep.subr.bf16.mxu0 %v8843_v25  ;;  %5344 = vmatprep.subr.bf16.mxu1 %v8845_v26  ;;  %v5080_v0 = vpack.c.bf16 %v5079_v63, %v5078_v62  ;;  %v5113_v1 = vld [vmem:[%s11320_s4] sm:$0xf] }
0x1a5d   :  { %v5118_v3 = vrot.slane %v5113_v1, %v9509_v37  ;;  %v5126_v4 = vrot.slane %v5113_v1, %v9511_v38  ;;  %v5122_v5 = vrot.slane %v5113_v1, %v9516_v40  ;;  %v5130_v6 = vrot.slane %v5113_v1, %v9518_v41 }
0x1a5f   :  { %5302 = vmatpush1.bf16.msra.mxu0 %v8847_v28  ;;  %5345 = vmatpush1.bf16.msra.mxu1 %v8848_v29 }
0x1a60   :  { %5303 = vmatprep.subr.bf16.mxu0 %v8849_v30  ;;  %5346 = vmatprep.subr.bf16.mxu1 %v8851_v31 }
0x1a63   :  { %5304 = vmatpush1.bf16.msra.mxu0 %v8853_v32  ;;  %5347 = vmatpush1.bf16.msra.mxu1 %v8854_v61 }
0x1a64   :  { %5305 = vmatprep.subr.bf16.mxu0 %v8855_v33  ;;  %5348 = vmatprep.subr.bf16.mxu1 %v8857_v35 }
0x1a67   :  { %5306 = vmatpush1.bf16.msra.mxu0 %v8859_v36  ;;  %5349 = vmatpush1.bf16.msra.mxu1 %v8860_v39 }
0x1a68   :  { %5307 = vmatprep.subr.bf16.mxu0 %v8861_v46  ;;  %5350 = vmatprep.subr.bf16.mxu1 %v8863_v47 }
0x1a6b   :  { %5308 = vmatpush1.bf16.msra.mxu0 %v8865_v50  ;;  %5351 = vmatpush1.bf16.msra.mxu1 %v8866_v51 }
0x1a6c   :  { %5309 = vmatprep.subr.bf16.mxu0 %v8867_v54  ;;  %5352 = vmatprep.subr.bf16.mxu1 %v8869_v55 }
0x1a6f   :  { %5310 = vmatpush1.bf16.msra.mxu0 %v8871_v58  ;;  %5353 = vmatpush1.bf16.msra.mxu1 %v8872_v59 }
0x1a72   :  { %5328 = vmatmul.mubr.bf16.vlgmr.msra.gmra.mxu0 %v5080_v0  ;;  %5371 = vmatmul.mubr.bf16.vlgmr.msra.gmra.mxu1 %v5080_v0 }
0x1b32   :  { %v5329_v7 = vpop.f32.mrf.mxu0  ;;  %v5372_v8 = vpop.f32.mrf.mxu1 }
0x1b33   :  { %v5330_v9 = vadd.f32 %v5329_v7, %v5118_v3  ;;  %v5373_v42 = vadd.f32 %v5372_v8, %v5126_v4 }
0x1b34   :  { %v5331_v43 = vpop.f32.mrf.mxu0  ;;  %v5374_v10 = vpop.f32.mrf.mxu1 }
0x1b35   :  { %5381 = vst [vmem:[#allocation5] sm:$0xff] %v5330_v9  ;;  %5383 = vst [vmem:[#allocation5 + $0x8] sm:$0xff] %v5373_v42  ;;  %v5332_v11 = vadd.f32 %v5331_v43, %v5122_v5  ;;  %v5375_v12 = vadd.f32 %v5374_v10, %v5130_v6 }
0x1b36   :  { %v5333_v44 = vpop.f32.mrf.mxu0  ;;  %v5376_v45 = vpop.f32.mrf.mxu1 }
0x1b37   :  { %5382 = vst [vmem:[#allocation5 + $0x38] sm:$0xff] %v5332_v11  ;;  %5384 = vst [vmem:[#allocation5 + $0x18] sm:$0xff] %v5375_v12  ;;  %v5334_v13 = vadd.f32 %v5333_v44, %v5118_v3  ;;  %v5377_v14 = vadd.f32 %v5376_v45, %v5126_v4 }
0x1b38   :  { %v5335_v48 = vpop.f32.mrf.mxu0  ;;  %v5378_v15 = vpop.f32.mrf.mxu1 }
0x1b39   :  { %5385 = vst [vmem:[#allocation5 + $0x20] sm:$0xff] %v5334_v13  ;;  %5387 = vst [vmem:[#allocation5 + $0x30] sm:$0xff] %v5377_v14  ;;  %v5336_v16 = vadd.f32 %v5335_v48, %v5122_v5  ;;  %v5379_v52 = vadd.f32 %v5378_v15, %v5130_v6 }
0x1b3b   :  { %5386 = vst [vmem:[#allocation5 + $0x10] sm:$0xff] %v5336_v16  ;;  %5388 = vst [vmem:[#allocation5 + $0x28] sm:$0xff] %v5379_v52 }
0x1b3c PF:  { %v8873_v17 = vld [vmem:[%s11319_s3 + $0xe4] ss:$16 sps:$4 sm:$0xff]   ;;  %5624 = vmatprep.mubr.bf16.mxu0 %v9128_v2  ;;  %5667 = vmatprep.mubr.bf16.mxu1 %v9128_v2  ;;  %v8875_v18 = vld [vmem:[%s11319_s3 + $0xe0] ss:$16 sps:$4 sm:$0xff]   ;;  %v8884_v21 = vld [vmem:[%s11319_s3 + $0xec] ss:$16 sps:$4 sm:$0xff]  }
0x1b3d   :  { %5592 = vmatprep.subr.bf16.mxu0 %v8873_v17  ;;  %v8876_v19 = vld [vmem:[%s11319_s3 + $0xc4] ss:$16 sps:$4 sm:$0xff]   ;;  %v8878_v56 = vld [vmem:[%s11319_s3 + $0xc0] ss:$16 sps:$4 sm:$0xff]   ;;  %v8887_v60 = vld [vmem:[%s11319_s3 + $0xe8] ss:$16 sps:$4 sm:$0xff]   ;;  %5635 = vmatprep.subr.bf16.mxu1 %v8884_v21 }
0x1b3e   :  { %5593 = vmatpush1.bf16.msra.mxu0 %v8875_v18  ;;  %v8879_v20 = vld [vmem:[%s11319_s3 + $0xa4] ss:$16 sps:$4 sm:$0xff]   ;;  %v8881_v22 = vld [vmem:[%s11319_s3 + $0xa0] ss:$16 sps:$4 sm:$0xff]   ;;  %5636 = vmatpush1.bf16.msra.mxu1 %v8887_v60  ;;  %v8890_v49 = vld [vmem:[%s11319_s3 + $0xcc] ss:$16 sps:$4 sm:$0xff]  }
0x1b3f   :  { %5594 = vmatprep.subr.bf16.mxu0 %v8876_v19  ;;  %v8882_v23 = vld [vmem:[%s11319_s3 + $0x84] ss:$16 sps:$4 sm:$0xff]   ;;  %v8893_v24 = vld [vmem:[%s11319_s3 + $0xc8] ss:$16 sps:$4 sm:$0xff]   ;;  %5637 = vmatprep.subr.bf16.mxu1 %v8890_v49  ;;  %v8886_v57 = vld [vmem:[%s11319_s3 + $0x80] ss:$16 sps:$4 sm:$0xff]  }
0x1b40   :  { %v8888_v53 = vld [vmem:[%s11319_s3 + $0x64] ss:$16 sps:$4 sm:$0xff]   ;;  %v8896_v25 = vld [vmem:[%s11319_s3 + $0xac] ss:$16 sps:$4 sm:$0xff]   ;;  %v8899_v26 = vld [vmem:[%s11319_s3 + $0xa8] ss:$16 sps:$4 sm:$0xff]  }
0x1b41   :  { %v8902_v28 = vld [vmem:[%s11319_s3 + $0x8c] ss:$16 sps:$4 sm:$0xff]   ;;  %v8892_v29 = vld [vmem:[%s11319_s3 + $0x60] ss:$16 sps:$4 sm:$0xff]   ;;  %v8894_v30 = vld [vmem:[%s11319_s3 + $0x44] ss:$16 sps:$4 sm:$0xff]  }
0x1b42   :  { %5595 = vmatpush1.bf16.msra.mxu0 %v8878_v56  ;;  %5638 = vmatpush1.bf16.msra.mxu1 %v8893_v24  ;;  %v8905_v31 = vld [vmem:[%s11319_s3 + $0x88] ss:$16 sps:$4 sm:$0xff]   ;;  %v8908_v32 = vld [vmem:[%s11319_s3 + $0x6c] ss:$16 sps:$4 sm:$0xff]   ;;  %v8898_v61 = vld [vmem:[%s11319_s3 + $0x40] ss:$16 sps:$4 sm:$0xff]  }
0x1b43   :  { %5596 = vmatprep.subr.bf16.mxu0 %v8879_v20  ;;  %5639 = vmatprep.subr.bf16.mxu1 %v8896_v25  ;;  %v8900_v33 = vld [vmem:[%s11319_s3 + $0x24] ss:$16 sps:$4 sm:$0xff]   ;;  %v8911_v35 = vld [vmem:[%s11319_s3 + $0x68] ss:$16 sps:$4 sm:$0xff]   ;;  %v8904_v36 = vld [vmem:[%s11319_s3 + $0x20] ss:$16 sps:$4 sm:$0xff]  }
0x1b44   :  { %v8912_v39 = vld [vmem:[%s11319_s3 + $0x4c] ss:$16 sps:$4 sm:$0xff]   ;;  %v8906_v46 = vld [vmem:[%s11319_s3 + $0x4] ss:$16 sps:$4 sm:$0xff]   ;;  %v8914_v47 = vld [vmem:[%s11319_s3 + $0x48] ss:$16 sps:$4 sm:$0xff]  }
0x1b45   :  { %v8915_v50 = vld [vmem:[%s11319_s3 + $0x2c] ss:$16 sps:$4 sm:$0xff]   ;;  %v8910_v51 = vld [vmem:[%s11319_s3] ss:$16 sps:$4 sm:$0xff]   ;;  %v8917_v58 = vld [vmem:[%s11319_s3 + $0x28] ss:$16 sps:$4 sm:$0xff]  }
0x1b46   :  { %5597 = vmatpush1.bf16.msra.mxu0 %v8881_v22  ;;  %5640 = vmatpush1.bf16.msra.mxu1 %v8899_v26  ;;  %v5397_v54 = vld [vmem:[#allocation2] sm:$0xff]  ;;  %v5398_v55 = vld [vmem:[#allocation2 + $0x8] sm:$0xff]  ;;  %v8921_v0 = vld [vmem:[%s11322_s6 + $0x38] sm:$0xff]   ;;  %s7556_s16 = sld [smem:[#allocation7 + $0x6]] }
0x1b47   :  { %5598 = vmatprep.subr.bf16.mxu0 %v8882_v23  ;;  %5641 = vmatprep.subr.bf16.mxu1 %v8902_v28  ;;  %v8918_v59 = vld [vmem:[%s11319_s3 + $0xc] ss:$16 sps:$4 sm:$0xff]   ;;  %v5399_v62 = vpack.c.bf16 %v5398_v55, %v5397_v54  ;;  %v8920_v63 = vld [vmem:[%s11319_s3 + $0x8] ss:$16 sps:$4 sm:$0xff]   ;;  %v8922_v1 = vld [vmem:[%s11322_s6 + $0x30] sm:$0xff]  }
0x1b48   :  { %v8923_v3 = vld [vmem:[%s11322_s6 + $0x28] sm:$0xff]   ;;  %v8924_v4 = vld [vmem:[%s11322_s6 + $0x20] sm:$0xff]   ;;  %v8925_v5 = vld [vmem:[%s11322_s6 + $0x18] sm:$0xff]  }
0x1b49   :  { %v8926_v6 = vld [vmem:[%s11322_s6 + $0x10] sm:$0xff]   ;;  %v8927_v7 = vld [vmem:[%s11322_s6 + $0x8] sm:$0xff]   ;;  %v8928_v8 = vld [vmem:[%s11322_s6] sm:$0xff]  }
0x1b4a   :  { %5599 = vmatpush1.bf16.msra.mxu0 %v8886_v57  ;;  %5642 = vmatpush1.bf16.msra.mxu1 %v8905_v31  ;;  %v5389_v9 = vld [vmem:[#allocation5] sm:$0xff]  ;;  %v5390_v43 = vld [vmem:[#allocation5 + $0x38] sm:$0xff]  ;;  %v5394_v14 = vld [vmem:[#allocation5 + $0x10] sm:$0xff] }
0x1b4b   :  { %5600 = vmatprep.subr.bf16.mxu0 %v8888_v53  ;;  %5643 = vmatprep.subr.bf16.mxu1 %v8908_v32  ;;  %v5393_v12 = vld [vmem:[#allocation5 + $0x20] sm:$0xff]  ;;  %v5391_v19 = vld [vmem:[#allocation5 + $0x8] sm:$0xff]  ;;  %v5392_v60 = vld [vmem:[#allocation5 + $0x18] sm:$0xff] }
0x1b4c   :  { %v5395_v22 = vld [vmem:[#allocation5 + $0x30] sm:$0xff]  ;;  %v5396_v26 = vld [vmem:[#allocation5 + $0x28] sm:$0xff]  ;;  %p7557_p6 = scmp.ne.s32.totalorder %s7556_s16, 0 }
0x1b4e   :  { %5601 = vmatpush1.bf16.msra.mxu0 %v8892_v29  ;;  %5644 = vmatpush1.bf16.msra.mxu1 %v8911_v35 }
0x1b4f   :  { %5602 = vmatprep.subr.bf16.mxu0 %v8894_v30  ;;  %5645 = vmatprep.subr.bf16.mxu1 %v8912_v39 }
0x1b52   :  { %5603 = vmatpush1.bf16.msra.mxu0 %v8898_v61  ;;  %5646 = vmatpush1.bf16.msra.mxu1 %v8914_v47 }
0x1b53   :  { %5604 = vmatprep.subr.bf16.mxu0 %v8900_v33  ;;  %5647 = vmatprep.subr.bf16.mxu1 %v8915_v50  ;;  %v5724_v50 = vld [vmem:[#allocation3 + $0x8] sm:$0xff] }
0x1b56   :  { %5605 = vmatpush1.bf16.msra.mxu0 %v8904_v36  ;;  %5648 = vmatpush1.bf16.msra.mxu1 %v8917_v58 }
0x1b57   :  { %5606 = vmatprep.subr.bf16.mxu0 %v8906_v46  ;;  %5649 = vmatprep.subr.bf16.mxu1 %v8918_v59 }
0x1b5a   :  { %5607 = vmatpush1.bf16.msra.mxu0 %v8910_v51  ;;  %5650 = vmatpush1.bf16.msra.mxu1 %v8920_v63  ;;  %v5725_v63 = vld [vmem:[#allocation3] sm:$0xff] }
0x1b5b   :  { %7994 = vmatprep.subr.bf16.mxu0 %v9129_v27 }
0x1b5d   :  { %5625 = vmatmul.mubr.bf16.vlgmr.msra.gmra.mxu0 %v5399_v62  ;;  %5668 = vmatmul.mubr.bf16.vlgmr.msra.gmra.mxu1 %v5399_v62 }
0x1b5e   :  { %8010 = vmatprep.mubr.msk.bf16.mxu0 %vm9130_vm0, %v9129_v27  ;;  %7995 = vmatpush3.bf16.msra.mxu0 %v8921_v0 }
0x1b5f   :  { %7996 = vmatprep.subr.bf16.mxu0 %v9129_v27 }
0x1b62   :  { %7997 = vmatpush3.bf16.msra.mxu0 %v8922_v1 }
0x1b63   :  { %7998 = vmatprep.subr.bf16.mxu0 %v9129_v27 }
0x1b66   :  { %7999 = vmatpush3.bf16.msra.mxu0 %v8923_v3 }
0x1b67   :  { %8000 = vmatprep.subr.bf16.mxu0 %v9129_v27 }
0x1b6a   :  { %8001 = vmatpush3.bf16.msra.mxu0 %v8924_v4 }
0x1b6b   :  { %8002 = vmatprep.subr.bf16.mxu0 %v9129_v27 }
0x1b6e   :  { %8003 = vmatpush3.bf16.msra.mxu0 %v8925_v5 }
0x1b6f   :  { %8004 = vmatprep.subr.bf16.mxu0 %v9129_v27 }
0x1b72   :  { %8005 = vmatpush3.bf16.msra.mxu0 %v8926_v6 }
0x1b73   :  { %8006 = vmatprep.subr.bf16.mxu0 %v9129_v27 }
0x1b76   :  { %8007 = vmatpush3.bf16.msra.mxu0 %v8927_v7 }
0x1b77   :  { %8008 = vmatprep.subr.bf16.mxu0 %v9129_v27 }
0x1b7a   :  { %8009 = vmatpush3.bf16.msra.mxu0 %v8928_v8 }
0x1c1d   :  { %v5626_v42 = vpop.f32.mrf.mxu0  ;;  %v5669_v18 = vpop.f32.mrf.mxu1 }
0x1c1e   :  { %v5678_v10 = vadd.f32 %v5626_v42, %v5389_v9  ;;  %v5680_v20 = vadd.f32 %v5669_v18, %v5391_v19 }
0x1c1f   :  { %v5628_v11 = vpop.f32.mrf.mxu0  ;;  %v5671_v21 = vpop.f32.mrf.mxu1 }
0x1c20   :  { %v7539_v44 = vmul.f32 -1.442695, %v5678_v10  ;;  %v5679_v45 = vadd.f32 %v5628_v11, %v5390_v43  ;;  %v7541_v23 = vmul.f32 -1.442695, %v5680_v20  ;;  %v5681_v24 = vadd.f32 %v5671_v21, %v5392_v60 }
0x1c21   :  { %v5630_v13 = vpop.f32.mrf.mxu0  ;;  %v5673_v49 = vpop.f32.mrf.mxu1 }
0x1c22   :  { %8929 = vpow2.f32 %v7539_v44  ;;  %v7540_v48 = vmul.f32 -1.442695, %v5679_v45  ;;  %v5682_v15 = vadd.f32 %v5630_v13, %v5393_v12  ;;  %v5684_v57 = vadd.f32 %v5673_v49, %v5395_v22  ;;  %v7545_v44 = vld [vmem:[%s11323_s7] ss:$0 sm:$0xff] }
0x1c23   :  { %v5632_v16 = vpop.f32.mrf.mxu0  ;;  %v5675_v28 = vpop.f32.mrf.mxu1 }
0x1c24   :  { %8931 = vpow2.f32 %v7540_v48  ;;  %v7542_v52 = vmul.f32 -1.442695, %v5682_v15  ;;  %v5683_v17 = vadd.f32 %v5632_v16, %v5394_v14  ;;  %v7544_v30 = vmul.f32 -1.442695, %v5684_v57 }
0x1c25   :  { %v5685_v61 = vadd.f32 %v5675_v28, %v5396_v26 }
0x1c26   :  { %8933 = vpow2.f32 %v7542_v52  ;;  %v7543_v56 = vmul.f32 -1.442695, %v5683_v17 }
0x1c28   :  { %8935 = vpow2.f32 %v7543_v56 }
0x1c29   :  { %8937 = vpow2.f32 %v7541_v23 }
0x1c2a   :  { %8939 = vtanh.f32 %v5681_v24 }
0x1c2f   :  { %v8930_v53 = vpop.eup %8929 }
0x1c30   :  { %v5704_v25 = vadd.f32 1.0, %v8930_v53 }
0x1c31   :  { %v8932_v29 = vpop.eup %8931 }
0x1c32   :  { %8941 = vrcp.f32 %v5704_v25  ;;  %v5705_v31 = vadd.f32 1.0, %v8932_v29 }
0x1c33   :  { %v8934_v32 = vpop.eup %8933 }
0x1c34   :  { %8943 = vrcp.f32 %v5705_v31  ;;  %v5707_v33 = vadd.f32 1.0, %v8934_v32 }
0x1c35   :  { %v8936_v35 = vpop.eup %8935  ;;  %8945 = vpow2.f32 %v7544_v30 }
0x1c36   :  { %8947 = vrcp.f32 %v5707_v33  ;;  %v5708_v36 = vadd.f32 1.0, %v8936_v35  ;;  %v8938_v39 = vpop.eup %8937 }
0x1c37   :  { %8949 = vtanh.f32 %v5685_v61  ;;  %v8940_v46 = vpop.eup %8939  ;;  %v5706_v54 = vadd.f32 1.0, %v8938_v39 }
0x1c38   :  { %8951 = vrcp.f32 %v5708_v36 }
0x1c39   :  { %8953 = vrcp.f32 %v5706_v54 }
0x1c3f   :  { %v8942_v47 = vpop.eup %8941 }
0x1c40   :  { %v5728_v59 = vmul.f32 %v8942_v47, %v8940_v46 }
0x1c41   :  { %v8944_v51 = vpop.eup %8943 }
0x1c42   :  { %v8946_v55 = vpop.eup %8945  ;;  %v5726_v58 = vmul.f32 %v8944_v51, %v5724_v50 }
0x1c43   :  { %v8948_v62 = vpop.eup %8947  ;;  %v5709_v4 = vadd.f32 1.0, %v8946_v55 }
0x1c44   :  { %v8950_v0 = vpop.eup %8949  ;;  %v5730_v1 = vadd.f32 %v5728_v59, %v5726_v58 }
0x1c45   :  { %v8952_v3 = vpop.eup %8951  ;;  %v5729_v6 = vmul.f32 %v8950_v0, %v8948_v62 }
0x1c46   :  { %8955 = vtanh.f32 %v5730_v1  ;;  %5736 = vst [vmem:[#allocation3 + $0x8] sm:$0xff] %v5730_v1  ;;  %v5727_v5 = vmul.f32 %v8952_v3, %v5725_v63  ;;  %v8954_v8 = vpop.eup %8953 }
0x1c47   :  { %8957 = vrcp.f32 %v5709_v4 }
0x1c48   :  { %v5731_v7 = vadd.f32 %v5729_v6, %v5727_v5 }
0x1c4a   :  { %8959 = vtanh.f32 %v5731_v7  ;;  %5737 = vst [vmem:[#allocation3] sm:$0xff] %v5731_v7 }
0x1c53   :  { %v8956_v9 = vpop.eup %8955 }
0x1c54   :  { %v5734_v42 = vmul.f32 %v8956_v9, %v8954_v8  ;;  %v8958_v43 = vpop.eup %8957 }
0x1c56   :  { %5738 = vst [vmem:[#allocation2] sm:$0xff] %v5734_v42 }
0x1c57   :  { %v8960_v10 = vpop.eup %8959 }
0x1c58   :  { %v5735_v11 = vmul.f32 %v8960_v10, %v8958_v43 }
0x1c5a   :  { %5739 = vst [vmem:[#allocation2 + $0x8] sm:$0xff] %v5735_v11  ;;  %v5740_v12 = vpack.c.bf16 %v5735_v11, %v5734_v42 }
0x1c5c   :  { %8011 = vmatmul.mubr.bf16.vlgmr.msra.gmra.mxu0 %v5740_v12 }
0x1d1c   :  { %v5846_v45 = vpop.f32.mrf.mxu0 }
0x1d1d   :  { %v5847_v13 = vadd.f32 %v7545_v44, %v5846_v45 }
0x1d1e   :  { %v8012_v14 = vpop.f32.mrf.mxu0 }
0x1d1f   :  { %7554 = vst [vmem:[%s11326_s10 + $0x50] sm:$0xff] %v5847_v13  ;;  %5860 = sbr.rel (%p7557_p6) target bundleno = 8091 (0x1f9b), region = 109 }
0x1d20   :  { %v5849_v48 = vpop.f32.mrf.mxu0 }
0x1d21   :  { %v5850_v15 = vadd.f32 %v7545_v44, %v5849_v48 }
0x1d22   :  { %v8013_v16 = vpop.f32.mrf.mxu0 }
0x1d23   :  { %7555 = vst [vmem:[%s11326_s10 + $0x58] sm:$0xff] %v5850_v15 }
0x1d24   :  { %5863 = vmax.xlane.f32.xlu0 %v5847_v13  ;;  %v11011_v52 = vand.u32 127, %v104_v34  ;;  %v8961_v23 = vld [vmem:[%s11321_s5 + $0x38] sm:$0xff]   ;;  %v9151_v49 = vmov 0.0   ;;  %v8962_v24 = vld [vmem:[%s11321_s5 + $0x30] sm:$0xff]   ;;  %v8963_v57 = vld [vmem:[%s11321_s5 + $0x28] sm:$0xff]   ;;  %vm9152_vm15 = vmmov 0  }
0x1d25   :  { %8014 = vmatprep.subr.bf16.mxu0 %v9151_v49  ;;  %v8964_v53 = vld [vmem:[%s11321_s5 + $0x20] sm:$0xff]   ;;  %v8965_v25 = vld [vmem:[%s11321_s5 + $0x18] sm:$0xff]   ;;  %v8966_v26 = vld [vmem:[%s11321_s5 + $0x10] sm:$0xff]   ;;  %8030 = vmatprep.mubr.msk.bf16.mxu0 %vm9152_vm15, %v9151_v49  ;;  %v9153_v0 = vmov 1.0|1.0  }
0x1d26   :  { %8015 = vmatpush3.bf16.msra.mxu0 %v8961_v23  ;;  %v8967_v36 = vld [vmem:[%s11321_s5 + $0x8] sm:$0xff]   ;;  %v8968_v39 = vld [vmem:[%s11321_s5] sm:$0xff]  }
0x1d27   :  { %8016 = vmatprep.subr.bf16.mxu0 %v9151_v49 }
0x1d28   :  { %5865 = vmax.xlane.f32.xlu0 %v5850_v15 }
0x1d2a   :  { %8017 = vmatpush3.bf16.msra.mxu0 %v8962_v24 }
0x1d2b   :  { %8018 = vmatprep.subr.bf16.mxu0 %v9151_v49 }
0x1d2e   :  { %8019 = vmatpush3.bf16.msra.mxu0 %v8963_v57 }
0x1d2f   :  { %8020 = vmatprep.subr.bf16.mxu0 %v9151_v49 }
0x1d32   :  { %8021 = vmatpush3.bf16.msra.mxu0 %v8964_v53 }
0x1d33   :  { %8022 = vmatprep.subr.bf16.mxu0 %v9151_v49 }
0x1d36   :  { %8023 = vmatpush3.bf16.msra.mxu0 %v8965_v25 }
0x1d37   :  { %8024 = vmatprep.subr.bf16.mxu0 %v9151_v49 }
0x1d3a   :  { %8025 = vmatpush3.bf16.msra.mxu0 %v8966_v26 }
0x1d3b   :  { %8026 = vmatprep.subr.bf16.mxu0 %v9151_v49 }
0x1d3e   :  { %8027 = vmatpush3.bf16.msra.mxu0 %v8967_v36 }
0x1d3f   :  { %8028 = vmatprep.subr.bf16.mxu0 %v9151_v49 }
0x1d42   :  { %8029 = vmatpush3.bf16.msra.mxu0 %v8968_v39 }
0x1dad   :  { %v5864_v17 = vpop.xlane.xlu0 %5863 }
0x1dae   :  { %vm5867_vm11 = vcmp.eq.f32.partialorder %v5847_v13, %v5864_v17 }
0x1daf   :  { %v5869_v18 = vsel %vm5867_vm11, %v11011_v52, 128 }
0x1db0   :  { %v5872_v19 = vshra.s32 %v5869_v18, 16  ;;  %v5871_v28 = vand.u32 65535, %v5869_v18 }
0x1db1   :  { %v5866_v56 = vpop.xlane.xlu0 %5865 }
0x1db2   :  { %vm5868_vm12 = vcmp.eq.f32.partialorder %v5850_v15, %v5866_v56  ;;  %v5874_v20 = vcvt.s32.f32 %v5872_v19  ;;  %v5873_v31 = vcvt.s32.f32 %v5871_v28 }
0x1db3   :  { %v5870_v21 = vsel %vm5868_vm12, %v11011_v52, 128 }
0x1db4   :  { %5875 = vmin.xlane.f32.xlu1 %v5874_v20  ;;  %v5886_v60 = vshra.s32 %v5870_v21, 16  ;;  %v5885_v29 = vand.u32 65535, %v5870_v21 }
0x1db6   :  { %v5888_v22 = vcvt.s32.f32 %v5886_v60  ;;  %v5887_v33 = vcvt.s32.f32 %v5885_v29 }
0x1db8   :  { %5889 = vmin.xlane.f32.xlu1 %v5888_v22 }
0x1e3d   :  { %v5876_v30 = vpop.xlane.xlu1 %5875 }
0x1e3e   :  { %vm5877_vm13 = vcmp.eq.f32.partialorder %v5874_v20, %v5876_v30  ;;  %v5882_v46 = vcvt.f32.s32 %v5876_v30 }
0x1e3f   :  { %v5878_v32 = vsel %vm5877_vm13, %v5873_v31, inf }
0x1e40   :  { %5879 = vmin.xlane.f32.xlu0 %v5878_v32  ;;  %v5883_v54 = vshll.u32 %v5882_v46, 16 }
0x1e41   :  { %v5890_v61 = vpop.xlane.xlu1 %5889 }
0x1e42   :  { %vm5891_vm14 = vcmp.eq.f32.partialorder %v5888_v22, %v5890_v61  ;;  %v5896_v50 = vcvt.f32.s32 %v5890_v61 }
0x1e43   :  { %v5892_v35 = vsel %vm5891_vm14, %v5887_v33, inf }
0x1e44   :  { %5893 = vmin.xlane.f32.xlu1 %v5892_v35  ;;  %v5897_v58 = vshll.u32 %v5896_v50, 16 }
0x1ec9   :  { %v5880_v47 = vpop.xlane.xlu0 %5879 }
0x1eca   :  { %v5881_v51 = vcvt.f32.s32 %v5880_v47 }
0x1ecc   :  { %v5884_v59 = vadd.s32 %v5883_v54, %v5881_v51 }
0x1ecd   :  { %v5894_v55 = vpop.xlane.xlu1 %5893 }
0x1ece   :  { %v5895_v62 = vcvt.f32.s32 %v5894_v55  ;;  %vm5899_vm1 = vcmp.eq.s32.totalorder %v11011_v52, %v5884_v59 }
0x1ed0   :  { %v5898_v63 = vadd.s32 %v5897_v58, %v5895_v62 }
0x1ed2   :  { %vm5900_vm2 = vcmp.eq.s32.totalorder %v11011_v52, %v5898_v63 }
0x1ed3   :  { %vm7568_vm3 = vmpackc.low %vm5900_vm2, %vm5899_vm1 }
0x1ed4   :  { %8031 = vmatmul.mubr.msk.bf16.vlgmr.msra.gmra.mxu0 %vm7568_vm3, %v9153_v0 }
0x1f94   :  { %v6004_v1 = vpop.f32.mrf.mxu0 }
0x1f95   :  { %6011 = vst [vmem:[#allocation4 + $0x8] sm:$0xff] %v6004_v1 }
0x1f96   :  { %v8032_v3 = vpop.f32.mrf.mxu0 }
0x1f98   :  { %v6007_v4 = vpop.f32.mrf.mxu0 }
0x1f99   :  { %6012 = vst [vmem:[#allocation4] sm:$0xff] %v6007_v4 }
0x1f9a   :  { %v8033_v5 = vpop.f32.mrf.mxu0 }
0x1f9b PF:  { %s7570_s15 = sld [smem:[#allocation7 + $0x6]] }
0x1fa1   :  { %p7571_p7 = scmp.eq.s32.totalorder %s7570_s15, 0 }
0x1fa3   :  { %6017 = sbr.rel (%p7571_p7) target bundleno = 8109 (0x1fad), region = 113 }
0x1fa8   :  { %v6021_v6 = vld [vmem:[#allocation6 + $0x10] sm:$0xff]  ;;  %v6023_v8 = vld [vmem:[#allocation6] sm:$0xff]  ;;  %v6025_v42 = vld [vmem:[#allocation6 + $0x148] sm:$0xff] }
0x1fa9   :  { %v6022_v7 = vld [vmem:[#allocation6 + $0x110] sm:$0xff]  ;;  %6029 = vst [vmem:[#allocation5] sm:$0xff] %v6021_v6  ;;  %6031 = vst [vmem:[#allocation5 + $0x8] sm:$0xff] %v6023_v8  ;;  %v6024_v9 = vld [vmem:[#allocation6 + $0x180] sm:$0xff] }
0x1faa   :  { %6030 = vst [vmem:[#allocation5 + $0x38] sm:$0xff] %v6022_v7  ;;  %v6026_v43 = vld [vmem:[#allocation6 + $0x20] sm:$0xff]  ;;  %6032 = vst [vmem:[#allocation5 + $0x18] sm:$0xff] %v6024_v9  ;;  %v6028_v11 = vld [vmem:[#allocation6 + $0x78] sm:$0xff] }
0x1fab   :  { %6033 = vst [vmem:[#allocation5 + $0x20] sm:$0xff] %v6025_v42  ;;  %6034 = vst [vmem:[#allocation5 + $0x10] sm:$0xff] %v6026_v43  ;;  %v6027_v10 = vld [vmem:[#allocation6 + $0x60] sm:$0xff] }
0x1fac   :  { %6035 = vst [vmem:[#allocation5 + $0x30] sm:$0xff] %v6027_v10  ;;  %6036 = vst [vmem:[#allocation5 + $0x28] sm:$0xff] %v6028_v11 }
0x1fad PF:  { %p7572_p8 = scmp.ne.s32.totalorder %s7570_s15, 0 }
0x1faf   :  { %6040 = sbr.rel (%p7572_p8) target bundleno = 8352 (0x20a0), region = 117 }
0x1fb4   :  { %v8969_v12 = vld [vmem:[%s11318_s2 + $0xe4] ss:$16 sps:$4 sm:$0xff]   ;;  %v8971_v44 = vld [vmem:[%s11318_s2 + $0xec] ss:$16 sps:$4 sm:$0xff]   ;;  %v9154_v45 = vmov 0  }
0x1fb5   :  { %6290 = vmatprep.mubr.bf16.mxu0 %v9154_v45  ;;  %6333 = vmatprep.mubr.bf16.mxu1 %v9154_v45  ;;  %v8973_v13 = vld [vmem:[%s11318_s2 + $0xe0] ss:$16 sps:$4 sm:$0xff]   ;;  %v8974_v14 = vld [vmem:[%s11318_s2 + $0xe8] ss:$16 sps:$4 sm:$0xff]   ;;  %v8975_v48 = vld [vmem:[%s11318_s2 + $0xc4] ss:$16 sps:$4 sm:$0xff]  }
0x1fb6   :  { %6258 = vmatprep.subr.bf16.mxu0 %v8969_v12  ;;  %6301 = vmatprep.subr.bf16.mxu1 %v8971_v44  ;;  %v8977_v15 = vld [vmem:[%s11318_s2 + $0xcc] ss:$16 sps:$4 sm:$0xff]   ;;  %v8979_v16 = vld [vmem:[%s11318_s2 + $0xc0] ss:$16 sps:$4 sm:$0xff]   ;;  %v8980_v52 = vld [vmem:[%s11318_s2 + $0xc8] ss:$16 sps:$4 sm:$0xff]  }
0x1fb7   :  { %6259 = vmatpush1.bf16.msra.mxu0 %v8973_v13  ;;  %6302 = vmatpush1.bf16.msra.mxu1 %v8974_v14  ;;  %v8981_v17 = vld [vmem:[%s11318_s2 + $0xa4] ss:$16 sps:$4 sm:$0xff]   ;;  %v8983_v18 = vld [vmem:[%s11318_s2 + $0xac] ss:$16 sps:$4 sm:$0xff]   ;;  %v8985_v19 = vld [vmem:[%s11318_s2 + $0xa0] ss:$16 sps:$4 sm:$0xff]  }
0x1fb8   :  { %6260 = vmatprep.subr.bf16.mxu0 %v8975_v48  ;;  %6303 = vmatprep.subr.bf16.mxu1 %v8977_v15  ;;  %v8986_v56 = vld [vmem:[%s11318_s2 + $0xa8] ss:$16 sps:$4 sm:$0xff]   ;;  %v8987_v20 = vld [vmem:[%s11318_s2 + $0x84] ss:$16 sps:$4 sm:$0xff]   ;;  %v8989_v21 = vld [vmem:[%s11318_s2 + $0x8c] ss:$16 sps:$4 sm:$0xff]  }
0x1fb9   :  { %v8991_v60 = vld [vmem:[%s11318_s2 + $0x80] ss:$16 sps:$4 sm:$0xff]   ;;  %v8992_v22 = vld [vmem:[%s11318_s2 + $0x88] ss:$16 sps:$4 sm:$0xff]   ;;  %v8993_v23 = vld [vmem:[%s11318_s2 + $0x64] ss:$16 sps:$4 sm:$0xff]  }
0x1fba   :  { %v8995_v49 = vld [vmem:[%s11318_s2 + $0x6c] ss:$16 sps:$4 sm:$0xff]   ;;  %v8997_v24 = vld [vmem:[%s11318_s2 + $0x60] ss:$16 sps:$4 sm:$0xff]   ;;  %v8998_v57 = vld [vmem:[%s11318_s2 + $0x68] ss:$16 sps:$4 sm:$0xff]  }
0x1fbb   :  { %6261 = vmatpush1.bf16.msra.mxu0 %v8979_v16  ;;  %6304 = vmatpush1.bf16.msra.mxu1 %v8980_v52  ;;  %v8999_v53 = vld [vmem:[%s11318_s2 + $0x44] ss:$16 sps:$4 sm:$0xff]   ;;  %v9001_v25 = vld [vmem:[%s11318_s2 + $0x4c] ss:$16 sps:$4 sm:$0xff]   ;;  %v9003_v26 = vld [vmem:[%s11318_s2 + $0x40] ss:$16 sps:$4 sm:$0xff]  }
0x1fbc   :  { %6262 = vmatprep.subr.bf16.mxu0 %v8981_v17  ;;  %6305 = vmatprep.subr.bf16.mxu1 %v8983_v18  ;;  %v9004_v28 = vld [vmem:[%s11318_s2 + $0x48] ss:$16 sps:$4 sm:$0xff]   ;;  %v9005_v29 = vld [vmem:[%s11318_s2 + $0x24] ss:$16 sps:$4 sm:$0xff]   ;;  %v9007_v30 = vld [vmem:[%s11318_s2 + $0x2c] ss:$16 sps:$4 sm:$0xff]  }
0x1fbd   :  { %v9009_v31 = vld [vmem:[%s11318_s2 + $0x20] ss:$16 sps:$4 sm:$0xff]   ;;  %v9010_v32 = vld [vmem:[%s11318_s2 + $0x28] ss:$16 sps:$4 sm:$0xff]   ;;  %v9011_v61 = vld [vmem:[%s11318_s2 + $0x4] ss:$16 sps:$4 sm:$0xff]  }
0x1fbe   :  { %v9013_v33 = vld [vmem:[%s11318_s2 + $0xc] ss:$16 sps:$4 sm:$0xff]   ;;  %v9015_v35 = vld [vmem:[%s11318_s2] ss:$16 sps:$4 sm:$0xff]   ;;  %v9016_v36 = vld [vmem:[%s11318_s2 + $0x8] ss:$16 sps:$4 sm:$0xff]  }
0x1fbf   :  { %6263 = vmatpush1.bf16.msra.mxu0 %v8985_v19  ;;  %6306 = vmatpush1.bf16.msra.mxu1 %v8986_v56  ;;  %v6041_v39 = vld [vmem:[#allocation4 + $0x8] sm:$0xff]  ;;  %v6042_v46 = vld [vmem:[#allocation4] sm:$0xff] }
0x1fc0   :  { %6264 = vmatprep.subr.bf16.mxu0 %v8987_v20  ;;  %6307 = vmatprep.subr.bf16.mxu1 %v8989_v21  ;;  %v6043_v47 = vpack.c.bf16 %v6042_v46, %v6041_v39  ;;  %v6076_v50 = vld [vmem:[%s11320_s4] sm:$0xf] }
0x1fc1   :  { %v6081_v51 = vrot.slane %v6076_v50, %v9509_v37  ;;  %v6089_v54 = vrot.slane %v6076_v50, %v9511_v38  ;;  %v6085_v55 = vrot.slane %v6076_v50, %v9516_v40  ;;  %v6093_v58 = vrot.slane %v6076_v50, %v9518_v41 }
0x1fc3   :  { %6265 = vmatpush1.bf16.msra.mxu0 %v8991_v60  ;;  %6308 = vmatpush1.bf16.msra.mxu1 %v8992_v22 }
0x1fc4   :  { %6266 = vmatprep.subr.bf16.mxu0 %v8993_v23  ;;  %6309 = vmatprep.subr.bf16.mxu1 %v8995_v49 }
0x1fc7   :  { %6267 = vmatpush1.bf16.msra.mxu0 %v8997_v24  ;;  %6310 = vmatpush1.bf16.msra.mxu1 %v8998_v57 }
0x1fc8   :  { %6268 = vmatprep.subr.bf16.mxu0 %v8999_v53  ;;  %6311 = vmatprep.subr.bf16.mxu1 %v9001_v25 }
0x1fcb   :  { %6269 = vmatpush1.bf16.msra.mxu0 %v9003_v26  ;;  %6312 = vmatpush1.bf16.msra.mxu1 %v9004_v28 }
0x1fcc   :  { %6270 = vmatprep.subr.bf16.mxu0 %v9005_v29  ;;  %6313 = vmatprep.subr.bf16.mxu1 %v9007_v30 }
0x1fcf   :  { %6271 = vmatpush1.bf16.msra.mxu0 %v9009_v31  ;;  %6314 = vmatpush1.bf16.msra.mxu1 %v9010_v32 }
0x1fd0   :  { %6272 = vmatprep.subr.bf16.mxu0 %v9011_v61  ;;  %6315 = vmatprep.subr.bf16.mxu1 %v9013_v33 }
0x1fd3   :  { %6273 = vmatpush1.bf16.msra.mxu0 %v9015_v35  ;;  %6316 = vmatpush1.bf16.msra.mxu1 %v9016_v36 }
0x1fd6   :  { %6291 = vmatmul.mubr.bf16.vlgmr.msra.gmra.mxu0 %v6043_v47  ;;  %6334 = vmatmul.mubr.bf16.vlgmr.msra.gmra.mxu1 %v6043_v47 }
0x2096   :  { %v6292_v59 = vpop.f32.mrf.mxu0  ;;  %v6335_v62 = vpop.f32.mrf.mxu1 }
0x2097   :  { %v6293_v63 = vadd.f32 %v6292_v59, %v6081_v51  ;;  %v6336_v0 = vadd.f32 %v6335_v62, %v6089_v54 }
0x2098   :  { %v6294_v1 = vpop.f32.mrf.mxu0  ;;  %v6337_v3 = vpop.f32.mrf.mxu1 }
0x2099   :  { %6344 = vst [vmem:[#allocation5] sm:$0xff] %v6293_v63  ;;  %6346 = vst [vmem:[#allocation5 + $0x8] sm:$0xff] %v6336_v0  ;;  %v6295_v4 = vadd.f32 %v6294_v1, %v6085_v55  ;;  %v6338_v5 = vadd.f32 %v6337_v3, %v6093_v58 }
0x209a   :  { %v6296_v6 = vpop.f32.mrf.mxu0  ;;  %v6339_v7 = vpop.f32.mrf.mxu1 }
0x209b   :  { %6345 = vst [vmem:[#allocation5 + $0x38] sm:$0xff] %v6295_v4  ;;  %6347 = vst [vmem:[#allocation5 + $0x18] sm:$0xff] %v6338_v5  ;;  %v6297_v37 = vadd.f32 %v6296_v6, %v6081_v51  ;;  %v6340_v38 = vadd.f32 %v6339_v7, %v6089_v54 }
0x209c   :  { %v6298_v8 = vpop.f32.mrf.mxu0  ;;  %v6341_v40 = vpop.f32.mrf.mxu1 }
0x209d   :  { %6348 = vst [vmem:[#allocation5 + $0x20] sm:$0xff] %v6297_v37  ;;  %6350 = vst [vmem:[#allocation5 + $0x30] sm:$0xff] %v6340_v38  ;;  %v6299_v41 = vadd.f32 %v6298_v8, %v6085_v55  ;;  %v6342_v9 = vadd.f32 %v6341_v40, %v6093_v58 }
0x209f   :  { %6349 = vst [vmem:[#allocation5 + $0x10] sm:$0xff] %v6299_v41  ;;  %6351 = vst [vmem:[#allocation5 + $0x28] sm:$0xff] %v6342_v9 }
0x20a0 PF:  { %v9017_v42 = vld [vmem:[%s11319_s3 + $0xe4] ss:$16 sps:$4 sm:$0xff]   ;;  %6587 = vmatprep.mubr.bf16.mxu0 %v9128_v2  ;;  %6630 = vmatprep.mubr.bf16.mxu1 %v9128_v2  ;;  %v9019_v43 = vld [vmem:[%s11319_s3 + $0xe0] ss:$16 sps:$4 sm:$0xff]   ;;  %v9028_v2 = vld [vmem:[%s11319_s3 + $0xec] ss:$16 sps:$4 sm:$0xff]  }
0x20a1   :  { %6555 = vmatprep.subr.bf16.mxu0 %v9017_v42  ;;  %v9020_v10 = vld [vmem:[%s11319_s3 + $0xc4] ss:$16 sps:$4 sm:$0xff]   ;;  %v9022_v11 = vld [vmem:[%s11319_s3 + $0xc0] ss:$16 sps:$4 sm:$0xff]   ;;  %v9031_v44 = vld [vmem:[%s11319_s3 + $0xe8] ss:$16 sps:$4 sm:$0xff]   ;;  %6598 = vmatprep.subr.bf16.mxu1 %v9028_v2 }
0x20a2   :  { %6556 = vmatpush1.bf16.msra.mxu0 %v9019_v43  ;;  %v9023_v12 = vld [vmem:[%s11319_s3 + $0xa4] ss:$16 sps:$4 sm:$0xff]   ;;  %v9025_v45 = vld [vmem:[%s11319_s3 + $0xa0] ss:$16 sps:$4 sm:$0xff]   ;;  %6599 = vmatpush1.bf16.msra.mxu1 %v9031_v44  ;;  %v9034_v14 = vld [vmem:[%s11319_s3 + $0xcc] ss:$16 sps:$4 sm:$0xff]  }
0x20a3   :  { %6557 = vmatprep.subr.bf16.mxu0 %v9020_v10  ;;  %v9026_v13 = vld [vmem:[%s11319_s3 + $0x84] ss:$16 sps:$4 sm:$0xff]   ;;  %v9037_v48 = vld [vmem:[%s11319_s3 + $0xc8] ss:$16 sps:$4 sm:$0xff]   ;;  %6600 = vmatprep.subr.bf16.mxu1 %v9034_v14  ;;  %v9030_v15 = vld [vmem:[%s11319_s3 + $0x80] ss:$16 sps:$4 sm:$0xff]  }
0x20a4   :  { %v9032_v16 = vld [vmem:[%s11319_s3 + $0x64] ss:$16 sps:$4 sm:$0xff]   ;;  %v9040_v52 = vld [vmem:[%s11319_s3 + $0xac] ss:$16 sps:$4 sm:$0xff]   ;;  %v9043_v17 = vld [vmem:[%s11319_s3 + $0xa8] ss:$16 sps:$4 sm:$0xff]  }
0x20a5   :  { %v9046_v18 = vld [vmem:[%s11319_s3 + $0x8c] ss:$16 sps:$4 sm:$0xff]   ;;  %v9036_v19 = vld [vmem:[%s11319_s3 + $0x60] ss:$16 sps:$4 sm:$0xff]   ;;  %v9038_v56 = vld [vmem:[%s11319_s3 + $0x44] ss:$16 sps:$4 sm:$0xff]  }
0x20a6   :  { %6558 = vmatpush1.bf16.msra.mxu0 %v9022_v11  ;;  %6601 = vmatpush1.bf16.msra.mxu1 %v9037_v48  ;;  %v9049_v20 = vld [vmem:[%s11319_s3 + $0x88] ss:$16 sps:$4 sm:$0xff]   ;;  %v9052_v21 = vld [vmem:[%s11319_s3 + $0x6c] ss:$16 sps:$4 sm:$0xff]   ;;  %v9042_v60 = vld [vmem:[%s11319_s3 + $0x40] ss:$16 sps:$4 sm:$0xff]  }
0x20a7   :  { %6559 = vmatprep.subr.bf16.mxu0 %v9023_v12  ;;  %6602 = vmatprep.subr.bf16.mxu1 %v9040_v52  ;;  %v9044_v22 = vld [vmem:[%s11319_s3 + $0x24] ss:$16 sps:$4 sm:$0xff]   ;;  %v9055_v23 = vld [vmem:[%s11319_s3 + $0x68] ss:$16 sps:$4 sm:$0xff]   ;;  %v9048_v49 = vld [vmem:[%s11319_s3 + $0x20] ss:$16 sps:$4 sm:$0xff]  }
0x20a8   :  { %v9056_v24 = vld [vmem:[%s11319_s3 + $0x4c] ss:$16 sps:$4 sm:$0xff]   ;;  %v9050_v57 = vld [vmem:[%s11319_s3 + $0x4] ss:$16 sps:$4 sm:$0xff]   ;;  %v9058_v53 = vld [vmem:[%s11319_s3 + $0x48] ss:$16 sps:$4 sm:$0xff]  }
0x20a9   :  { %v9059_v25 = vld [vmem:[%s11319_s3 + $0x2c] ss:$16 sps:$4 sm:$0xff]   ;;  %v9054_v26 = vld [vmem:[%s11319_s3] ss:$16 sps:$4 sm:$0xff]   ;;  %v9061_v30 = vld [vmem:[%s11319_s3 + $0x28] ss:$16 sps:$4 sm:$0xff]  }
0x20aa   :  { %6560 = vmatpush1.bf16.msra.mxu0 %v9025_v45  ;;  %6603 = vmatpush1.bf16.msra.mxu1 %v9043_v17  ;;  %v6360_v28 = vld [vmem:[#allocation2] sm:$0xff]  ;;  %v6361_v29 = vld [vmem:[#allocation2 + $0x8] sm:$0xff]  ;;  %v9065_v33 = vld [vmem:[%s11322_s6 + $0x38] sm:$0xff]  }
0x20ab   :  { %6561 = vmatprep.subr.bf16.mxu0 %v9026_v13  ;;  %6604 = vmatprep.subr.bf16.mxu1 %v9046_v18  ;;  %v9062_v31 = vld [vmem:[%s11319_s3 + $0xc] ss:$16 sps:$4 sm:$0xff]   ;;  %v6362_v32 = vpack.c.bf16 %v6361_v29, %v6360_v28  ;;  %v9064_v61 = vld [vmem:[%s11319_s3 + $0x8] ss:$16 sps:$4 sm:$0xff]   ;;  %v9066_v35 = vld [vmem:[%s11322_s6 + $0x30] sm:$0xff]  }
0x20ac   :  { %v9067_v36 = vld [vmem:[%s11322_s6 + $0x28] sm:$0xff]   ;;  %v9068_v39 = vld [vmem:[%s11322_s6 + $0x20] sm:$0xff]   ;;  %v9069_v46 = vld [vmem:[%s11322_s6 + $0x18] sm:$0xff]  }
0x20ad   :  { %v9070_v47 = vld [vmem:[%s11322_s6 + $0x10] sm:$0xff]   ;;  %v9071_v50 = vld [vmem:[%s11322_s6 + $0x8] sm:$0xff]   ;;  %v9072_v51 = vld [vmem:[%s11322_s6] sm:$0xff]   ;;  %s7654_s6 = sld [smem:[#allocation7 + $0x7]] }
0x20ae   :  { %6562 = vmatpush1.bf16.msra.mxu0 %v9030_v15  ;;  %6605 = vmatpush1.bf16.msra.mxu1 %v9049_v20  ;;  %v6352_v54 = vld [vmem:[#allocation5] sm:$0xff]  ;;  %v6353_v58 = vld [vmem:[#allocation5 + $0x38] sm:$0xff]  ;;  %v6357_v4 = vld [vmem:[#allocation5 + $0x10] sm:$0xff] }
0x20af   :  { %6563 = vmatprep.subr.bf16.mxu0 %v9032_v16  ;;  %6606 = vmatprep.subr.bf16.mxu1 %v9052_v21  ;;  %v6356_v63 = vld [vmem:[#allocation5 + $0x20] sm:$0xff]  ;;  %v6355_v42 = vld [vmem:[#allocation5 + $0x18] sm:$0xff]  ;;  %v6358_v43 = vld [vmem:[#allocation5 + $0x30] sm:$0xff] }
0x20b0   :  { %v6359_v13 = vld [vmem:[#allocation5 + $0x28] sm:$0xff] }
0x20b2   :  { %6564 = vmatpush1.bf16.msra.mxu0 %v9036_v19  ;;  %6607 = vmatpush1.bf16.msra.mxu1 %v9055_v23 }
0x20b3   :  { %6565 = vmatprep.subr.bf16.mxu0 %v9038_v56  ;;  %6608 = vmatprep.subr.bf16.mxu1 %v9056_v24  ;;  %p7655_p9 = scmp.ne.s32.totalorder %s7654_s6, 0 }
0x20b6   :  { %6566 = vmatpush1.bf16.msra.mxu0 %v9042_v60  ;;  %6609 = vmatpush1.bf16.msra.mxu1 %v9058_v53 }
0x20b7   :  { %6567 = vmatprep.subr.bf16.mxu0 %v9044_v22  ;;  %6610 = vmatprep.subr.bf16.mxu1 %v9059_v25  ;;  %v6687_v22 = vld [vmem:[#allocation3 + $0x8] sm:$0xff] }
0x20ba   :  { %6568 = vmatpush1.bf16.msra.mxu0 %v9048_v49  ;;  %6611 = vmatpush1.bf16.msra.mxu1 %v9061_v30 }
0x20bb   :  { %6569 = vmatprep.subr.bf16.mxu0 %v9050_v57  ;;  %6612 = vmatprep.subr.bf16.mxu1 %v9062_v31 }
0x20be   :  { %6570 = vmatpush1.bf16.msra.mxu0 %v9054_v26  ;;  %6613 = vmatpush1.bf16.msra.mxu1 %v9064_v61  ;;  %v6688_v26 = vld [vmem:[#allocation3] sm:$0xff] }
0x20bf   :  { %8034 = vmatprep.subr.bf16.mxu0 %v9129_v27 }
0x20c1   :  { %6588 = vmatmul.mubr.bf16.vlgmr.msra.gmra.mxu0 %v6362_v32  ;;  %6631 = vmatmul.mubr.bf16.vlgmr.msra.gmra.mxu1 %v6362_v32 }
0x20c2   :  { %8050 = vmatprep.mubr.msk.bf16.mxu0 %vm9130_vm0, %v9129_v27  ;;  %8035 = vmatpush3.bf16.msra.mxu0 %v9065_v33 }
0x20c3   :  { %8036 = vmatprep.subr.bf16.mxu0 %v9129_v27 }
0x20c6   :  { %8037 = vmatpush3.bf16.msra.mxu0 %v9066_v35 }
0x20c7   :  { %8038 = vmatprep.subr.bf16.mxu0 %v9129_v27 }
0x20ca   :  { %8039 = vmatpush3.bf16.msra.mxu0 %v9067_v36 }
0x20cb   :  { %8040 = vmatprep.subr.bf16.mxu0 %v9129_v27 }
0x20ce   :  { %8041 = vmatpush3.bf16.msra.mxu0 %v9068_v39 }
0x20cf   :  { %8042 = vmatprep.subr.bf16.mxu0 %v9129_v27 }
0x20d2   :  { %8043 = vmatpush3.bf16.msra.mxu0 %v9069_v46 }
0x20d3   :  { %8044 = vmatprep.subr.bf16.mxu0 %v9129_v27 }
0x20d6   :  { %8045 = vmatpush3.bf16.msra.mxu0 %v9070_v47 }
0x20d7   :  { %8046 = vmatprep.subr.bf16.mxu0 %v9129_v27 }
0x20da   :  { %8047 = vmatpush3.bf16.msra.mxu0 %v9071_v50 }
0x20db   :  { %8048 = vmatprep.subr.bf16.mxu0 %v9129_v27  ;;  %v6354_v27 = vld [vmem:[#allocation5 + $0x8] sm:$0xff] }
0x20de   :  { %8049 = vmatpush3.bf16.msra.mxu0 %v9072_v51 }
0x2181   :  { %v6589_v55 = vpop.f32.mrf.mxu0  ;;  %v6632_v8 = vpop.f32.mrf.mxu1 }
0x2182   :  { %v6641_v59 = vadd.f32 %v6589_v55, %v6352_v54  ;;  %v6643_v41 = vadd.f32 %v6632_v8, %v6354_v27  ;;  %v7643_v54 = vld [vmem:[%s11323_s7] ss:$0 sm:$0xff] }
0x2183   :  { %v6591_v62 = vpop.f32.mrf.mxu0  ;;  %v6634_v9 = vpop.f32.mrf.mxu1 }
0x2184   :  { %v7637_v0 = vmul.f32 -1.442695, %v6641_v59  ;;  %v6642_v1 = vadd.f32 %v6591_v62, %v6353_v58  ;;  %v7639_v10 = vmul.f32 -1.442695, %v6643_v41  ;;  %v6644_v12 = vadd.f32 %v6634_v9, %v6355_v42 }
0x2185   :  { %v6593_v3 = vpop.f32.mrf.mxu0  ;;  %v6636_v11 = vpop.f32.mrf.mxu1 }
0x2186   :  { %9073 = vpow2.f32 %v7637_v0  ;;  %v7638_v5 = vmul.f32 -1.442695, %v6642_v1  ;;  %v6645_v6 = vadd.f32 %v6593_v3, %v6356_v63  ;;  %v6647_v2 = vadd.f32 %v6636_v11, %v6358_v43 }
0x2187   :  { %v6595_v7 = vpop.f32.mrf.mxu0  ;;  %v6638_v14 = vpop.f32.mrf.mxu1 }
0x2188   :  { %9075 = vpow2.f32 %v7638_v5  ;;  %v7640_v37 = vmul.f32 -1.442695, %v6645_v6  ;;  %v6646_v38 = vadd.f32 %v6595_v7, %v6357_v4  ;;  %v7642_v15 = vmul.f32 -1.442695, %v6647_v2 }
0x2189   :  { %v6648_v17 = vadd.f32 %v6638_v14, %v6359_v13 }
0x218a   :  { %9077 = vpow2.f32 %v7640_v37  ;;  %v7641_v40 = vmul.f32 -1.442695, %v6646_v38 }
0x218c   :  { %9079 = vpow2.f32 %v7641_v40 }
0x218d   :  { %9081 = vpow2.f32 %v7639_v10 }
0x218e   :  { %9083 = vtanh.f32 %v6644_v12 }
0x2193   :  { %v9074_v44 = vpop.eup %9073 }
0x2194   :  { %v6667_v45 = vadd.f32 1.0, %v9074_v44 }
0x2195   :  { %v9076_v48 = vpop.eup %9075 }
0x2196   :  { %9085 = vrcp.f32 %v6667_v45  ;;  %v6668_v16 = vadd.f32 1.0, %v9076_v48 }
0x2197   :  { %v9078_v52 = vpop.eup %9077 }
0x2198   :  { %9087 = vrcp.f32 %v6668_v16  ;;  %v6670_v18 = vadd.f32 1.0, %v9078_v52 }
0x2199   :  { %v9080_v19 = vpop.eup %9079  ;;  %9089 = vpow2.f32 %v7642_v15 }
0x219a   :  { %9091 = vrcp.f32 %v6670_v18  ;;  %v6671_v56 = vadd.f32 1.0, %v9080_v19  ;;  %v9082_v20 = vpop.eup %9081 }
0x219b   :  { %9093 = vtanh.f32 %v6648_v17  ;;  %v9084_v21 = vpop.eup %9083  ;;  %v6669_v49 = vadd.f32 1.0, %v9082_v20 }
0x219c   :  { %9095 = vrcp.f32 %v6671_v56 }
0x219d   :  { %9097 = vrcp.f32 %v6669_v49 }
0x21a3   :  { %v9086_v60 = vpop.eup %9085 }
0x21a4   :  { %v6691_v53 = vmul.f32 %v9086_v60, %v9084_v21 }
0x21a5   :  { %v9088_v23 = vpop.eup %9087 }
0x21a6   :  { %v9090_v24 = vpop.eup %9089  ;;  %v6689_v57 = vmul.f32 %v9088_v23, %v6687_v22 }
0x21a7   :  { %v9092_v25 = vpop.eup %9091  ;;  %v6672_v31 = vadd.f32 1.0, %v9090_v24 }
0x21a8   :  { %v9094_v28 = vpop.eup %9093  ;;  %v6693_v29 = vadd.f32 %v6691_v53, %v6689_v57 }
0x21a9   :  { %v9096_v30 = vpop.eup %9095  ;;  %v6692_v61 = vmul.f32 %v9094_v28, %v9092_v25 }
0x21aa   :  { %9099 = vtanh.f32 %v6693_v29  ;;  %6699 = vst [vmem:[#allocation3 + $0x8] sm:$0xff] %v6693_v29  ;;  %v6690_v32 = vmul.f32 %v9096_v30, %v6688_v26  ;;  %v9098_v35 = vpop.eup %9097 }
0x21ab   :  { %9101 = vrcp.f32 %v6672_v31 }
0x21ac   :  { %v6694_v33 = vadd.f32 %v6692_v61, %v6690_v32 }
0x21ae   :  { %9103 = vtanh.f32 %v6694_v33  ;;  %6700 = vst [vmem:[#allocation3] sm:$0xff] %v6694_v33 }
0x21b7   :  { %v9100_v36 = vpop.eup %9099 }
0x21b8   :  { %v6697_v39 = vmul.f32 %v9100_v36, %v9098_v35  ;;  %v9102_v46 = vpop.eup %9101 }
0x21ba   :  { %6701 = vst [vmem:[#allocation2] sm:$0xff] %v6697_v39 }
0x21bb   :  { %v9104_v47 = vpop.eup %9103 }
0x21bc   :  { %v6698_v50 = vmul.f32 %v9104_v47, %v9102_v46 }
0x21be   :  { %6702 = vst [vmem:[#allocation2 + $0x8] sm:$0xff] %v6698_v50  ;;  %v6703_v51 = vpack.c.bf16 %v6698_v50, %v6697_v39 }
0x21c0   :  { %8051 = vmatmul.mubr.bf16.vlgmr.msra.gmra.mxu0 %v6703_v51 }
0x2280   :  { %v6809_v55 = vpop.f32.mrf.mxu0 }
0x2281   :  { %v6810_v58 = vadd.f32 %v7643_v54, %v6809_v55 }
0x2282   :  { %v8052_v59 = vpop.f32.mrf.mxu0 }
0x2283   :  { %7652 = vst [vmem:[%s11326_s10 + $0x60] sm:$0xff] %v6810_v58  ;;  %6823 = sbr.rel (%p7655_p9) target bundleno = 9471 (0x24ff), region = 121 }
0x2284   :  { %v6812_v62 = vpop.f32.mrf.mxu0 }
0x2285   :  { %v6813_v63 = vadd.f32 %v7643_v54, %v6812_v62 }
0x2286   :  { %v8053_v0 = vpop.f32.mrf.mxu0 }
0x2287   :  { %7653 = vst [vmem:[%s11326_s10 + $0x68] sm:$0xff] %v6813_v63 }
0x2288   :  { %6826 = vmax.xlane.f32.xlu0 %v6810_v58  ;;  %v11286_v1 = vand.u32 127, %v104_v34  ;;  %v9105_v27 = vld [vmem:[%s11321_s5 + $0x38] sm:$0xff]   ;;  %v9155_v34 = vmov 0.0   ;;  %v9106_v40 = vld [vmem:[%s11321_s5 + $0x30] sm:$0xff]   ;;  %v9107_v41 = vld [vmem:[%s11321_s5 + $0x28] sm:$0xff]   ;;  %vm9156_vm7 = vmmov 0  }
0x2289   :  { %8054 = vmatprep.subr.bf16.mxu0 %v9155_v34  ;;  %v9108_v9 = vld [vmem:[%s11321_s5 + $0x20] sm:$0xff]   ;;  %v9109_v42 = vld [vmem:[%s11321_s5 + $0x18] sm:$0xff]   ;;  %v9110_v43 = vld [vmem:[%s11321_s5 + $0x10] sm:$0xff]   ;;  %8070 = vmatprep.mubr.msk.bf16.mxu0 %vm9156_vm7, %v9155_v34  ;;  %v9157_v23 = vmov 1.0|1.0  }
0x228a   :  { %8055 = vmatpush3.bf16.msra.mxu0 %v9105_v27  ;;  %v9111_v48 = vld [vmem:[%s11321_s5 + $0x8] sm:$0xff]   ;;  %v9112_v15 = vld [vmem:[%s11321_s5] sm:$0xff]  }
0x228b   :  { %8056 = vmatprep.subr.bf16.mxu0 %v9155_v34 }
0x228c   :  { %6828 = vmax.xlane.f32.xlu0 %v6813_v63 }
0x228e   :  { %8057 = vmatpush3.bf16.msra.mxu0 %v9106_v40 }
0x228f   :  { %8058 = vmatprep.subr.bf16.mxu0 %v9155_v34 }
0x2292   :  { %8059 = vmatpush3.bf16.msra.mxu0 %v9107_v41 }
0x2293   :  { %8060 = vmatprep.subr.bf16.mxu0 %v9155_v34 }
0x2296   :  { %8061 = vmatpush3.bf16.msra.mxu0 %v9108_v9 }
0x2297   :  { %8062 = vmatprep.subr.bf16.mxu0 %v9155_v34 }
0x229a   :  { %8063 = vmatpush3.bf16.msra.mxu0 %v9109_v42 }
0x229b   :  { %8064 = vmatprep.subr.bf16.mxu0 %v9155_v34 }
0x229e   :  { %8065 = vmatpush3.bf16.msra.mxu0 %v9110_v43 }
0x229f   :  { %8066 = vmatprep.subr.bf16.mxu0 %v9155_v34 }
0x22a2   :  { %8067 = vmatpush3.bf16.msra.mxu0 %v9111_v48 }
0x22a3   :  { %8068 = vmatprep.subr.bf16.mxu0 %v9155_v34 }
0x22a6   :  { %8069 = vmatpush3.bf16.msra.mxu0 %v9112_v15 }
0x2311   :  { %v6827_v3 = vpop.xlane.xlu0 %6826 }
0x2312   :  { %vm6830_vm0 = vcmp.eq.f32.partialorder %v6810_v58, %v6827_v3 }
0x2313   :  { %v6832_v4 = vsel %vm6830_vm0, %v11286_v1, 128 }
0x2314   :  { %v6835_v5 = vshra.s32 %v6832_v4, 16  ;;  %v6834_v10 = vand.u32 65535, %v6832_v4 }
0x2315   :  { %v6829_v6 = vpop.xlane.xlu0 %6828 }
0x2316   :  { %vm6831_vm4 = vcmp.eq.f32.partialorder %v6813_v63, %v6829_v6  ;;  %v6837_v7 = vcvt.s32.f32 %v6835_v5  ;;  %v6836_v2 = vcvt.s32.f32 %v6834_v10 }
0x2317   :  { %v6833_v37 = vsel %vm6831_vm4, %v11286_v1, 128 }
0x2318   :  { %6838 = vmin.xlane.f32.xlu1 %v6837_v7  ;;  %v6849_v38 = vshra.s32 %v6833_v37, 16  ;;  %v6848_v11 = vand.u32 65535, %v6833_v37 }
0x231a   :  { %v6851_v8 = vcvt.s32.f32 %v6849_v38  ;;  %v6850_v13 = vcvt.s32.f32 %v6848_v11 }
0x231c   :  { %6852 = vmin.xlane.f32.xlu1 %v6851_v8 }
0x23a1   :  { %v6839_v12 = vpop.xlane.xlu1 %6838 }
0x23a2   :  { %vm6840_vm5 = vcmp.eq.f32.partialorder %v6837_v7, %v6839_v12  ;;  %v6845_v16 = vcvt.f32.s32 %v6839_v12 }
0x23a3   :  { %v6841_v44 = vsel %vm6840_vm5, %v6836_v2, inf }
0x23a4   :  { %6842 = vmin.xlane.f32.xlu0 %v6841_v44  ;;  %v6846_v19 = vshll.u32 %v6845_v16, 16 }
0x23a5   :  { %v6853_v45 = vpop.xlane.xlu1 %6852 }
0x23a6   :  { %vm6854_vm6 = vcmp.eq.f32.partialorder %v6851_v8, %v6853_v45  ;;  %v6859_v17 = vcvt.f32.s32 %v6853_v45 }
0x23a7   :  { %v6855_v14 = vsel %vm6854_vm6, %v6850_v13, inf }
0x23a8   :  { %6856 = vmin.xlane.f32.xlu1 %v6855_v14  ;;  %v6860_v20 = vshll.u32 %v6859_v17, 16 }
0x242d   :  { %v6843_v52 = vpop.xlane.xlu0 %6842 }
0x242e   :  { %v6844_v18 = vcvt.f32.s32 %v6843_v52 }
0x2430   :  { %v6847_v21 = vadd.s32 %v6846_v19, %v6844_v18 }
0x2431   :  { %v6857_v56 = vpop.xlane.xlu1 %6856 }
0x2432   :  { %v6858_v60 = vcvt.f32.s32 %v6857_v56  ;;  %vm6862_vm8 = vcmp.eq.s32.totalorder %v11286_v1, %v6847_v21 }
0x2434   :  { %v6861_v22 = vadd.s32 %v6860_v20, %v6858_v60 }
0x2436   :  { %vm6863_vm9 = vcmp.eq.s32.totalorder %v11286_v1, %v6861_v22 }
0x2437   :  { %vm7666_vm10 = vmpackc.low %vm6863_vm9, %vm6862_vm8 }
0x2438   :  { %8071 = vmatmul.mubr.msk.bf16.vlgmr.msra.gmra.mxu0 %vm7666_vm10, %v9157_v23 }
0x24f8   :  { %v6967_v49 = vpop.f32.mrf.mxu0 }
0x24f9   :  { %6974 = vst [vmem:[#allocation4 + $0x8] sm:$0xff] %v6967_v49 }
0x24fa   :  { %v8072_v24 = vpop.f32.mrf.mxu0 }
0x24fc   :  { %v6970_v57 = vpop.f32.mrf.mxu0 }
0x24fd   :  { %6975 = vst [vmem:[#allocation4] sm:$0xff] %v6970_v57 }
0x24fe   :  { %v8073_v53 = vpop.f32.mrf.mxu0 }
0x24ff PF:  { %6980 = vsyncpa [#allocation8], 1 }

</bundles_post_ra>
